<compile_context>
chip_gen: v7x
topology: tpu7x:2x2x1
jax: 0.10.0
libtpu: 0.0.40
codegen_flags: <defaults>
</compile_context>

<pallas_src>
import math

import numpy as np
import jax
import jax.numpy as jnp
from jax.experimental import pallas as pl
from jax.experimental.pallas import tpu as pltpu

# ----------------------------- small configuration ---------------------------
B = 2                  # batch
INPUT_SIZE = 16        # sequence length of the finest scale
WINDOW = [2, 2, 2]     # pyramid window sizes
INNER_SIZE = 3         # intra-scale neighbourhood
D_MODEL = 32
D_INNER_HID = 64
D_K = 8
D_V = 8
N_HEAD = 4
N_LAYER = 2
COV_SIZE = 3
NUM_SEQ = 4
INV_TEMP = 1.0 / math.sqrt(D_K)

VMEM = pl.BlockSpec(memory_space=pltpu.MemorySpace.VMEM)


# --------------------------- static structures (numpy) -----------------------
def get_mask(input_size, window_size, inner_size):
    all_size = [input_size]
    for w in window_size:
        all_size.append(all_size[-1] // w)
    seq_len = sum(all_size)
    mask = np.zeros((seq_len, seq_len), dtype=np.float32)

    inner_window = inner_size // 2
    for layer_idx in range(len(all_size)):
        start = sum(all_size[:layer_idx])
        for i in range(start, start + all_size[layer_idx]):
            left = max(i - inner_window, start)
            right = min(i + inner_window + 1, start + all_size[layer_idx])
            mask[i, left:right] = 1

    for layer_idx in range(1, len(all_size)):
        start = sum(all_size[:layer_idx])
        for i in range(start, start + all_size[layer_idx]):
            left = (start - all_size[layer_idx - 1]) + (i - start) * window_size[layer_idx - 1]
            if i == start + all_size[layer_idx] - 1:
                right = start
            else:
                right = (start - all_size[layer_idx - 1]) + (i - start + 1) * window_size[layer_idx - 1]
            mask[i, left:right] = 1
            mask[left:right, i] = 1

    return (1.0 - mask).astype(np.float32), all_size   # 1.0 where attention is masked


def refer_points(all_sizes, window_size):
    input_size = all_sizes[0]
    indexes = np.zeros((input_size, len(all_sizes)), dtype=np.int32)
    for i in range(input_size):
        indexes[i, 0] = i
        former = i
        for j in range(1, len(all_sizes)):
            start = sum(all_sizes[:j])
            inner_idx = former - (start - all_sizes[j - 1])
            former = start + min(inner_idx // window_size[j - 1], all_sizes[j] - 1)
            indexes[i, j] = former
    return indexes


def make_position_embedding(length, d_model):
    position = np.arange(length, dtype=np.float64)[:, None]
    vec = np.array([math.pow(10000.0, 2.0 * (i // 2) / d_model) for i in range(d_model)],
                   dtype=np.float64)[None, :]
    r = position / vec
    pe = np.array(r)
    pe[:, 0::2] = np.sin(r[:, 0::2])
    pe[:, 1::2] = np.cos(r[:, 1::2])
    return pe.astype(np.float32)


MASK_NP, ALL_SIZE = get_mask(INPUT_SIZE, WINDOW, INNER_SIZE)
SEQ_LEN = sum(ALL_SIZE)                 # 30 real rows per batch
N_SCALES = len(ALL_SIZE)                # 4
PER_BATCH = 32                          # 30 padded to 32 (8-multiple)
ROWS_PAD = B * PER_BATCH                # 64 rows carried through the kernel
IDX_NP = refer_points(ALL_SIZE, WINDOW)
POS_EMB_NP = make_position_embedding(INPUT_SIZE, D_MODEL)
SCALE_OFFS = np.cumsum([0] + ALL_SIZE)  # [0, 16, 24, 28, 30]


# --------------------------- single constant-slab layout ---------------------
class _SlabLayout:
    """All constants live in one (rows, 128) f32 slab; blocks are 8-row aligned."""

    def __init__(self):
        self.off = {}
        self._rows = 0

    def add(self, name, r, c):
        assert c <= 128
        self.off[name] = (self._rows, r, c)
        self._rows += ((r + 7) // 8) * 8

    @property
    def rows(self):
        return self._rows


_LAYOUT = _SlabLayout()
_LAYOUT.add('embed_w', 8, D_MODEL)
_LAYOUT.add('embed_bias', B * INPUT_SIZE, D_MODEL)
_LAYOUT.add('down_w', D_MODEL, D_K)
_LAYOUT.add('conv_w', D_K, D_K * sum(WINDOW))           # BN-folded, tap-blocked per scale
_LAYOUT.add('conv_b', len(WINDOW), D_K)
for _i, _w in enumerate(WINDOW):
    _LAYOUT.add(f'sel{_i}', B * ALL_SIZE[_i + 1], _w * B * ALL_SIZE[_i])
_LAYOUT.add('place', ROWS_PAD, sum(B * s for s in ALL_SIZE))   # (64, 60)
_LAYOUT.add('up_w', D_K, D_MODEL)
_LAYOUT.add('up_bias', ROWS_PAD, D_MODEL)
_LAYOUT.add('cscm_ln', 2, D_MODEL)
_LAYOUT.add('mask', ROWS_PAD, ROWS_PAD)
for _l in range(N_LAYER):
    _LAYOUT.add(f'l{_l}_wqk', D_MODEL, 2 * N_HEAD * D_K)       # [Wq/sqrt(dk) | Wk]
    _LAYOUT.add(f'l{_l}_wvf', D_MODEL, N_HEAD * D_MODEL)       # fc folded into per-head V
    _LAYOUT.add(f'l{_l}_w1', D_MODEL, D_INNER_HID)
    _LAYOUT.add(f'l{_l}_w2', D_INNER_HID, D_MODEL)
    _LAYOUT.add(f'l{_l}_vec', 7, D_INNER_HID)                  # biases / LN params
_LAYOUT.add('gmat', N_SCALES * B * INPUT_SIZE, ROWS_PAD)       # stacked gather one-hots
_LAYOUT.add('wpred', D_MODEL, 2 * N_SCALES)                    # lanes: [m0 v0 m1 v1 ...]

_SLAB_OFF = _LAYOUT.off
SLAB_ROWS = _LAYOUT.rows
assert SLAB_ROWS % 8 == 0


# ------------------------------- in-kernel math helpers ----------------------
def _gelu_tanh(x):
    c0 = np.float32(0.7978845608028654)   # sqrt(2/pi)
    c1 = np.float32(0.044715)
    return 0.5 * x * (1.0 + jnp.tanh(c0 * (x + c1 * x * x * x)))


def _softplus(x):
    # overflow/underflow safe: max(x,0) + log(1 + exp(-|x|))
    return jnp.maximum(x, 0.0) + jnp.log(1.0 + jnp.exp(-jnp.abs(x)))


# ----------------------------------- fused kernel ----------------------------
def _fused_forward_kernel(embed_in_ref, slab_ref, out_ref):
    f32 = jnp.float32

    def blk(name):
        off, r, c = _SLAB_OFF[name]
        return slab_ref[off:off + r, 0:c]

    def mm(a, b):
        return jnp.dot(a, b, preferred_element_type=f32)

    def layer_norm(x, g, b, eps):
        mu = jnp.mean(x, axis=-1, keepdims=True)
        var = jnp.mean((x - mu) ** 2, axis=-1, keepdims=True)
        return (x - mu) * jax.lax.rsqrt(var + eps) * g + b

    # ---------------- embedding: one fused matmul + precomputed bias slab ------
    fine = mm(embed_in_ref[...], blk('embed_w')) + blk('embed_bias')        # (32, 32)

    # ---------------- bottleneck (CSCM) ----------------------------------------
    x = mm(fine, blk('down_w'))                                             # (32, 8)
    conv_w = blk('conv_w')                                                  # (8, 48)
    conv_b = blk('conv_b')                                                  # (3, 8)
    place = blk('place')                                                    # (64, 60)
    sel_blks = tuple(blk(f'sel{i}') for i in range(len(WINDOW)))

    coarse = jnp.zeros((ROWS_PAD, D_K), f32)
    place_lane = B * ALL_SIZE[0]
    cw_off = 0
    for i, win in enumerate(WINDOW):
        t_in = B * ALL_SIZE[i]
        t_out = B * ALL_SIZE[i + 1]
        # all taps of the strided conv in ONE matmul (BN + biases folded at pack time)
        xw = mm(x, conv_w[:, cw_off:cw_off + win * D_K])                    # (t_in, win*8)
        sel = sel_blks[i]                                                   # (t_out, win*t_in)
        acc = conv_b[i:i + 1, :]
        for k in range(win):
            acc = acc + mm(sel[:, k * t_in:(k + 1) * t_in],
                           xw[:, k * D_K:(k + 1) * D_K])
        # ELU(alpha=1), exp clamped on the negative branch
        y = jnp.where(acc > 0.0, acc, jnp.exp(jnp.minimum(acc, 0.0)) - 1.0)
        coarse = coarse + mm(place[:, place_lane:place_lane + t_out], y)
        place_lane += t_out
        cw_off += win * D_K
        x = y

    seq = (mm(place[:, 0:B * ALL_SIZE[0]], fine)
           + mm(coarse, blk('up_w'))
           + blk('up_bias'))                                                # (64, 32)
    cscm_ln = blk('cscm_ln')
    seq = layer_norm(seq, cscm_ln[0:1, :], cscm_ln[1:2, :], 1e-5)

    # ---------------- encoder layers (post-norm, batch folded into rows) -------
    mask_bias = blk('mask')                                                 # (64, 64) additive

    def enc_layer(xin, l):
        wqk = blk(f'l{l}_wqk')                                              # (32, 64)
        wvf = blk(f'l{l}_wvf')                                              # (32, 128)
        w1 = blk(f'l{l}_w1')
        w2 = blk(f'l{l}_w2')
        vec = blk(f'l{l}_vec')
        fc_b = vec[0:1, :D_MODEL]
        ln1_g = vec[1:2, :D_MODEL]
        ln1_b = vec[2:3, :D_MODEL]
        b1 = vec[3:4, :D_INNER_HID]
        b2 = vec[4:5, :D_MODEL]
        ln2_g = vec[5:6, :D_MODEL]
        ln2_b = vec[6:7, :D_MODEL]

        qk = mm(xin, wqk)                                                   # (64, 64)
        vf = mm(xin, wvf)                                                   # (64, 128)
        y = xin + fc_b                                                      # residual + fc bias
        for h in range(N_HEAD):                                             # static unrolled
            qh = qk[:, h * D_K:(h + 1) * D_K]                               # 1/sqrt(dk) folded in
            kh = qk[:, N_HEAD * D_K + h * D_K: N_HEAD * D_K + (h + 1) * D_K]
            # q @ k^T without an explicit transpose (NT matmul on the MXU)
            s = jax.lax.dot_general(qh, kh, (((1,), (1,)), ((), ())),
                                    preferred_element_type=f32) + mask_bias
            s = s - jnp.max(s, axis=-1, keepdims=True)
            p = jnp.exp(s)
            p = p * pl.reciprocal(jnp.sum(p, axis=-1, keepdims=True), approx=True)
            # fc projection folded into the value projection -> no head concat
            y = y + mm(p, vf[:, h * D_MODEL:(h + 1) * D_MODEL])
        y = layer_norm(y, ln1_g, ln1_b, 1e-6)
        h1 = _gelu_tanh(mm(y, w1) + b1)
        h2 = mm(h1, w2) + b2
        return layer_norm(h2 + y, ln2_g, ln2_b, 1e-6)

    for l in range(N_LAYER):
        seq = enc_layer(seq, l)

    # ---------------- pyramid gather + mean/var predictors ---------------------
    pred = mm(seq, blk('wpred'))                                            # (64, 8)
    gmat = blk('gmat')                                                      # (128, 64)
    out = jnp.zeros((B * INPUT_SIZE, 2), f32)
    for j in range(N_SCALES):
        gj = gmat[j * B * INPUT_SIZE:(j + 1) * B * INPUT_SIZE, :]           # (32, 64)
        out = out + mm(gj, pred[:, 2 * j:2 * j + 2])                        # gather via one-hot
    out_ref[...] = _softplus(out)


# ------------------------------ parameter packing ----------------------------
def pack_params(p):
    """Fold / repack raw parameters into ONE lane-dense constant slab (done once)."""
    f32 = np.float32
    slab = np.zeros((SLAB_ROWS, 128), f32)

    def put(name, val):
        off, r, c = _SLAB_OFF[name]
        v = np.asarray(val, f32)
        assert v.shape == (r, c), (name, v.shape, (r, c))
        slab[off:off + r, :c] = v

    # embedding: merge cov-linear + circular data-conv into one (8, 32) weight,
    # fold position embedding + cov bias + data-conv bias into one bias slab
    put('embed_w', np.concatenate([np.asarray(p['cov_w']), np.asarray(p['data_w']),
                                   np.zeros((1, D_MODEL), f32)], axis=0))
    put('embed_bias', np.tile(POS_EMB_NP, (B, 1))
        + np.asarray(p['cov_b']) + np.asarray(p['data_b']))

    # bottleneck: fold eval-mode BatchNorm (and the down-proj bias) into conv
    put('down_w', p['down_w'])
    conv_w_blk = np.zeros((D_K, D_K * sum(WINDOW)), f32)
    conv_b_blk = np.zeros((len(WINDOW), D_K), f32)
    cw_off = 0
    for i, win in enumerate(WINDOW):
        s = np.asarray(p['bn_g'][i]) / np.sqrt(np.asarray(p['bn_v'][i]) + 1e-5)   # (1, 8)
        bf = (np.asarray(p['conv_b'][i]) - np.asarray(p['bn_m'][i])) * s + np.asarray(p['bn_b'][i])
        for k in range(win):
            wk = np.asarray(p['conv_w'][i])[:, :, k].T * s                  # (in, out), BN folded
            conv_w_blk[:, cw_off + k * D_K:cw_off + (k + 1) * D_K] = wk
            if i == 0:
                bf = bf + np.asarray(p['down_b']) @ wk                      # fold down-proj bias
        conv_b_blk[i] = bf[0]
        cw_off += win * D_K
    put('conv_w', conv_w_blk)
    put('conv_b', conv_b_blk)

    # per-scale tap selection one-hots (lane-blocked per tap)
    for i, win in enumerate(WINDOW):
        t_in_b, t_out_b = ALL_SIZE[i], ALL_SIZE[i + 1]
        t_in, t_out = B * t_in_b, B * t_out_b
        sel = np.zeros((t_out, win * t_in), f32)
        for b in range(B):
            for t in range(t_out_b):
                for k in range(win):
                    sel[b * t_out_b + t, k * t_in + b * t_in_b + win * t + k] = 1.0
        put(f'sel{i}', sel)

    # placement of each scale's rows into the padded per-batch pyramid layout
    place = np.zeros((ROWS_PAD, sum(B * s for s in ALL_SIZE)), f32)
    lane = 0
    for j, sz in enumerate(ALL_SIZE):
        for b in range(B):
            for t in range(sz):
                place[b * PER_BATCH + SCALE_OFFS[j] + t, lane + b * sz + t] = 1.0
        lane += B * sz
    put('place', place)

    put('up_w', p['up_w'])
    up_bias = np.zeros((ROWS_PAD, D_MODEL), f32)
    for b in range(B):
        up_bias[b * PER_BATCH + INPUT_SIZE:b * PER_BATCH + SEQ_LEN, :] = np.asarray(p['up_b'])
    put('up_bias', up_bias)
    put('cscm_ln', np.concatenate([np.asarray(p['cscm_ln_g']),
                                   np.asarray(p['cscm_ln_b'])], axis=0))

    # additive attention mask: 0 where allowed, -1e9 where masked / cross-batch / pad
    mask = np.full((ROWS_PAD, ROWS_PAD), -1e9, f32)
    for b in range(B):
        blkm = mask[b * PER_BATCH:b * PER_BATCH + SEQ_LEN,
                    b * PER_BATCH:b * PER_BATCH + SEQ_LEN]
        blkm[MASK_NP < 0.5] = 0.0
    put('mask', mask)

    # encoder layers: 1/sqrt(dk) folded into Wq, fc folded into per-head Wv
    for l, lp in enumerate(p['layers']):
        wq = np.asarray(lp['wq'])
        wk = np.asarray(lp['wk'])
        wv = np.asarray(lp['wv'])
        fc = np.asarray(lp['fc_w'])
        put(f'l{l}_wqk', np.concatenate([wq * np.float32(INV_TEMP), wk], axis=1))
        wvf = np.concatenate(
            [wv[:, h * D_V:(h + 1) * D_V] @ fc[h * D_V:(h + 1) * D_V, :] for h in range(N_HEAD)],
            axis=1)
        put(f'l{l}_wvf', wvf)
        put(f'l{l}_w1', lp['w1'])
        put(f'l{l}_w2', lp['w2'])
        vec = np.zeros((7, D_INNER_HID), f32)
        rows = [lp['fc_b'], lp['ln1_g'], lp['ln1_b'], lp['b1'], lp['b2'], lp['ln2_g'], lp['ln2_b']]
        for r, v in enumerate(rows):
            v = np.asarray(v)
            vec[r, :v.shape[1]] = v[0]
        put(f'l{l}_vec', vec)

    # stacked gather one-hots (scale-major rows)
    gmat = np.zeros((N_SCALES * B * INPUT_SIZE, ROWS_PAD), f32)
    for j in range(N_SCALES):
        for b in range(B):
            for i in range(INPUT_SIZE):
                gmat[j * B * INPUT_SIZE + b * INPUT_SIZE + i,
                     b * PER_BATCH + IDX_NP[i, j]] = 1.0
    put('gmat', gmat)

    # predictor weights, per-scale [mean|var] lane pairs
    wpred = np.zeros((D_MODEL, 2 * N_SCALES), f32)
    mw = np.asarray(p['mean_w'])
    vw = np.asarray(p['var_w'])
    for j in range(N_SCALES):
        wpred[:, 2 * j] = mw[j * D_MODEL:(j + 1) * D_MODEL, 0]
        wpred[:, 2 * j + 1] = vw[j * D_MODEL:(j + 1) * D_MODEL, 0]
    put('wpred', wpred)

    return jnp.asarray(slab)


# ----------------------------------- forward ---------------------------------
def forward(x_enc, slab):
    bsz, length, _ = x_enc.shape

    # im2col-style input prep (layout plumbing only; all matmuls run in-kernel)
    covs = x_enc[:, :, 1:1 + COV_SIZE]
    seq_ids = (x_enc[:, :, -1] / NUM_SEQ - 0.5)[..., None]
    x0 = x_enc[:, :, 0]
    # circular padding of the kernel-3 data conv
    dcol = jnp.stack([jnp.roll(x0, 1, axis=1), x0, jnp.roll(x0, -1, axis=1)], axis=-1)
    pad = jnp.zeros((bsz, length, 1), jnp.float32)
    embed_in = jnp.concatenate([covs, seq_ids, dcol, pad], axis=-1)
    embed_in = embed_in.reshape(bsz * length, COV_SIZE + 5)                 # (B*16, 8)

    out = pl.pallas_call(
        _fused_forward_kernel,
        out_shape=jax.ShapeDtypeStruct((bsz * INPUT_SIZE, 2), jnp.float32),
        in_specs=[VMEM, VMEM],
        out_specs=VMEM,
    )(embed_in, slab)

    mean_pre = out[:, 0].reshape(bsz, INPUT_SIZE)
    var_pre = out[:, 1].reshape(bsz, INPUT_SIZE)
    return mean_pre, var_pre


# ------------------------------ parameter init --------------------------------
def init_params(key):
    keys = iter(jax.random.split(key, 128))

    def nrm(shape, scale=0.1):
        return (scale * jax.random.normal(next(keys), shape)).astype(jnp.float32)

    p = {}
    # SingleStepEmbedding
    p['cov_w'] = nrm((COV_SIZE + 1, D_MODEL))
    p['cov_b'] = nrm((1, D_MODEL))
    p['data_w'] = nrm((3, D_MODEL))                    # Conv1d(1, d_model, 3) weight (k, out)
    p['data_b'] = nrm((1, D_MODEL))                    # Conv1d bias
    # Bottleneck_Construct (CSCM)
    p['down_w'] = nrm((D_MODEL, D_K)); p['down_b'] = nrm((1, D_K))
    p['up_w'] = nrm((D_K, D_MODEL));   p['up_b'] = nrm((1, D_MODEL))
    p['conv_w'] = [nrm((D_K, D_K, w)) for w in WINDOW]          # (out, in, k)
    p['conv_b'] = [nrm((1, D_K)) for _ in WINDOW]
    p['bn_g'] = [jnp.ones((1, D_K), jnp.float32) for _ in WINDOW]
    p['bn_b'] = [jnp.zeros((1, D_K), jnp.float32) for _ in WINDOW]
    p['bn_m'] = [jnp.zeros((1, D_K), jnp.float32) for _ in WINDOW]   # running mean (eval)
    p['bn_v'] = [jnp.ones((1, D_K), jnp.float32) for _ in WINDOW]    # running var  (eval)
    p['cscm_ln_g'] = jnp.ones((1, D_MODEL), jnp.float32)
    p['cscm_ln_b'] = jnp.zeros((1, D_MODEL), jnp.float32)
    # Encoder layers
    layers = []
    for _ in range(N_LAYER):
        layers.append({
            'wq': nrm((D_MODEL, N_HEAD * D_K)),
            'wk': nrm((D_MODEL, N_HEAD * D_K)),
            'wv': nrm((D_MODEL, N_HEAD * D_V)),
            'fc_w': nrm((N_HEAD * D_V, D_MODEL)),
            'fc_b': nrm((1, D_MODEL)),
            'ln1_g': jnp.ones((1, D_MODEL), jnp.float32),
            'ln1_b': jnp.zeros((1, D_MODEL), jnp.float32),
            'w1': nrm((D_MODEL, D_INNER_HID)),
            'b1': nrm((1, D_INNER_HID)),
            'w2': nrm((D_INNER_HID, D_MODEL)),
            'b2': nrm((1, D_MODEL)),
            'ln2_g': jnp.ones((1, D_MODEL), jnp.float32),
            'ln2_b': jnp.zeros((1, D_MODEL), jnp.float32),
        })
    p['layers'] = layers
    # Predictors (Linear(4*d_model, 1, bias=False))
    p['mean_w'] = nrm((N_SCALES * D_MODEL, 1))
    p['var_w'] = nrm((N_SCALES * D_MODEL, 1))
    return p


# ----------------------------------- main -------------------------------------
if __name__ == "__main__":
    key = jax.random.PRNGKey(0)
    pkey, dkey, ckey, skey = jax.random.split(key, 4)

    params = init_params(pkey)
    slab = pack_params(params)         # BN folding / fc folding / slab packing, done once

    # x_enc columns: [data, covariates (COV_SIZE), sequence id]
    data_col = jax.random.normal(dkey, (B, INPUT_SIZE, 1), dtype=jnp.float32)
    cov_cols = jax.random.normal(ckey, (B, INPUT_SIZE, COV_SIZE), dtype=jnp.float32)
    seq_id = jax.random.randint(skey, (B, INPUT_SIZE, 1), 0, NUM_SEQ).astype(jnp.float32)
    x_enc = jnp.concatenate([data_col, cov_cols, seq_id], axis=-1)   # (2, 16, 5)

    fwd = jax.jit(forward)
    mean_pre, var_pre = fwd(x_enc, slab)
    jax.block_until_ready((mean_pre, var_pre))

    assert mean_pre.shape == (B, INPUT_SIZE) and var_pre.shape == (B, INPUT_SIZE)
    assert bool(jnp.all(jnp.isfinite(mean_pre))) and bool(jnp.all(jnp.isfinite(var_pre)))
    assert bool(jnp.all(var_pre >= 0.0))
    print("KERNEL_OK")
</pallas_src>

<mosaic_0001>
module attributes {stable_mosaic.version = 11 : i64} {
  func.func @_fused_forward_kernel(%arg0: memref<32x8xf32, #tpu.memory_space<vmem>>, %arg1: memref<824x128xf32, #tpu.memory_space<vmem>>, %arg2: memref<32x2xf32, #tpu.memory_space<vmem>>) attributes {dimension_semantics = [], scalar_prefetch = 0 : i64, scratch_operands = 0 : i64, tpu.core_type = #tpu.core_type<tc>} {
    %c0 = arith.constant 0 : index
    %c0_0 = arith.constant 0 : index
    %0 = vector.load %arg0[%c0, %c0_0] : memref<32x8xf32, #tpu.memory_space<vmem>>, vector<32x8xf32>
    %c0_1 = arith.constant 0 : index
    %c0_2 = arith.constant 0 : index
    %1 = vector.load %arg1[%c0_1, %c0_2] : memref<824x128xf32, #tpu.memory_space<vmem>>, vector<8x32xf32>
    %cst = arith.constant dense<0.000000e+00> : vector<32x32xf32>
    %2 = tpu.matmul %0, %1, %cst {dimension_numbers = #tpu.dot_dimension_numbers<[1], [0], [0], [1], [0, 0, 1, 1], [], []>} : vector<32x8xf32>, vector<8x32xf32>, vector<32x32xf32> -> vector<32x32xf32>
    %c8 = arith.constant 8 : index
    %c0_3 = arith.constant 0 : index
    %3 = vector.load %arg1[%c8, %c0_3] : memref<824x128xf32, #tpu.memory_space<vmem>>, vector<32x32xf32>
    %4 = arith.addf %2, %3 : vector<32x32xf32>
    %c40 = arith.constant 40 : index
    %c0_4 = arith.constant 0 : index
    %5 = vector.load %arg1[%c40, %c0_4] : memref<824x128xf32, #tpu.memory_space<vmem>>, vector<32x8xf32>
    %cst_5 = arith.constant dense<0.000000e+00> : vector<32x8xf32>
    %6 = tpu.matmul %4, %5, %cst_5 {dimension_numbers = #tpu.dot_dimension_numbers<[1], [0], [0], [1], [0, 0, 1, 1], [], []>} : vector<32x32xf32>, vector<32x8xf32>, vector<32x8xf32> -> vector<32x8xf32>
    %c72 = arith.constant 72 : index
    %c0_6 = arith.constant 0 : index
    %7 = vector.load %arg1[%c72, %c0_6] : memref<824x128xf32, #tpu.memory_space<vmem>>, vector<8x48xf32>
    %c80 = arith.constant 80 : index
    %c0_7 = arith.constant 0 : index
    %8 = vector.load %arg1[%c80, %c0_7] : memref<824x128xf32, #tpu.memory_space<vmem>>, vector<3x8xf32>
    %c120 = arith.constant 120 : index
    %c0_8 = arith.constant 0 : index
    %9 = vector.load %arg1[%c120, %c0_8] : memref<824x128xf32, #tpu.memory_space<vmem>>, vector<64x60xf32>
    %c88 = arith.constant 88 : index
    %c0_9 = arith.constant 0 : index
    %10 = vector.load %arg1[%c88, %c0_9] : memref<824x128xf32, #tpu.memory_space<vmem>>, vector<16x64xf32>
    %c104 = arith.constant 104 : index
    %c0_10 = arith.constant 0 : index
    %11 = vector.load %arg1[%c104, %c0_10] : memref<824x128xf32, #tpu.memory_space<vmem>>, vector<8x32xf32>
    %c112 = arith.constant 112 : index
    %c0_11 = arith.constant 0 : index
    %12 = vector.load %arg1[%c112, %c0_11] : memref<824x128xf32, #tpu.memory_space<vmem>>, vector<4x16xf32>
    %cst_12 = arith.constant 0.000000e+00 : f32
    %13 = vector.broadcast %cst_12 : f32 to vector<64x8xf32>
    %14 = vector.extract_strided_slice %7 {offsets = [0, 0], sizes = [8, 16], strides = [1, 1]} : vector<8x48xf32> to vector<8x16xf32>
    %cst_13 = arith.constant dense<0.000000e+00> : vector<32x16xf32>
    %15 = tpu.matmul %6, %14, %cst_13 {dimension_numbers = #tpu.dot_dimension_numbers<[1], [0], [0], [1], [0, 0, 1, 1], [], []>} : vector<32x8xf32>, vector<8x16xf32>, vector<32x16xf32> -> vector<32x16xf32>
    %16 = vector.extract_strided_slice %8 {offsets = [0, 0], sizes = [1, 8], strides = [1, 1]} : vector<3x8xf32> to vector<1x8xf32>
    %17 = vector.extract_strided_slice %10 {offsets = [0, 0], sizes = [16, 32], strides = [1, 1]} : vector<16x64xf32> to vector<16x32xf32>
    %18 = vector.extract_strided_slice %15 {offsets = [0, 0], sizes = [32, 8], strides = [1, 1]} : vector<32x16xf32> to vector<32x8xf32>
    %cst_14 = arith.constant dense<0.000000e+00> : vector<16x8xf32>
    %19 = tpu.matmul %17, %18, %cst_14 {dimension_numbers = #tpu.dot_dimension_numbers<[1], [0], [0], [1], [0, 0, 1, 1], [], []>} : vector<16x32xf32>, vector<32x8xf32>, vector<16x8xf32> -> vector<16x8xf32>
    %20 = vector.broadcast %16 : vector<1x8xf32> to vector<16x8xf32>
    %21 = arith.addf %20, %19 : vector<16x8xf32>
    %22 = vector.extract_strided_slice %10 {offsets = [0, 32], sizes = [16, 32], strides = [1, 1]} : vector<16x64xf32> to vector<16x32xf32>
    %23 = vector.extract_strided_slice %15 {offsets = [0, 8], sizes = [32, 8], strides = [1, 1]} : vector<32x16xf32> to vector<32x8xf32>
    %cst_15 = arith.constant dense<0.000000e+00> : vector<16x8xf32>
    %24 = tpu.matmul %22, %23, %cst_15 {dimension_numbers = #tpu.dot_dimension_numbers<[1], [0], [0], [1], [0, 0, 1, 1], [], []>} : vector<16x32xf32>, vector<32x8xf32>, vector<16x8xf32> -> vector<16x8xf32>
    %25 = arith.addf %21, %24 : vector<16x8xf32>
    %cst_16 = arith.constant 0.000000e+00 : f32
    %26 = vector.broadcast %cst_16 : f32 to vector<16x8xf32>
    %27 = arith.cmpf ogt, %25, %26 : vector<16x8xf32>
    %cst_17 = arith.constant 0.000000e+00 : f32
    %28 = vector.broadcast %cst_17 : f32 to vector<16x8xf32>
    %29 = arith.minimumf %25, %28 : vector<16x8xf32>
    %30 = math.exp %29 : vector<16x8xf32>
    %cst_18 = arith.constant 1.000000e+00 : f32
    %31 = vector.broadcast %cst_18 : f32 to vector<16x8xf32>
    %32 = arith.subf %30, %31 : vector<16x8xf32>
    %33 = arith.select %27, %25, %32 : vector<16x8xi1>, vector<16x8xf32>
    %34 = vector.extract_strided_slice %9 {offsets = [0, 32], sizes = [64, 16], strides = [1, 1]} : vector<64x60xf32> to vector<64x16xf32>
    %cst_19 = arith.constant dense<0.000000e+00> : vector<64x8xf32>
    %35 = tpu.matmul %34, %33, %cst_19 {dimension_numbers = #tpu.dot_dimension_numbers<[1], [0], [0], [1], [0, 0, 1, 1], [], []>} : vector<64x16xf32>, vector<16x8xf32>, vector<64x8xf32> -> vector<64x8xf32>
    %36 = arith.addf %13, %35 : vector<64x8xf32>
    %37 = vector.extract_strided_slice %7 {offsets = [0, 16], sizes = [8, 16], strides = [1, 1]} : vector<8x48xf32> to vector<8x16xf32>
    %cst_20 = arith.constant dense<0.000000e+00> : vector<16x16xf32>
    %38 = tpu.matmul %33, %37, %cst_20 {dimension_numbers = #tpu.dot_dimension_numbers<[1], [0], [0], [1], [0, 0, 1, 1], [], []>} : vector<16x8xf32>, vector<8x16xf32>, vector<16x16xf32> -> vector<16x16xf32>
    %39 = vector.extract_strided_slice %8 {offsets = [1, 0], sizes = [1, 8], strides = [1, 1]} : vector<3x8xf32> to vector<1x8xf32>
    %40 = vector.extract_strided_slice %11 {offsets = [0, 0], sizes = [8, 16], strides = [1, 1]} : vector<8x32xf32> to vector<8x16xf32>
    %41 = vector.extract_strided_slice %38 {offsets = [0, 0], sizes = [16, 8], strides = [1, 1]} : vector<16x16xf32> to vector<16x8xf32>
    %cst_21 = arith.constant dense<0.000000e+00> : vector<8x8xf32>
    %42 = tpu.matmul %40, %41, %cst_21 {dimension_numbers = #tpu.dot_dimension_numbers<[1], [0], [0], [1], [0, 0, 1, 1], [], []>} : vector<8x16xf32>, vector<16x8xf32>, vector<8x8xf32> -> vector<8x8xf32>
    %43 = vector.broadcast %39 : vector<1x8xf32> to vector<8x8xf32>
    %44 = arith.addf %43, %42 : vector<8x8xf32>
    %45 = vector.extract_strided_slice %11 {offsets = [0, 16], sizes = [8, 16], strides = [1, 1]} : vector<8x32xf32> to vector<8x16xf32>
    %46 = vector.extract_strided_slice %38 {offsets = [0, 8], sizes = [16, 8], strides = [1, 1]} : vector<16x16xf32> to vector<16x8xf32>
    %cst_22 = arith.constant dense<0.000000e+00> : vector<8x8xf32>
    %47 = tpu.matmul %45, %46, %cst_22 {dimension_numbers = #tpu.dot_dimension_numbers<[1], [0], [0], [1], [0, 0, 1, 1], [], []>} : vector<8x16xf32>, vector<16x8xf32>, vector<8x8xf32> -> vector<8x8xf32>
    %48 = arith.addf %44, %47 : vector<8x8xf32>
    %cst_23 = arith.constant 0.000000e+00 : f32
    %49 = vector.broadcast %cst_23 : f32 to vector<8x8xf32>
    %50 = arith.cmpf ogt, %48, %49 : vector<8x8xf32>
    %cst_24 = arith.constant 0.000000e+00 : f32
    %51 = vector.broadcast %cst_24 : f32 to vector<8x8xf32>
    %52 = arith.minimumf %48, %51 : vector<8x8xf32>
    %53 = math.exp %52 : vector<8x8xf32>
    %cst_25 = arith.constant 1.000000e+00 : f32
    %54 = vector.broadcast %cst_25 : f32 to vector<8x8xf32>
    %55 = arith.subf %53, %54 : vector<8x8xf32>
    %56 = arith.select %50, %48, %55 : vector<8x8xi1>, vector<8x8xf32>
    %57 = vector.extract_strided_slice %9 {offsets = [0, 48], sizes = [64, 8], strides = [1, 1]} : vector<64x60xf32> to vector<64x8xf32>
    %cst_26 = arith.constant dense<0.000000e+00> : vector<64x8xf32>
    %58 = tpu.matmul %57, %56, %cst_26 {dimension_numbers = #tpu.dot_dimension_numbers<[1], [0], [0], [1], [0, 0, 1, 1], [], []>} : vector<64x8xf32>, vector<8x8xf32>, vector<64x8xf32> -> vector<64x8xf32>
    %59 = arith.addf %36, %58 : vector<64x8xf32>
    %60 = vector.extract_strided_slice %7 {offsets = [0, 32], sizes = [8, 16], strides = [1, 1]} : vector<8x48xf32> to vector<8x16xf32>
    %cst_27 = arith.constant dense<0.000000e+00> : vector<8x16xf32>
    %61 = tpu.matmul %56, %60, %cst_27 {dimension_numbers = #tpu.dot_dimension_numbers<[1], [0], [0], [1], [0, 0, 1, 1], [], []>} : vector<8x8xf32>, vector<8x16xf32>, vector<8x16xf32> -> vector<8x16xf32>
    %62 = vector.extract_strided_slice %8 {offsets = [2, 0], sizes = [1, 8], strides = [1, 1]} : vector<3x8xf32> to vector<1x8xf32>
    %63 = vector.extract_strided_slice %12 {offsets = [0, 0], sizes = [4, 8], strides = [1, 1]} : vector<4x16xf32> to vector<4x8xf32>
    %64 = vector.extract_strided_slice %61 {offsets = [0, 0], sizes = [8, 8], strides = [1, 1]} : vector<8x16xf32> to vector<8x8xf32>
    %cst_28 = arith.constant dense<0.000000e+00> : vector<4x8xf32>
    %65 = tpu.matmul %63, %64, %cst_28 {dimension_numbers = #tpu.dot_dimension_numbers<[1], [0], [0], [1], [0, 0, 1, 1], [], []>} : vector<4x8xf32>, vector<8x8xf32>, vector<4x8xf32> -> vector<4x8xf32>
    %66 = vector.broadcast %62 : vector<1x8xf32> to vector<4x8xf32>
    %67 = arith.addf %66, %65 : vector<4x8xf32>
    %68 = vector.extract_strided_slice %12 {offsets = [0, 8], sizes = [4, 8], strides = [1, 1]} : vector<4x16xf32> to vector<4x8xf32>
    %69 = vector.extract_strided_slice %61 {offsets = [0, 8], sizes = [8, 8], strides = [1, 1]} : vector<8x16xf32> to vector<8x8xf32>
    %cst_29 = arith.constant dense<0.000000e+00> : vector<4x8xf32>
    %70 = tpu.matmul %68, %69, %cst_29 {dimension_numbers = #tpu.dot_dimension_numbers<[1], [0], [0], [1], [0, 0, 1, 1], [], []>} : vector<4x8xf32>, vector<8x8xf32>, vector<4x8xf32> -> vector<4x8xf32>
    %71 = arith.addf %67, %70 : vector<4x8xf32>
    %cst_30 = arith.constant 0.000000e+00 : f32
    %72 = vector.broadcast %cst_30 : f32 to vector<4x8xf32>
    %73 = arith.cmpf ogt, %71, %72 : vector<4x8xf32>
    %cst_31 = arith.constant 0.000000e+00 : f32
    %74 = vector.broadcast %cst_31 : f32 to vector<4x8xf32>
    %75 = arith.minimumf %71, %74 : vector<4x8xf32>
    %76 = math.exp %75 : vector<4x8xf32>
    %cst_32 = arith.constant 1.000000e+00 : f32
    %77 = vector.broadcast %cst_32 : f32 to vector<4x8xf32>
    %78 = arith.subf %76, %77 : vector<4x8xf32>
    %79 = arith.select %73, %71, %78 : vector<4x8xi1>, vector<4x8xf32>
    %80 = vector.extract_strided_slice %9 {offsets = [0, 56], sizes = [64, 4], strides = [1, 1]} : vector<64x60xf32> to vector<64x4xf32>
    %cst_33 = arith.constant dense<0.000000e+00> : vector<64x8xf32>
    %81 = tpu.matmul %80, %79, %cst_33 {dimension_numbers = #tpu.dot_dimension_numbers<[1], [0], [0], [1], [0, 0, 1, 1], [], []>} : vector<64x4xf32>, vector<4x8xf32>, vector<64x8xf32> -> vector<64x8xf32>
    %82 = arith.addf %59, %81 : vector<64x8xf32>
    %83 = vector.extract_strided_slice %9 {offsets = [0, 0], sizes = [64, 32], strides = [1, 1]} : vector<64x60xf32> to vector<64x32xf32>
    %cst_34 = arith.constant dense<0.000000e+00> : vector<64x32xf32>
    %84 = tpu.matmul %83, %4, %cst_34 {dimension_numbers = #tpu.dot_dimension_numbers<[1], [0], [0], [1], [0, 0, 1, 1], [], []>} : vector<64x32xf32>, vector<32x32xf32>, vector<64x32xf32> -> vector<64x32xf32>
    %c184 = arith.constant 184 : index
    %c0_35 = arith.constant 0 : index
    %85 = vector.load %arg1[%c184, %c0_35] : memref<824x128xf32, #tpu.memory_space<vmem>>, vector<8x32xf32>
    %cst_36 = arith.constant dense<0.000000e+00> : vector<64x32xf32>
    %86 = tpu.matmul %82, %85, %cst_36 {dimension_numbers = #tpu.dot_dimension_numbers<[1], [0], [0], [1], [0, 0, 1, 1], [], []>} : vector<64x8xf32>, vector<8x32xf32>, vector<64x32xf32> -> vector<64x32xf32>
    %87 = arith.addf %84, %86 : vector<64x32xf32>
    %c192 = arith.constant 192 : index
    %c0_37 = arith.constant 0 : index
    %88 = vector.load %arg1[%c192, %c0_37] : memref<824x128xf32, #tpu.memory_space<vmem>>, vector<64x32xf32>
    %89 = arith.addf %87, %88 : vector<64x32xf32>
    %c256 = arith.constant 256 : index
    %c0_38 = arith.constant 0 : index
    %90 = vector.load %arg1[%c256, %c0_38] : memref<824x128xf32, #tpu.memory_space<vmem>>, vector<2x32xf32>
    %91 = vector.extract_strided_slice %90 {offsets = [0, 0], sizes = [1, 32], strides = [1, 1]} : vector<2x32xf32> to vector<1x32xf32>
    %92 = vector.extract_strided_slice %90 {offsets = [1, 0], sizes = [1, 32], strides = [1, 1]} : vector<2x32xf32> to vector<1x32xf32>
    %cst_39 = arith.constant dense<0.000000e+00> : vector<64xf32>
    %93 = vector.multi_reduction <add>, %89, %cst_39 [1] : vector<64x32xf32> to vector<64xf32>
    %94 = vector.shape_cast %93 : vector<64xf32> to vector<64x1xf32>
    %cst_40 = arith.constant 3.200000e+01 : f32
    %95 = vector.broadcast %cst_40 : f32 to vector<64x1xf32>
    %96 = arith.divf %94, %95 : vector<64x1xf32>
    %97 = vector.broadcast %96 : vector<64x1xf32> to vector<64x32xf32>
    %98 = arith.subf %89, %97 : vector<64x32xf32>
    %99 = arith.mulf %98, %98 : vector<64x32xf32>
    %cst_41 = arith.constant dense<0.000000e+00> : vector<64xf32>
    %100 = vector.multi_reduction <add>, %99, %cst_41 [1] : vector<64x32xf32> to vector<64xf32>
    %101 = vector.shape_cast %100 : vector<64xf32> to vector<64x1xf32>
    %cst_42 = arith.constant 3.200000e+01 : f32
    %102 = vector.broadcast %cst_42 : f32 to vector<64x1xf32>
    %103 = arith.divf %101, %102 : vector<64x1xf32>
    %104 = vector.broadcast %96 : vector<64x1xf32> to vector<64x32xf32>
    %105 = arith.subf %89, %104 : vector<64x32xf32>
    %cst_43 = arith.constant 9.99999974E-6 : f32
    %106 = vector.broadcast %cst_43 : f32 to vector<64x1xf32>
    %107 = arith.addf %103, %106 : vector<64x1xf32>
    %108 = math.rsqrt %107 : vector<64x1xf32>
    %109 = vector.broadcast %108 : vector<64x1xf32> to vector<64x32xf32>
    %110 = arith.mulf %105, %109 : vector<64x32xf32>
    %111 = vector.broadcast %91 : vector<1x32xf32> to vector<64x32xf32>
    %112 = arith.mulf %110, %111 : vector<64x32xf32>
    %113 = vector.broadcast %92 : vector<1x32xf32> to vector<64x32xf32>
    %114 = arith.addf %112, %113 : vector<64x32xf32>
    %c264 = arith.constant 264 : index
    %c0_44 = arith.constant 0 : index
    %115 = vector.load %arg1[%c264, %c0_44] : memref<824x128xf32, #tpu.memory_space<vmem>>, vector<64x64xf32>
    %c328 = arith.constant 328 : index
    %c0_45 = arith.constant 0 : index
    %116 = vector.load %arg1[%c328, %c0_45] : memref<824x128xf32, #tpu.memory_space<vmem>>, vector<32x64xf32>
    %c360 = arith.constant 360 : index
    %c0_46 = arith.constant 0 : index
    %117 = vector.load %arg1[%c360, %c0_46] : memref<824x128xf32, #tpu.memory_space<vmem>>, vector<32x128xf32>
    %c392 = arith.constant 392 : index
    %c0_47 = arith.constant 0 : index
    %118 = vector.load %arg1[%c392, %c0_47] : memref<824x128xf32, #tpu.memory_space<vmem>>, vector<32x64xf32>
    %c424 = arith.constant 424 : index
    %c0_48 = arith.constant 0 : index
    %119 = vector.load %arg1[%c424, %c0_48] : memref<824x128xf32, #tpu.memory_space<vmem>>, vector<64x32xf32>
    %c488 = arith.constant 488 : index
    %c0_49 = arith.constant 0 : index
    %120 = vector.load %arg1[%c488, %c0_49] : memref<824x128xf32, #tpu.memory_space<vmem>>, vector<7x64xf32>
    %121 = vector.extract_strided_slice %120 {offsets = [0, 0], sizes = [1, 32], strides = [1, 1]} : vector<7x64xf32> to vector<1x32xf32>
    %122 = vector.extract_strided_slice %120 {offsets = [1, 0], sizes = [1, 32], strides = [1, 1]} : vector<7x64xf32> to vector<1x32xf32>
    %123 = vector.extract_strided_slice %120 {offsets = [2, 0], sizes = [1, 32], strides = [1, 1]} : vector<7x64xf32> to vector<1x32xf32>
    %124 = vector.extract_strided_slice %120 {offsets = [3, 0], sizes = [1, 64], strides = [1, 1]} : vector<7x64xf32> to vector<1x64xf32>
    %125 = vector.extract_strided_slice %120 {offsets = [4, 0], sizes = [1, 32], strides = [1, 1]} : vector<7x64xf32> to vector<1x32xf32>
    %126 = vector.extract_strided_slice %120 {offsets = [5, 0], sizes = [1, 32], strides = [1, 1]} : vector<7x64xf32> to vector<1x32xf32>
    %127 = vector.extract_strided_slice %120 {offsets = [6, 0], sizes = [1, 32], strides = [1, 1]} : vector<7x64xf32> to vector<1x32xf32>
    %cst_50 = arith.constant dense<0.000000e+00> : vector<64x64xf32>
    %128 = tpu.matmul %114, %116, %cst_50 {dimension_numbers = #tpu.dot_dimension_numbers<[1], [0], [0], [1], [0, 0, 1, 1], [], []>} : vector<64x32xf32>, vector<32x64xf32>, vector<64x64xf32> -> vector<64x64xf32>
    %cst_51 = arith.constant dense<0.000000e+00> : vector<64x128xf32>
    %129 = tpu.matmul %114, %117, %cst_51 {dimension_numbers = #tpu.dot_dimension_numbers<[1], [0], [0], [1], [0, 0, 1, 1], [], []>} : vector<64x32xf32>, vector<32x128xf32>, vector<64x128xf32> -> vector<64x128xf32>
    %130 = vector.broadcast %121 : vector<1x32xf32> to vector<64x32xf32>
    %131 = arith.addf %114, %130 : vector<64x32xf32>
    %132 = vector.extract_strided_slice %128 {offsets = [0, 0], sizes = [64, 8], strides = [1, 1]} : vector<64x64xf32> to vector<64x8xf32>
    %133 = vector.extract_strided_slice %128 {offsets = [0, 32], sizes = [64, 8], strides = [1, 1]} : vector<64x64xf32> to vector<64x8xf32>
    %cst_52 = arith.constant dense<0.000000e+00> : vector<64x64xf32>
    %134 = tpu.matmul %132, %133, %cst_52 {dimension_numbers = #tpu.dot_dimension_numbers<[1], [1], [0], [0], [0, 0, 1, 0], [], []>} : vector<64x8xf32>, vector<64x8xf32>, vector<64x64xf32> -> vector<64x64xf32>
    %135 = arith.addf %134, %115 : vector<64x64xf32>
    %cst_53 = arith.constant dense<0xFF800000> : vector<64xf32>
    %136 = vector.multi_reduction <maximumf>, %135, %cst_53 [1] : vector<64x64xf32> to vector<64xf32>
    %137 = vector.shape_cast %136 : vector<64xf32> to vector<64x1xf32>
    %138 = vector.broadcast %137 : vector<64x1xf32> to vector<64x64xf32>
    %139 = arith.subf %135, %138 : vector<64x64xf32>
    %140 = math.exp %139 : vector<64x64xf32>
    %cst_54 = arith.constant dense<0.000000e+00> : vector<64xf32>
    %141 = vector.multi_reduction <add>, %140, %cst_54 [1] : vector<64x64xf32> to vector<64xf32>
    %142 = vector.shape_cast %141 : vector<64xf32> to vector<64x1xf32>
    %143 = tpu.reciprocal %142 {approx = true} : vector<64x1xf32> -> vector<64x1xf32>
    %144 = vector.broadcast %143 : vector<64x1xf32> to vector<64x64xf32>
    %145 = arith.mulf %140, %144 : vector<64x64xf32>
    %146 = vector.extract_strided_slice %129 {offsets = [0, 0], sizes = [64, 32], strides = [1, 1]} : vector<64x128xf32> to vector<64x32xf32>
    %cst_55 = arith.constant dense<0.000000e+00> : vector<64x32xf32>
    %147 = tpu.matmul %145, %146, %cst_55 {dimension_numbers = #tpu.dot_dimension_numbers<[1], [0], [0], [1], [0, 0, 1, 1], [], []>} : vector<64x64xf32>, vector<64x32xf32>, vector<64x32xf32> -> vector<64x32xf32>
    %148 = arith.addf %131, %147 : vector<64x32xf32>
    %149 = vector.extract_strided_slice %128 {offsets = [0, 8], sizes = [64, 8], strides = [1, 1]} : vector<64x64xf32> to vector<64x8xf32>
    %150 = vector.extract_strided_slice %128 {offsets = [0, 40], sizes = [64, 8], strides = [1, 1]} : vector<64x64xf32> to vector<64x8xf32>
    %cst_56 = arith.constant dense<0.000000e+00> : vector<64x64xf32>
    %151 = tpu.matmul %149, %150, %cst_56 {dimension_numbers = #tpu.dot_dimension_numbers<[1], [1], [0], [0], [0, 0, 1, 0], [], []>} : vector<64x8xf32>, vector<64x8xf32>, vector<64x64xf32> -> vector<64x64xf32>
    %152 = arith.addf %151, %115 : vector<64x64xf32>
    %cst_57 = arith.constant dense<0xFF800000> : vector<64xf32>
    %153 = vector.multi_reduction <maximumf>, %152, %cst_57 [1] : vector<64x64xf32> to vector<64xf32>
    %154 = vector.shape_cast %153 : vector<64xf32> to vector<64x1xf32>
    %155 = vector.broadcast %154 : vector<64x1xf32> to vector<64x64xf32>
    %156 = arith.subf %152, %155 : vector<64x64xf32>
    %157 = math.exp %156 : vector<64x64xf32>
    %cst_58 = arith.constant dense<0.000000e+00> : vector<64xf32>
    %158 = vector.multi_reduction <add>, %157, %cst_58 [1] : vector<64x64xf32> to vector<64xf32>
    %159 = vector.shape_cast %158 : vector<64xf32> to vector<64x1xf32>
    %160 = tpu.reciprocal %159 {approx = true} : vector<64x1xf32> -> vector<64x1xf32>
    %161 = vector.broadcast %160 : vector<64x1xf32> to vector<64x64xf32>
    %162 = arith.mulf %157, %161 : vector<64x64xf32>
    %163 = vector.extract_strided_slice %129 {offsets = [0, 32], sizes = [64, 32], strides = [1, 1]} : vector<64x128xf32> to vector<64x32xf32>
    %cst_59 = arith.constant dense<0.000000e+00> : vector<64x32xf32>
    %164 = tpu.matmul %162, %163, %cst_59 {dimension_numbers = #tpu.dot_dimension_numbers<[1], [0], [0], [1], [0, 0, 1, 1], [], []>} : vector<64x64xf32>, vector<64x32xf32>, vector<64x32xf32> -> vector<64x32xf32>
    %165 = arith.addf %148, %164 : vector<64x32xf32>
    %166 = vector.extract_strided_slice %128 {offsets = [0, 16], sizes = [64, 8], strides = [1, 1]} : vector<64x64xf32> to vector<64x8xf32>
    %167 = vector.extract_strided_slice %128 {offsets = [0, 48], sizes = [64, 8], strides = [1, 1]} : vector<64x64xf32> to vector<64x8xf32>
    %cst_60 = arith.constant dense<0.000000e+00> : vector<64x64xf32>
    %168 = tpu.matmul %166, %167, %cst_60 {dimension_numbers = #tpu.dot_dimension_numbers<[1], [1], [0], [0], [0, 0, 1, 0], [], []>} : vector<64x8xf32>, vector<64x8xf32>, vector<64x64xf32> -> vector<64x64xf32>
    %169 = arith.addf %168, %115 : vector<64x64xf32>
    %cst_61 = arith.constant dense<0xFF800000> : vector<64xf32>
    %170 = vector.multi_reduction <maximumf>, %169, %cst_61 [1] : vector<64x64xf32> to vector<64xf32>
    %171 = vector.shape_cast %170 : vector<64xf32> to vector<64x1xf32>
    %172 = vector.broadcast %171 : vector<64x1xf32> to vector<64x64xf32>
    %173 = arith.subf %169, %172 : vector<64x64xf32>
    %174 = math.exp %173 : vector<64x64xf32>
    %cst_62 = arith.constant dense<0.000000e+00> : vector<64xf32>
    %175 = vector.multi_reduction <add>, %174, %cst_62 [1] : vector<64x64xf32> to vector<64xf32>
    %176 = vector.shape_cast %175 : vector<64xf32> to vector<64x1xf32>
    %177 = tpu.reciprocal %176 {approx = true} : vector<64x1xf32> -> vector<64x1xf32>
    %178 = vector.broadcast %177 : vector<64x1xf32> to vector<64x64xf32>
    %179 = arith.mulf %174, %178 : vector<64x64xf32>
    %180 = vector.extract_strided_slice %129 {offsets = [0, 64], sizes = [64, 32], strides = [1, 1]} : vector<64x128xf32> to vector<64x32xf32>
    %cst_63 = arith.constant dense<0.000000e+00> : vector<64x32xf32>
    %181 = tpu.matmul %179, %180, %cst_63 {dimension_numbers = #tpu.dot_dimension_numbers<[1], [0], [0], [1], [0, 0, 1, 1], [], []>} : vector<64x64xf32>, vector<64x32xf32>, vector<64x32xf32> -> vector<64x32xf32>
    %182 = arith.addf %165, %181 : vector<64x32xf32>
    %183 = vector.extract_strided_slice %128 {offsets = [0, 24], sizes = [64, 8], strides = [1, 1]} : vector<64x64xf32> to vector<64x8xf32>
    %184 = vector.extract_strided_slice %128 {offsets = [0, 56], sizes = [64, 8], strides = [1, 1]} : vector<64x64xf32> to vector<64x8xf32>
    %cst_64 = arith.constant dense<0.000000e+00> : vector<64x64xf32>
    %185 = tpu.matmul %183, %184, %cst_64 {dimension_numbers = #tpu.dot_dimension_numbers<[1], [1], [0], [0], [0, 0, 1, 0], [], []>} : vector<64x8xf32>, vector<64x8xf32>, vector<64x64xf32> -> vector<64x64xf32>
    %186 = arith.addf %185, %115 : vector<64x64xf32>
    %cst_65 = arith.constant dense<0xFF800000> : vector<64xf32>
    %187 = vector.multi_reduction <maximumf>, %186, %cst_65 [1] : vector<64x64xf32> to vector<64xf32>
    %188 = vector.shape_cast %187 : vector<64xf32> to vector<64x1xf32>
    %189 = vector.broadcast %188 : vector<64x1xf32> to vector<64x64xf32>
    %190 = arith.subf %186, %189 : vector<64x64xf32>
    %191 = math.exp %190 : vector<64x64xf32>
    %cst_66 = arith.constant dense<0.000000e+00> : vector<64xf32>
    %192 = vector.multi_reduction <add>, %191, %cst_66 [1] : vector<64x64xf32> to vector<64xf32>
    %193 = vector.shape_cast %192 : vector<64xf32> to vector<64x1xf32>
    %194 = tpu.reciprocal %193 {approx = true} : vector<64x1xf32> -> vector<64x1xf32>
    %195 = vector.broadcast %194 : vector<64x1xf32> to vector<64x64xf32>
    %196 = arith.mulf %191, %195 : vector<64x64xf32>
    %197 = vector.extract_strided_slice %129 {offsets = [0, 96], sizes = [64, 32], strides = [1, 1]} : vector<64x128xf32> to vector<64x32xf32>
    %cst_67 = arith.constant dense<0.000000e+00> : vector<64x32xf32>
    %198 = tpu.matmul %196, %197, %cst_67 {dimension_numbers = #tpu.dot_dimension_numbers<[1], [0], [0], [1], [0, 0, 1, 1], [], []>} : vector<64x64xf32>, vector<64x32xf32>, vector<64x32xf32> -> vector<64x32xf32>
    %199 = arith.addf %182, %198 : vector<64x32xf32>
    %cst_68 = arith.constant dense<0.000000e+00> : vector<64xf32>
    %200 = vector.multi_reduction <add>, %199, %cst_68 [1] : vector<64x32xf32> to vector<64xf32>
    %201 = vector.shape_cast %200 : vector<64xf32> to vector<64x1xf32>
    %cst_69 = arith.constant 3.200000e+01 : f32
    %202 = vector.broadcast %cst_69 : f32 to vector<64x1xf32>
    %203 = arith.divf %201, %202 : vector<64x1xf32>
    %204 = vector.broadcast %203 : vector<64x1xf32> to vector<64x32xf32>
    %205 = arith.subf %199, %204 : vector<64x32xf32>
    %206 = arith.mulf %205, %205 : vector<64x32xf32>
    %cst_70 = arith.constant dense<0.000000e+00> : vector<64xf32>
    %207 = vector.multi_reduction <add>, %206, %cst_70 [1] : vector<64x32xf32> to vector<64xf32>
    %208 = vector.shape_cast %207 : vector<64xf32> to vector<64x1xf32>
    %cst_71 = arith.constant 3.200000e+01 : f32
    %209 = vector.broadcast %cst_71 : f32 to vector<64x1xf32>
    %210 = arith.divf %208, %209 : vector<64x1xf32>
    %211 = vector.broadcast %203 : vector<64x1xf32> to vector<64x32xf32>
    %212 = arith.subf %199, %211 : vector<64x32xf32>
    %cst_72 = arith.constant 9.99999997E-7 : f32
    %213 = vector.broadcast %cst_72 : f32 to vector<64x1xf32>
    %214 = arith.addf %210, %213 : vector<64x1xf32>
    %215 = math.rsqrt %214 : vector<64x1xf32>
    %216 = vector.broadcast %215 : vector<64x1xf32> to vector<64x32xf32>
    %217 = arith.mulf %212, %216 : vector<64x32xf32>
    %218 = vector.broadcast %122 : vector<1x32xf32> to vector<64x32xf32>
    %219 = arith.mulf %217, %218 : vector<64x32xf32>
    %220 = vector.broadcast %123 : vector<1x32xf32> to vector<64x32xf32>
    %221 = arith.addf %219, %220 : vector<64x32xf32>
    %cst_73 = arith.constant dense<0.000000e+00> : vector<64x64xf32>
    %222 = tpu.matmul %221, %118, %cst_73 {dimension_numbers = #tpu.dot_dimension_numbers<[1], [0], [0], [1], [0, 0, 1, 1], [], []>} : vector<64x32xf32>, vector<32x64xf32>, vector<64x64xf32> -> vector<64x64xf32>
    %223 = vector.broadcast %124 : vector<1x64xf32> to vector<64x64xf32>
    %224 = arith.addf %222, %223 : vector<64x64xf32>
    %cst_74 = arith.constant 5.000000e-01 : f32
    %225 = vector.broadcast %cst_74 : f32 to vector<64x64xf32>
    %226 = arith.mulf %225, %224 : vector<64x64xf32>
    %cst_75 = arith.constant 4.471500e-02 : f32
    %227 = vector.broadcast %cst_75 : f32 to vector<64x64xf32>
    %228 = arith.mulf %227, %224 : vector<64x64xf32>
    %229 = arith.mulf %228, %224 : vector<64x64xf32>
    %230 = arith.mulf %229, %224 : vector<64x64xf32>
    %231 = arith.addf %224, %230 : vector<64x64xf32>
    %cst_76 = arith.constant 0.797884583 : f32
    %232 = vector.broadcast %cst_76 : f32 to vector<64x64xf32>
    %233 = arith.mulf %232, %231 : vector<64x64xf32>
    %234 = math.tanh %233 : vector<64x64xf32>
    %cst_77 = arith.constant 1.000000e+00 : f32
    %235 = vector.broadcast %cst_77 : f32 to vector<64x64xf32>
    %236 = arith.addf %235, %234 : vector<64x64xf32>
    %237 = arith.mulf %226, %236 : vector<64x64xf32>
    %cst_78 = arith.constant dense<0.000000e+00> : vector<64x32xf32>
    %238 = tpu.matmul %237, %119, %cst_78 {dimension_numbers = #tpu.dot_dimension_numbers<[1], [0], [0], [1], [0, 0, 1, 1], [], []>} : vector<64x64xf32>, vector<64x32xf32>, vector<64x32xf32> -> vector<64x32xf32>
    %239 = vector.broadcast %125 : vector<1x32xf32> to vector<64x32xf32>
    %240 = arith.addf %238, %239 : vector<64x32xf32>
    %241 = arith.addf %240, %221 : vector<64x32xf32>
    %cst_79 = arith.constant dense<0.000000e+00> : vector<64xf32>
    %242 = vector.multi_reduction <add>, %241, %cst_79 [1] : vector<64x32xf32> to vector<64xf32>
    %243 = vector.shape_cast %242 : vector<64xf32> to vector<64x1xf32>
    %cst_80 = arith.constant 3.200000e+01 : f32
    %244 = vector.broadcast %cst_80 : f32 to vector<64x1xf32>
    %245 = arith.divf %243, %244 : vector<64x1xf32>
    %246 = vector.broadcast %245 : vector<64x1xf32> to vector<64x32xf32>
    %247 = arith.subf %241, %246 : vector<64x32xf32>
    %248 = arith.mulf %247, %247 : vector<64x32xf32>
    %cst_81 = arith.constant dense<0.000000e+00> : vector<64xf32>
    %249 = vector.multi_reduction <add>, %248, %cst_81 [1] : vector<64x32xf32> to vector<64xf32>
    %250 = vector.shape_cast %249 : vector<64xf32> to vector<64x1xf32>
    %cst_82 = arith.constant 3.200000e+01 : f32
    %251 = vector.broadcast %cst_82 : f32 to vector<64x1xf32>
    %252 = arith.divf %250, %251 : vector<64x1xf32>
    %253 = vector.broadcast %245 : vector<64x1xf32> to vector<64x32xf32>
    %254 = arith.subf %241, %253 : vector<64x32xf32>
    %cst_83 = arith.constant 9.99999997E-7 : f32
    %255 = vector.broadcast %cst_83 : f32 to vector<64x1xf32>
    %256 = arith.addf %252, %255 : vector<64x1xf32>
    %257 = math.rsqrt %256 : vector<64x1xf32>
    %258 = vector.broadcast %257 : vector<64x1xf32> to vector<64x32xf32>
    %259 = arith.mulf %254, %258 : vector<64x32xf32>
    %260 = vector.broadcast %126 : vector<1x32xf32> to vector<64x32xf32>
    %261 = arith.mulf %259, %260 : vector<64x32xf32>
    %262 = vector.broadcast %127 : vector<1x32xf32> to vector<64x32xf32>
    %263 = arith.addf %261, %262 : vector<64x32xf32>
    %c496 = arith.constant 496 : index
    %c0_84 = arith.constant 0 : index
    %264 = vector.load %arg1[%c496, %c0_84] : memref<824x128xf32, #tpu.memory_space<vmem>>, vector<32x64xf32>
    %c528 = arith.constant 528 : index
    %c0_85 = arith.constant 0 : index
    %265 = vector.load %arg1[%c528, %c0_85] : memref<824x128xf32, #tpu.memory_space<vmem>>, vector<32x128xf32>
    %c560 = arith.constant 560 : index
    %c0_86 = arith.constant 0 : index
    %266 = vector.load %arg1[%c560, %c0_86] : memref<824x128xf32, #tpu.memory_space<vmem>>, vector<32x64xf32>
    %c592 = arith.constant 592 : index
    %c0_87 = arith.constant 0 : index
    %267 = vector.load %arg1[%c592, %c0_87] : memref<824x128xf32, #tpu.memory_space<vmem>>, vector<64x32xf32>
    %c656 = arith.constant 656 : index
    %c0_88 = arith.constant 0 : index
    %268 = vector.load %arg1[%c656, %c0_88] : memref<824x128xf32, #tpu.memory_space<vmem>>, vector<7x64xf32>
    %269 = vector.extract_strided_slice %268 {offsets = [0, 0], sizes = [1, 32], strides = [1, 1]} : vector<7x64xf32> to vector<1x32xf32>
    %270 = vector.extract_strided_slice %268 {offsets = [1, 0], sizes = [1, 32], strides = [1, 1]} : vector<7x64xf32> to vector<1x32xf32>
    %271 = vector.extract_strided_slice %268 {offsets = [2, 0], sizes = [1, 32], strides = [1, 1]} : vector<7x64xf32> to vector<1x32xf32>
    %272 = vector.extract_strided_slice %268 {offsets = [3, 0], sizes = [1, 64], strides = [1, 1]} : vector<7x64xf32> to vector<1x64xf32>
    %273 = vector.extract_strided_slice %268 {offsets = [4, 0], sizes = [1, 32], strides = [1, 1]} : vector<7x64xf32> to vector<1x32xf32>
    %274 = vector.extract_strided_slice %268 {offsets = [5, 0], sizes = [1, 32], strides = [1, 1]} : vector<7x64xf32> to vector<1x32xf32>
    %275 = vector.extract_strided_slice %268 {offsets = [6, 0], sizes = [1, 32], strides = [1, 1]} : vector<7x64xf32> to vector<1x32xf32>
    %cst_89 = arith.constant dense<0.000000e+00> : vector<64x64xf32>
    %276 = tpu.matmul %263, %264, %cst_89 {dimension_numbers = #tpu.dot_dimension_numbers<[1], [0], [0], [1], [0, 0, 1, 1], [], []>} : vector<64x32xf32>, vector<32x64xf32>, vector<64x64xf32> -> vector<64x64xf32>
    %cst_90 = arith.constant dense<0.000000e+00> : vector<64x128xf32>
    %277 = tpu.matmul %263, %265, %cst_90 {dimension_numbers = #tpu.dot_dimension_numbers<[1], [0], [0], [1], [0, 0, 1, 1], [], []>} : vector<64x32xf32>, vector<32x128xf32>, vector<64x128xf32> -> vector<64x128xf32>
    %278 = vector.broadcast %269 : vector<1x32xf32> to vector<64x32xf32>
    %279 = arith.addf %263, %278 : vector<64x32xf32>
    %280 = vector.extract_strided_slice %276 {offsets = [0, 0], sizes = [64, 8], strides = [1, 1]} : vector<64x64xf32> to vector<64x8xf32>
    %281 = vector.extract_strided_slice %276 {offsets = [0, 32], sizes = [64, 8], strides = [1, 1]} : vector<64x64xf32> to vector<64x8xf32>
    %cst_91 = arith.constant dense<0.000000e+00> : vector<64x64xf32>
    %282 = tpu.matmul %280, %281, %cst_91 {dimension_numbers = #tpu.dot_dimension_numbers<[1], [1], [0], [0], [0, 0, 1, 0], [], []>} : vector<64x8xf32>, vector<64x8xf32>, vector<64x64xf32> -> vector<64x64xf32>
    %283 = arith.addf %282, %115 : vector<64x64xf32>
    %cst_92 = arith.constant dense<0xFF800000> : vector<64xf32>
    %284 = vector.multi_reduction <maximumf>, %283, %cst_92 [1] : vector<64x64xf32> to vector<64xf32>
    %285 = vector.shape_cast %284 : vector<64xf32> to vector<64x1xf32>
    %286 = vector.broadcast %285 : vector<64x1xf32> to vector<64x64xf32>
    %287 = arith.subf %283, %286 : vector<64x64xf32>
    %288 = math.exp %287 : vector<64x64xf32>
    %cst_93 = arith.constant dense<0.000000e+00> : vector<64xf32>
    %289 = vector.multi_reduction <add>, %288, %cst_93 [1] : vector<64x64xf32> to vector<64xf32>
    %290 = vector.shape_cast %289 : vector<64xf32> to vector<64x1xf32>
    %291 = tpu.reciprocal %290 {approx = true} : vector<64x1xf32> -> vector<64x1xf32>
    %292 = vector.broadcast %291 : vector<64x1xf32> to vector<64x64xf32>
    %293 = arith.mulf %288, %292 : vector<64x64xf32>
    %294 = vector.extract_strided_slice %277 {offsets = [0, 0], sizes = [64, 32], strides = [1, 1]} : vector<64x128xf32> to vector<64x32xf32>
    %cst_94 = arith.constant dense<0.000000e+00> : vector<64x32xf32>
    %295 = tpu.matmul %293, %294, %cst_94 {dimension_numbers = #tpu.dot_dimension_numbers<[1], [0], [0], [1], [0, 0, 1, 1], [], []>} : vector<64x64xf32>, vector<64x32xf32>, vector<64x32xf32> -> vector<64x32xf32>
    %296 = arith.addf %279, %295 : vector<64x32xf32>
    %297 = vector.extract_strided_slice %276 {offsets = [0, 8], sizes = [64, 8], strides = [1, 1]} : vector<64x64xf32> to vector<64x8xf32>
    %298 = vector.extract_strided_slice %276 {offsets = [0, 40], sizes = [64, 8], strides = [1, 1]} : vector<64x64xf32> to vector<64x8xf32>
    %cst_95 = arith.constant dense<0.000000e+00> : vector<64x64xf32>
    %299 = tpu.matmul %297, %298, %cst_95 {dimension_numbers = #tpu.dot_dimension_numbers<[1], [1], [0], [0], [0, 0, 1, 0], [], []>} : vector<64x8xf32>, vector<64x8xf32>, vector<64x64xf32> -> vector<64x64xf32>
    %300 = arith.addf %299, %115 : vector<64x64xf32>
    %cst_96 = arith.constant dense<0xFF800000> : vector<64xf32>
    %301 = vector.multi_reduction <maximumf>, %300, %cst_96 [1] : vector<64x64xf32> to vector<64xf32>
    %302 = vector.shape_cast %301 : vector<64xf32> to vector<64x1xf32>
    %303 = vector.broadcast %302 : vector<64x1xf32> to vector<64x64xf32>
    %304 = arith.subf %300, %303 : vector<64x64xf32>
    %305 = math.exp %304 : vector<64x64xf32>
    %cst_97 = arith.constant dense<0.000000e+00> : vector<64xf32>
    %306 = vector.multi_reduction <add>, %305, %cst_97 [1] : vector<64x64xf32> to vector<64xf32>
    %307 = vector.shape_cast %306 : vector<64xf32> to vector<64x1xf32>
    %308 = tpu.reciprocal %307 {approx = true} : vector<64x1xf32> -> vector<64x1xf32>
    %309 = vector.broadcast %308 : vector<64x1xf32> to vector<64x64xf32>
    %310 = arith.mulf %305, %309 : vector<64x64xf32>
    %311 = vector.extract_strided_slice %277 {offsets = [0, 32], sizes = [64, 32], strides = [1, 1]} : vector<64x128xf32> to vector<64x32xf32>
    %cst_98 = arith.constant dense<0.000000e+00> : vector<64x32xf32>
    %312 = tpu.matmul %310, %311, %cst_98 {dimension_numbers = #tpu.dot_dimension_numbers<[1], [0], [0], [1], [0, 0, 1, 1], [], []>} : vector<64x64xf32>, vector<64x32xf32>, vector<64x32xf32> -> vector<64x32xf32>
    %313 = arith.addf %296, %312 : vector<64x32xf32>
    %314 = vector.extract_strided_slice %276 {offsets = [0, 16], sizes = [64, 8], strides = [1, 1]} : vector<64x64xf32> to vector<64x8xf32>
    %315 = vector.extract_strided_slice %276 {offsets = [0, 48], sizes = [64, 8], strides = [1, 1]} : vector<64x64xf32> to vector<64x8xf32>
    %cst_99 = arith.constant dense<0.000000e+00> : vector<64x64xf32>
    %316 = tpu.matmul %314, %315, %cst_99 {dimension_numbers = #tpu.dot_dimension_numbers<[1], [1], [0], [0], [0, 0, 1, 0], [], []>} : vector<64x8xf32>, vector<64x8xf32>, vector<64x64xf32> -> vector<64x64xf32>
    %317 = arith.addf %316, %115 : vector<64x64xf32>
    %cst_100 = arith.constant dense<0xFF800000> : vector<64xf32>
    %318 = vector.multi_reduction <maximumf>, %317, %cst_100 [1] : vector<64x64xf32> to vector<64xf32>
    %319 = vector.shape_cast %318 : vector<64xf32> to vector<64x1xf32>
    %320 = vector.broadcast %319 : vector<64x1xf32> to vector<64x64xf32>
    %321 = arith.subf %317, %320 : vector<64x64xf32>
    %322 = math.exp %321 : vector<64x64xf32>
    %cst_101 = arith.constant dense<0.000000e+00> : vector<64xf32>
    %323 = vector.multi_reduction <add>, %322, %cst_101 [1] : vector<64x64xf32> to vector<64xf32>
    %324 = vector.shape_cast %323 : vector<64xf32> to vector<64x1xf32>
    %325 = tpu.reciprocal %324 {approx = true} : vector<64x1xf32> -> vector<64x1xf32>
    %326 = vector.broadcast %325 : vector<64x1xf32> to vector<64x64xf32>
    %327 = arith.mulf %322, %326 : vector<64x64xf32>
    %328 = vector.extract_strided_slice %277 {offsets = [0, 64], sizes = [64, 32], strides = [1, 1]} : vector<64x128xf32> to vector<64x32xf32>
    %cst_102 = arith.constant dense<0.000000e+00> : vector<64x32xf32>
    %329 = tpu.matmul %327, %328, %cst_102 {dimension_numbers = #tpu.dot_dimension_numbers<[1], [0], [0], [1], [0, 0, 1, 1], [], []>} : vector<64x64xf32>, vector<64x32xf32>, vector<64x32xf32> -> vector<64x32xf32>
    %330 = arith.addf %313, %329 : vector<64x32xf32>
    %331 = vector.extract_strided_slice %276 {offsets = [0, 24], sizes = [64, 8], strides = [1, 1]} : vector<64x64xf32> to vector<64x8xf32>
    %332 = vector.extract_strided_slice %276 {offsets = [0, 56], sizes = [64, 8], strides = [1, 1]} : vector<64x64xf32> to vector<64x8xf32>
    %cst_103 = arith.constant dense<0.000000e+00> : vector<64x64xf32>
    %333 = tpu.matmul %331, %332, %cst_103 {dimension_numbers = #tpu.dot_dimension_numbers<[1], [1], [0], [0], [0, 0, 1, 0], [], []>} : vector<64x8xf32>, vector<64x8xf32>, vector<64x64xf32> -> vector<64x64xf32>
    %334 = arith.addf %333, %115 : vector<64x64xf32>
    %cst_104 = arith.constant dense<0xFF800000> : vector<64xf32>
    %335 = vector.multi_reduction <maximumf>, %334, %cst_104 [1] : vector<64x64xf32> to vector<64xf32>
    %336 = vector.shape_cast %335 : vector<64xf32> to vector<64x1xf32>
    %337 = vector.broadcast %336 : vector<64x1xf32> to vector<64x64xf32>
    %338 = arith.subf %334, %337 : vector<64x64xf32>
    %339 = math.exp %338 : vector<64x64xf32>
    %cst_105 = arith.constant dense<0.000000e+00> : vector<64xf32>
    %340 = vector.multi_reduction <add>, %339, %cst_105 [1] : vector<64x64xf32> to vector<64xf32>
    %341 = vector.shape_cast %340 : vector<64xf32> to vector<64x1xf32>
    %342 = tpu.reciprocal %341 {approx = true} : vector<64x1xf32> -> vector<64x1xf32>
    %343 = vector.broadcast %342 : vector<64x1xf32> to vector<64x64xf32>
    %344 = arith.mulf %339, %343 : vector<64x64xf32>
    %345 = vector.extract_strided_slice %277 {offsets = [0, 96], sizes = [64, 32], strides = [1, 1]} : vector<64x128xf32> to vector<64x32xf32>
    %cst_106 = arith.constant dense<0.000000e+00> : vector<64x32xf32>
    %346 = tpu.matmul %344, %345, %cst_106 {dimension_numbers = #tpu.dot_dimension_numbers<[1], [0], [0], [1], [0, 0, 1, 1], [], []>} : vector<64x64xf32>, vector<64x32xf32>, vector<64x32xf32> -> vector<64x32xf32>
    %347 = arith.addf %330, %346 : vector<64x32xf32>
    %cst_107 = arith.constant dense<0.000000e+00> : vector<64xf32>
    %348 = vector.multi_reduction <add>, %347, %cst_107 [1] : vector<64x32xf32> to vector<64xf32>
    %349 = vector.shape_cast %348 : vector<64xf32> to vector<64x1xf32>
    %cst_108 = arith.constant 3.200000e+01 : f32
    %350 = vector.broadcast %cst_108 : f32 to vector<64x1xf32>
    %351 = arith.divf %349, %350 : vector<64x1xf32>
    %352 = vector.broadcast %351 : vector<64x1xf32> to vector<64x32xf32>
    %353 = arith.subf %347, %352 : vector<64x32xf32>
    %354 = arith.mulf %353, %353 : vector<64x32xf32>
    %cst_109 = arith.constant dense<0.000000e+00> : vector<64xf32>
    %355 = vector.multi_reduction <add>, %354, %cst_109 [1] : vector<64x32xf32> to vector<64xf32>
    %356 = vector.shape_cast %355 : vector<64xf32> to vector<64x1xf32>
    %cst_110 = arith.constant 3.200000e+01 : f32
    %357 = vector.broadcast %cst_110 : f32 to vector<64x1xf32>
    %358 = arith.divf %356, %357 : vector<64x1xf32>
    %359 = vector.broadcast %351 : vector<64x1xf32> to vector<64x32xf32>
    %360 = arith.subf %347, %359 : vector<64x32xf32>
    %cst_111 = arith.constant 9.99999997E-7 : f32
    %361 = vector.broadcast %cst_111 : f32 to vector<64x1xf32>
    %362 = arith.addf %358, %361 : vector<64x1xf32>
    %363 = math.rsqrt %362 : vector<64x1xf32>
    %364 = vector.broadcast %363 : vector<64x1xf32> to vector<64x32xf32>
    %365 = arith.mulf %360, %364 : vector<64x32xf32>
    %366 = vector.broadcast %270 : vector<1x32xf32> to vector<64x32xf32>
    %367 = arith.mulf %365, %366 : vector<64x32xf32>
    %368 = vector.broadcast %271 : vector<1x32xf32> to vector<64x32xf32>
    %369 = arith.addf %367, %368 : vector<64x32xf32>
    %cst_112 = arith.constant dense<0.000000e+00> : vector<64x64xf32>
    %370 = tpu.matmul %369, %266, %cst_112 {dimension_numbers = #tpu.dot_dimension_numbers<[1], [0], [0], [1], [0, 0, 1, 1], [], []>} : vector<64x32xf32>, vector<32x64xf32>, vector<64x64xf32> -> vector<64x64xf32>
    %371 = vector.broadcast %272 : vector<1x64xf32> to vector<64x64xf32>
    %372 = arith.addf %370, %371 : vector<64x64xf32>
    %cst_113 = arith.constant 5.000000e-01 : f32
    %373 = vector.broadcast %cst_113 : f32 to vector<64x64xf32>
    %374 = arith.mulf %373, %372 : vector<64x64xf32>
    %cst_114 = arith.constant 4.471500e-02 : f32
    %375 = vector.broadcast %cst_114 : f32 to vector<64x64xf32>
    %376 = arith.mulf %375, %372 : vector<64x64xf32>
    %377 = arith.mulf %376, %372 : vector<64x64xf32>
    %378 = arith.mulf %377, %372 : vector<64x64xf32>
    %379 = arith.addf %372, %378 : vector<64x64xf32>
    %cst_115 = arith.constant 0.797884583 : f32
    %380 = vector.broadcast %cst_115 : f32 to vector<64x64xf32>
    %381 = arith.mulf %380, %379 : vector<64x64xf32>
    %382 = math.tanh %381 : vector<64x64xf32>
    %cst_116 = arith.constant 1.000000e+00 : f32
    %383 = vector.broadcast %cst_116 : f32 to vector<64x64xf32>
    %384 = arith.addf %383, %382 : vector<64x64xf32>
    %385 = arith.mulf %374, %384 : vector<64x64xf32>
    %cst_117 = arith.constant dense<0.000000e+00> : vector<64x32xf32>
    %386 = tpu.matmul %385, %267, %cst_117 {dimension_numbers = #tpu.dot_dimension_numbers<[1], [0], [0], [1], [0, 0, 1, 1], [], []>} : vector<64x64xf32>, vector<64x32xf32>, vector<64x32xf32> -> vector<64x32xf32>
    %387 = vector.broadcast %273 : vector<1x32xf32> to vector<64x32xf32>
    %388 = arith.addf %386, %387 : vector<64x32xf32>
    %389 = arith.addf %388, %369 : vector<64x32xf32>
    %cst_118 = arith.constant dense<0.000000e+00> : vector<64xf32>
    %390 = vector.multi_reduction <add>, %389, %cst_118 [1] : vector<64x32xf32> to vector<64xf32>
    %391 = vector.shape_cast %390 : vector<64xf32> to vector<64x1xf32>
    %cst_119 = arith.constant 3.200000e+01 : f32
    %392 = vector.broadcast %cst_119 : f32 to vector<64x1xf32>
    %393 = arith.divf %391, %392 : vector<64x1xf32>
    %394 = vector.broadcast %393 : vector<64x1xf32> to vector<64x32xf32>
    %395 = arith.subf %389, %394 : vector<64x32xf32>
    %396 = arith.mulf %395, %395 : vector<64x32xf32>
    %cst_120 = arith.constant dense<0.000000e+00> : vector<64xf32>
    %397 = vector.multi_reduction <add>, %396, %cst_120 [1] : vector<64x32xf32> to vector<64xf32>
    %398 = vector.shape_cast %397 : vector<64xf32> to vector<64x1xf32>
    %cst_121 = arith.constant 3.200000e+01 : f32
    %399 = vector.broadcast %cst_121 : f32 to vector<64x1xf32>
    %400 = arith.divf %398, %399 : vector<64x1xf32>
    %401 = vector.broadcast %393 : vector<64x1xf32> to vector<64x32xf32>
    %402 = arith.subf %389, %401 : vector<64x32xf32>
    %cst_122 = arith.constant 9.99999997E-7 : f32
    %403 = vector.broadcast %cst_122 : f32 to vector<64x1xf32>
    %404 = arith.addf %400, %403 : vector<64x1xf32>
    %405 = math.rsqrt %404 : vector<64x1xf32>
    %406 = vector.broadcast %405 : vector<64x1xf32> to vector<64x32xf32>
    %407 = arith.mulf %402, %406 : vector<64x32xf32>
    %408 = vector.broadcast %274 : vector<1x32xf32> to vector<64x32xf32>
    %409 = arith.mulf %407, %408 : vector<64x32xf32>
    %410 = vector.broadcast %275 : vector<1x32xf32> to vector<64x32xf32>
    %411 = arith.addf %409, %410 : vector<64x32xf32>
    %c792 = arith.constant 792 : index
    %c0_123 = arith.constant 0 : index
    %412 = vector.load %arg1[%c792, %c0_123] : memref<824x128xf32, #tpu.memory_space<vmem>>, vector<32x8xf32>
    %cst_124 = arith.constant dense<0.000000e+00> : vector<64x8xf32>
    %413 = tpu.matmul %411, %412, %cst_124 {dimension_numbers = #tpu.dot_dimension_numbers<[1], [0], [0], [1], [0, 0, 1, 1], [], []>} : vector<64x32xf32>, vector<32x8xf32>, vector<64x8xf32> -> vector<64x8xf32>
    %c664 = arith.constant 664 : index
    %c0_125 = arith.constant 0 : index
    %414 = vector.load %arg1[%c664, %c0_125] : memref<824x128xf32, #tpu.memory_space<vmem>>, vector<128x64xf32>
    %cst_126 = arith.constant 0.000000e+00 : f32
    %415 = vector.broadcast %cst_126 : f32 to vector<32x2xf32>
    %416 = vector.extract_strided_slice %414 {offsets = [0, 0], sizes = [32, 64], strides = [1, 1]} : vector<128x64xf32> to vector<32x64xf32>
    %417 = vector.extract_strided_slice %413 {offsets = [0, 0], sizes = [64, 2], strides = [1, 1]} : vector<64x8xf32> to vector<64x2xf32>
    %cst_127 = arith.constant dense<0.000000e+00> : vector<32x2xf32>
    %418 = tpu.matmul %416, %417, %cst_127 {dimension_numbers = #tpu.dot_dimension_numbers<[1], [0], [0], [1], [0, 0, 1, 1], [], []>} : vector<32x64xf32>, vector<64x2xf32>, vector<32x2xf32> -> vector<32x2xf32>
    %419 = arith.addf %415, %418 : vector<32x2xf32>
    %420 = vector.extract_strided_slice %414 {offsets = [32, 0], sizes = [32, 64], strides = [1, 1]} : vector<128x64xf32> to vector<32x64xf32>
    %421 = vector.extract_strided_slice %413 {offsets = [0, 2], sizes = [64, 2], strides = [1, 1]} : vector<64x8xf32> to vector<64x2xf32>
    %cst_128 = arith.constant dense<0.000000e+00> : vector<32x2xf32>
    %422 = tpu.matmul %420, %421, %cst_128 {dimension_numbers = #tpu.dot_dimension_numbers<[1], [0], [0], [1], [0, 0, 1, 1], [], []>} : vector<32x64xf32>, vector<64x2xf32>, vector<32x2xf32> -> vector<32x2xf32>
    %423 = arith.addf %419, %422 : vector<32x2xf32>
    %424 = vector.extract_strided_slice %414 {offsets = [64, 0], sizes = [32, 64], strides = [1, 1]} : vector<128x64xf32> to vector<32x64xf32>
    %425 = vector.extract_strided_slice %413 {offsets = [0, 4], sizes = [64, 2], strides = [1, 1]} : vector<64x8xf32> to vector<64x2xf32>
    %cst_129 = arith.constant dense<0.000000e+00> : vector<32x2xf32>
    %426 = tpu.matmul %424, %425, %cst_129 {dimension_numbers = #tpu.dot_dimension_numbers<[1], [0], [0], [1], [0, 0, 1, 1], [], []>} : vector<32x64xf32>, vector<64x2xf32>, vector<32x2xf32> -> vector<32x2xf32>
    %427 = arith.addf %423, %426 : vector<32x2xf32>
    %428 = vector.extract_strided_slice %414 {offsets = [96, 0], sizes = [32, 64], strides = [1, 1]} : vector<128x64xf32> to vector<32x64xf32>
    %429 = vector.extract_strided_slice %413 {offsets = [0, 6], sizes = [64, 2], strides = [1, 1]} : vector<64x8xf32> to vector<64x2xf32>
    %cst_130 = arith.constant dense<0.000000e+00> : vector<32x2xf32>
    %430 = tpu.matmul %428, %429, %cst_130 {dimension_numbers = #tpu.dot_dimension_numbers<[1], [0], [0], [1], [0, 0, 1, 1], [], []>} : vector<32x64xf32>, vector<64x2xf32>, vector<32x2xf32> -> vector<32x2xf32>
    %431 = arith.addf %427, %430 : vector<32x2xf32>
    %cst_131 = arith.constant 0.000000e+00 : f32
    %432 = vector.broadcast %cst_131 : f32 to vector<32x2xf32>
    %433 = arith.maximumf %431, %432 : vector<32x2xf32>
    %434 = math.absf %431 : vector<32x2xf32>
    %cst_132 = arith.constant 0.000000e+00 : f32
    %435 = vector.broadcast %cst_132 : f32 to vector<32x2xf32>
    %436 = arith.subf %435, %434 : vector<32x2xf32>
    %437 = math.exp %436 : vector<32x2xf32>
    %cst_133 = arith.constant 1.000000e+00 : f32
    %438 = vector.broadcast %cst_133 : f32 to vector<32x2xf32>
    %439 = arith.addf %438, %437 : vector<32x2xf32>
    %440 = math.log %439 : vector<32x2xf32>
    %441 = arith.addf %433, %440 : vector<32x2xf32>
    %c0_134 = arith.constant 0 : index
    %c0_135 = arith.constant 0 : index
    %442 = vector.load %arg2[%c0_134, %c0_135] : memref<32x2xf32, #tpu.memory_space<vmem>>, vector<32x2xf32>
    tpu.vector_store %arg2[%c0_134, %c0_135], %441 {strides = array<i32>} : memref<32x2xf32, #tpu.memory_space<vmem>>, vector<32x2xf32>,
    return
  }
}

</mosaic_0001>

<bundles_post_ra>
// kernel: squeeze.7
= control target key start
LH: loop header
LB: loop body
LE: loop exit
PB: predicated region body
PF: predicated region fallthrough
CT: control target
= control target key end

     0   :  { %s85_s0 = inlined_call_operand.vmem [shape: f32[32], index: 0, kind: input, shape index: {}]   ;;  %s86_s1 = inlined_call_operand.hbm [shape: f32[2,16], index: 1, kind: output, shape index: {}]  }
   0x1   :  { %v5_v0 = vld [vmem:[%s85_s0] sm:$0x1] }
   0x2   :  { %2 = vsyncpa [#allocation1], 0  ;;  %6 = vst [vmem:[#allocation3] sm:$0x1] %v5_v0  ;;  %vm8_vm0 = vcmask 130048   ;;  %s58_s0 = smov 112  }
   0x3   :  { %s59_s8 = smov [#allocation0]  }
   0x4   :  { %s26_s9 = sshll.u32 %s59_s8, 4  ;;  %s27_s9 = int_to_ptr.vmem [resolvable:$true] %s26_s9 }
   0x5   :  { %s34_s10 = scalar_lea.vmem %s27_s9, 32  ;;  %p39_p1 = scmp.lt.s32.totalorder %s27_s9, %s27_s9 }
   0x6   :  { %p35_p0 = scmp.ne.s32.totalorder %s27_s9, %s34_s10  ;;  %p40_p2 = scmp.lt.s32.totalorder %s34_s10, %s34_s10 }
   0x8   :  { %p41_p3 = por %p40_p2, %p39_p1 }
   0x9   :  { %v10_v1 = vld [vmem:[#allocation3] sm:$0x1]  }
   0xa   :  { %v7_v2 = vld [vmem:[#allocation3] sm:$0x1]   ;;  %11 = vrot.lane.b32.xlu0 %v10_v1, %s58_s0  ;;  %p42_p4 = pnand %p41_p3, %p35_p0 }
   0xb   :  { %9 = vst.msk [vmem:[#allocation2] sm:$0x1] %vm8_vm0, %v7_v2  }
  0x7c   :  { %v12_v3 = vpop.permute.xlu0 %11  }
  0x7d   :  { %15 = vst.msk [vmem:[#allocation2 + $0x1] sm:$0x1] %vm8_vm0, %v12_v3  }
  0x84   :  { %v19_v4 = vld [vmem:[#allocation2] sm:$0x3] }
  0x85   :  { %21 = vst [vmem:[#allocation0] sm:$0x3] %v19_v4 }
  0x86   :  { %45 = shalt.err (!%p42_p4)
}
  0x87   :  { %s46_s13 = scalar_lea.hbm %s86_s1, 32 }
  0x88   :  { %p47_p5 = scmp.ne.s32.totalorder %s86_s1, %s46_s13  ;;  %p50_p6 = scmp.lt.u32.totalorder %s46_s13, %s86_s1 }
  0x8a   :  { %p52_p7 = pnand %p50_p6, %p47_p5 }
  0x8c   :  { %55 = shalt.err (!%p52_p7)
}
  0x8d   :  { %29 = dma.vmem_to_hbm [thread:$0]  %s27_s9, 32, %s86_s1, [#allocation1]  }
  0x8e   :  { %56 = dma.done.wait [#allocation1], 32  }
  0x8f   :  { %57 = vsyncadd [#allocation1], 4294967264 }
  0x90   :  { %31 = vsyncpa [#allocation1], 1 }

// kernel: forward.1
= control target key start
LH: loop header
LB: loop body
LE: loop exit
PB: predicated region body
PF: predicated region fallthrough
CT: control target
= control target key end

     0   :  { %7 = vsyncpa [#allocation3], 0  ;;  %s10761_s9 = smov [#allocation2]   ;;  %s13103_s0 = inlined_call_operand.vmem [shape: f32[32,8], index: 0, kind: input, shape index: {}]   ;;  %s13104_s1 = inlined_call_operand.hbm [shape: f32[824,128], index: 1, kind: input, shape index: {}]   ;;  %s13105_s2 = inlined_call_operand.vmem [shape: f32[32,2], index: 2, kind: output, shape index: {}]  }
   0x1   :  { %s15_s10 = sshll.u32 %s10761_s9, 4  ;;  %s10737_s13 = scalar_lea.hbm %s13104_s1, 13184  ;;  %s16_s10 = int_to_ptr.vmem [resolvable:$true] %s15_s10 }
   0x2   :  { %p10738_p0 = scmp.ne.s32.totalorder %s13104_s1, %s10737_s13  ;;  %p10741_p1 = scmp.lt.u32.totalorder %s10737_s13, %s13104_s1 }
   0x4   :  { %p10743_p2 = pnand %p10741_p1, %p10738_p0 }
   0x6   :  { %10746 = shalt.err (!%p10743_p2)
}
   0x7   :  { %s10747_s18 = scalar_lea.vmem %s16_s10, 13184  ;;  %p10752_p4 = scmp.lt.s32.totalorder %s16_s10, %s16_s10 }
   0x8   :  { %p10748_p3 = scmp.ne.s32.totalorder %s16_s10, %s10747_s18  ;;  %p10753_p5 = scmp.lt.s32.totalorder %s10747_s18, %s10747_s18 }
   0xa   :  { %p10754_p6 = por %p10753_p5, %p10752_p4 }
   0xc   :  { %p10755_p7 = pnand %p10754_p6, %p10748_p3 }
   0xe   :  { %10758 = shalt.err (!%p10755_p7)
}
   0xf   :  { %s10762_s19 = smov 128   ;;  %s10763_s20 = smov 8  }
  0x10   :  { %21 = dma.hbm_to_vmem [thread:$0]  %s13104_s1, 13184, %s16_s10, [#allocation3], %s10762_s19, %s10762_s19, %s10763_s20  }
  0x11   :  { %10759 = dma.done.wait [#allocation3], 13184  }
  0x12   :  { %10760 = vsyncadd [#allocation3], 4294954112  ;;  %vm34_vm0 = vcmask 64512   ;;  %v29_v0 = vld [vmem:[#allocation2] sm:$0xff]  ;;  %v26_v2 = vld [vmem:[%s13103_s0 + $0x8] sm:$0xff]  ;;  %vm136_vm1 = vcmask 261120   ;;  %v426_v53 = vlaneseq }
  0x13   :  { %v25_v1 = vld [vmem:[%s13103_s0] sm:$0xff]  ;;  %8442 = vmatprep.subr.mxu0 %v29_v0  ;;  %v27_v3 = vld [vmem:[%s13103_s0 + $0x10] sm:$0xff]  ;;  %v132_v4 = vld [vmem:[#allocation2 + $0x28] sm:$0xff]  ;;  %s10765_s30 = smov 120   ;;  %s10766_s3 = smov 112   ;;  %vm10768_vm4 = vmmov 0  }
  0x14   :  { %8444 = vmatprep.mubr.msk.f32.mxu0 %vm34_vm0, %v25_v1  ;;  %8443 = vmatpush3.msra.mxu0 %v29_v0  ;;  %v133_v5 = vld [vmem:[#allocation2 + $0x30] sm:$0xff]  ;;  %v28_v7 = vld [vmem:[%s13103_s0 + $0x18] sm:$0xff]  ;;  %v135_v9 = vld [vmem:[#allocation2 + $0x40] sm:$0xff]  ;;  %s10764_s0 = smov 96   ;;  %v10848_v54 = vshrl.u32 %v426_v53, 7  ;;  %s10770_s4 = smov 80  }
  0x15   :  { %8445 = vmatmul.mubr.msk.f32.vlgmr.msra.gmra.mrb[0].mxu0 %vm34_vm0, %v26_v2  ;;  %v9338_v6 = vpack.c.bf16 %v133_v5, %v132_v4  ;;  %v134_v8 = vld [vmem:[#allocation2 + $0x38] sm:$0xff]  ;;  %v31_v11 = vld [vmem:[#allocation2 + $0x10] sm:$0xff]  ;;  %v30_v12 = vld [vmem:[#allocation2 + $0x8] sm:$0xff]  ;;  %vm630_vm5 = vcmask 130048   ;;  %s10771_s5 = smov 72   ;;  %vm1335_vm7 = vcmask 31744  }
  0x16   :  { %8447 = vmatprep.mubr.msk.f32.mxu0 %vm34_vm0, %v27_v3  ;;  %v9342_v10 = vpack.c.bf16 %v135_v9, %v134_v8  ;;  %v33_v17 = vld [vmem:[#allocation2 + $0x20] sm:$0xff]  ;;  %v32_v18 = vld [vmem:[#allocation2 + $0x18] sm:$0xff]  ;;  %v10830_v25 = vld [vmem:[#allocation2 + $0x48] sm:$0xff]  ;;  %13120 = vst [vmem:[#allocation5_spill] sm:$0xff] %v10848_v54  ;;  %v10851_v55 = vsub.s32 0, %v10848_v54  ;;  %vm1352_vm8 = vcmask 1043456  }
  0x17   :  { %9339 = vmatprep.subr.bf16.mxu1 %v9338_v6  ;;  %8464 = vmatprep.subr.mxu0 %v10830_v25  ;;  %v244_v30 = vld [vmem:[#allocation2 + $0x58] sm:$0xff]  ;;  %v245_v31 = vld [vmem:[#allocation2 + $0x60] sm:$0xff]  ;;  %v10853_v56 = vld [vmem:[#allocation2 + $0x50] sm:$0x7]  ;;  %s10772_s6 = smov 88   ;;  %vm2302_vm11 = vcmask 523264  }
  0x18   :  { %9341 = vmatpush3.bf16.msra.mxu1 %v9338_v6  ;;  %8465 = vmatpush3.msra.mxu0 %v10830_v25  ;;  %13121 = vst [vmem:[#allocation6_spill] sm:$0xff] %v10851_v55  ;;  %v429_v57 = vrot.slane %v10853_v56, %v10851_v55  ;;  %vm11202_vm10 = vmpackc.low %vm34_vm0, %vm34_vm0  ;;  %s10773_s7 = smov 104   ;;  %s10774_s8 = smov 64   ;;  %vm7570_vm12 = vcmask 15360  }
  0x19   :  { %8448 = vmatmul.mubr.msk.f32.gmra.mrb[2].mxu0 %vm34_vm0, %v28_v7  ;;  %9343 = vmatprep.subr.bf16.mxu1 %v9342_v10  ;;  %s10775_s9 = smov 32   ;;  %s10776_s10 = smov 126  }
  0x1a   :  { %432 = vrot.lane.b32.xlu1 %v244_v30, %s10764_s0  ;;  %s10777_s11 = smov 124   ;;  %s10778_s12 = smov 122  }
  0x1c   :  { %9345 = vmatpush3.bf16.msra.mxu1 %v9342_v10 }
  0x1e   :  { %434 = vrot.lane.b32.xlu1 %v245_v31, %s10764_s0 }
  0x8c   :  { %v433_v32 = vpop.permute.xlu1 %432 }
  0x90   :  { %v435_v49 = vpop.permute.xlu1 %434 }
  0xe8   :  { %v8446_v13 = vpop.f32.mrb[0].mxu0 }
  0xe9   :  { %v119_v14 = vadd.f32 %v8446_v13, %v31_v11  ;;  %v113_v15 = vpop.f32.mrb[1].mxu0  ;;  %v10767_v11 = vmov 0.0|0.0   ;;  %v10769_v13 = vmov 0.0  }
  0xea   :  { %v114_v16 = vadd.f32 %v113_v15, %v30_v12  ;;  %v246_v12 = vld [vmem:[#allocation2 + $0x68] sm:$0xff] }
  0xec   :  { %v10822_v19 = vpack.c.bf16 %v119_v14, %v114_v16  ;;  %v8449_v20 = vpop.f32.mrb[2].mxu0  ;;  %8458 = vmatprep.mubr.msk.f32.mxu1 %vm136_vm1, %v114_v16  ;;  %v10866_v16 = vld [vmem:[#allocation2 + $0x90] sm:$0xff] }
  0xed   :  { %v129_v21 = vadd.f32 %v8449_v20, %v33_v17  ;;  %v123_v22 = vpop.f32.mrb[3].mxu0  ;;  %8459 = vmatmul.mubr.msk.f32.vlgmr.msra.gmra.mrb[0].mxu1 %vm136_vm1, %v119_v14  ;;  %v10862_v14 = vld [vmem:[#allocation2 + $0x80] sm:$0xff] }
  0xee   :  { %v124_v23 = vadd.f32 %v123_v22, %v32_v18  ;;  %v10873_v22 = vld [vmem:[#allocation2 + $0x78] sm:$0xff] }
  0xf0   :  { %v10826_v24 = vpack.c.bf16 %v129_v21, %v124_v23  ;;  %8461 = vmatprep.mubr.msk.f32.mxu1 %vm136_vm1, %v124_v23  ;;  %v10882_v23 = vld [vmem:[#allocation2 + $0xb0] sm:$0xff] }
  0xf1   :  { %8462 = vmatmul.mubr.msk.f32.gmra.mrb[2].mxu1 %vm136_vm1, %v129_v21  ;;  %v10871_v21 = vld [vmem:[#allocation2 + $0xa0] sm:$0xff] }
  0xf2   :  { %8491 = vmatprep.mubr.msk.f32.mxu1 %vm136_vm1, %v433_v32 }
 0x1c0   :  { %v8460_v26 = vpop.f32.mrb[0].mxu1 }
 0x1c1   :  { %v215_v27 = vpop.f32.mrb[1].mxu1 }
 0x1c2   :  { %8466 = vmatprep.mubr.msk.f32.mxu0 %vm34_vm0, %v215_v27  ;;  %v10890_v27 = vld [vmem:[#allocation2 + $0x98] sm:$0xff] }
 0x1c3   :  { %8467 = vmatmul.mubr.msk.f32.vlgmr.msra.gmra.mrb[4].mxu0 %vm34_vm0, %v8460_v26  ;;  %v10884_v26 = vld [vmem:[#allocation2 + $0x88] sm:$0xff] }
 0x1c4   :  { %v8463_v28 = vpop.f32.mrb[2].mxu1 }
 0x1c5   :  { %v225_v29 = vpop.f32.mrb[3].mxu1 }
 0x1c6   :  { %8469 = vmatprep.mubr.msk.f32.mxu0 %vm34_vm0, %v225_v29 }
 0x1c7   :  { %8470 = vmatmul.mubr.msk.f32.gmra.mrb[6].mxu0 %vm34_vm0, %v8463_v28  ;;  %v10894_v28 = vld [vmem:[#allocation2 + $0xa8] sm:$0xff] }
 0x1c8   :  { %8480 = vmatprep.mubr.msk.f32.mxu0 %vm136_vm1, %v244_v30 }
 0x296   :  { %v8468_v33 = vpop.f32.mrb[4].mxu0 }
 0x297   :  { %v326_v34 = vpop.f32.mrb[5].mxu0 }
 0x298   :  { %v9346_v35 = vpack.c.bf16 %v8468_v33, %v326_v34  ;;  %v9980_v36 = vpack.i.bf16 %v8468_v33, %v326_v34 }
 0x29a   :  { %9981 = vrot.lane.b32.xlu0 %v9980_v36, %s10765_s30  ;;  %v8471_v37 = vpop.f32.mrb[6].mxu0  ;;  %9347 = vmatprep.subr.bf16.mxu0 %v9346_v35 }
 0x29b   :  { %v336_v38 = vpop.f32.mrb[7].mxu0  ;;  %9349 = vmatpush3.bf16.msra.mxu0 %v9346_v35  ;;  %v10903_v35 = vsub.s32 1, %v10848_v54 }
 0x29c   :  { %v9985_v39 = vpack.i.bf16 %v8471_v37, %v336_v38  ;;  %v9350_v40 = vpack.c.bf16 %v8471_v37, %v336_v38 }
 0x29d   :  { %13122 = vst [vmem:[#allocation7_spill] sm:$0xff] %v10903_v35  ;;  %v707_v36 = vrot.slane %v10853_v56, %v10903_v35 }
 0x29e   :  { %9986 = vrot.lane.b32.xlu0 %v9985_v39, %s10765_s30  ;;  %9351 = vmatprep.subr.bf16.mxu0 %v9350_v40 }
 0x29f   :  { %9353 = vmatpush3.bf16.msra.mxu0 %v9350_v40 }
 0x2a2   :  { %8481 = vmatmul.mubr.msk.f32.vlgmr.msra.gmra.mrb[8].mxu0 %vm136_vm1, %v245_v31  ;;  %546 = vrot.lane.b32.xlu0 %v10830_v25, %s10766_s3 }
 0x2a6   :  { %709 = vrot.lane.b32.xlu0 %v246_v12, %s10766_s3 }
 0x2aa   :  { %808 = vrot.lane.b32.xlu0 %v10862_v14, %s10770_s4 }
 0x2ae   :  { %812 = vrot.lane.b32.xlu0 %v10866_v16, %s10770_s4 }
 0x2b2   :  { %816 = vrot.lane.b32.xlu0 %v10871_v21, %s10770_s4 }
 0x2b6   :  { %820 = vrot.lane.b32.xlu0 %v10882_v23, %s10770_s4 }
 0x30c   :  { %v9982_v41 = vpop.permute.xlu0 %9981 }
 0x30d   :  { %v9984_v42 = vunpack.i.h.bf16 %v9982_v41  ;;  %v9983_v43 = vunpack.i.l.bf16 %v9982_v41 }
 0x30f   :  { %v9354_v44 = vpack.c.bf16 %v9984_v42, %v9983_v43 }
 0x310   :  { %v9987_v45 = vpop.permute.xlu0 %9986 }
 0x311   :  { %v9989_v46 = vunpack.i.h.bf16 %v9987_v45  ;;  %v9988_v47 = vunpack.i.l.bf16 %v9987_v45  ;;  %9355 = vmatprep.subr.bf16.mxu1 %v9354_v44 }
 0x312   :  { %9357 = vmatpush3.bf16.msra.mxu1 %v9354_v44 }
 0x313   :  { %v9358_v48 = vpack.c.bf16 %v9989_v46, %v9988_v47 }
 0x314   :  { %v547_v52 = vpop.permute.xlu0 %546 }
 0x315   :  { %9359 = vmatprep.subr.bf16.mxu1 %v9358_v48  ;;  %8494 = vmatprep.subr.mxu0 %v547_v52 }
 0x316   :  { %9361 = vmatpush3.bf16.msra.mxu1 %v9358_v48  ;;  %8495 = vmatpush3.msra.mxu0 %v547_v52  ;;  %v247_v52 = vld [vmem:[#allocation2 + $0x70] sm:$0xf] }
 0x317   :  { %9362 = vmatprep.subr.bf16.mxu0 %v10767_v11 }
 0x318   :  { %v710_v33 = vpop.permute.xlu0 %709 }
 0x319   :  { %8492 = vmatmul.mubr.msk.f32.vlgmr.msra.gmra.mrb[4].mxu1 %vm136_vm1, %v435_v49 }
 0x31c   :  { %v809_v43 = vpop.permute.xlu0 %808 }
 0x320   :  { %v813_v48 = vpop.permute.xlu0 %812 }
 0x375   :  { %v8482_v50 = vpop.f32.mrb[8].mxu0 }
 0x376   :  { %v417_v51 = vpop.f32.mrb[9].mxu0  ;;  %v431_v58 = vadd.f32 %v8482_v50, %v429_v57  ;;  %v817_v50 = vpop.permute.xlu0 %816 }
 0x377   :  { %v430_v59 = vadd.f32 %v429_v57, %v417_v51 }
 0x37a   :  { %v821_v51 = vpop.permute.xlu0 %820 }
 0x3ec   :  { %v8493_v60 = vpop.f32.mrb[4].mxu1 }
 0x3ed   :  { %v532_v61 = vadd.f32 %v8493_v60, %v431_v58  ;;  %v522_v62 = vpop.f32.mrb[5].mxu1 }
 0x3ee   :  { %v531_v63 = vadd.f32 %v522_v62, %v430_v59 }
 0x3ef   :  { %v536_v0 = vmin.f32 %v532_v61, 0.0  ;;  %vm534_vm2 = vcmp.gt.f32.partialorder %v532_v61, 0.0 }
 0x3f0   :  { %v535_v1 = vmin.f32 %v531_v63, 0.0  ;;  %vm533_vm3 = vcmp.gt.f32.partialorder %v531_v63, 0.0 }
 0x3f1   :  { %v539_v2 = vmul.f32 1.442695, %v536_v0 }
 0x3f2   :  { %v537_v3 = vmul.f32 1.442695, %v535_v1 }
 0x3f3   :  { %10335 = vpow2.f32 %v539_v2 }
 0x3f4   :  { %10337 = vpow2.f32 %v537_v3  ;;  %v1469_v3 = vld [vmem:[#allocation2 + $0xb8] sm:$0xff] }
 0x3fd   :  { %v10336_v4 = vpop.eup %10335 }
 0x3fe   :  { %v10338_v5 = vpop.eup %10337  ;;  %v7597_v6 = vadd.f32 -1.0, %v10336_v4 }
 0x3ff   :  { %v7596_v7 = vadd.f32 -1.0, %v10338_v5 }
 0x400   :  { %v544_v8 = vsel %vm534_vm2, %v532_v61, %v7597_v6 }
 0x401   :  { %v543_v9 = vsel %vm533_vm3, %v531_v63, %v7596_v7 }
 0x402   :  { %8496 = vmatprep.mubr.msk.f32.mxu0 %vm34_vm0, %v543_v9  ;;  %v9368_v10 = vpack.c.bf16 %v544_v8, %v543_v9 }
 0x403   :  { %8497 = vmatmul.mubr.msk.f32.vlgmr.msra.gmra.mrb[10].mxu0 %vm34_vm0, %v544_v8 }
 0x404   :  { %9369 = vmatprep.subr.bf16.mxu1 %v9368_v10  ;;  %8503 = vmatprep.mubr.msk.f32.mxu0 %vm10768_vm4, %v10769_v13 }
 0x405   :  { %9371 = vmatpush3.bf16.msra.mxu1 %v9368_v10 }
 0x4d6   :  { %v8498_v15 = vpop.f32.mrb[10].mxu0 }
 0x4d7   :  { %v621_v17 = vpop.f32.mrb[11].mxu0 }
 0x4d8   :  { %v9990_v18 = vpack.i.bf16 %v8498_v15, %v621_v17  ;;  %v9363_v20 = vpack.c.bf16 %v8498_v15, %v621_v17  ;;  %v10987_v15 = vsub.s32 2, %v10848_v54 }
 0x4da   :  { %9991 = vrot.lane.b32.xlu1 %v9990_v18, %s10765_s30  ;;  %9364 = vmatpush3.bf16.msra.mxu0 %v9363_v20  ;;  %13123 = vst [vmem:[#allocation8_spill] sm:$0xff] %v10987_v15  ;;  %v1232_v17 = vrot.slane %v10853_v56, %v10987_v15 }
 0x4db   :  { %9365 = vmatprep.subr.bf16.mxu0 %v10767_v11 }
 0x4dd   :  { %8504 = vmatmul.mubr.msk.f32.vlgmr.msra.gmra.mrb[12].mxu0 %vm630_vm5, %v246_v12 }
 0x4de   :  { %8510 = vmatprep.mubr.msk.f32.mxu0 %vm10768_vm4, %v10769_v13  ;;  %806 = vrot.lane.b32.xlu1 %v10873_v22, %s10770_s4 }
 0x4e2   :  { %810 = vrot.lane.b32.xlu1 %v10884_v26, %s10770_s4 }
 0x4e6   :  { %814 = vrot.lane.b32.xlu1 %v10890_v27, %s10770_s4 }
 0x4ea   :  { %818 = vrot.lane.b32.xlu1 %v10894_v28, %s10770_s4 }
 0x4ee   :  { %1080 = vrot.lane.b32.xlu1 %v10830_v25, %s10764_s0 }
 0x4f2   :  { %1234 = vrot.lane.b32.xlu1 %v247_v52, %s10765_s30 }
 0x4f6   :  { %945 = vrot.lane.b32.xlu1 %v10862_v14, %s10764_s0 }
 0x4fa   :  { %949 = vrot.lane.b32.xlu1 %v10866_v16, %s10764_s0 }
 0x4fe   :  { %953 = vrot.lane.b32.xlu1 %v10871_v21, %s10764_s0 }
 0x502   :  { %957 = vrot.lane.b32.xlu1 %v10882_v23, %s10764_s0 }
 0x506   :  { %1321 = vrot.lane.b32.xlu1 %v10862_v14, %s10771_s5 }
 0x50a   :  { %1325 = vrot.lane.b32.xlu1 %v10866_v16, %s10771_s5 }
 0x50e   :  { %1329 = vrot.lane.b32.xlu1 %v10871_v21, %s10771_s5 }
 0x512   :  { %1333 = vrot.lane.b32.xlu1 %v10882_v23, %s10771_s5 }
 0x54c   :  { %v9992_v29 = vpop.permute.xlu1 %9991 }
 0x54d   :  { %v9994_v30 = vunpack.i.h.bf16 %v9992_v29  ;;  %v9993_v31 = vunpack.i.l.bf16 %v9992_v29 }
 0x54f   :  { %v9366_v32 = vpack.c.bf16 %v9994_v30, %v9993_v31 }
 0x550   :  { %v807_v34 = vpop.permute.xlu1 %806 }
 0x551   :  { %9367 = vmatpush3.bf16.msra.mxu0 %v9366_v32 }
 0x554   :  { %8511 = vmatmul.mubr.msk.f32.vlgmr.msra.gmra.mrb[12].mxu0 %vm630_vm5, %v710_v33  ;;  %v811_v40 = vpop.permute.xlu1 %810 }
 0x555   :  { %8515 = vmatprep.mubr.msk.f32.mxu0 %vm34_vm0, %v807_v34 }
 0x558   :  { %v815_v42 = vpop.permute.xlu1 %814 }
 0x55c   :  { %v819_v44 = vpop.permute.xlu1 %818 }
 0x560   :  { %v1081_v49 = vpop.permute.xlu1 %1080 }
 0x564   :  { %v1235_v2 = vpop.permute.xlu1 %1234 }
 0x568   :  { %v946_v6 = vpop.permute.xlu1 %945 }
 0x56c   :  { %v950_v8 = vpop.permute.xlu1 %949 }
 0x570   :  { %v954_v10 = vpop.permute.xlu1 %953 }
 0x574   :  { %v958_v12 = vpop.permute.xlu1 %957 }
 0x578   :  { %v1322_v32 = vpop.permute.xlu1 %1321 }
 0x627   :  { %v787_v37 = vpop.f32.mrb[12].mxu0 }
 0x628   :  { %v9856_v38 = vadd.f32 %v787_v37, %v707_v36  ;;  %v8512_v25 = vpop.f32.mrb[13].mxu0 }
 0x62a   :  { %v793_v39 = vmin.f32 %v9856_v38, 0.0  ;;  %vm792_vm6 = vcmp.gt.f32.partialorder %v9856_v38, 0.0 }
 0x62c   :  { %v794_v41 = vmul.f32 1.442695, %v793_v39 }
 0x62e   :  { %10339 = vpow2.f32 %v794_v41 }
 0x638   :  { %v10340_v45 = vpop.eup %10339 }
 0x639   :  { %v7602_v46 = vadd.f32 -1.0, %v10340_v45 }
 0x63b   :  { %v797_v47 = vsel %vm792_vm6, %v9856_v38, %v7602_v46  ;;  %v1326_v38 = vpop.permute.xlu1 %1325 }
 0x63c   :  { %8513 = vmatprep.subr.mxu0 %v797_v47 }
 0x63d   :  { %8514 = vmatpush3.msra.mxu0 %v797_v47 }
 0x63e   :  { %8516 = vmatmul.mubr.msk.f32.vlgmr.msra.gmra.mrb[14].mxu0 %vm34_vm0, %v809_v43  ;;  %8543 = vmatprep.subr.mxu0 %v10769_v13 }
 0x63f   :  { %8518 = vmatprep.mubr.msk.f32.mxu0 %vm34_vm0, %v811_v40  ;;  %8544 = vmatpush3.msra.mxu0 %v1081_v49  ;;  %v1330_v56 = vpop.permute.xlu1 %1329 }
 0x640   :  { %8548 = vmatprep.subr.mxu0 %v10769_v13 }
 0x642   :  { %8519 = vmatmul.mubr.msk.f32.gmra.mrb[16].mxu0 %vm34_vm0, %v813_v48 }
 0x643   :  { %8521 = vmatprep.mubr.msk.f32.mxu0 %vm34_vm0, %v815_v42  ;;  %v1334_v40 = vpop.permute.xlu1 %1333 }
 0x646   :  { %8522 = vmatmul.mubr.msk.f32.gmra.mrb[18].mxu0 %vm34_vm0, %v817_v50 }
 0x647   :  { %8524 = vmatprep.mubr.msk.f32.mxu0 %vm34_vm0, %v819_v44 }
 0x64a   :  { %8525 = vmatmul.mubr.msk.f32.gmra.mrb[20].mxu0 %vm34_vm0, %v821_v51 }
 0x64b   :  { %8545 = vmatprep.mubr.msk.f32.mxu0 %vm10768_vm4, %v10769_v13 }
 0x64e   :  { %8546 = vmatmul.mubr.msk.f32.vlgmr.msra.gmra.mrb[22].mxu0 %vm34_vm0, %v797_v47 }
 0x64f   :  { %8550 = vmatprep.mubr.msk.f32.mxu0 %vm10768_vm4, %v10769_v13 }
 0x711   :  { %v10930_v53 = vpop.f32.mrb[14].mxu0 }
 0x712   :  { %v10932_v57 = vpop.f32.mrb[15].mxu0 }
 0x715   :  { %v10934_v58 = vpop.f32.mrb[16].mxu0 }
 0x716   :  { %v10936_v59 = vpop.f32.mrb[17].mxu0 }
 0x719   :  { %v10938_v60 = vpop.f32.mrb[18].mxu0 }
 0x71a   :  { %v10942_v61 = vpop.f32.mrb[19].mxu0 }
 0x71d   :  { %v10944_v62 = vpop.f32.mrb[20].mxu0 }
 0x71e   :  { %v10948_v63 = vpop.f32.mrb[21].mxu0 }
 0x721   :  { %v1152_v0 = vpop.f32.mrb[22].mxu0 }
 0x722   :  { %1237 = vrot.lane.b32.xlu0 %v1152_v0, %s10765_s30  ;;  %v8547_v1 = vpop.f32.mrb[23].mxu0  ;;  %8549 = vmatpush3.msra.mxu0 %v1152_v0  ;;  %v1724_v0 = vld [vmem:[#allocation2 + $0xe0] sm:$0xff] }
 0x723   :  { %8551 = vmatmul.mubr.msk.f32.vlgmr.msra.gmra.mrb[24].mxu0 %vm34_vm0, %v247_v52  ;;  %8553 = vmatprep.subr.mxu0 %v10769_v13 }
 0x724   :  { %8555 = vmatprep.mubr.msk.f32.mxu0 %vm10768_vm4, %v10769_v13 }
 0x726   :  { %943 = vrot.lane.b32.xlu0 %v10873_v22, %s10764_s0 }
 0x72a   :  { %947 = vrot.lane.b32.xlu0 %v10884_v26, %s10764_s0 }
 0x72e   :  { %951 = vrot.lane.b32.xlu0 %v10890_v27, %s10764_s0 }
 0x732   :  { %955 = vrot.lane.b32.xlu0 %v10894_v28, %s10764_s0 }
 0x736   :  { %1319 = vrot.lane.b32.xlu0 %v10873_v22, %s10771_s5 }
 0x73a   :  { %1323 = vrot.lane.b32.xlu0 %v10884_v26, %s10771_s5 }
 0x73e   :  { %1327 = vrot.lane.b32.xlu0 %v10890_v27, %s10771_s5 }
 0x742   :  { %1331 = vrot.lane.b32.xlu0 %v10894_v28, %s10771_s5 }
 0x794   :  { %v1238_v4 = vpop.permute.xlu0 %1237 }
 0x795   :  { %8554 = vmatpush3.msra.mxu0 %v1238_v4 }
 0x796   :  { %8556 = vmatmul.mubr.msk.f32.vlgmr.msra.gmra.mrb[24].mxu0 %vm34_vm0, %v1235_v2  ;;  %8572 = vmatprep.subr.mxu0 %v1469_v3 }
 0x797   :  { %8573 = vmatpush3.msra.mxu0 %v1469_v3  ;;  %v1725_v3 = vld [vmem:[#allocation2 + $0xe8] sm:$0xff] }
 0x798   :  { %9373 = vmatprep.subr.bf16.mxu0 %v10822_v19  ;;  %v944_v5 = vpop.permute.xlu0 %943 }
 0x799   :  { %8531 = vmatprep.mubr.msk.f32.mxu1 %vm630_vm5, %v944_v5 }
 0x79a   :  { %8532 = vmatmul.mubr.msk.f32.vlgmr.msra.gmra.mrb[6].mxu1 %vm630_vm5, %v946_v6  ;;  %v1726_v6 = vld [vmem:[#allocation2 + $0xf0] sm:$0xff] }
 0x79c   :  { %v948_v7 = vpop.permute.xlu0 %947 }
 0x79d   :  { %8534 = vmatprep.mubr.msk.f32.mxu1 %vm630_vm5, %v948_v7 }
 0x79e   :  { %8535 = vmatmul.mubr.msk.f32.gmra.mrb[8].mxu1 %vm630_vm5, %v950_v8 }
 0x7a0   :  { %v952_v9 = vpop.permute.xlu0 %951 }
 0x7a1   :  { %8537 = vmatprep.mubr.msk.f32.mxu1 %vm630_vm5, %v952_v9 }
 0x7a2   :  { %8538 = vmatmul.mubr.msk.f32.gmra.mrb[10].mxu1 %vm630_vm5, %v954_v10 }
 0x7a4   :  { %v956_v11 = vpop.permute.xlu0 %955 }
 0x7a5   :  { %8540 = vmatprep.mubr.msk.f32.mxu1 %vm630_vm5, %v956_v11  ;;  %v1727_v11 = vld [vmem:[#allocation2 + $0xf8] sm:$0xff] }
 0x7a6   :  { %8541 = vmatmul.mubr.msk.f32.gmra.mrb[12].mxu1 %vm630_vm5, %v958_v12 }
 0x7a8   :  { %v1320_v13 = vpop.permute.xlu0 %1319 }
 0x7a9   :  { %8560 = vmatprep.mubr.msk.f32.mxu1 %vm1335_vm7, %v1320_v13 }
 0x7ac   :  { %v1324_v34 = vpop.permute.xlu0 %1323 }
 0x7b0   :  { %v1328_v25 = vpop.permute.xlu0 %1327 }
 0x7b4   :  { %v1332_v39 = vpop.permute.xlu0 %1331 }
 0x869   :  { %v1308_v18 = vpop.f32.mrb[24].mxu0 }
 0x86a   :  { %v9865_v20 = vadd.f32 %v1308_v18, %v1232_v17  ;;  %v8557_v29 = vpop.f32.mrb[25].mxu0 }
 0x86c   :  { %v1314_v30 = vmin.f32 %v9865_v20, 0.0  ;;  %vm1313_vm9 = vcmp.gt.f32.partialorder %v9865_v20, 0.0 }
 0x86e   :  { %v1315_v31 = vmul.f32 1.442695, %v1314_v30 }
 0x870   :  { %10341 = vpow2.f32 %v1315_v31 }
 0x87a   :  { %v10342_v33 = vpop.eup %10341 }
 0x87b   :  { %v7622_v36 = vadd.f32 -1.0, %v10342_v33 }
 0x87d   :  { %v1318_v37 = vsel %vm1313_vm9, %v9865_v20, %v7622_v36 }
 0x87e   :  { %8558 = vmatprep.subr.msk.mxu1 %vm1352_vm8, %v1318_v37 }
 0x87f   :  { %8559 = vmatpush3.msk.msra.mxu1 %vm1352_vm8, %v1318_v37 }
 0x880   :  { %8561 = vmatmul.mubr.msk.f32.vlgmr.msra.gmra.mrb[6].mxu1 %vm1335_vm7, %v1322_v32 }
 0x881   :  { %8563 = vmatprep.mubr.msk.f32.mxu1 %vm1335_vm7, %v1324_v34 }
 0x884   :  { %8564 = vmatmul.mubr.msk.f32.gmra.mrb[8].mxu1 %vm1335_vm7, %v1326_v38 }
 0x885   :  { %8566 = vmatprep.mubr.msk.f32.mxu1 %vm1335_vm7, %v1328_v25 }
 0x888   :  { %8567 = vmatmul.mubr.msk.f32.gmra.mrb[10].mxu1 %vm1335_vm7, %v1330_v56 }
 0x889   :  { %8569 = vmatprep.mubr.msk.f32.mxu1 %vm1335_vm7, %v1332_v39 }
 0x88c   :  { %8570 = vmatmul.mubr.msk.f32.gmra.mrb[12].mxu1 %vm1335_vm7, %v1334_v40 }
 0x953   :  { %v8562_v41 = vpop.f32.mrb[6].mxu1 }
 0x954   :  { %v9857_v42 = vadd.f32 %v8562_v41, %v10930_v53  ;;  %v1422_v43 = vpop.f32.mrb[7].mxu1 }
 0x955   :  { %v9858_v44 = vadd.f32 %v1422_v43, %v10932_v57 }
 0x957   :  { %v8565_v45 = vpop.f32.mrb[8].mxu1  ;;  %8574 = vmatprep.mubr.msk.f32.mxu0 %vm34_vm0, %v9858_v44 }
 0x958   :  { %v9859_v46 = vadd.f32 %v8565_v45, %v10934_v58  ;;  %v1432_v47 = vpop.f32.mrb[9].mxu1  ;;  %8575 = vmatmul.mubr.msk.f32.vlgmr.msra.gmra.mrb[26].mxu0 %vm34_vm0, %v9857_v42 }
 0x959   :  { %v9860_v48 = vadd.f32 %v1432_v47, %v10936_v59  ;;  %9375 = vmatpush3.bf16.msra.mxu0 %v10822_v19 }
 0x95a   :  { %9377 = vmatprep.subr.bf16.mxu0 %v10826_v24 }
 0x95b   :  { %v8568_v49 = vpop.f32.mrb[10].mxu1  ;;  %8577 = vmatprep.mubr.msk.f32.mxu0 %vm34_vm0, %v9860_v48 }
 0x95c   :  { %v9861_v50 = vadd.f32 %v8568_v49, %v10938_v60  ;;  %v1442_v51 = vpop.f32.mrb[11].mxu1  ;;  %8578 = vmatmul.mubr.msk.f32.gmra.mrb[28].mxu0 %vm34_vm0, %v9859_v46 }
 0x95d   :  { %v9862_v52 = vadd.f32 %v1442_v51, %v10942_v61  ;;  %9379 = vmatpush3.bf16.msra.mxu0 %v10826_v24  ;;  %v1721_v24 = vld [vmem:[#allocation2 + $0xc8] sm:$0xff]  ;;  %v1722_v61 = vld [vmem:[#allocation2 + $0xd0] sm:$0xff] }
 0x95f   :  { %v8571_v53 = vpop.f32.mrb[12].mxu1  ;;  %8580 = vmatprep.mubr.msk.f32.mxu0 %vm34_vm0, %v9862_v52 }
 0x960   :  { %v9863_v57 = vadd.f32 %v8571_v53, %v10944_v62  ;;  %v1452_v19 = vpop.f32.mrb[13].mxu1  ;;  %8581 = vmatmul.mubr.msk.f32.gmra.mrb[30].mxu0 %vm34_vm0, %v9861_v50 }
 0x961   :  { %v9864_v58 = vadd.f32 %v1452_v19, %v10948_v63 }
 0x963   :  { %8583 = vmatprep.mubr.msk.f32.mxu0 %vm34_vm0, %v9864_v58 }
 0x964   :  { %8584 = vmatmul.mubr.msk.f32.gmra.mrb[32].mxu0 %vm34_vm0, %v9863_v57 }
 0x965   :  { %8594 = vmatprep.mubr.msk.f32.mxu0 %vm136_vm1, %v10873_v22 }
 0x968   :  { %8595 = vmatmul.mubr.msk.f32.vlgmr.msra.gmra.mrb[26].mxu0 %vm136_vm1, %v10862_v14  ;;  %v1720_v14 = vld [vmem:[#allocation2 + $0xc0] sm:$0xff] }
 0x969   :  { %8597 = vmatprep.mubr.msk.f32.mxu0 %vm136_vm1, %v10884_v26 }
 0x96c   :  { %8598 = vmatmul.mubr.msk.f32.gmra.mrb[28].mxu0 %vm136_vm1, %v10866_v16 }
 0x96d   :  { %8600 = vmatprep.mubr.msk.f32.mxu0 %vm136_vm1, %v10890_v27 }
 0x970   :  { %8601 = vmatmul.mubr.msk.f32.gmra.mrb[30].mxu0 %vm136_vm1, %v10871_v21  ;;  %v1723_v21 = vld [vmem:[#allocation2 + $0xd8] sm:$0xff] }
 0x971   :  { %8603 = vmatprep.mubr.msk.f32.mxu0 %vm136_vm1, %v10894_v28 }
 0x974   :  { %8604 = vmatmul.mubr.msk.f32.gmra.mrb[32].mxu0 %vm136_vm1, %v10882_v23 }
 0xa3b   :  { %v8596_v22 = vpop.f32.mrb[26].mxu0 }
 0xa3c   :  { %v1729_v59 = vadd.f32 %v8596_v22, %v1721_v24  ;;  %v1681_v26 = vpop.f32.mrb[27].mxu0 }
 0xa3d   :  { %v1728_v60 = vadd.f32 %v1720_v14, %v1681_v26 }
 0xa3e   :  { %v1740_v16 = vsel %vm136_vm1, %v1729_v59, 0.0 }
 0xa3f   :  { %1741 = vadd.xlane.f32.xlu1 %v1740_v16  ;;  %v8599_v27 = vpop.f32.mrb[28].mxu0  ;;  %v1737_v62 = vsel %vm136_vm1, %v1728_v60, 0.0 }
 0xa40   :  { %1738 = vadd.xlane.f32.xlu0 %v1737_v62  ;;  %v1691_v63 = vpop.f32.mrb[29].mxu0  ;;  %v1731_v1 = vadd.f32 %v8599_v27, %v1723_v21 }
 0xa41   :  { %v1730_v28 = vadd.f32 %v1722_v61, %v1691_v63 }
 0xa42   :  { %v1746_v9 = vsel %vm136_vm1, %v1731_v1, 0.0 }
 0xa43   :  { %v8602_v23 = vpop.f32.mrb[30].mxu0  ;;  %v1743_v2 = vsel %vm136_vm1, %v1730_v28, 0.0 }
 0xa44   :  { %1744 = vadd.xlane.f32.xlu0 %v1743_v2  ;;  %v1701_v4 = vpop.f32.mrb[31].mxu0  ;;  %v1733_v7 = vadd.f32 %v8602_v23, %v1725_v3  ;;  %v1879_v2 = vld [vmem:[#allocation2 + $0x170] sm:$0xff] }
 0xa45   :  { %v1732_v5 = vadd.f32 %v1724_v0, %v1701_v4  ;;  %v1875_v0 = vld [vmem:[#allocation2 + $0x150] sm:$0xff]  ;;  %v1876_v4 = vld [vmem:[#allocation2 + $0x158] sm:$0xff] }
 0xa46   :  { %v1752_v18 = vsel %vm136_vm1, %v1733_v7, 0.0 }
 0xa47   :  { %v8605_v8 = vpop.f32.mrb[32].mxu0  ;;  %v1749_v10 = vsel %vm136_vm1, %v1732_v5, 0.0 }
 0xa48   :  { %1747 = vadd.xlane.f32.xlu0 %v1746_v9  ;;  %1750 = vadd.xlane.f32.xlu1 %v1749_v10  ;;  %v1711_v12 = vpop.f32.mrb[33].mxu0  ;;  %v1735_v17 = vadd.f32 %v8605_v8, %v1727_v11  ;;  %v1881_v8 = vld [vmem:[#allocation2 + $0x180] sm:$0xff] }
 0xa49   :  { %v1734_v13 = vadd.f32 %v1726_v6, %v1711_v12  ;;  %v1880_v6 = vld [vmem:[#allocation2 + $0x178] sm:$0xff] }
 0xa4a   :  { %v1758_v29 = vsel %vm136_vm1, %v1735_v17, 0.0  ;;  %v9392_v9 = vpack.c.bf16 %v1881_v8, %v1880_v6 }
 0xa4b   :  { %v1755_v20 = vsel %vm136_vm1, %v1734_v13, 0.0 }
 0xa4c   :  { %1753 = vadd.xlane.f32.xlu0 %v1752_v18  ;;  %1756 = vadd.xlane.f32.xlu1 %v1755_v20 }
 0xa50   :  { %1759 = vadd.xlane.f32.xlu0 %v1758_v29 }
 0xacc   :  { %v1742_v30 = vpop.xlane.xlu1 %1741 }
 0xacd   :  { %v1763_v31 = vmul.f32 0.03125, %v1742_v30  ;;  %v1739_v32 = vpop.xlane.xlu0 %1738 }
 0xace   :  { %v1762_v33 = vmul.f32 0.03125, %v1739_v32 }
 0xacf   :  { %v11041_v34 = vsub.f32 %v1729_v59, %v1763_v31 }
 0xad0   :  { %v11043_v36 = vsub.f32 %v1728_v60, %v1762_v33 }
 0xad1   :  { %v1745_v37 = vpop.xlane.xlu0 %1744  ;;  %v1779_v38 = vmul.f32 %v11041_v34, %v11041_v34 }
 0xad2   :  { %v1764_v25 = vmul.f32 0.03125, %v1745_v37  ;;  %v1778_v56 = vmul.f32 %v11043_v36, %v11043_v36 }
 0xad3   :  { %v1789_v39 = vsel %vm136_vm1, %v1779_v38, 0.0  ;;  %v1736_v38 = vld [vmem:[#allocation2 + $0x100] sm:$0x3] }
 0xad4   :  { %v11050_v40 = vsub.f32 %v1730_v28, %v1764_v25  ;;  %1790 = vadd.xlane.f32.xlu0 %v1789_v39  ;;  %v1786_v41 = vsel %vm136_vm1, %v1778_v56, 0.0  ;;  %v1874_v28 = vld [vmem:[#allocation2 + $0x148] sm:$0xff] }
 0xad5   :  { %v1748_v42 = vpop.xlane.xlu0 %1747  ;;  %v1751_v43 = vpop.xlane.xlu1 %1750  ;;  %1787 = vadd.xlane.f32.xlu1 %v1786_v41  ;;  %v9380_v23 = vpack.c.bf16 %v1875_v0, %v1874_v28 }
 0xad6   :  { %v1765_v44 = vmul.f32 0.03125, %v1748_v42  ;;  %v1766_v45 = vmul.f32 0.03125, %v1751_v43  ;;  %v1780_v46 = vmul.f32 %v11050_v40, %v11050_v40  ;;  %v11082_v42 = vrot.slane %v1736_v38, %v10851_v55 }
 0xad7   :  { %9381 = vmatprep.subr.bf16.mxu0 %v9380_v23 }
 0xad8   :  { %v11055_v47 = vsub.f32 %v1731_v1, %v1765_v44  ;;  %v11057_v48 = vsub.f32 %v1732_v5, %v1766_v45  ;;  %v1792_v49 = vsel %vm136_vm1, %v1780_v46, 0.0  ;;  %v1878_v1 = vld [vmem:[#allocation2 + $0x168] sm:$0xff]  ;;  %9383 = vmatpush3.bf16.msra.mxu0 %v9380_v23  ;;  %v1877_v5 = vld [vmem:[#allocation2 + $0x160] sm:$0xff] }
 0xad9   :  { %v1754_v50 = vpop.xlane.xlu0 %1753  ;;  %1793 = vadd.xlane.f32.xlu1 %v1792_v49  ;;  %v1757_v51 = vpop.xlane.xlu1 %1756  ;;  %v9388_v3 = vpack.c.bf16 %v1879_v2, %v1878_v1  ;;  %v1894_v46 = vld [vmem:[#allocation2 + $0x1e8] sm:$0x7f] }
 0xada   :  { %v1767_v52 = vmul.f32 0.03125, %v1754_v50  ;;  %v1768_v53 = vmul.f32 0.03125, %v1757_v51  ;;  %v1781_v57 = vmul.f32 %v11055_v47, %v11055_v47  ;;  %v1782_v19 = vmul.f32 %v11057_v48, %v11057_v48 }
 0xadb   :  { %9389 = vmatprep.subr.bf16.mxu1 %v9388_v3  ;;  %v1857_v50 = vrot.slane %v1736_v38, %v10903_v35 }
 0xadc   :  { %v11064_v58 = vsub.f32 %v1733_v7, %v1767_v52  ;;  %v11066_v24 = vsub.f32 %v1734_v13, %v1768_v53  ;;  %v1795_v14 = vsel %vm136_vm1, %v1781_v57, 0.0  ;;  %v1798_v22 = vsel %vm136_vm1, %v1782_v19, 0.0  ;;  %9391 = vmatpush3.bf16.msra.mxu1 %v9388_v3 }
 0xadd   :  { %1796 = vadd.xlane.f32.xlu0 %v1795_v14  ;;  %v1760_v59 = vpop.xlane.xlu0 %1759  ;;  %1799 = vadd.xlane.f32.xlu1 %v1798_v22  ;;  %v9384_v7 = vpack.c.bf16 %v1877_v5, %v1876_v4  ;;  %v2132_v14 = vrot.slane %v1894_v46, %v10851_v55 }
 0xade   :  { %v1769_v26 = vmul.f32 0.03125, %v1760_v59  ;;  %v1783_v60 = vmul.f32 %v11064_v58, %v11064_v58  ;;  %v1784_v16 = vmul.f32 %v11066_v24, %v11066_v24  ;;  %9393 = vmatprep.subr.bf16.mxu1 %v9392_v9 }
 0xadf   :  { %9385 = vmatprep.subr.bf16.mxu0 %v9384_v7 }
 0xae0   :  { %v11074_v61 = vsub.f32 %v1735_v17, %v1769_v26  ;;  %v1801_v27 = vsel %vm136_vm1, %v1783_v60, 0.0  ;;  %v1804_v62 = vsel %vm136_vm1, %v1784_v16, 0.0  ;;  %9387 = vmatpush3.bf16.msra.mxu0 %v9384_v7  ;;  %9395 = vmatpush3.bf16.msra.mxu1 %v9392_v9 }
 0xae1   :  { %1802 = vadd.xlane.f32.xlu0 %v1801_v27  ;;  %1805 = vadd.xlane.f32.xlu1 %v1804_v62 }
 0xae2   :  { %v1785_v21 = vmul.f32 %v11074_v61, %v11074_v61 }
 0xae4   :  { %v1807_v63 = vsel %vm136_vm1, %v1785_v21, 0.0 }
 0xae5   :  { %1808 = vadd.xlane.f32.xlu0 %v1807_v63 }
 0xb61   :  { %v1791_v10 = vpop.xlane.xlu0 %1790 }
 0xb62   :  { %v1811_v11 = vmul.f32 0.03125, %v1791_v10  ;;  %v1788_v12 = vpop.xlane.xlu1 %1787 }
 0xb63   :  { %v1810_v13 = vmul.f32 0.03125, %v1788_v12 }
 0xb64   :  { %v1819_v17 = vadd.f32 1e-05, %v1811_v11 }
 0xb65   :  { %v1818_v18 = vadd.f32 1e-05, %v1810_v13 }
 0xb66   :  { %10343 = vrsqrt.f32 %v1819_v17  ;;  %v1794_v20 = vpop.xlane.xlu1 %1793 }
 0xb67   :  { %10345 = vrsqrt.f32 %v1818_v18  ;;  %v1812_v29 = vmul.f32 0.03125, %v1794_v20 }
 0xb69   :  { %v1820_v30 = vadd.f32 1e-05, %v1812_v29 }
 0xb6a   :  { %v1797_v31 = vpop.xlane.xlu0 %1796  ;;  %v1800_v32 = vpop.xlane.xlu1 %1799 }
 0xb6b   :  { %10347 = vrsqrt.f32 %v1820_v30  ;;  %v1813_v33 = vmul.f32 0.03125, %v1797_v31  ;;  %v1814_v37 = vmul.f32 0.03125, %v1800_v32 }
 0xb6d   :  { %v1821_v25 = vadd.f32 1e-05, %v1813_v33  ;;  %v1822_v56 = vadd.f32 1e-05, %v1814_v37 }
 0xb6e   :  { %v1803_v39 = vpop.xlane.xlu0 %1802  ;;  %v1806_v41 = vpop.xlane.xlu1 %1805 }
 0xb6f   :  { %10349 = vrsqrt.f32 %v1821_v25  ;;  %v1815_v43 = vmul.f32 0.03125, %v1803_v39  ;;  %v1816_v44 = vmul.f32 0.03125, %v1806_v41 }
 0xb70   :  { %v10344_v45 = vpop.eup %10343  ;;  %10351 = vrsqrt.f32 %v1822_v56 }
 0xb71   :  { %v10346_v49 = vpop.eup %10345  ;;  %v1835_v51 = vmul.f32 %v10344_v45, %v11041_v34  ;;  %v1823_v52 = vadd.f32 1e-05, %v1815_v43  ;;  %v1824_v53 = vadd.f32 1e-05, %v1816_v44 }
 0xb72   :  { %v1809_v57 = vpop.xlane.xlu0 %1808  ;;  %v1834_v19 = vmul.f32 %v10346_v49, %v11043_v36 }
 0xb73   :  { %v1847_v22 = vmul.f32 %v11082_v42, %v1835_v51  ;;  %10353 = vrsqrt.f32 %v1823_v52  ;;  %v1817_v59 = vmul.f32 0.03125, %v1809_v57 }
 0xb74   :  { %10355 = vrsqrt.f32 %v1824_v53  ;;  %v1846_v26 = vmul.f32 %v11082_v42, %v1834_v19 }
 0xb75   :  { %v10348_v60 = vpop.eup %10347  ;;  %v1825_v16 = vadd.f32 1e-05, %v1817_v59  ;;  %v1859_v27 = vadd.f32 %v1857_v50, %v1847_v22 }
 0xb76   :  { %v1858_v62 = vadd.f32 %v1857_v50, %v1846_v26  ;;  %v1836_v34 = vmul.f32 %v10348_v60, %v11050_v40 }
 0xb77   :  { %10357 = vrsqrt.f32 %v1825_v16  ;;  %v11091_v21 = vadd.f32 %v2132_v14, %v1859_v27 }
 0xb78   :  { %8614 = vmatprep.mubr.msk.f32.mxu0 %vm136_vm1, %v1858_v62  ;;  %8634 = vmatprep.mubr.msk.f32.mxu1 %vm136_vm1, %v1858_v62  ;;  %v1848_v36 = vmul.f32 %v11082_v42, %v1836_v34  ;;  %v11096_v63 = vadd.f32 %v2132_v14, %v1858_v62 }
 0xb79   :  { %v10350_v28 = vpop.eup %10349  ;;  %8615 = vmatmul.mubr.msk.f32.vlgmr.msra.gmra.mrb[34].mxu0 %vm136_vm1, %v1859_v27  ;;  %8635 = vmatmul.mubr.msk.f32.vlgmr.msra.gmra.mrb[14].mxu1 %vm136_vm1, %v1859_v27 }
 0xb7a   :  { %v10352_v0 = vpop.eup %10351  ;;  %v1860_v1 = vadd.f32 %v1857_v50, %v1848_v36  ;;  %v1837_v40 = vmul.f32 %v10350_v28, %v11055_v47  ;;  %v13124_v28 = vmov 0 }
 0xb7b   :  { %v1838_v23 = vmul.f32 %v10352_v0, %v11057_v48  ;;  %v13125_v28 = vsel %vm11202_vm10, 4294967295, %v13124_v28 }
 0xb7c   :  { %8617 = vmatprep.mubr.msk.f32.mxu0 %vm136_vm1, %v1860_v1  ;;  %8637 = vmatprep.mubr.msk.f32.mxu1 %vm136_vm1, %v1860_v1  ;;  %v1849_v2 = vmul.f32 %v11082_v42, %v1837_v40  ;;  %v11105_v3 = vadd.f32 %v2132_v14, %v1860_v1  ;;  %13126 = vst [vmem:[#allocation9_spill] sm:$0xff] %v13125_v28 }
 0xb7d   :  { %v10354_v4 = vpop.eup %10353  ;;  %v1850_v5 = vmul.f32 %v11082_v42, %v1838_v23 }
 0xb7e   :  { %v10356_v6 = vpop.eup %10355  ;;  %v1861_v7 = vadd.f32 %v1857_v50, %v1849_v2  ;;  %v1839_v8 = vmul.f32 %v10354_v4, %v11064_v58 }
 0xb7f   :  { %v1862_v9 = vadd.f32 %v1857_v50, %v1850_v5  ;;  %v1840_v47 = vmul.f32 %v10356_v6, %v11066_v24 }
 0xb80   :  { %8618 = vmatmul.mubr.msk.f32.gmra.mrb[36].mxu0 %vm136_vm1, %v1861_v7  ;;  %8638 = vmatmul.mubr.msk.f32.gmra.mrb[16].mxu1 %vm136_vm1, %v1861_v7  ;;  %v1851_v48 = vmul.f32 %v11082_v42, %v1839_v8  ;;  %v11113_v10 = vadd.f32 %v2132_v14, %v1861_v7 }
 0xb81   :  { %v10358_v11 = vpop.eup %10357  ;;  %8620 = vmatprep.mubr.msk.f32.mxu0 %vm136_vm1, %v1862_v9  ;;  %8640 = vmatprep.mubr.msk.f32.mxu1 %vm136_vm1, %v1862_v9  ;;  %v1852_v12 = vmul.f32 %v11082_v42, %v1840_v47  ;;  %v11118_v13 = vadd.f32 %v2132_v14, %v1862_v9 }
 0xb82   :  { %v1863_v58 = vadd.f32 %v1857_v50, %v1851_v48  ;;  %v1841_v24 = vmul.f32 %v10358_v11, %v11074_v61 }
 0xb83   :  { %v1864_v17 = vadd.f32 %v1857_v50, %v1852_v12 }
 0xb84   :  { %8621 = vmatmul.mubr.msk.f32.gmra.mrb[38].mxu0 %vm136_vm1, %v1863_v58  ;;  %8641 = vmatmul.mubr.msk.f32.gmra.mrb[18].mxu1 %vm136_vm1, %v1863_v58  ;;  %v1853_v18 = vmul.f32 %v11082_v42, %v1841_v24  ;;  %v11124_v20 = vadd.f32 %v2132_v14, %v1863_v58 }
 0xb85   :  { %8623 = vmatprep.mubr.msk.f32.mxu0 %vm136_vm1, %v1864_v17  ;;  %8643 = vmatprep.mubr.msk.f32.mxu1 %vm136_vm1, %v1864_v17  ;;  %v11128_v29 = vadd.f32 %v2132_v14, %v1864_v17 }
 0xb86   :  { %v1865_v30 = vadd.f32 %v1857_v50, %v1853_v18 }
 0xb88   :  { %8624 = vmatmul.mubr.msk.f32.gmra.mrb[40].mxu0 %vm136_vm1, %v1865_v30  ;;  %8644 = vmatmul.mubr.msk.f32.gmra.mrb[20].mxu1 %vm136_vm1, %v1865_v30  ;;  %v11132_v61 = vadd.f32 %v2132_v14, %v1865_v30 }
 0xc4c   :  { %v11134_v31 = vpop.f32.mrb[34].mxu0  ;;  %v8636_v32 = vpop.f32.mrb[14].mxu1 }
 0xc4d   :  { %v11136_v33 = vpop.f32.mrb[35].mxu0  ;;  %v2090_v37 = vpop.f32.mrb[15].mxu1 }
 0xc4e   :  { %v11138_v38 = vpack.i.bf16 %v8636_v32, %v2090_v37  ;;  %8662 = vmatprep.mubr.msk.f32.mxu0 %vm34_vm0, %v11136_v33  ;;  %v9420_v25 = vpack.c.bf16 %v8636_v32, %v2090_v37  ;;  %v11144_v56 = vpack.i.bf16 %v11134_v31, %v11136_v33 }
 0xc50   :  { %9421 = vmatprep.subr.bf16.mxu1 %v9420_v25  ;;  %9996 = vrot.lane.b32.xlu1 %v11144_v56, %s10764_s0 }
 0xc51   :  { %9423 = vmatpush3.bf16.msra.mxu1 %v9420_v25 }
 0xc53   :  { %v11148_v39 = vpop.f32.mrb[36].mxu0  ;;  %v8639_v41 = vpop.f32.mrb[16].mxu1 }
 0xc54   :  { %v11150_v42 = vpop.f32.mrb[37].mxu0  ;;  %v2100_v43 = vpop.f32.mrb[17].mxu1 }
 0xc55   :  { %v11152_v44 = vpack.i.bf16 %v8639_v41, %v2100_v43  ;;  %v9424_v45 = vpack.c.bf16 %v8639_v41, %v2100_v43  ;;  %v11156_v46 = vpack.i.bf16 %v11148_v39, %v11150_v42 }
 0xc57   :  { %9425 = vmatprep.subr.bf16.mxu1 %v9424_v45  ;;  %v11158_v49 = vpop.f32.mrb[38].mxu0  ;;  %v8642_v50 = vpop.f32.mrb[18].mxu1  ;;  %10001 = vrot.lane.b32.xlu0 %v11156_v46, %s10764_s0 }
 0xc58   :  { %v11162_v51 = vpop.f32.mrb[39].mxu0  ;;  %v2110_v52 = vpop.f32.mrb[19].mxu1  ;;  %9427 = vmatpush3.bf16.msra.mxu1 %v9424_v45 }
 0xc59   :  { %v11164_v53 = vpack.i.bf16 %v8642_v50, %v2110_v52  ;;  %v9428_v57 = vpack.c.bf16 %v8642_v50, %v2110_v52  ;;  %v11168_v19 = vpack.i.bf16 %v11158_v49, %v11162_v51 }
 0xc5b   :  { %9429 = vmatprep.subr.bf16.mxu1 %v9428_v57  ;;  %v11170_v14 = vpop.f32.mrb[40].mxu0  ;;  %v8645_v22 = vpop.f32.mrb[20].mxu1  ;;  %10021 = vrot.lane.b32.xlu0 %v11144_v56, %s10770_s4 }
 0xc5c   :  { %10006 = vrot.lane.b32.xlu1 %v11168_v19, %s10764_s0  ;;  %v11176_v59 = vpop.f32.mrb[41].mxu0  ;;  %v2120_v26 = vpop.f32.mrb[21].mxu1  ;;  %9431 = vmatpush3.bf16.msra.mxu1 %v9428_v57 }
 0xc5d   :  { %v11178_v60 = vpack.i.bf16 %v8645_v22, %v2120_v26  ;;  %v9432_v16 = vpack.c.bf16 %v8645_v22, %v2120_v26  ;;  %v11182_v27 = vpack.i.bf16 %v11170_v14, %v11176_v59 }
 0xc5f   :  { %9433 = vmatprep.subr.bf16.mxu1 %v9432_v16  ;;  %10031 = vrot.lane.b32.xlu0 %v11156_v46, %s10770_s4 }
 0xc60   :  { %10011 = vrot.lane.b32.xlu1 %v11182_v27, %s10764_s0  ;;  %9435 = vmatpush3.bf16.msra.mxu1 %v9432_v16 }
 0xc63   :  { %10046 = vrot.lane.b32.xlu0 %v11182_v27, %s10772_s6 }
 0xc64   :  { %10016 = vrot.lane.b32.xlu1 %v11144_v56, %s10772_s6 }
 0xc68   :  { %10026 = vrot.lane.b32.xlu1 %v11156_v46, %s10772_s6 }
 0xc6c   :  { %10036 = vrot.lane.b32.xlu1 %v11168_v19, %s10772_s6 }
 0xc70   :  { %10041 = vrot.lane.b32.xlu1 %v11168_v19, %s10770_s4 }
 0xc74   :  { %10051 = vrot.lane.b32.xlu1 %v11182_v27, %s10770_s4 }
 0xcc2   :  { %v9997_v62 = vpop.permute.xlu1 %9996 }
 0xcc3   :  { %v9999_v34 = vunpack.i.h.bf16 %v9997_v62  ;;  %v9998_v36 = vunpack.i.l.bf16 %v9997_v62 }
 0xcc5   :  { %v9396_v0 = vpack.c.bf16 %v9999_v34, %v9998_v36 }
 0xcc7   :  { %9398 = vmatprep.subr.msk.bf16.mxu0 %vm11202_vm10, %v9396_v0 }
 0xcc8   :  { %9401 = vmatpush3.bf16.xpose.msk.msra.mxu0 %vm11202_vm10, %v9396_v0  ;;  %v11261_v0 = vld [vmem:[#allocation2 + $0x110] sm:$0xff] }
 0xcc9   :  { %v10002_v1 = vpop.permute.xlu0 %10001 }
 0xcca   :  { %v10004_v40 = vunpack.i.h.bf16 %v10002_v1  ;;  %v10003_v23 = vunpack.i.l.bf16 %v10002_v1  ;;  %v11263_v1 = vld [vmem:[#allocation2 + $0x108] sm:$0xff] }
 0xccc   :  { %v9402_v2 = vpack.c.bf16 %v10004_v40, %v10003_v23 }
 0xccd   :  { %v10022_v24 = vpop.permute.xlu0 %10021 }
 0xcce   :  { %v10007_v4 = vpop.permute.xlu1 %10006  ;;  %9404 = vmatprep.subr.msk.bf16.mxu0 %vm11202_vm10, %v9402_v2  ;;  %v10024_v18 = vunpack.i.h.bf16 %v10022_v24  ;;  %v10023_v30 = vunpack.i.l.bf16 %v10022_v24 }
 0xccf   :  { %v10009_v5 = vunpack.i.h.bf16 %v10007_v4  ;;  %v10008_v6 = vunpack.i.l.bf16 %v10007_v4 }
 0xcd0   :  { %9407 = vmatpush3.bf16.xpose.msk.msra.mxu0 %vm11202_vm10, %v9402_v2  ;;  %v9476_v37 = vpack.c.bf16 %v10024_v18, %v10023_v30  ;;  %v11281_v18 = vld [vmem:[#allocation2 + $0x130] sm:$0xff] }
 0xcd1   :  { %v9408_v7 = vpack.c.bf16 %v10009_v5, %v10008_v6  ;;  %v10032_v25 = vpop.permute.xlu0 %10031  ;;  %v11267_v5 = vld [vmem:[#allocation2 + $0x120] sm:$0xff] }
 0xcd2   :  { %v10012_v8 = vpop.permute.xlu1 %10011  ;;  %v10034_v43 = vunpack.i.h.bf16 %v10032_v25  ;;  %v10033_v45 = vunpack.i.l.bf16 %v10032_v25 }
 0xcd3   :  { %9410 = vmatprep.subr.msk.bf16.mxu0 %vm11202_vm10, %v9408_v7  ;;  %v10014_v9 = vunpack.i.h.bf16 %v10012_v8  ;;  %v10013_v47 = vunpack.i.l.bf16 %v10012_v8 }
 0xcd4   :  { %v9482_v50 = vpack.c.bf16 %v10034_v43, %v10033_v45 }
 0xcd5   :  { %v9414_v58 = vpack.c.bf16 %v10014_v9, %v10013_v47 }
 0xcd6   :  { %v10017_v48 = vpop.permute.xlu1 %10016 }
 0xcd7   :  { %v10019_v11 = vunpack.i.h.bf16 %v10017_v48  ;;  %v10018_v12 = vunpack.i.l.bf16 %v10017_v48  ;;  %v11274_v48 = vld [vmem:[#allocation2 + $0x118] sm:$0xff] }
 0xcd8   :  { %9413 = vmatpush3.bf16.xpose.msk.msra.mxu0 %vm11202_vm10, %v9408_v7 }
 0xcd9   :  { %v11216_v17 = vpack.c.bf16 %v10019_v11, %v10018_v12  ;;  %9416 = vmatprep.subr.msk.bf16.mxu0 %vm11202_vm10, %v9414_v58  ;;  %v11276_v11 = vld [vmem:[#allocation2 + $0x128] sm:$0xff] }
 0xcda   :  { %v11225_v32 = vpop.permute.xlu1 %10026 }
 0xcdb   :  { %9438 = vmatprep.subr.msk.bf16.mxu1 %vm11202_vm10, %v11216_v17 }
 0xcde   :  { %v11231_v41 = vpop.permute.xlu1 %10036 }
 0xce0   :  { %9419 = vmatpush3.bf16.xpose.msk.msra.mxu0 %vm11202_vm10, %v9414_v58 }
 0xce1   :  { %9478 = vmatprep.subr.msk.bf16.mxu0 %vm11202_vm10, %v9476_v37 }
 0xce2   :  { %v10042_v52 = vpop.permute.xlu1 %10041 }
 0xce3   :  { %v10044_v57 = vunpack.i.h.bf16 %v10042_v52  ;;  %v10043_v22 = vunpack.i.l.bf16 %v10042_v52  ;;  %v11289_v52 = vld [vmem:[#allocation2 + $0x140] sm:$0xff] }
 0xce5   :  { %v9488_v26 = vpack.c.bf16 %v10044_v57, %v10043_v22 }
 0xce6   :  { %v10052_v16 = vpop.permute.xlu1 %10051 }
 0xce7   :  { %8663 = vmatmul.mubr.msk.f32.vlgmr.msra.gmra.mrb[42].mxu0 %vm34_vm0, %v11134_v31  ;;  %v10054_v62 = vunpack.i.h.bf16 %v10052_v16  ;;  %v10053_v34 = vunpack.i.l.bf16 %v10052_v16 }
 0xce8   :  { %8665 = vmatprep.mubr.msk.f32.mxu0 %vm34_vm0, %v11150_v42  ;;  %9481 = vmatpush3.bf16.xpose.msk.msra.mxu0 %vm11202_vm10, %v9476_v37 }
 0xce9   :  { %9484 = vmatprep.subr.msk.bf16.mxu0 %vm11202_vm10, %v9482_v50  ;;  %v9494_v36 = vpack.c.bf16 %v10054_v62, %v10053_v34  ;;  %v11299_v62 = vld [vmem:[#allocation2 + $0x138] sm:$0xff] }
 0xceb   :  { %8666 = vmatmul.mubr.msk.f32.gmra.mrb[44].mxu0 %vm34_vm0, %v11148_v39 }
 0xcec   :  { %8668 = vmatprep.mubr.msk.f32.mxu0 %vm34_vm0, %v11162_v51 }
 0xcef   :  { %8669 = vmatmul.mubr.msk.f32.gmra.mrb[46].mxu0 %vm34_vm0, %v11158_v49 }
 0xcf0   :  { %8671 = vmatprep.mubr.msk.f32.mxu0 %vm34_vm0, %v11176_v59  ;;  %9487 = vmatpush3.bf16.xpose.msk.msra.mxu0 %vm11202_vm10, %v9482_v50 }
 0xcf1   :  { %9490 = vmatprep.subr.msk.bf16.mxu0 %vm11202_vm10, %v9488_v26 }
 0xcf3   :  { %8672 = vmatmul.mubr.msk.f32.gmra.mrb[48].mxu0 %vm34_vm0, %v11170_v14 }
 0xcf8   :  { %9493 = vmatpush3.bf16.xpose.msk.msra.mxu0 %vm11202_vm10, %v9488_v26 }
 0xcf9   :  { %9496 = vmatprep.subr.msk.bf16.mxu0 %vm11202_vm10, %v9494_v36 }
 0xd00   :  { %9499 = vmatpush3.bf16.xpose.msk.msra.mxu0 %vm11202_vm10, %v9494_v36 }
 0xdba   :  { %v8664_v40 = vpop.f32.mrb[42].mxu0 }
 0xdbb   :  { %v2269_v23 = vadd.f32 %v8664_v40, %v11261_v0  ;;  %v2263_v2 = vpop.f32.mrb[43].mxu0  ;;  %v11305_v40 = vpop.permute.xlu0 %10046 }
 0xdbc   :  { %v2264_v4 = vadd.f32 %v2263_v2, %v11263_v1 }
 0xdbd   :  { %v2306_v6 = vsel %vm2302_vm11, %v2269_v23, -inf }
 0xdbe   :  { %2307 = vmax.xlane.f32.xlu1 %v2306_v6  ;;  %v8667_v7 = vpop.f32.mrb[44].mxu0  ;;  %v2303_v8 = vsel %vm2302_vm11, %v2264_v4, -inf }
 0xdbf   :  { %v11272_v9 = vadd.f32 %v8667_v7, %v11267_v5  ;;  %v2273_v47 = vpop.f32.mrb[45].mxu0  ;;  %2304 = vmax.xlane.f32.xlu0 %v2303_v8 }
 0xdc0   :  { %v2274_v58 = vadd.f32 %v2273_v47, %v11274_v48 }
 0xdc1   :  { %v2312_v12 = vsel %vm2302_vm11, %v11272_v9, -inf }
 0xdc2   :  { %v8670_v24 = vpop.f32.mrb[46].mxu0  ;;  %v2309_v50 = vsel %vm2302_vm11, %v2274_v58, -inf }
 0xdc3   :  { %v2283_v30 = vpop.f32.mrb[47].mxu0  ;;  %2313 = vmax.xlane.f32.xlu0 %v2312_v12  ;;  %v11285_v25 = vadd.f32 %v8670_v24, %v11281_v18 }
 0xdc4   :  { %v2284_v37 = vadd.f32 %v2283_v30, %v11276_v11 }
 0xdc5   :  { %v2318_v26 = vsel %vm2302_vm11, %v11285_v25, -inf }
 0xdc6   :  { %v8673_v43 = vpop.f32.mrb[48].mxu0  ;;  %v2315_v45 = vsel %vm2302_vm11, %v2284_v37, -inf }
 0xdc7   :  { %v2293_v57 = vpop.f32.mrb[49].mxu0  ;;  %2316 = vmax.xlane.f32.xlu1 %v2315_v45  ;;  %2310 = vmax.xlane.f32.xlu0 %v2309_v50  ;;  %v2299_v22 = vadd.f32 %v8673_v43, %v11289_v52 }
 0xdc8   :  { %v2294_v34 = vadd.f32 %v2293_v57, %v11299_v62 }
 0xdc9   :  { %v2324_v16 = vsel %vm2302_vm11, %v2299_v22, -inf }
 0xdca   :  { %v2321_v36 = vsel %vm2302_vm11, %v2294_v34, -inf }
 0xdcb   :  { %2319 = vmax.xlane.f32.xlu0 %v2318_v26 }
 0xdcf   :  { %2325 = vmax.xlane.f32.xlu0 %v2324_v16 }
 0xdd8   :  { %2528 = vrot.lane.b32.xlu1 %v11136_v33, %s10765_s30 }
 0xde5   :  { %10056 = vrot.lane.b32.xlu0 %v11144_v56, %s10771_s5 }
 0xdfc   :  { %2322 = vmax.xlane.f32.xlu1 %v2321_v36 }
 0xe0d   :  { %2954 = vrot.lane.b32.xlu1 %v11136_v33, %s10766_s3 }
 0xe4b   :  { %v2308_v2 = vpop.xlane.xlu1 %2307 }
 0xe4c   :  { %v2328_v6 = vsub.f32 %v2269_v23, %v2308_v2  ;;  %v2305_v7 = vpop.xlane.xlu0 %2304 }
 0xe4d   :  { %v2327_v8 = vsub.f32 %v2264_v4, %v2305_v7 }
 0xe4e   :  { %v2337_v47 = vmul.f32 1.442695, %v2328_v6 }
 0xe4f   :  { %v2335_v12 = vmul.f32 1.442695, %v2327_v8 }
 0xe50   :  { %10359 = vpow2.f32 %v2337_v47  ;;  %v2314_v56 = vpop.xlane.xlu0 %2313 }
 0xe51   :  { %10361 = vpow2.f32 %v2335_v12 }
 0xe54   :  { %v2317_v24 = vpop.xlane.xlu1 %2316  ;;  %v2311_v30 = vpop.xlane.xlu0 %2310 }
 0xe55   :  { %v2331_v43 = vsub.f32 %v2284_v37, %v2317_v24  ;;  %v2329_v45 = vsub.f32 %v2274_v58, %v2311_v30  ;;  %v2330_v30 = vsub.f32 %v11272_v9, %v2314_v56 }
 0xe57   :  { %v2339_v50 = vmul.f32 1.442695, %v2329_v45  ;;  %v2343_v57 = vmul.f32 1.442695, %v2331_v43  ;;  %v2341_v43 = vmul.f32 1.442695, %v2330_v30 }
 0xe58   :  { %v2320_v26 = vpop.xlane.xlu0 %2319 }
 0xe59   :  { %10363 = vpow2.f32 %v2339_v50  ;;  %v2332_v45 = vsub.f32 %v11285_v25, %v2320_v26 }
 0xe5a   :  { %v11307_v16 = vpop.eup %10359  ;;  %10365 = vpow2.f32 %v2343_v57 }
 0xe5b   :  { %v11309_v36 = vpop.eup %10361  ;;  %v2354_v23 = vsel %vm2302_vm11, %v11307_v16, 0.0  ;;  %10367 = vpow2.f32 %v2341_v43  ;;  %v2345_v50 = vmul.f32 1.442695, %v2332_v45  ;;  %v10048_v43 = vunpack.i.l.bf16 %v11305_v40 }
 0xe5c   :  { %2355 = vadd.xlane.f32.xlu0 %v2354_v23  ;;  %v2326_v4 = vpop.xlane.xlu0 %2325  ;;  %v2351_v2 = vsel %vm2302_vm11, %v11309_v36, 0.0  ;;  %v11334_v23 = vpop.permute.xlu1 %2528 }
 0xe5d   :  { %2352 = vadd.xlane.f32.xlu1 %v2351_v2  ;;  %v2334_v57 = vsub.f32 %v2299_v22, %v2326_v4  ;;  %10369 = vpow2.f32 %v2345_v50 }
 0xe5f   :  { %v2349_v2 = vmul.f32 1.442695, %v2334_v57 }
 0xe60   :  { %v10057_v37 = vpop.permute.xlu0 %10056 }
 0xe61   :  { %v10059_v58 = vunpack.i.h.bf16 %v10057_v37  ;;  %v10058_v6 = vunpack.i.l.bf16 %v10057_v37  ;;  %10371 = vpow2.f32 %v2349_v2 }
 0xe63   :  { %v11315_v7 = vpack.c.bf16 %v10059_v58, %v10058_v6  ;;  %v11317_v8 = vpop.eup %10363 }
 0xe64   :  { %v2357_v47 = vsel %vm2302_vm11, %v11317_v8, 0.0  ;;  %v11324_v12 = vpop.eup %10365 }
 0xe65   :  { %9518 = vmatprep.subr.msk.bf16.mxu0 %vm11202_vm10, %v11315_v7  ;;  %2358 = vadd.xlane.f32.xlu1 %v2357_v47  ;;  %v2363_v24 = vsel %vm2302_vm11, %v11324_v12, 0.0  ;;  %v11336_v6 = vpop.eup %10367 }
 0xe66   :  { %v2360_v56 = vsel %vm2302_vm11, %v11336_v6, 0.0 }
 0xe67   :  { %v11341_v25 = vpop.eup %10369 }
 0xe68   :  { %v2366_v22 = vsel %vm2302_vm11, %v11341_v25, 0.0 }
 0xe69   :  { %2364 = vadd.xlane.f32.xlu1 %v2363_v24 }
 0xe6b   :  { %v11345_v26 = vpop.eup %10371 }
 0xe72   :  { %2530 = vrot.lane.b32.xlu0 %v11134_v31, %s10765_s30 }
 0xe7a   :  { %2532 = vrot.lane.b32.xlu1 %v11150_v42, %s10765_s30 }
 0xe89   :  { %v2323_v37 = vpop.xlane.xlu1 %2322 }
 0xe8a   :  { %v2333_v58 = vsub.f32 %v2294_v34, %v2323_v37  ;;  %v2372_v34 = vsel %vm2302_vm11, %v11345_v26, 0.0 }
 0xe8c   :  { %v2347_v47 = vmul.f32 1.442695, %v2333_v58 }
 0xe8d   :  { %v2955_v9 = vpop.permute.xlu1 %2954 }
 0xe8e   :  { %8774 = vmatprep.mubr.msk.f32.mxu0 %vm34_vm0, %v2955_v9  ;;  %10373 = vpow2.f32 %v2347_v47 }
 0xe91   :  { %2361 = vadd.xlane.f32.xlu0 %v2360_v56 }
 0xe95   :  { %2367 = vadd.xlane.f32.xlu0 %v2366_v22 }
 0xe98   :  { %v11349_v4 = vpop.eup %10373 }
 0xe99   :  { %2373 = vadd.xlane.f32.xlu0 %v2372_v34  ;;  %v2369_v24 = vsel %vm2302_vm11, %v11349_v4, 0.0 }
 0xe9e   :  { %2370 = vadd.xlane.f32.xlu1 %v2369_v24 }
 0xeaf   :  { %2956 = vrot.lane.b32.xlu0 %v11134_v31, %s10766_s3  ;;  %10061 = vrot.lane.b32.xlu1 %v11156_v46, %s10771_s5 }
 0xeb3   :  { %2534 = vrot.lane.b32.xlu0 %v11148_v39, %s10765_s30  ;;  %2538 = vrot.lane.b32.xlu1 %v11158_v49, %s10765_s30 }
 0xeb7   :  { %2536 = vrot.lane.b32.xlu0 %v11162_v51, %s10765_s30  ;;  %2542 = vrot.lane.b32.xlu1 %v11170_v14, %s10765_s30 }
 0xebb   :  { %2540 = vrot.lane.b32.xlu0 %v11176_v59, %s10765_s30  ;;  %2958 = vrot.lane.b32.xlu1 %v11150_v42, %s10766_s3 }
 0xebf   :  { %10066 = vrot.lane.b32.xlu0 %v11168_v19, %s10771_s5  ;;  %10071 = vrot.lane.b32.xlu1 %v11182_v27, %s10771_s5  ;;  %v10029_v19 = vunpack.i.h.bf16 %v11225_v32 }
 0xec3   :  { %2960 = vrot.lane.b32.xlu0 %v11148_v39, %s10766_s3  ;;  %2964 = vrot.lane.b32.xlu1 %v11158_v49, %s10766_s3 }
 0xec7   :  { %2962 = vrot.lane.b32.xlu0 %v11162_v51, %s10766_s3  ;;  %2968 = vrot.lane.b32.xlu1 %v11170_v14, %s10766_s3 }
 0xecb   :  { %2966 = vrot.lane.b32.xlu0 %v11176_v59, %s10766_s3  ;;  %3374 = vrot.lane.b32.xlu1 %v11134_v31, %s10773_s7 }
 0xecf   :  { %3372 = vrot.lane.b32.xlu0 %v11136_v33, %s10773_s7  ;;  %3378 = vrot.lane.b32.xlu1 %v11148_v39, %s10773_s7 }
 0xed3   :  { %3376 = vrot.lane.b32.xlu0 %v11150_v42, %s10773_s7  ;;  %3382 = vrot.lane.b32.xlu1 %v11158_v49, %s10773_s7  ;;  %v10028_v49 = vunpack.i.l.bf16 %v11225_v32  ;;  %v10038_v32 = vunpack.i.l.bf16 %v11231_v41 }
 0xed7   :  { %3380 = vrot.lane.b32.xlu0 %v11162_v51, %s10773_s7  ;;  %3386 = vrot.lane.b32.xlu1 %v11170_v14, %s10773_s7  ;;  %v9442_v14 = vpack.c.bf16 %v10029_v19, %v10028_v49 }
 0xedb   :  { %3384 = vrot.lane.b32.xlu0 %v11176_v59, %s10773_s7  ;;  %v10039_v59 = vunpack.i.h.bf16 %v11231_v41 }
 0xee9   :  { %v2356_v31 = vpop.xlane.xlu0 %2355 }
 0xeea   :  { %10375 = vrcp.f32 %v2356_v31  ;;  %v2353_v33 = vpop.xlane.xlu1 %2352 }
 0xeeb   :  { %10377 = vrcp.f32 %v2353_v33 }
 0xeed   :  { %v2531_v41 = vpop.permute.xlu0 %2530 }
 0xef2   :  { %v2359_v39 = vpop.xlane.xlu1 %2358 }
 0xef3   :  { %10379 = vrcp.f32 %v2359_v39 }
 0xef4   :  { %v10376_v46 = vpop.eup %10375 }
 0xef5   :  { %v10378_v42 = vpop.eup %10377  ;;  %v2384_v27 = vmul.f32 %v10376_v46, %v11307_v16  ;;  %v9448_v16 = vpack.c.bf16 %v10039_v59, %v10038_v32 }
 0xef6   :  { %v2383_v51 = vmul.f32 %v10378_v42, %v11309_v36 }
 0xef8   :  { %8690 = vmatprep.mubr.msk.f32.mxu1 %vm2302_vm11, %v2383_v51 }
 0xef9   :  { %8691 = vmatmul.mubr.msk.f32.vlgmr.msra.gmra.mrb[22].mxu1 %vm2302_vm11, %v2384_v27 }
 0xefa   :  { %9441 = vmatpush3.bf16.xpose.msk.msra.mxu1 %vm11202_vm10, %v11216_v17  ;;  %v10049_v17 = vunpack.i.h.bf16 %v11305_v40 }
 0xefb   :  { %9444 = vmatprep.subr.msk.bf16.mxu1 %vm11202_vm10, %v9442_v14 }
 0xefc   :  { %v9454_v45 = vpack.c.bf16 %v10049_v17, %v10048_v43 }
 0xefd   :  { %v10380_v30 = vpop.eup %10379 }
 0xefe   :  { %v2385_v36 = vmul.f32 %v10380_v30, %v11317_v8  ;;  %v2365_v8 = vpop.xlane.xlu1 %2364 }
 0xeff   :  { %10381 = vrcp.f32 %v2365_v8 }
 0xf00   :  { %8693 = vmatprep.mubr.msk.f32.mxu1 %vm2302_vm11, %v2385_v36 }
 0xf02   :  { %9447 = vmatpush3.bf16.xpose.msk.msra.mxu1 %vm11202_vm10, %v9442_v14  ;;  %v2533_v40 = vpop.permute.xlu1 %2532 }
 0xf03   :  { %9450 = vmatprep.subr.msk.bf16.mxu1 %vm11202_vm10, %v9448_v16 }
 0xf09   :  { %v10382_v37 = vpop.eup %10381 }
 0xf0a   :  { %9453 = vmatpush3.bf16.xpose.msk.msra.mxu1 %vm11202_vm10, %v9448_v16  ;;  %v2387_v56 = vmul.f32 %v10382_v37, %v11324_v12 }
 0xf0b   :  { %9456 = vmatprep.subr.msk.bf16.mxu1 %vm11202_vm10, %v9454_v45 }
 0xf12   :  { %9459 = vmatpush3.bf16.xpose.msk.msra.mxu1 %vm11202_vm10, %v9454_v45 }
 0xf1e   :  { %v2362_v50 = vpop.xlane.xlu0 %2361 }
 0xf1f   :  { %10383 = vrcp.f32 %v2362_v50 }
 0xf22   :  { %v2368_v57 = vpop.xlane.xlu0 %2367 }
 0xf23   :  { %10385 = vrcp.f32 %v2368_v57 }
 0xf26   :  { %v2374_v2 = vpop.xlane.xlu0 %2373 }
 0xf27   :  { %10387 = vrcp.f32 %v2374_v2 }
 0xf29   :  { %v10384_v58 = vpop.eup %10383 }
 0xf2a   :  { %v2957_v47 = vpop.permute.xlu0 %2956  ;;  %v2386_v9 = vmul.f32 %v10384_v58, %v11336_v6 }
 0xf2b   :  { %8775 = vmatmul.mubr.msk.f32.vlgmr.msra.gmra.mrb[50].mxu0 %vm34_vm0, %v2957_v47  ;;  %v2371_v22 = vpop.xlane.xlu1 %2370 }
 0xf2c   :  { %9521 = vmatpush3.bf16.xpose.msk.msra.mxu0 %vm11202_vm10, %v11315_v7  ;;  %8694 = vmatmul.mubr.msk.f32.gmra.mrb[24].mxu1 %vm2302_vm11, %v2386_v9  ;;  %10389 = vrcp.f32 %v2371_v22 }
 0xf2d   :  { %v10386_v34 = vpop.eup %10385  ;;  %8696 = vmatprep.mubr.msk.f32.mxu1 %vm2302_vm11, %v2387_v56 }
 0xf2e   :  { %v2535_v24 = vpop.permute.xlu0 %2534  ;;  %v2388_v31 = vmul.f32 %v10386_v34, %v11341_v25 }
 0xf2f   :  { %v10062_v6 = vpop.permute.xlu1 %10061 }
 0xf30   :  { %8697 = vmatmul.mubr.msk.f32.gmra.mrb[26].mxu1 %vm2302_vm11, %v2388_v31  ;;  %v10064_v33 = vunpack.i.h.bf16 %v10062_v6  ;;  %v10063_v12 = vunpack.i.l.bf16 %v10062_v6 }
 0xf31   :  { %v10388_v7 = vpop.eup %10387 }
 0xf32   :  { %v2537_v39 = vpop.permute.xlu0 %2536  ;;  %v9522_v46 = vpack.c.bf16 %v10064_v33, %v10063_v12  ;;  %v2390_v27 = vmul.f32 %v10388_v7, %v11345_v26 }
 0xf33   :  { %v2539_v42 = vpop.permute.xlu1 %2538 }
 0xf34   :  { %9524 = vmatprep.subr.msk.bf16.mxu0 %vm11202_vm10, %v9522_v46 }
 0xf35   :  { %9527 = vmatpush3.bf16.xpose.msk.msra.mxu0 %vm11202_vm10, %v9522_v46 }
 0xf36   :  { %v2541_v19 = vpop.permute.xlu0 %2540  ;;  %v10390_v49 = vpop.eup %10389 }
 0xf37   :  { %v2543_v51 = vpop.permute.xlu1 %2542  ;;  %v2389_v25 = vmul.f32 %v10390_v49, %v11349_v4 }
 0xf39   :  { %8699 = vmatprep.mubr.msk.f32.mxu1 %vm2302_vm11, %v2389_v25 }
 0xf3a   :  { %v10067_v14 = vpop.permute.xlu0 %10066  ;;  %8700 = vmatmul.mubr.msk.f32.gmra.mrb[28].mxu1 %vm2302_vm11, %v2390_v27 }
 0xf3b   :  { %v10069_v59 = vunpack.i.h.bf16 %v10067_v14  ;;  %v10068_v32 = vunpack.i.l.bf16 %v10067_v14  ;;  %v2959_v30 = vpop.permute.xlu1 %2958  ;;  %8718 = vmatprep.mubr.msk.f32.mxu1 %vm34_vm0, %v11334_v23 }
 0xf3c   :  { %8777 = vmatprep.mubr.msk.f32.mxu0 %vm34_vm0, %v2959_v30 }
 0xf3d   :  { %v9528_v36 = vpack.c.bf16 %v10069_v59, %v10068_v32 }
 0xf3e   :  { %v2961_v16 = vpop.permute.xlu0 %2960  ;;  %8719 = vmatmul.mubr.msk.f32.vlgmr.msra.gmra.mrb[30].mxu1 %vm34_vm0, %v2531_v41 }
 0xf3f   :  { %8778 = vmatmul.mubr.msk.f32.gmra.mrb[52].mxu0 %vm34_vm0, %v2961_v16  ;;  %v10072_v26 = vpop.permute.xlu1 %10071  ;;  %8721 = vmatprep.mubr.msk.f32.mxu1 %vm34_vm0, %v2533_v40 }
 0xf40   :  { %9530 = vmatprep.subr.msk.bf16.mxu0 %vm11202_vm10, %v9528_v36  ;;  %v10074_v4 = vunpack.i.h.bf16 %v10072_v26  ;;  %v10073_v17 = vunpack.i.l.bf16 %v10072_v26 }
 0xf41   :  { %9533 = vmatpush3.bf16.xpose.msk.msra.mxu0 %vm11202_vm10, %v9528_v36 }
 0xf42   :  { %v2963_v23 = vpop.permute.xlu0 %2962  ;;  %v9534_v43 = vpack.c.bf16 %v10074_v4, %v10073_v17  ;;  %8722 = vmatmul.mubr.msk.f32.gmra.mrb[32].mxu1 %vm34_vm0, %v2535_v24 }
 0xf43   :  { %8780 = vmatprep.mubr.msk.f32.mxu0 %vm34_vm0, %v2963_v23  ;;  %v2965_v45 = vpop.permute.xlu1 %2964  ;;  %8724 = vmatprep.mubr.msk.f32.mxu1 %vm34_vm0, %v2537_v39 }
 0xf44   :  { %8781 = vmatmul.mubr.msk.f32.gmra.mrb[54].mxu0 %vm34_vm0, %v2965_v45  ;;  %9536 = vmatprep.subr.msk.bf16.mxu0 %vm11202_vm10, %v9534_v43 }
 0xf46   :  { %v2967_v41 = vpop.permute.xlu0 %2966  ;;  %8725 = vmatmul.mubr.msk.f32.gmra.mrb[34].mxu1 %vm34_vm0, %v2539_v42 }
 0xf47   :  { %8783 = vmatprep.mubr.msk.f32.mxu0 %vm34_vm0, %v2967_v41  ;;  %v2969_v8 = vpop.permute.xlu1 %2968  ;;  %8727 = vmatprep.mubr.msk.f32.mxu1 %vm34_vm0, %v2541_v19 }
 0xf48   :  { %8784 = vmatmul.mubr.msk.f32.gmra.mrb[56].mxu0 %vm34_vm0, %v2969_v8 }
 0xf49   :  { %9539 = vmatpush3.bf16.xpose.msk.msra.mxu0 %vm11202_vm10, %v9534_v43 }
 0xf4a   :  { %v3373_v50 = vpop.permute.xlu0 %3372  ;;  %8728 = vmatmul.mubr.msk.f32.gmra.mrb[36].mxu1 %vm34_vm0, %v2543_v51 }
 0xf4b   :  { %8830 = vmatprep.mubr.msk.f32.mxu0 %vm34_vm0, %v3373_v50  ;;  %v3375_v57 = vpop.permute.xlu1 %3374 }
 0xf4e   :  { %v3377_v2 = vpop.permute.xlu0 %3376 }
 0xf4f   :  { %v3379_v37 = vpop.permute.xlu1 %3378 }
 0xf50   :  { %8831 = vmatmul.mubr.msk.f32.vlgmr.msra.gmra.mrb[58].mxu0 %vm34_vm0, %v3375_v57 }
 0xf51   :  { %8833 = vmatprep.mubr.msk.f32.mxu0 %vm34_vm0, %v3377_v2 }
 0xf52   :  { %v3381_v40 = vpop.permute.xlu0 %3380 }
 0xf53   :  { %v3383_v58 = vpop.permute.xlu1 %3382 }
 0xf54   :  { %8834 = vmatmul.mubr.msk.f32.gmra.mrb[60].mxu0 %vm34_vm0, %v3379_v37 }
 0xf55   :  { %8836 = vmatprep.mubr.msk.f32.mxu0 %vm34_vm0, %v3381_v40 }
 0xf56   :  { %v3385_v47 = vpop.permute.xlu0 %3384 }
 0xf57   :  { %v3387_v9 = vpop.permute.xlu1 %3386 }
 0xf58   :  { %8837 = vmatmul.mubr.msk.f32.gmra.mrb[62].mxu0 %vm34_vm0, %v3383_v58 }
 0xf59   :  { %8839 = vmatprep.mubr.msk.f32.mxu0 %vm34_vm0, %v3385_v47 }
 0xf5c   :  { %8840 = vmatmul.mubr.msk.f32.gmra.mrb[64].mxu0 %vm34_vm0, %v3387_v9 }
 0xffe   :  { %v8776_v56 = vpop.f32.mrb[50].mxu0 }
 0xfff   :  { %v11476_v22 = vadd.f32 %v8776_v56, %v11261_v0  ;;  %v3084_v34 = vpop.f32.mrb[51].mxu0 }
0x1000   :  { %v11479_v24 = vadd.f32 %v3084_v34, %v11263_v1 }
0x1001   :  { %v3126_v31 = vsel %vm2302_vm11, %v11476_v22, -inf }
0x1002   :  { %3127 = vmax.xlane.f32.xlu0 %v3126_v31  ;;  %v3123_v6 = vsel %vm2302_vm11, %v11479_v24, -inf }
0x1003   :  { %3124 = vmax.xlane.f32.xlu1 %v3123_v6 }
0x1011   :  { %v11485_v33 = vpop.f32.mrb[30].mxu1 }
0x1012   :  { %v8779_v12 = vpop.f32.mrb[52].mxu0  ;;  %v11487_v39 = vpop.f32.mrb[31].mxu1 }
0x1013   :  { %v11490_v46 = vadd.f32 %v8779_v12, %v11267_v5  ;;  %v3094_v42 = vpop.f32.mrb[53].mxu0 }
0x1014   :  { %v11493_v7 = vadd.f32 %v3094_v42, %v11274_v48 }
0x1015   :  { %v3132_v19 = vsel %vm2302_vm11, %v11490_v46, -inf  ;;  %v11497_v49 = vpop.f32.mrb[32].mxu1 }
0x1016   :  { %3133 = vmax.xlane.f32.xlu0 %v3132_v19  ;;  %v3129_v51 = vsel %vm2302_vm11, %v11493_v7, -inf  ;;  %v11501_v25 = vpop.f32.mrb[33].mxu1 }
0x1017   :  { %3130 = vmax.xlane.f32.xlu1 %v3129_v51  ;;  %v8782_v27 = vpop.f32.mrb[54].mxu0 }
0x1018   :  { %v11504_v14 = vadd.f32 %v8782_v27, %v11281_v18  ;;  %v3104_v59 = vpop.f32.mrb[55].mxu0 }
0x1019   :  { %v11507_v32 = vadd.f32 %v3104_v59, %v11276_v11  ;;  %v11509_v30 = vpop.f32.mrb[34].mxu1 }
0x101a   :  { %v11511_v36 = vpop.f32.mrb[35].mxu1  ;;  %v3138_v16 = vsel %vm2302_vm11, %v11504_v14, -inf }
0x101b   :  { %3139 = vmax.xlane.f32.xlu0 %v3138_v16  ;;  %v8785_v26 = vpop.f32.mrb[56].mxu0  ;;  %v3135_v4 = vsel %vm2302_vm11, %v11507_v32, -inf }
0x101c   :  { %v11518_v17 = vadd.f32 %v8785_v26, %v11289_v52  ;;  %3136 = vmax.xlane.f32.xlu1 %v3135_v4  ;;  %v3114_v23 = vpop.f32.mrb[57].mxu0 }
0x101d   :  { %v11521_v43 = vadd.f32 %v3114_v23, %v11299_v62  ;;  %v11523_v45 = vpop.f32.mrb[36].mxu1 }
0x101e   :  { %v11525_v41 = vpop.f32.mrb[37].mxu1  ;;  %v3144_v8 = vsel %vm2302_vm11, %v11518_v17, -inf }
0x101f   :  { %3145 = vmax.xlane.f32.xlu0 %v3144_v8  ;;  %v3141_v50 = vsel %vm2302_vm11, %v11521_v43, -inf }
0x1020   :  { %3142 = vmax.xlane.f32.xlu1 %v3141_v50 }
0x1023   :  { %v8832_v57 = vpop.f32.mrb[58].mxu0 }
0x1024   :  { %v11532_v2 = vadd.f32 %v8832_v57, %v11261_v0  ;;  %v3502_v37 = vpop.f32.mrb[59].mxu0 }
0x1025   :  { %v11535_v40 = vadd.f32 %v3502_v37, %v11263_v1 }
0x1026   :  { %v3544_v58 = vsel %vm2302_vm11, %v11532_v2, -inf }
0x1027   :  { %3545 = vmax.xlane.f32.xlu0 %v3544_v58  ;;  %v8835_v47 = vpop.f32.mrb[60].mxu0  ;;  %v3541_v9 = vsel %vm2302_vm11, %v11535_v40, -inf }
0x1028   :  { %v11542_v56 = vadd.f32 %v8835_v47, %v11267_v5  ;;  %v3512_v34 = vpop.f32.mrb[61].mxu0  ;;  %3542 = vmax.xlane.f32.xlu1 %v3541_v9 }
0x1029   :  { %v11545_v31 = vadd.f32 %v3512_v34, %v11274_v48 }
0x102a   :  { %v3550_v6 = vsel %vm2302_vm11, %v11542_v56, -inf }
0x102b   :  { %3551 = vmax.xlane.f32.xlu0 %v3550_v6  ;;  %v8838_v12 = vpop.f32.mrb[62].mxu0  ;;  %v3547_v42 = vsel %vm2302_vm11, %v11545_v31, -inf }
0x102c   :  { %v11552_v19 = vadd.f32 %v8838_v12, %v11281_v18  ;;  %v3522_v51 = vpop.f32.mrb[63].mxu0  ;;  %3548 = vmax.xlane.f32.xlu1 %v3547_v42 }
0x102d   :  { %v11555_v27 = vadd.f32 %v3522_v51, %v11276_v11 }
0x102e   :  { %v3556_v59 = vsel %vm2302_vm11, %v11552_v19, -inf }
0x102f   :  { %3557 = vmax.xlane.f32.xlu0 %v3556_v59  ;;  %v8841_v16 = vpop.f32.mrb[64].mxu0  ;;  %v3553_v26 = vsel %vm2302_vm11, %v11555_v27, -inf }
0x1030   :  { %v11562_v4 = vadd.f32 %v8841_v16, %v11289_v52  ;;  %v3532_v23 = vpop.f32.mrb[65].mxu0  ;;  %3554 = vmax.xlane.f32.xlu1 %v3553_v26 }
0x1031   :  { %v11565_v8 = vadd.f32 %v3532_v23, %v11299_v62 }
0x1032   :  { %v3562_v50 = vsel %vm2302_vm11, %v11562_v4, -inf }
0x1033   :  { %3563 = vmax.xlane.f32.xlu0 %v3562_v50  ;;  %v3559_v57 = vsel %vm2302_vm11, %v11565_v8, -inf }
0x1034   :  { %3560 = vmax.xlane.f32.xlu1 %v3559_v57 }
0x1045   :  { %10076 = vrot.lane.b32.xlu1 %v11138_v38, %s10764_s0 }
0x1049   :  { %10081 = vrot.lane.b32.xlu0 %v11152_v44, %s10764_s0  ;;  %10086 = vrot.lane.b32.xlu1 %v11164_v53, %s10764_s0 }
0x104d   :  { %10096 = vrot.lane.b32.xlu0 %v11138_v38, %s10774_s8  ;;  %10091 = vrot.lane.b32.xlu1 %v11178_v60, %s10764_s0 }
0x108f   :  { %v3128_v37 = vpop.xlane.xlu0 %3127 }
0x1090   :  { %v3148_v58 = vsub.f32 %v11476_v22, %v3128_v37  ;;  %v3125_v47 = vpop.xlane.xlu1 %3124 }
0x1091   :  { %v3147_v9 = vsub.f32 %v11479_v24, %v3125_v47 }
0x1092   :  { %v3157_v34 = vmul.f32 1.442695, %v3148_v58 }
0x1093   :  { %v3155_v6 = vmul.f32 1.442695, %v3147_v9 }
0x1094   :  { %10391 = vpow2.f32 %v3157_v34 }
0x1095   :  { %10393 = vpow2.f32 %v3155_v6 }
0x109e   :  { %v11583_v12 = vpop.eup %10391 }
0x109f   :  { %v11585_v42 = vpop.eup %10393  ;;  %v3174_v51 = vsel %vm2302_vm11, %v11583_v12, 0.0 }
0x10a0   :  { %3175 = vadd.xlane.f32.xlu0 %v3174_v51  ;;  %v3171_v59 = vsel %vm2302_vm11, %v11585_v42, 0.0 }
0x10a1   :  { %3172 = vadd.xlane.f32.xlu1 %v3171_v59 }
0x10a3   :  { %v3134_v22 = vpop.xlane.xlu0 %3133 }
0x10a4   :  { %v3150_v16 = vsub.f32 %v11490_v46, %v3134_v22  ;;  %v3131_v24 = vpop.xlane.xlu1 %3130 }
0x10a5   :  { %v3149_v26 = vsub.f32 %v11493_v7, %v3131_v24 }
0x10a6   :  { %v3161_v23 = vmul.f32 1.442695, %v3150_v16 }
0x10a7   :  { %v3159_v50 = vmul.f32 1.442695, %v3149_v26 }
0x10a8   :  { %10395 = vpow2.f32 %v3161_v23  ;;  %v3140_v57 = vpop.xlane.xlu0 %3139 }
0x10a9   :  { %10397 = vpow2.f32 %v3159_v50  ;;  %v3152_v37 = vsub.f32 %v11504_v14, %v3140_v57  ;;  %v3137_v58 = vpop.xlane.xlu1 %3136 }
0x10aa   :  { %v3151_v47 = vsub.f32 %v11507_v32, %v3137_v58 }
0x10ab   :  { %v3165_v9 = vmul.f32 1.442695, %v3152_v37 }
0x10ac   :  { %v3163_v34 = vmul.f32 1.442695, %v3151_v47  ;;  %v3146_v6 = vpop.xlane.xlu0 %3145 }
0x10ad   :  { %10399 = vpow2.f32 %v3165_v9  ;;  %v3154_v51 = vsub.f32 %v11518_v17, %v3146_v6  ;;  %v3143_v46 = vpop.xlane.xlu1 %3142 }
0x10ae   :  { %10401 = vpow2.f32 %v3163_v34  ;;  %v3153_v7 = vsub.f32 %v11521_v43, %v3143_v46  ;;  %v11625_v34 = vadd.f32 %v11485_v33, %v11261_v0  ;;  %v11641_v0 = vadd.f32 %v11511_v36, %v11276_v11 }
0x10af   :  { %v3169_v59 = vmul.f32 1.442695, %v3154_v51  ;;  %v11658_v11 = vadd.f32 %v11525_v41, %v11299_v62 }
0x10b0   :  { %v3167_v22 = vmul.f32 1.442695, %v3153_v7  ;;  %v11635_v7 = vadd.f32 %v11487_v39, %v11263_v1 }
0x10b1   :  { %10403 = vpow2.f32 %v3169_v59  ;;  %v2715_v62 = vsel %vm2302_vm11, %v11658_v11, -inf }
0x10b2   :  { %v11597_v16 = vpop.eup %10395  ;;  %10405 = vpow2.f32 %v3167_v22  ;;  %v2700_v22 = vsel %vm2302_vm11, %v11625_v34, -inf }
0x10b3   :  { %v3180_v14 = vsel %vm2302_vm11, %v11597_v16, 0.0  ;;  %v11601_v32 = vpop.eup %10397 }
0x10b4   :  { %3181 = vadd.xlane.f32.xlu0 %v3180_v14  ;;  %v11603_v24 = vpop.xlane.xlu0 %3545  ;;  %v3177_v17 = vsel %vm2302_vm11, %v11601_v32, 0.0  ;;  %v11649_v14 = vadd.f32 %v11497_v49, %v11267_v5  ;;  %v11664_v5 = vadd.f32 %v11501_v25, %v11274_v48 }
0x10b5   :  { %v3543_v26 = vpop.xlane.xlu1 %3542 }
0x10b6   :  { %v3565_v1 = vsub.f32 %v11535_v40, %v3543_v26  ;;  %v2706_v26 = vsel %vm2302_vm11, %v11649_v14, -inf }
0x10b7   :  { %v11607_v23 = vpop.eup %10399 }
0x10b8   :  { %3178 = vadd.xlane.f32.xlu0 %v3177_v17  ;;  %v11609_v43 = vpop.eup %10401  ;;  %v11611_v50 = vpop.xlane.xlu0 %3551  ;;  %v3186_v57 = vsel %vm2302_vm11, %v11607_v23, 0.0  ;;  %v2697_v17 = vsel %vm2302_vm11, %v11635_v7, -inf  ;;  %v3573_v49 = vmul.f32 1.442695, %v3565_v1 }
0x10b9   :  { %v11615_v37 = vpop.xlane.xlu1 %3548  ;;  %3187 = vadd.xlane.f32.xlu1 %v3186_v57  ;;  %v3183_v58 = vsel %vm2302_vm11, %v11609_v43, 0.0  ;;  %v2709_v57 = vsel %vm2302_vm11, %v11641_v0, -inf }
0x10ba   :  { %10407 = vpow2.f32 %v3573_v49 }
0x10bb   :  { %v11619_v47 = vpop.eup %10403 }
0x10bc   :  { %3184 = vadd.xlane.f32.xlu0 %v3183_v58  ;;  %v11621_v9 = vpop.eup %10405  ;;  %v11627_v6 = vpop.xlane.xlu0 %3557  ;;  %v3192_v51 = vsel %vm2302_vm11, %v11619_v47, 0.0 }
0x10bd   :  { %v11631_v46 = vpop.xlane.xlu1 %3554  ;;  %3193 = vadd.xlane.f32.xlu1 %v3192_v51  ;;  %v3189_v59 = vsel %vm2302_vm11, %v11621_v9, 0.0 }
0x10c0   :  { %3190 = vadd.xlane.f32.xlu0 %v3189_v59  ;;  %v11643_v33 = vpop.xlane.xlu0 %3563 }
0x10c1   :  { %v11652_v39 = vpop.xlane.xlu1 %3560  ;;  %2701 = vmax.xlane.f32.xlu1 %v2700_v22 }
0x10c4   :  { %2698 = vmax.xlane.f32.xlu0 %v2697_v17  ;;  %v10082_v36 = vpop.permute.xlu0 %10081  ;;  %v11672_v17 = vadd.f32 %v11509_v30, %v11281_v18  ;;  %v11680_v18 = vadd.f32 %v11523_v45, %v11289_v52 }
0x10c5   :  { %v10077_v40 = vpop.permute.xlu1 %10076  ;;  %2710 = vmax.xlane.f32.xlu1 %v2709_v57  ;;  %v10084_v58 = vunpack.i.h.bf16 %v10082_v36  ;;  %v10083_v51 = vunpack.i.l.bf16 %v10082_v36  ;;  %v2703_v36 = vsel %vm2302_vm11, %v11664_v5, -inf }
0x10c6   :  { %v10079_v59 = vunpack.i.h.bf16 %v10077_v40  ;;  %v10078_v22 = vunpack.i.l.bf16 %v10077_v40 }
0x10c7   :  { %v9464_v57 = vpack.c.bf16 %v10084_v58, %v10083_v51 }
0x10c8   :  { %2707 = vmax.xlane.f32.xlu0 %v2706_v26  ;;  %v9460_v41 = vpack.c.bf16 %v10079_v59, %v10078_v22  ;;  %v2712_v26 = vsel %vm2302_vm11, %v11672_v17, -inf  ;;  %v10097_v22 = vpop.permute.xlu0 %10096 }
0x10c9   :  { %v10087_v48 = vpop.permute.xlu1 %10086  ;;  %2716 = vmax.xlane.f32.xlu1 %v2715_v62  ;;  %v10099_v58 = vunpack.i.h.bf16 %v10097_v22  ;;  %v10098_v51 = vunpack.i.l.bf16 %v10097_v22 }
0x10ca   :  { %v10089_v25 = vunpack.i.h.bf16 %v10087_v48  ;;  %v10088_v1 = vunpack.i.l.bf16 %v10087_v48  ;;  %9461 = vmatprep.subr.bf16.mxu1 %v9460_v41  ;;  %v11684_v48 = vpop.eup %10407 }
0x10cb   :  { %9463 = vmatpush3.bf16.msra.mxu1 %v9460_v41  ;;  %v2718_v41 = vsel %vm2302_vm11, %v11680_v18, -inf  ;;  %v11686_v52 = vpack.c.bf16 %v10099_v58, %v10098_v51  ;;  %v3589_v45 = vsel %vm2302_vm11, %v11684_v48, 0.0 }
0x10cc   :  { %2704 = vmax.xlane.f32.xlu0 %v2703_v36  ;;  %9465 = vmatprep.subr.bf16.mxu1 %v9464_v57  ;;  %v9468_v59 = vpack.c.bf16 %v10089_v25, %v10088_v1  ;;  %v3566_v25 = vsub.f32 %v11532_v2, %v11603_v24 }
0x10cd   :  { %v10092_v40 = vpop.permute.xlu1 %10091 }
0x10ce   :  { %v10094_v30 = vunpack.i.h.bf16 %v10092_v40  ;;  %v10093_v49 = vunpack.i.l.bf16 %v10092_v40  ;;  %v3575_v1 = vmul.f32 1.442695, %v3566_v25 }
0x10cf   :  { %9467 = vmatpush3.bf16.msra.mxu1 %v9464_v57  ;;  %v3568_v57 = vsub.f32 %v11542_v56, %v11611_v50 }
0x10d0   :  { %2713 = vmax.xlane.f32.xlu0 %v2712_v26  ;;  %9469 = vmatprep.subr.bf16.mxu1 %v9468_v59  ;;  %v9472_v62 = vpack.c.bf16 %v10094_v30, %v10093_v49  ;;  %10409 = vpow2.f32 %v3575_v1  ;;  %v3567_v26 = vsub.f32 %v11545_v31, %v11615_v37 }
0x10d1   :  { %v3579_v36 = vmul.f32 1.442695, %v3568_v57 }
0x10d2   :  { %v3577_v56 = vmul.f32 1.442695, %v3567_v26 }
0x10d3   :  { %9471 = vmatpush3.bf16.msra.mxu1 %v9468_v59  ;;  %10411 = vpow2.f32 %v3579_v36 }
0x10d4   :  { %2719 = vmax.xlane.f32.xlu0 %v2718_v41  ;;  %9473 = vmatprep.subr.bf16.mxu1 %v9472_v62  ;;  %10413 = vpow2.f32 %v3577_v56 }
0x10d7   :  { %9475 = vmatpush3.bf16.msra.mxu1 %v9472_v62 }
0x10d8   :  { %3590 = vadd.xlane.f32.xlu0 %v3589_v45  ;;  %9501 = vmatprep.subr.bf16.mxu1 %v11686_v52 }
0x10da   :  { %10101 = vrot.lane.b32.xlu1 %v11152_v44, %s10774_s8  ;;  %v11701_v40 = vpop.eup %10409 }
0x10db   :  { %v3592_v2 = vsel %vm2302_vm11, %v11701_v40, 0.0 }
0x10dd   :  { %v11707_v24 = vpop.eup %10411 }
0x10de   :  { %v3598_v50 = vsel %vm2302_vm11, %v11707_v24, 0.0  ;;  %v11711_v30 = vpop.eup %10413 }
0x10df   :  { %v3595_v49 = vsel %vm2302_vm11, %v11711_v30, 0.0 }
0x10ee   :  { %10106 = vrot.lane.b32.xlu0 %v11164_v53, %s10774_s8 }
0x10f2   :  { %10111 = vrot.lane.b32.xlu0 %v11178_v60, %s10774_s8 }
0x10fe   :  { %3593 = vadd.xlane.f32.xlu1 %v3592_v2 }
0x1102   :  { %3599 = vadd.xlane.f32.xlu1 %v3598_v50 }
0x1111   :  { %3596 = vadd.xlane.f32.xlu0 %v3595_v49 }
0x1113   :  { %10116 = vrot.lane.b32.xlu1 %v11138_v38, %s10775_s9 }
0x112d   :  { %v11717_v31 = vpop.xlane.xlu0 %3175 }
0x112e   :  { %v11721_v59 = vpop.xlane.xlu1 %3172 }
0x1141   :  { %v11719_v37 = vpop.xlane.xlu0 %3181 }
0x1145   :  { %v11723_v22 = vpop.xlane.xlu0 %3178 }
0x1146   :  { %v11725_v58 = vpop.xlane.xlu1 %3187 }
0x1149   :  { %v11727_v51 = vpop.xlane.xlu0 %3184 }
0x114a   :  { %v11729_v62 = vpop.xlane.xlu1 %3193 }
0x114d   :  { %v11731_v41 = vpop.xlane.xlu0 %3190 }
0x114e   :  { %v2702_v45 = vpop.xlane.xlu1 %2701 }
0x114f   :  { %v2722_v25 = vsub.f32 %v11625_v34, %v2702_v45  ;;  %v3569_v34 = vsub.f32 %v11555_v27, %v11631_v46 }
0x1151   :  { %v2699_v38 = vpop.xlane.xlu0 %2698  ;;  %v2731_v1 = vmul.f32 1.442695, %v2722_v25 }
0x1152   :  { %v2721_v57 = vsub.f32 %v11635_v7, %v2699_v38  ;;  %v2711_v26 = vpop.xlane.xlu1 %2710 }
0x1153   :  { %10415 = vpow2.f32 %v2731_v1  ;;  %v2725_v50 = vsub.f32 %v11641_v0, %v2711_v26 }
0x1154   :  { %v2729_v36 = vmul.f32 1.442695, %v2721_v57  ;;  %v3581_v57 = vmul.f32 1.442695, %v3569_v34  ;;  %v3570_v34 = vsub.f32 %v11552_v19, %v11627_v6 }
0x1155   :  { %v2708_v2 = vpop.xlane.xlu0 %2707  ;;  %v2737_v45 = vmul.f32 1.442695, %v2725_v50 }
0x1156   :  { %10417 = vpow2.f32 %v2729_v36  ;;  %v2724_v56 = vsub.f32 %v11649_v14, %v2708_v2 }
0x1158   :  { %v2735_v49 = vmul.f32 1.442695, %v2724_v56 }
0x1159   :  { %v2705_v28 = vpop.xlane.xlu0 %2704 }
0x115a   :  { %10419 = vpow2.f32 %v2735_v49  ;;  %v2723_v55 = vsub.f32 %v11664_v5, %v2705_v28 }
0x115c   :  { %v2733_v25 = vmul.f32 1.442695, %v2723_v55 }
0x115d   :  { %v2714_v7 = vpop.xlane.xlu0 %2713  ;;  %v11740_v38 = vpop.eup %10415 }
0x115e   :  { %10421 = vpow2.f32 %v2733_v25  ;;  %v2726_v1 = vsub.f32 %v11672_v17, %v2714_v7  ;;  %v2748_v14 = vsel %vm2302_vm11, %v11740_v38, 0.0  ;;  %v3572_v25 = vsub.f32 %v11562_v4, %v11643_v33 }
0x115f   :  { %10423 = vpow2.f32 %v2737_v45  ;;  %2749 = vadd.xlane.f32.xlu0 %v2748_v14  ;;  %v3583_v7 = vmul.f32 1.442695, %v3570_v34  ;;  %v2717_v14 = vpop.xlane.xlu1 %2716 }
0x1160   :  { %v11745_v0 = vpop.eup %10417  ;;  %v2739_v36 = vmul.f32 1.442695, %v2726_v1 }
0x1161   :  { %v2745_v28 = vsel %vm2302_vm11, %v11745_v0, 0.0  ;;  %v2720_v45 = vpop.xlane.xlu0 %2719 }
0x1162   :  { %10425 = vpow2.f32 %v2739_v36  ;;  %2746 = vadd.xlane.f32.xlu1 %v2745_v28  ;;  %v2728_v1 = vsub.f32 %v11680_v18, %v2720_v45  ;;  %v2727_v36 = vsub.f32 %v11658_v11, %v2717_v14 }
0x1163   :  { %10427 = vpow2.f32 %v3581_v57  ;;  %v3587_v57 = vmul.f32 1.442695, %v3572_v25 }
0x1164   :  { %v11749_v55 = vpop.eup %10419  ;;  %10429 = vpow2.f32 %v3583_v7  ;;  %v2743_v28 = vmul.f32 1.442695, %v2728_v1 }
0x1165   :  { %v2754_v27 = vsel %vm2302_vm11, %v11749_v55, 0.0  ;;  %10431 = vpow2.f32 %v3587_v57 }
0x1166   :  { %2755 = vadd.xlane.f32.xlu0 %v2754_v27  ;;  %10433 = vpow2.f32 %v2743_v28 }
0x1168   :  { %v11753_v46 = vpop.eup %10421 }
0x1169   :  { %v2751_v5 = vsel %vm2302_vm11, %v11753_v46, 0.0  ;;  %v11757_v17 = vpop.eup %10423 }
0x116a   :  { %2752 = vadd.xlane.f32.xlu1 %v2751_v5  ;;  %v2757_v56 = vsel %vm2302_vm11, %v11757_v17, 0.0  ;;  %v3571_v5 = vsub.f32 %v11565_v8, %v11652_v39 }
0x116c   :  { %v11759_v26 = vpop.eup %10425 }
0x116d   :  { %v2760_v2 = vsel %vm2302_vm11, %v11759_v26, 0.0  ;;  %v11765_v50 = vpop.eup %10427 }
0x116e   :  { %2761 = vadd.xlane.f32.xlu0 %v2760_v2  ;;  %2758 = vadd.xlane.f32.xlu1 %v2757_v56  ;;  %v3601_v49 = vsel %vm2302_vm11, %v11765_v50, 0.0  ;;  %v3585_v2 = vmul.f32 1.442695, %v3571_v5  ;;  %v11799_v56 = vpop.xlane.xlu0 %3590 }
0x1172   :  { %3602 = vadd.xlane.f32.xlu0 %v3601_v49  ;;  %v10102_v49 = vpop.permute.xlu1 %10101  ;;  %v10107_v45 = vpop.permute.xlu0 %10106 }
0x1176   :  { %v10112_v1 = vpop.permute.xlu0 %10111 }
0x1177   :  { %v10114_v54 = vunpack.i.h.bf16 %v10112_v1  ;;  %v10113_v15 = vunpack.i.l.bf16 %v10112_v1 }
0x117f   :  { %10121 = vrot.lane.b32.xlu1 %v11152_v44, %s10775_s9  ;;  %v2741_v44 = vmul.f32 1.442695, %v2727_v36 }
0x1181   :  { %10435 = vpow2.f32 %v2741_v44 }
0x1182   :  { %10437 = vpow2.f32 %v3585_v2 }
0x1188   :  { %10126 = vrot.lane.b32.xlu0 %v11164_v53, %s10775_s9  ;;  %v11779_v53 = vpop.eup %10429 }
0x1189   :  { %v11781_v19 = vpop.eup %10431  ;;  %v3604_v4 = vsel %vm2302_vm11, %v11779_v53, 0.0 }
0x118a   :  { %v11785_v6 = vpop.eup %10433  ;;  %v3610_v11 = vsel %vm2302_vm11, %v11781_v19, 0.0 }
0x118b   :  { %v2766_v33 = vsel %vm2302_vm11, %v11785_v6, 0.0  ;;  %v11791_v18 = vpop.eup %10435  ;;  %v11803_v25 = vpop.xlane.xlu1 %3593 }
0x118c   :  { %v2763_v27 = vsel %vm2302_vm11, %v11791_v18, 0.0  ;;  %v11801_v34 = vpop.eup %10437 }
0x118d   :  { %v3607_v7 = vsel %vm2302_vm11, %v11801_v34, 0.0 }
0x118f   :  { %v11807_v14 = vpop.xlane.xlu1 %3599 }
0x1193   :  { %v10117_v8 = vpop.permute.xlu1 %10116 }
0x11a3   :  { %3605 = vadd.xlane.f32.xlu1 %v3604_v4 }
0x11a7   :  { %2767 = vadd.xlane.f32.xlu0 %v2766_v33  ;;  %3611 = vadd.xlane.f32.xlu1 %v3610_v11  ;;  %v10104_v33 = vunpack.i.h.bf16 %v10102_v49  ;;  %v10103_v11 = vunpack.i.l.bf16 %v10102_v49 }
0x11ab   :  { %2764 = vadd.xlane.f32.xlu0 %v2763_v27 }
0x11c1   :  { %10131 = vrot.lane.b32.xlu0 %v11178_v60, %s10775_s9  ;;  %v11809_v60 = vpop.xlane.xlu0 %3596 }
0x11e0   :  { %3608 = vadd.xlane.f32.xlu0 %v3607_v7 }
0x11ec   :  { %v2750_v39 = vpop.xlane.xlu0 %2749 }
0x11ed   :  { %10439 = vrcp.f32 %v2750_v39  ;;  %v10109_v39 = vunpack.i.h.bf16 %v10107_v45 }
0x11ef   :  { %v2747_v57 = vpop.xlane.xlu1 %2746 }
0x11f0   :  { %10441 = vrcp.f32 %v2747_v57  ;;  %v10108_v57 = vunpack.i.l.bf16 %v10107_v45 }
0x11f2   :  { %v9508_v35 = vpack.c.bf16 %v10109_v39, %v10108_v57 }
0x11f3   :  { %v2756_v36 = vpop.xlane.xlu0 %2755 }
0x11f4   :  { %10443 = vrcp.f32 %v2756_v36  ;;  %v9504_v36 = vpack.c.bf16 %v10104_v33, %v10103_v11  ;;  %v10118_v33 = vunpack.i.l.bf16 %v10117_v8 }
0x11f7   :  { %v2753_v28 = vpop.xlane.xlu1 %2752  ;;  %v10440_v44 = vpop.eup %10439 }
0x11f8   :  { %10445 = vrcp.f32 %v2753_v28  ;;  %v2778_v7 = vmul.f32 %v10440_v44, %v11740_v38  ;;  %v9512_v44 = vpack.c.bf16 %v10114_v54, %v10113_v15 }
0x11fa   :  { %v10442_v4 = vpop.eup %10441 }
0x11fb   :  { %v2762_v27 = vpop.xlane.xlu0 %2761  ;;  %v2759_v5 = vpop.xlane.xlu1 %2758  ;;  %v2777_v2 = vmul.f32 %v10442_v4, %v11745_v0 }
0x11fc   :  { %10447 = vrcp.f32 %v2762_v27 }
0x11fd   :  { %10449 = vrcp.f32 %v2759_v5  ;;  %8746 = vmatprep.mubr.msk.f32.mxu1 %vm2302_vm11, %v2777_v2 }
0x11fe   :  { %8747 = vmatmul.mubr.msk.f32.vlgmr.msra.gmra.mrb[22].mxu1 %vm2302_vm11, %v2778_v7  ;;  %v10444_v28 = vpop.eup %10443  ;;  %10451 = vrcp.f32 %v11721_v59 }
0x11ff   :  { %9503 = vmatpush3.bf16.msra.mxu1 %v11686_v52  ;;  %v2780_v0 = vmul.f32 %v10444_v28, %v11749_v55  ;;  %v10119_v52 = vunpack.i.h.bf16 %v10117_v8 }
0x1200   :  { %9505 = vmatprep.subr.bf16.mxu1 %v9504_v36 }
0x1201   :  { %v9540_v55 = vpack.c.bf16 %v10119_v52, %v10118_v33 }
0x1202   :  { %v10446_v49 = vpop.eup %10445 }
0x1203   :  { %9507 = vmatpush3.bf16.msra.mxu1 %v9504_v36  ;;  %v2779_v38 = vmul.f32 %v10446_v49, %v11753_v46  ;;  %v3603_v46 = vpop.xlane.xlu0 %3602 }
0x1204   :  { %9509 = vmatprep.subr.bf16.mxu1 %v9508_v35 }
0x1205   :  { %8749 = vmatprep.mubr.msk.f32.mxu1 %vm2302_vm11, %v2779_v38 }
0x1206   :  { %v10448_v45 = vpop.eup %10447  ;;  %8750 = vmatmul.mubr.msk.f32.gmra.mrb[24].mxu1 %vm2302_vm11, %v2780_v0 }
0x1207   :  { %v10450_v4 = vpop.eup %10449  ;;  %9511 = vmatpush3.bf16.msra.mxu1 %v9508_v35  ;;  %v2782_v11 = vmul.f32 %v10448_v45, %v11759_v26  ;;  %v10127_v27 = vpop.permute.xlu0 %10126 }
0x1208   :  { %9513 = vmatprep.subr.bf16.mxu1 %v9512_v44  ;;  %v2781_v1 = vmul.f32 %v10450_v4, %v11757_v17  ;;  %v10452_v35 = vpop.eup %10451  ;;  %v10122_v26 = vpop.permute.xlu1 %10121  ;;  %v10128_v39 = vunpack.i.l.bf16 %v10127_v27 }
0x1209   :  { %v10123_v7 = vunpack.i.l.bf16 %v10122_v26 }
0x120a   :  { %8752 = vmatprep.mubr.msk.f32.mxu1 %vm2302_vm11, %v2781_v1 }
0x120b   :  { %8753 = vmatmul.mubr.msk.f32.gmra.mrb[26].mxu1 %vm2302_vm11, %v2782_v11 }
0x120c   :  { %9515 = vmatpush3.bf16.msra.mxu1 %v9512_v44 }
0x120d   :  { %9541 = vmatprep.subr.bf16.mxu1 %v9540_v55 }
0x1234   :  { %v2768_v5 = vpop.xlane.xlu0 %2767 }
0x1235   :  { %10453 = vrcp.f32 %v2768_v5 }
0x1238   :  { %v2765_v54 = vpop.xlane.xlu0 %2764 }
0x1239   :  { %10455 = vrcp.f32 %v2765_v54 }
0x123a   :  { %10457 = vrcp.f32 %v11717_v31  ;;  %v3203_v31 = vmul.f32 %v10452_v35, %v11585_v42 }
0x123b   :  { %10459 = vrcp.f32 %v11723_v22  ;;  %v10124_v22 = vunpack.i.h.bf16 %v10122_v26 }
0x123c   :  { %10461 = vrcp.f32 %v11719_v37  ;;  %v10132_v57 = vpop.permute.xlu0 %10131 }
0x123d   :  { %10463 = vrcp.f32 %v11727_v51  ;;  %v9544_v42 = vpack.c.bf16 %v10124_v22, %v10123_v7  ;;  %v10134_v36 = vunpack.i.h.bf16 %v10132_v57  ;;  %v10133_v28 = vunpack.i.l.bf16 %v10132_v57 }
0x123e   :  { %10465 = vrcp.f32 %v11725_v58 }
0x123f   :  { %v10454_v15 = vpop.eup %10453  ;;  %10467 = vrcp.f32 %v11731_v41  ;;  %v9552_v0 = vpack.c.bf16 %v10134_v36, %v10133_v28 }
0x1240   :  { %v2784_v59 = vmul.f32 %v10454_v15, %v11785_v6  ;;  %10469 = vrcp.f32 %v11729_v62 }
0x1241   :  { %10471 = vrcp.f32 %v11799_v56 }
0x1242   :  { %10473 = vrcp.f32 %v11803_v25  ;;  %v3606_v25 = vpop.xlane.xlu1 %3605 }
0x1243   :  { %v10456_v17 = vpop.eup %10455  ;;  %10475 = vrcp.f32 %v11809_v60 }
0x1244   :  { %v2783_v8 = vmul.f32 %v10456_v17, %v11791_v18  ;;  %v10458_v2 = vpop.eup %10457  ;;  %v10129_v18 = vunpack.i.h.bf16 %v10127_v27  ;;  %10477 = vrcp.f32 %v11807_v14 }
0x1245   :  { %v10460_v37 = vpop.eup %10459  ;;  %v3204_v58 = vmul.f32 %v10458_v2, %v11583_v12  ;;  %10479 = vrcp.f32 %v3603_v46 }
0x1246   :  { %8755 = vmatprep.mubr.msk.f32.mxu1 %vm2302_vm11, %v2783_v8  ;;  %v10462_v51 = vpop.eup %10461  ;;  %v3205_v41 = vmul.f32 %v10460_v37, %v11601_v32  ;;  %v9548_v49 = vpack.c.bf16 %v10129_v18, %v10128_v39  ;;  %10481 = vrcp.f32 %v3606_v25 }
0x1247   :  { %8756 = vmatmul.mubr.msk.f32.gmra.mrb[28].mxu1 %vm2302_vm11, %v2784_v59  ;;  %v10464_v6 = vpop.eup %10463  ;;  %v3206_v12 = vmul.f32 %v10462_v51, %v11597_v16 }
0x1248   :  { %8802 = vmatprep.mubr.msk.f32.mxu1 %vm2302_vm11, %v3203_v31  ;;  %v10466_v62 = vpop.eup %10465  ;;  %v3207_v32 = vmul.f32 %v10464_v6, %v11609_v43 }
0x1249   :  { %v10468_v56 = vpop.eup %10467  ;;  %v3208_v60 = vmul.f32 %v10466_v62, %v11607_v23 }
0x124a   :  { %v10470_v16 = vpop.eup %10469  ;;  %v3209_v38 = vmul.f32 %v10468_v56, %v11621_v9 }
0x124b   :  { %8803 = vmatmul.mubr.msk.f32.vlgmr.msra.gmra.mrb[22].mxu1 %vm2302_vm11, %v3204_v58  ;;  %v10472_v43 = vpop.eup %10471  ;;  %v3210_v14 = vmul.f32 %v10470_v16, %v11619_v47 }
0x124c   :  { %9543 = vmatpush3.bf16.msra.mxu1 %v9540_v55  ;;  %8805 = vmatprep.mubr.msk.f32.mxu1 %vm2302_vm11, %v3205_v41  ;;  %v10474_v45 = vpop.eup %10473  ;;  %v3621_v44 = vmul.f32 %v10472_v43, %v11684_v48 }
0x124d   :  { %9545 = vmatprep.subr.bf16.mxu1 %v9544_v42  ;;  %v10476_v4 = vpop.eup %10475  ;;  %v3622_v23 = vmul.f32 %v10474_v45, %v11701_v40  ;;  %v3612_v40 = vpop.xlane.xlu1 %3611 }
0x124e   :  { %v10478_v9 = vpop.eup %10477  ;;  %v3623_v52 = vmul.f32 %v10476_v4, %v11711_v30  ;;  %10483 = vrcp.f32 %v3612_v40 }
0x124f   :  { %8806 = vmatmul.mubr.msk.f32.gmra.mrb[24].mxu1 %vm2302_vm11, %v3206_v12  ;;  %v10480_v33 = vpop.eup %10479  ;;  %v3624_v47 = vmul.f32 %v10478_v9, %v11707_v24 }
0x1250   :  { %9547 = vmatpush3.bf16.msra.mxu1 %v9544_v42  ;;  %8808 = vmatprep.mubr.msk.f32.mxu1 %vm2302_vm11, %v3207_v32  ;;  %v10482_v11 = vpop.eup %10481  ;;  %v3625_v48 = vmul.f32 %v10480_v33, %v11765_v50 }
0x1251   :  { %9549 = vmatprep.subr.bf16.mxu1 %v9548_v49  ;;  %v3626_v1 = vmul.f32 %v10482_v11, %v11779_v53 }
0x1253   :  { %8809 = vmatmul.mubr.msk.f32.gmra.mrb[26].mxu1 %vm2302_vm11, %v3208_v60 }
0x1254   :  { %9551 = vmatpush3.bf16.msra.mxu1 %v9548_v49  ;;  %8811 = vmatprep.mubr.msk.f32.mxu1 %vm2302_vm11, %v3209_v38 }
0x1255   :  { %9553 = vmatprep.subr.bf16.mxu1 %v9552_v0 }
0x1257   :  { %8812 = vmatmul.mubr.msk.f32.gmra.mrb[28].mxu1 %vm2302_vm11, %v3210_v14 }
0x1258   :  { %9555 = vmatpush3.bf16.msra.mxu1 %v9552_v0  ;;  %8858 = vmatprep.mubr.msk.f32.mxu1 %vm2302_vm11, %v3621_v44  ;;  %v10484_v55 = vpop.eup %10483 }
0x1259   :  { %v3628_v24 = vmul.f32 %v10484_v55, %v11781_v19 }
0x125b   :  { %8859 = vmatmul.mubr.msk.f32.vlgmr.msra.gmra.mrb[22].mxu1 %vm2302_vm11, %v3622_v23 }
0x125c   :  { %8861 = vmatprep.mubr.msk.f32.mxu1 %vm2302_vm11, %v3623_v52 }
0x125f   :  { %8862 = vmatmul.mubr.msk.f32.gmra.mrb[24].mxu1 %vm2302_vm11, %v3624_v47 }
0x1260   :  { %8864 = vmatprep.mubr.msk.f32.mxu1 %vm2302_vm11, %v3625_v48 }
0x1263   :  { %8865 = vmatmul.mubr.msk.f32.gmra.mrb[26].mxu1 %vm2302_vm11, %v3626_v1 }
0x126d   :  { %v3609_v30 = vpop.xlane.xlu0 %3608 }
0x126e   :  { %10485 = vrcp.f32 %v3609_v30 }
0x1278   :  { %v10486_v46 = vpop.eup %10485 }
0x1279   :  { %v3627_v27 = vmul.f32 %v10486_v46, %v11801_v34 }
0x127b   :  { %8867 = vmatprep.mubr.msk.f32.mxu1 %vm2302_vm11, %v3627_v27  ;;  %v1882_v27 = vld [vmem:[#allocation2 + $0x188] sm:$0xff] }
0x127c   :  { %8868 = vmatmul.mubr.msk.f32.gmra.mrb[28].mxu1 %vm2302_vm11, %v3628_v24  ;;  %v1883_v24 = vld [vmem:[#allocation2 + $0x190] sm:$0xff] }
0x132e   :  { %v8860_v50 = vpop.f32.mrb[22].mxu1 }
0x132f   :  { %v9866_v5 = vadd.f32 %v8860_v50, %v11091_v21  ;;  %v3743_v53 = vpop.f32.mrb[23].mxu1 }
0x1330   :  { %v9867_v54 = vadd.f32 %v3743_v53, %v11096_v63 }
0x1331   :  { %v3793_v8 = vsel %vm136_vm1, %v9866_v5, 0.0 }
0x1332   :  { %v8863_v35 = vpop.f32.mrb[24].mxu1  ;;  %v3790_v15 = vsel %vm136_vm1, %v9867_v54, 0.0 }
0x1333   :  { %v9868_v17 = vadd.f32 %v8863_v35, %v11113_v10  ;;  %3791 = vadd.xlane.f32.xlu1 %v3790_v15  ;;  %v3753_v26 = vpop.f32.mrb[25].mxu1  ;;  %v1885_v35 = vld [vmem:[#allocation2 + $0x1a0] sm:$0xff] }
0x1334   :  { %v9869_v34 = vadd.f32 %v3753_v26, %v11105_v3 }
0x1335   :  { %v3799_v10 = vsel %vm136_vm1, %v9868_v17, 0.0 }
0x1336   :  { %v8866_v19 = vpop.f32.mrb[26].mxu1  ;;  %v3796_v31 = vsel %vm136_vm1, %v9869_v34, 0.0 }
0x1337   :  { %v9870_v59 = vadd.f32 %v8866_v19, %v11124_v20  ;;  %3794 = vadd.xlane.f32.xlu1 %v3793_v8  ;;  %v3763_v2 = vpop.f32.mrb[27].mxu1 }
0x1338   :  { %v9871_v21 = vadd.f32 %v3763_v2, %v11118_v13 }
0x1339   :  { %v3805_v63 = vsel %vm136_vm1, %v9870_v59, 0.0 }
0x133a   :  { %3806 = vadd.xlane.f32.xlu0 %v3805_v63  ;;  %v3802_v3 = vsel %vm136_vm1, %v9871_v21, 0.0 }
0x133b   :  { %3797 = vadd.xlane.f32.xlu1 %v3796_v31 }
0x133f   :  { %3800 = vadd.xlane.f32.xlu1 %v3799_v10 }
0x1343   :  { %3803 = vadd.xlane.f32.xlu1 %v3802_v3  ;;  %v11928_v3 = vld [vmem:[#allocation2 + $0x1e8] sm:$0x7f] }
0x134f   :  { %v8869_v37 = vpop.f32.mrb[28].mxu1 }
0x1350   :  { %v9872_v22 = vadd.f32 %v8869_v37, %v11132_v61  ;;  %v3773_v20 = vpop.f32.mrb[29].mxu1  ;;  %v13127_v37 = vld [vmem:[#allocation7_spill] sm:$0xff] }
0x1351   :  { %v9873_v7 = vadd.f32 %v3773_v20, %v11128_v29 }
0x1352   :  { %v3811_v13 = vsel %vm136_vm1, %v9872_v22, 0.0 }
0x1353   :  { %3812 = vadd.xlane.f32.xlu0 %v3811_v13  ;;  %v3808_v58 = vsel %vm136_vm1, %v9873_v7, 0.0  ;;  %v13128_v13 = vld [vmem:[#allocation8_spill] sm:$0xff] }
0x1354   :  { %3809 = vadd.xlane.f32.xlu1 %v3808_v58  ;;  %v3909_v58 = vrot.slane %v11928_v3, %v13128_v13 }
0x13c0   :  { %v3792_v51 = vpop.xlane.xlu1 %3791 }
0x13c1   :  { %v3814_v41 = vmul.f32 0.03125, %v3792_v51 }
0x13c3   :  { %v11888_v6 = vsub.f32 %v9867_v54, %v3814_v41  ;;  %v1884_v54 = vld [vmem:[#allocation2 + $0x198] sm:$0xff] }
0x13c4   :  { %v3795_v18 = vpop.xlane.xlu1 %3794  ;;  %v9560_v15 = vpack.c.bf16 %v1885_v35, %v1884_v54 }
0x13c5   :  { %v3815_v39 = vmul.f32 0.03125, %v3795_v18  ;;  %v3830_v42 = vmul.f32 %v11888_v6, %v11888_v6 }
0x13c7   :  { %v11892_v57 = vsub.f32 %v9866_v5, %v3815_v39  ;;  %v3838_v61 = vsel %vm136_vm1, %v3830_v42, 0.0  ;;  %v3807_v29 = vpop.xlane.xlu0 %3806  ;;  %v9556_v5 = vpack.c.bf16 %v1883_v24, %v1882_v27 }
0x13c8   :  { %v3798_v12 = vpop.xlane.xlu1 %3797  ;;  %3839 = vadd.xlane.f32.xlu1 %v3838_v61  ;;  %v3819_v56 = vmul.f32 0.03125, %v3807_v29 }
0x13c9   :  { %v3816_v62 = vmul.f32 0.03125, %v3798_v12  ;;  %v3831_v32 = vmul.f32 %v11892_v57, %v11892_v57  ;;  %9557 = vmatprep.subr.bf16.mxu0 %v9556_v5 }
0x13ca   :  { %v11902_v16 = vsub.f32 %v9870_v59, %v3819_v56  ;;  %9559 = vmatpush3.bf16.msra.mxu0 %v9556_v5 }
0x13cb   :  { %v11897_v36 = vsub.f32 %v9869_v34, %v3816_v62  ;;  %v3841_v28 = vsel %vm136_vm1, %v3831_v32, 0.0  ;;  %9561 = vmatprep.subr.bf16.mxu0 %v9560_v15 }
0x13cc   :  { %v3801_v49 = vpop.xlane.xlu1 %3800  ;;  %3842 = vadd.xlane.f32.xlu0 %v3841_v28  ;;  %v3835_v23 = vmul.f32 %v11902_v16, %v11902_v16 }
0x13cd   :  { %v3817_v25 = vmul.f32 0.03125, %v3801_v49  ;;  %v3832_v60 = vmul.f32 %v11897_v36, %v11897_v36 }
0x13ce   :  { %v3853_v52 = vsel %vm136_vm1, %v3835_v23, 0.0  ;;  %9563 = vmatpush3.bf16.msra.mxu0 %v9560_v15  ;;  %v1886_v15 = vld [vmem:[#allocation2 + $0x1a8] sm:$0xff] }
0x13cf   :  { %v11904_v38 = vsub.f32 %v9868_v17, %v3817_v25  ;;  %v3844_v43 = vsel %vm136_vm1, %v3832_v60, 0.0 }
0x13d0   :  { %v3804_v0 = vpop.xlane.xlu1 %3803  ;;  %3845 = vadd.xlane.f32.xlu1 %v3844_v43 }
0x13d1   :  { %v3818_v14 = vmul.f32 0.03125, %v3804_v0  ;;  %v3833_v45 = vmul.f32 %v11904_v38, %v11904_v38 }
0x13d3   :  { %v11909_v44 = vsub.f32 %v9871_v21, %v3818_v14  ;;  %v3847_v4 = vsel %vm136_vm1, %v3833_v45, 0.0 }
0x13d4   :  { %3848 = vadd.xlane.f32.xlu0 %v3847_v4 }
0x13d5   :  { %v3834_v9 = vmul.f32 %v11909_v44, %v11909_v44 }
0x13d7   :  { %v3850_v33 = vsel %vm136_vm1, %v3834_v9, 0.0 }
0x13d8   :  { %3854 = vadd.xlane.f32.xlu0 %v3853_v52  ;;  %3851 = vadd.xlane.f32.xlu1 %v3850_v33 }
0x13e0   :  { %v3813_v47 = vpop.xlane.xlu0 %3812 }
0x13e1   :  { %v3821_v11 = vmul.f32 0.03125, %v3813_v47  ;;  %v3810_v48 = vpop.xlane.xlu1 %3809 }
0x13e2   :  { %v3820_v1 = vmul.f32 0.03125, %v3810_v48 }
0x13e3   :  { %v11918_v40 = vsub.f32 %v9872_v22, %v3821_v11  ;;  %v3897_v22 = vrot.slane %v11928_v3, %v13127_v37 }
0x13e4   :  { %v11920_v30 = vsub.f32 %v9873_v7, %v3820_v1 }
0x13e5   :  { %v3837_v55 = vmul.f32 %v11918_v40, %v11918_v40 }
0x13e6   :  { %v3836_v46 = vmul.f32 %v11920_v30, %v11920_v30 }
0x13e7   :  { %v3859_v50 = vsel %vm136_vm1, %v3837_v55, 0.0 }
0x13e8   :  { %3860 = vadd.xlane.f32.xlu0 %v3859_v50  ;;  %v3856_v53 = vsel %vm136_vm1, %v3836_v46, 0.0 }
0x13e9   :  { %3857 = vadd.xlane.f32.xlu1 %v3856_v53 }
0x1455   :  { %v3840_v17 = vpop.xlane.xlu1 %3839 }
0x1456   :  { %v3862_v26 = vmul.f32 0.03125, %v3840_v17  ;;  %v1887_v17 = vld [vmem:[#allocation2 + $0x1b0] sm:$0xff] }
0x1458   :  { %v3870_v34 = vadd.f32 1e-06, %v3862_v26  ;;  %v9564_v26 = vpack.c.bf16 %v1887_v17, %v1886_v15 }
0x1459   :  { %v3843_v19 = vpop.xlane.xlu0 %3842 }
0x145a   :  { %10487 = vrsqrt.f32 %v3870_v34  ;;  %v3863_v8 = vmul.f32 0.03125, %v3843_v19  ;;  %9565 = vmatprep.subr.bf16.mxu1 %v9564_v26  ;;  %v1889_v34 = vld [vmem:[#allocation2 + $0x1c0] sm:$0xff]  ;;  %v1890_v19 = vld [vmem:[#allocation2 + $0x1c8] sm:$0xff] }
0x145b   :  { %9567 = vmatpush3.bf16.msra.mxu1 %v9564_v26 }
0x145c   :  { %v3871_v59 = vadd.f32 1e-06, %v3863_v8  ;;  %v1891_v8 = vld [vmem:[#allocation2 + $0x1d0] sm:$0xff] }
0x145d   :  { %v3846_v2 = vpop.xlane.xlu1 %3845 }
0x145e   :  { %10489 = vrsqrt.f32 %v3871_v59  ;;  %v3864_v21 = vmul.f32 0.03125, %v3846_v2  ;;  %v9572_v59 = vpack.c.bf16 %v1891_v8, %v1890_v19  ;;  %v1892_v2 = vld [vmem:[#allocation2 + $0x1d8] sm:$0xff] }
0x1460   :  { %v3872_v63 = vadd.f32 1e-06, %v3864_v21  ;;  %v1893_v21 = vld [vmem:[#allocation2 + $0x1e0] sm:$0xff] }
0x1461   :  { %v3849_v31 = vpop.xlane.xlu0 %3848 }
0x1462   :  { %10491 = vrsqrt.f32 %v3872_v63  ;;  %v3865_v10 = vmul.f32 0.03125, %v3849_v31  ;;  %v9576_v63 = vpack.c.bf16 %v1893_v21, %v1892_v2  ;;  %v13129_v31 = vld [vmem:[#allocation5_spill] sm:$0xff] }
0x1464   :  { %v10488_v20 = vpop.eup %10487  ;;  %v3873_v7 = vadd.f32 1e-06, %v3865_v10  ;;  %v13118_v10 = vsub.s32 3, %v13129_v31 }
0x1465   :  { %v3855_v51 = vpop.xlane.xlu0 %3854  ;;  %v3852_v41 = vpop.xlane.xlu1 %3851  ;;  %v3886_v18 = vmul.f32 %v10488_v20, %v11888_v6 }
0x1466   :  { %10493 = vrsqrt.f32 %v3873_v7  ;;  %v3867_v39 = vmul.f32 0.03125, %v3855_v51  ;;  %v3866_v42 = vmul.f32 0.03125, %v3852_v41 }
0x1467   :  { %v3898_v61 = vmul.f32 %v3897_v22, %v3886_v18 }
0x1468   :  { %v10490_v29 = vpop.eup %10489  ;;  %v3875_v12 = vadd.f32 1e-06, %v3867_v39  ;;  %v3874_v62 = vadd.f32 1e-06, %v3866_v42 }
0x1469   :  { %v3887_v32 = vmul.f32 %v10490_v29, %v11892_v57  ;;  %v11936_v56 = vadd.f32 %v3909_v58, %v3898_v61 }
0x146a   :  { %10495 = vrsqrt.f32 %v3875_v12 }
0x146b   :  { %v3899_v28 = vmul.f32 %v3897_v22, %v3887_v32  ;;  %10497 = vrsqrt.f32 %v3874_v62  ;;  %8878 = vmatprep.mubr.msk.f32.mxu0 %vm136_vm1, %v11936_v56 }
0x146c   :  { %v10492_v49 = vpop.eup %10491 }
0x146d   :  { %v11940_v25 = vadd.f32 %v3909_v58, %v3899_v28  ;;  %v3888_v6 = vmul.f32 %v10492_v49, %v11897_v36 }
0x146f   :  { %8879 = vmatmul.mubr.msk.f32.vlgmr.msra.gmra.mrb[66].mxu0 %vm136_vm1, %v11940_v25  ;;  %v3900_v60 = vmul.f32 %v3897_v22, %v3888_v6 }
0x1470   :  { %v10494_v43 = vpop.eup %10493 }
0x1471   :  { %v11945_v0 = vadd.f32 %v3909_v58, %v3900_v60  ;;  %v3889_v57 = vmul.f32 %v10494_v43, %v11904_v38 }
0x1473   :  { %8881 = vmatprep.mubr.msk.f32.mxu0 %vm136_vm1, %v11945_v0  ;;  %v3901_v14 = vmul.f32 %v3897_v22, %v3889_v57 }
0x1474   :  { %v10496_v45 = vpop.eup %10495 }
0x1475   :  { %v10498_v4 = vpop.eup %10497  ;;  %v3861_v23 = vpop.xlane.xlu0 %3860  ;;  %v11950_v9 = vadd.f32 %v3909_v58, %v3901_v14  ;;  %v3891_v36 = vmul.f32 %v10496_v45, %v11902_v16 }
0x1476   :  { %v3869_v52 = vmul.f32 0.03125, %v3861_v23  ;;  %v3858_v33 = vpop.xlane.xlu1 %3857  ;;  %v3890_v47 = vmul.f32 %v10498_v4, %v11909_v44 }
0x1477   :  { %v3868_v11 = vmul.f32 0.03125, %v3858_v33  ;;  %8882 = vmatmul.mubr.msk.f32.gmra.mrb[68].mxu0 %vm136_vm1, %v11950_v9  ;;  %v3903_v38 = vmul.f32 %v3897_v22, %v3891_v36 }
0x1478   :  { %v3877_v48 = vadd.f32 1e-06, %v3869_v52  ;;  %v3902_v1 = vmul.f32 %v3897_v22, %v3890_v47 }
0x1479   :  { %v3876_v55 = vadd.f32 1e-06, %v3868_v11  ;;  %v11956_v46 = vadd.f32 %v3909_v58, %v3903_v38 }
0x147a   :  { %10499 = vrsqrt.f32 %v3877_v48  ;;  %v11958_v27 = vadd.f32 %v3909_v58, %v3902_v1 }
0x147b   :  { %10501 = vrsqrt.f32 %v3876_v55 }
0x147c   :  { %8884 = vmatprep.mubr.msk.f32.mxu0 %vm136_vm1, %v11958_v27 }
0x147d   :  { %8885 = vmatmul.mubr.msk.f32.gmra.mrb[70].mxu0 %vm136_vm1, %v11956_v46 }
0x1484   :  { %v10500_v16 = vpop.eup %10499 }
0x1485   :  { %v10502_v44 = vpop.eup %10501  ;;  %v3893_v24 = vmul.f32 %v10500_v16, %v11918_v40  ;;  %v1888_v40 = vld [vmem:[#allocation2 + $0x1b8] sm:$0xff] }
0x1486   :  { %v3892_v50 = vmul.f32 %v10502_v44, %v11920_v30  ;;  %v9568_v30 = vpack.c.bf16 %v1889_v34, %v1888_v40 }
0x1487   :  { %v3905_v5 = vmul.f32 %v3897_v22, %v3893_v24 }
0x1488   :  { %v3904_v53 = vmul.f32 %v3897_v22, %v3892_v50  ;;  %9569 = vmatprep.subr.bf16.mxu1 %v9568_v30  ;;  %v11978_v22 = vrot.slane %v11928_v3, %v13118_v10 }
0x1489   :  { %v11968_v35 = vadd.f32 %v3909_v58, %v3905_v5  ;;  %9571 = vmatpush3.bf16.msra.mxu1 %v9568_v30 }
0x148a   :  { %v11966_v54 = vadd.f32 %v3909_v58, %v3904_v53  ;;  %9573 = vmatprep.subr.bf16.mxu1 %v9572_v59 }
0x148c   :  { %8887 = vmatprep.mubr.msk.f32.mxu0 %vm136_vm1, %v11966_v54 }
0x148d   :  { %8888 = vmatmul.mubr.msk.f32.gmra.mrb[72].mxu0 %vm136_vm1, %v11968_v35  ;;  %9575 = vmatpush3.bf16.msra.mxu1 %v9572_v59 }
0x148e   :  { %9577 = vmatprep.subr.bf16.mxu1 %v9576_v63 }
0x1491   :  { %9579 = vmatpush3.bf16.msra.mxu1 %v9576_v63 }
0x1542   :  { %v8880_v20 = vpop.f32.mrb[66].mxu0 }
0x1543   :  { %v4018_v7 = vadd.f32 %v8880_v20, %v11978_v22  ;;  %v4012_v58 = vpop.f32.mrb[67].mxu0 }
0x1544   :  { %v4013_v51 = vadd.f32 %v4012_v58, %v11978_v22 }
0x1545   :  { %v4060_v41 = vmul.f32 0.044715, %v4018_v7  ;;  %v4052_v59 = vmul.f32 0.5, %v4018_v7 }
0x1546   :  { %v4059_v18 = vmul.f32 0.044715, %v4013_v51  ;;  %v4051_v30 = vmul.f32 0.5, %v4013_v51 }
0x1547   :  { %v4068_v39 = vmul.f32 %v4060_v41, %v4018_v7 }
0x1548   :  { %v4067_v42 = vmul.f32 %v4059_v18, %v4013_v51 }
0x1549   :  { %v4076_v61 = vmul.f32 %v4068_v39, %v4018_v7 }
0x154a   :  { %v4075_v29 = vmul.f32 %v4067_v42, %v4013_v51  ;;  %v8883_v12 = vpop.f32.mrb[68].mxu0 }
0x154b   :  { %v4084_v62 = vadd.f32 %v4076_v61, %v4018_v7  ;;  %v4028_v32 = vadd.f32 %v8883_v12, %v11978_v22  ;;  %v4022_v28 = vpop.f32.mrb[69].mxu0 }
0x154c   :  { %v4083_v49 = vadd.f32 %v4075_v29, %v4013_v51  ;;  %v4023_v6 = vadd.f32 %v4022_v28, %v11978_v22 }
0x154d   :  { %v4092_v60 = vmul.f32 0.7978846, %v4084_v62  ;;  %v4062_v43 = vmul.f32 0.044715, %v4028_v32  ;;  %v4054_v62 = vmul.f32 0.5, %v4028_v32 }
0x154e   :  { %v4061_v57 = vmul.f32 0.044715, %v4023_v6  ;;  %v4091_v14 = vmul.f32 0.7978846, %v4083_v49  ;;  %v4053_v7 = vmul.f32 0.5, %v4023_v6 }
0x154f   :  { %10503 = vtanh.f32 %v4092_v60  ;;  %v4070_v45 = vmul.f32 %v4062_v43, %v4028_v32 }
0x1550   :  { %v4069_v4 = vmul.f32 %v4061_v57, %v4023_v6  ;;  %v8886_v23 = vpop.f32.mrb[70].mxu0  ;;  %10505 = vtanh.f32 %v4091_v14 }
0x1551   :  { %v4078_v36 = vmul.f32 %v4070_v45, %v4028_v32  ;;  %v4038_v52 = vadd.f32 %v8886_v23, %v11978_v22  ;;  %v4032_v33 = vpop.f32.mrb[71].mxu0 }
0x1552   :  { %v4077_v47 = vmul.f32 %v4069_v4, %v4023_v6  ;;  %v4033_v11 = vadd.f32 %v4032_v33, %v11978_v22 }
0x1553   :  { %v4086_v38 = vadd.f32 %v4078_v36, %v4028_v32  ;;  %v4064_v48 = vmul.f32 0.044715, %v4038_v52 }
0x1554   :  { %v4085_v1 = vadd.f32 %v4077_v47, %v4023_v6  ;;  %v4063_v55 = vmul.f32 0.044715, %v4033_v11  ;;  %v4055_v36 = vmul.f32 0.5, %v4033_v11  ;;  %v4056_v47 = vmul.f32 0.5, %v4038_v52 }
0x1555   :  { %v4072_v16 = vmul.f32 %v4064_v48, %v4038_v52  ;;  %v4094_v44 = vmul.f32 0.7978846, %v4086_v38 }
0x1556   :  { %v4071_v24 = vmul.f32 %v4063_v55, %v4033_v11  ;;  %v4093_v50 = vmul.f32 0.7978846, %v4085_v1 }
0x1557   :  { %v4080_v5 = vmul.f32 %v4072_v16, %v4038_v52  ;;  %10507 = vtanh.f32 %v4094_v44 }
0x1558   :  { %v4079_v53 = vmul.f32 %v4071_v24, %v4033_v11  ;;  %10509 = vtanh.f32 %v4093_v50 }
0x1559   :  { %v10504_v15 = vpop.eup %10503  ;;  %v4088_v17 = vadd.f32 %v4080_v5, %v4038_v52  ;;  %v13117_v52 = vsub.s32 4, %v13129_v31 }
0x155a   :  { %v10506_v26 = vpop.eup %10505  ;;  %v4108_v40 = vadd.f32 1.0, %v10504_v15  ;;  %v4087_v34 = vadd.f32 %v4079_v53, %v4033_v11 }
0x155b   :  { %v4107_v19 = vadd.f32 1.0, %v10506_v26  ;;  %v4096_v8 = vmul.f32 0.7978846, %v4088_v17  ;;  %v4126_v15 = vrot.slane %v11928_v3, %v13117_v52 }
0x155c   :  { %v4095_v2 = vmul.f32 0.7978846, %v4087_v34  ;;  %v4116_v63 = vmul.f32 %v4108_v40, %v4052_v59 }
0x155d   :  { %v4115_v21 = vmul.f32 %v4107_v19, %v4051_v30  ;;  %10511 = vtanh.f32 %v4096_v8 }
0x155e   :  { %10513 = vtanh.f32 %v4095_v2 }
0x155f   :  { %8906 = vmatprep.mubr.msk.f32.mxu1 %vm2302_vm11, %v4115_v21 }
0x1560   :  { %v8889_v20 = vpop.f32.mrb[72].mxu0  ;;  %8907 = vmatmul.mubr.msk.f32.vlgmr.msra.gmra.mrb[38].mxu1 %vm2302_vm11, %v4116_v63 }
0x1561   :  { %v10508_v58 = vpop.eup %10507  ;;  %v4048_v41 = vadd.f32 %v8889_v20, %v11978_v22  ;;  %v4042_v18 = vpop.f32.mrb[73].mxu0 }
0x1562   :  { %v10510_v39 = vpop.eup %10509  ;;  %v4043_v51 = vadd.f32 %v4042_v18, %v11978_v22  ;;  %v4110_v42 = vadd.f32 1.0, %v10508_v58 }
0x1563   :  { %v4066_v61 = vmul.f32 0.044715, %v4048_v41  ;;  %v4109_v29 = vadd.f32 1.0, %v10510_v39  ;;  %v4058_v5 = vmul.f32 0.5, %v4048_v41 }
0x1564   :  { %v4065_v12 = vmul.f32 0.044715, %v4043_v51  ;;  %v4118_v43 = vmul.f32 %v4110_v42, %v4054_v62  ;;  %v4057_v24 = vmul.f32 0.5, %v4043_v51 }
0x1565   :  { %v4074_v28 = vmul.f32 %v4066_v61, %v4048_v41  ;;  %v4117_v49 = vmul.f32 %v4109_v29, %v4053_v7 }
0x1566   :  { %v4073_v60 = vmul.f32 %v4065_v12, %v4043_v51 }
0x1567   :  { %v10512_v57 = vpop.eup %10511  ;;  %v4082_v14 = vmul.f32 %v4074_v28, %v4048_v41  ;;  %8909 = vmatprep.mubr.msk.f32.mxu1 %vm2302_vm11, %v4117_v49 }
0x1568   :  { %v10514_v45 = vpop.eup %10513  ;;  %v4081_v4 = vmul.f32 %v4073_v60, %v4043_v51  ;;  %8910 = vmatmul.mubr.msk.f32.gmra.mrb[40].mxu1 %vm2302_vm11, %v4118_v43  ;;  %v4112_v23 = vadd.f32 1.0, %v10512_v57 }
0x1569   :  { %v4090_v22 = vadd.f32 %v4082_v14, %v4048_v41  ;;  %v4111_v33 = vadd.f32 1.0, %v10514_v45 }
0x156a   :  { %v4089_v6 = vadd.f32 %v4081_v4, %v4043_v51  ;;  %v4120_v48 = vmul.f32 %v4112_v23, %v4056_v47 }
0x156b   :  { %v4119_v38 = vmul.f32 %v4111_v33, %v4055_v36  ;;  %v4098_v32 = vmul.f32 0.7978846, %v4090_v22 }
0x156c   :  { %v4097_v1 = vmul.f32 0.7978846, %v4089_v6 }
0x156d   :  { %8912 = vmatprep.mubr.msk.f32.mxu1 %vm2302_vm11, %v4119_v38  ;;  %10515 = vtanh.f32 %v4098_v32 }
0x156e   :  { %8913 = vmatmul.mubr.msk.f32.gmra.mrb[42].mxu1 %vm2302_vm11, %v4120_v48  ;;  %10517 = vtanh.f32 %v4097_v1 }
0x1577   :  { %v10516_v55 = vpop.eup %10515 }
0x1578   :  { %v10518_v16 = vpop.eup %10517  ;;  %v4114_v44 = vadd.f32 1.0, %v10516_v55 }
0x1579   :  { %v4113_v50 = vadd.f32 1.0, %v10518_v16 }
0x157a   :  { %v4122_v53 = vmul.f32 %v4114_v44, %v4058_v5 }
0x157b   :  { %v4121_v11 = vmul.f32 %v4113_v50, %v4057_v24 }
0x157d   :  { %8915 = vmatprep.mubr.msk.f32.mxu1 %vm2302_vm11, %v4121_v11 }
0x157e   :  { %8916 = vmatmul.mubr.msk.f32.gmra.mrb[44].mxu1 %vm2302_vm11, %v4122_v53 }
0x1633   :  { %v8908_v17 = vpop.f32.mrb[38].mxu1 }
0x1634   :  { %v4223_v26 = vadd.f32 %v8908_v17, %v4126_v15  ;;  %v4217_v40 = vpop.f32.mrb[39].mxu1 }
0x1635   :  { %v4218_v34 = vadd.f32 %v4217_v40, %v4126_v15 }
0x1636   :  { %v4257_v30 = vadd.f32 %v4223_v26, %v11940_v25 }
0x1637   :  { %v4256_v19 = vadd.f32 %v4218_v34, %v11936_v56 }
0x1638   :  { %v4267_v8 = vsel %vm136_vm1, %v4257_v30, 0.0 }
0x1639   :  { %4268 = vadd.xlane.f32.xlu0 %v4267_v8  ;;  %v4264_v59 = vsel %vm136_vm1, %v4256_v19, 0.0 }
0x163a   :  { %4265 = vadd.xlane.f32.xlu1 %v4264_v59 }
0x163b   :  { %v8911_v2 = vpop.f32.mrb[40].mxu1 }
0x163c   :  { %v4233_v21 = vadd.f32 %v8911_v2, %v4126_v15  ;;  %v4227_v63 = vpop.f32.mrb[41].mxu1 }
0x163d   :  { %v4228_v20 = vadd.f32 %v4227_v63, %v4126_v15 }
0x163e   :  { %v4259_v58 = vadd.f32 %v4233_v21, %v11950_v9 }
0x163f   :  { %v4258_v41 = vadd.f32 %v4228_v20, %v11945_v0 }
0x1640   :  { %v4273_v18 = vsel %vm136_vm1, %v4259_v58, 0.0 }
0x1641   :  { %v8914_v39 = vpop.f32.mrb[42].mxu1  ;;  %4274 = vadd.xlane.f32.xlu0 %v4273_v18  ;;  %v4270_v56 = vsel %vm136_vm1, %v4258_v41, 0.0  ;;  %v4396_v18 = vld [vmem:[#allocation2 + $0x210] sm:$0xff] }
0x1642   :  { %v4243_v25 = vadd.f32 %v8914_v39, %v4126_v15  ;;  %v4237_v51 = vpop.f32.mrb[43].mxu1  ;;  %4271 = vadd.xlane.f32.xlu1 %v4270_v56 }
0x1643   :  { %v4238_v42 = vadd.f32 %v4237_v51, %v4126_v15 }
0x1644   :  { %v4261_v61 = vadd.f32 %v4243_v25, %v11956_v46  ;;  %v4397_v25 = vld [vmem:[#allocation2 + $0x218] sm:$0xff] }
0x1645   :  { %v4260_v7 = vadd.f32 %v4238_v42, %v11958_v27  ;;  %v9588_v42 = vpack.c.bf16 %v4397_v25, %v4396_v18 }
0x1646   :  { %v4279_v29 = vsel %vm136_vm1, %v4261_v61, 0.0 }
0x1647   :  { %4280 = vadd.xlane.f32.xlu0 %v4279_v29  ;;  %v4276_v9 = vsel %vm136_vm1, %v4260_v7, 0.0  ;;  %9589 = vmatprep.subr.bf16.mxu1 %v9588_v42  ;;  %v4398_v29 = vld [vmem:[#allocation2 + $0x220] sm:$0xff] }
0x1648   :  { %4277 = vadd.xlane.f32.xlu1 %v4276_v9  ;;  %9591 = vmatpush3.bf16.msra.mxu1 %v9588_v42 }
0x1651   :  { %v8917_v0 = vpop.f32.mrb[44].mxu1 }
0x1652   :  { %v4253_v12 = vadd.f32 %v8917_v0, %v4126_v15  ;;  %v4247_v62 = vpop.f32.mrb[45].mxu1  ;;  %v4399_v0 = vld [vmem:[#allocation2 + $0x228] sm:$0xff] }
0x1653   :  { %v4248_v28 = vadd.f32 %v4247_v62, %v4126_v15 }
0x1654   :  { %v4263_v49 = vadd.f32 %v4253_v12, %v11968_v35  ;;  %v9592_v12 = vpack.c.bf16 %v4399_v0, %v4398_v29 }
0x1655   :  { %v4262_v60 = vadd.f32 %v4248_v28, %v11966_v54 }
0x1656   :  { %v4285_v43 = vsel %vm136_vm1, %v4263_v49, 0.0  ;;  %9593 = vmatprep.subr.bf16.mxu1 %v9592_v12 }
0x1657   :  { %4286 = vadd.xlane.f32.xlu0 %v4285_v43  ;;  %v4282_v46 = vsel %vm136_vm1, %v4262_v60, 0.0  ;;  %9595 = vmatpush3.bf16.msra.mxu1 %v9592_v12 }
0x1658   :  { %4283 = vadd.xlane.f32.xlu1 %v4282_v46 }
0x16c6   :  { %v4269_v27 = vpop.xlane.xlu0 %4268 }
0x16c7   :  { %v4289_v57 = vmul.f32 0.03125, %v4269_v27  ;;  %v4266_v14 = vpop.xlane.xlu1 %4265 }
0x16c8   :  { %v4288_v45 = vmul.f32 0.03125, %v4266_v14 }
0x16c9   :  { %v12016_v4 = vsub.f32 %v4257_v30, %v4289_v57 }
0x16ca   :  { %v12018_v23 = vsub.f32 %v4256_v19, %v4288_v45  ;;  %v13116_v45 = vsub.s32 5, %v13129_v31 }
0x16cb   :  { %v4305_v22 = vmul.f32 %v12016_v4, %v12016_v4 }
0x16cc   :  { %v4304_v54 = vmul.f32 %v12018_v23, %v12018_v23 }
0x16cd   :  { %v4315_v35 = vsel %vm136_vm1, %v4305_v22, 0.0 }
0x16ce   :  { %v4275_v36 = vpop.xlane.xlu0 %4274  ;;  %4316 = vadd.xlane.f32.xlu0 %v4315_v35  ;;  %v4312_v33 = vsel %vm136_vm1, %v4304_v54, 0.0  ;;  %v13115_v35 = vsub.s32 6, %v13129_v31 }
0x16cf   :  { %v4291_v6 = vmul.f32 0.03125, %v4275_v36  ;;  %4313 = vadd.xlane.f32.xlu1 %v4312_v33  ;;  %v4272_v47 = vpop.xlane.xlu1 %4271  ;;  %v12061_v33 = vrot.slane %v11928_v3, %v13116_v45 }
0x16d0   :  { %v4290_v38 = vmul.f32 0.03125, %v4272_v47 }
0x16d1   :  { %v12026_v32 = vsub.f32 %v4259_v58, %v4291_v6  ;;  %v4392_v58 = vld [vmem:[#allocation2 + $0x1f0] sm:$0xff] }
0x16d2   :  { %v12028_v48 = vsub.f32 %v4258_v41, %v4290_v38  ;;  %v4393_v41 = vld [vmem:[#allocation2 + $0x1f8] sm:$0xff]  ;;  %v4412_v38 = vld [vmem:[#allocation2 + $0x290] sm:$0x7f] }
0x16d3   :  { %v4307_v1 = vmul.f32 %v12026_v32, %v12026_v32  ;;  %v9580_v56 = vpack.c.bf16 %v4393_v41, %v4392_v58 }
0x16d4   :  { %v4281_v55 = vpop.xlane.xlu0 %4280  ;;  %v4306_v16 = vmul.f32 %v12028_v48, %v12028_v48 }
0x16d5   :  { %v4293_v44 = vmul.f32 0.03125, %v4281_v55  ;;  %v4278_v24 = vpop.xlane.xlu1 %4277  ;;  %v4321_v50 = vsel %vm136_vm1, %v4307_v1, 0.0  ;;  %9581 = vmatprep.subr.bf16.mxu0 %v9580_v56 }
0x16d6   :  { %v4292_v5 = vmul.f32 0.03125, %v4278_v24  ;;  %4322 = vadd.xlane.f32.xlu0 %v4321_v50  ;;  %v4318_v11 = vsel %vm136_vm1, %v4306_v16, 0.0  ;;  %9583 = vmatpush3.bf16.msra.mxu0 %v9580_v56  ;;  %v4383_v50 = vrot.slane %v11928_v3, %v13115_v35 }
0x16d7   :  { %v12036_v53 = vsub.f32 %v4261_v61, %v4293_v44  ;;  %4319 = vadd.xlane.f32.xlu1 %v4318_v11  ;;  %v4394_v61 = vld [vmem:[#allocation2 + $0x200] sm:$0xff] }
0x16d8   :  { %v12038_v15 = vsub.f32 %v4260_v7, %v4292_v5  ;;  %v4395_v7 = vld [vmem:[#allocation2 + $0x208] sm:$0xff] }
0x16d9   :  { %v4309_v17 = vmul.f32 %v12036_v53, %v12036_v53  ;;  %v9584_v9 = vpack.c.bf16 %v4395_v7, %v4394_v61 }
0x16da   :  { %v4308_v26 = vmul.f32 %v12038_v15, %v12038_v15 }
0x16db   :  { %v4327_v40 = vsel %vm136_vm1, %v4309_v17, 0.0  ;;  %9585 = vmatprep.subr.bf16.mxu0 %v9584_v9  ;;  %v13130_v17 = vld [vmem:[#allocation6_spill] sm:$0xff] }
0x16dc   :  { %4328 = vadd.xlane.f32.xlu0 %v4327_v40  ;;  %v4324_v34 = vsel %vm136_vm1, %v4308_v26, 0.0  ;;  %9587 = vmatpush3.bf16.msra.mxu0 %v9584_v9  ;;  %v4650_v26 = vrot.slane %v4412_v38, %v13130_v17 }
0x16dd   :  { %4325 = vadd.xlane.f32.xlu1 %v4324_v34 }
0x16e4   :  { %v4287_v30 = vpop.xlane.xlu0 %4286 }
0x16e5   :  { %v4295_v19 = vmul.f32 0.03125, %v4287_v30  ;;  %v4284_v8 = vpop.xlane.xlu1 %4283 }
0x16e6   :  { %v4294_v59 = vmul.f32 0.03125, %v4284_v8 }
0x16e7   :  { %v12046_v2 = vsub.f32 %v4263_v49, %v4295_v19 }
0x16e8   :  { %v12048_v21 = vsub.f32 %v4262_v60, %v4294_v59 }
0x16e9   :  { %v4311_v63 = vmul.f32 %v12046_v2, %v12046_v2 }
0x16ea   :  { %v4310_v20 = vmul.f32 %v12048_v21, %v12048_v21 }
0x16eb   :  { %v4333_v39 = vsel %vm136_vm1, %v4311_v63, 0.0 }
0x16ec   :  { %4334 = vadd.xlane.f32.xlu0 %v4333_v39  ;;  %v4330_v51 = vsel %vm136_vm1, %v4310_v20, 0.0 }
0x16ed   :  { %4331 = vadd.xlane.f32.xlu1 %v4330_v51 }
0x175b   :  { %v4317_v62 = vpop.xlane.xlu0 %4316 }
0x175c   :  { %v4337_v28 = vmul.f32 0.03125, %v4317_v62  ;;  %v4314_v49 = vpop.xlane.xlu1 %4313 }
0x175d   :  { %v4336_v60 = vmul.f32 0.03125, %v4314_v49 }
0x175e   :  { %v4345_v43 = vadd.f32 1e-06, %v4337_v28 }
0x175f   :  { %v4344_v46 = vadd.f32 1e-06, %v4336_v60 }
0x1760   :  { %10519 = vrsqrt.f32 %v4345_v43 }
0x1761   :  { %10521 = vrsqrt.f32 %v4344_v46 }
0x1763   :  { %v4323_v27 = vpop.xlane.xlu0 %4322 }
0x1764   :  { %v4339_v57 = vmul.f32 0.03125, %v4323_v27  ;;  %v4320_v14 = vpop.xlane.xlu1 %4319 }
0x1765   :  { %v4338_v22 = vmul.f32 0.03125, %v4320_v14 }
0x1766   :  { %v4347_v54 = vadd.f32 1e-06, %v4339_v57 }
0x1767   :  { %v4346_v36 = vadd.f32 1e-06, %v4338_v22 }
0x1768   :  { %10523 = vrsqrt.f32 %v4347_v54 }
0x1769   :  { %10525 = vrsqrt.f32 %v4346_v36  ;;  %v4329_v6 = vpop.xlane.xlu0 %4328 }
0x176a   :  { %v10520_v47 = vpop.eup %10519  ;;  %v4341_v1 = vmul.f32 0.03125, %v4329_v6  ;;  %v4326_v55 = vpop.xlane.xlu1 %4325 }
0x176b   :  { %v10522_v16 = vpop.eup %10521  ;;  %v4361_v44 = vmul.f32 %v10520_v47, %v12016_v4  ;;  %v4340_v24 = vmul.f32 0.03125, %v4326_v55 }
0x176c   :  { %v4349_v5 = vadd.f32 1e-06, %v4341_v1  ;;  %v4360_v11 = vmul.f32 %v10522_v16, %v12018_v23 }
0x176d   :  { %v4373_v40 = vmul.f32 %v12061_v33, %v4361_v44  ;;  %v4348_v34 = vadd.f32 1e-06, %v4340_v24 }
0x176e   :  { %10527 = vrsqrt.f32 %v4349_v5  ;;  %v4372_v30 = vmul.f32 %v12061_v33, %v4360_v11 }
0x176f   :  { %10529 = vrsqrt.f32 %v4348_v34  ;;  %v4385_v19 = vadd.f32 %v4383_v50, %v4373_v40 }
0x1770   :  { %v4384_v8 = vadd.f32 %v4383_v50, %v4372_v30 }
0x1771   :  { %v12071_v4 = vadd.f32 %v4650_v26, %v4385_v19 }
0x1772   :  { %v10524_v59 = vpop.eup %10523  ;;  %8926 = vmatprep.mubr.msk.f32.mxu0 %vm136_vm1, %v4384_v8  ;;  %8946 = vmatprep.mubr.msk.f32.mxu1 %vm136_vm1, %v4384_v8  ;;  %v12075_v3 = vadd.f32 %v4650_v26, %v4384_v8 }
0x1773   :  { %v10526_v23 = vpop.eup %10525  ;;  %8927 = vmatmul.mubr.msk.f32.vlgmr.msra.gmra.mrb[74].mxu0 %vm136_vm1, %v4385_v19  ;;  %8947 = vmatmul.mubr.msk.f32.vlgmr.msra.gmra.mrb[46].mxu1 %vm136_vm1, %v4385_v19  ;;  %v4363_v63 = vmul.f32 %v10524_v59, %v12026_v32 }
0x1774   :  { %v4362_v20 = vmul.f32 %v10526_v23, %v12028_v48 }
0x1775   :  { %v4375_v58 = vmul.f32 %v12061_v33, %v4363_v63 }
0x1776   :  { %v4374_v41 = vmul.f32 %v12061_v33, %v4362_v20 }
0x1777   :  { %v4387_v18 = vadd.f32 %v4383_v50, %v4375_v58 }
0x1778   :  { %v10528_v39 = vpop.eup %10527  ;;  %v4386_v56 = vadd.f32 %v4383_v50, %v4374_v41 }
0x1779   :  { %v10530_v25 = vpop.eup %10529  ;;  %v4335_v51 = vpop.xlane.xlu0 %4334  ;;  %v4365_v42 = vmul.f32 %v10528_v39, %v12036_v53  ;;  %v12084_v61 = vadd.f32 %v4650_v26, %v4387_v18 }
0x177a   :  { %v4343_v7 = vmul.f32 0.03125, %v4335_v51  ;;  %8929 = vmatprep.mubr.msk.f32.mxu0 %vm136_vm1, %v4386_v56  ;;  %8949 = vmatprep.mubr.msk.f32.mxu1 %vm136_vm1, %v4386_v56  ;;  %v4332_v32 = vpop.xlane.xlu1 %4331  ;;  %v4364_v48 = vmul.f32 %v10530_v25, %v12038_v15  ;;  %v12089_v29 = vadd.f32 %v4650_v26, %v4386_v56 }
0x177b   :  { %v4342_v9 = vmul.f32 0.03125, %v4332_v32  ;;  %8930 = vmatmul.mubr.msk.f32.gmra.mrb[76].mxu0 %vm136_vm1, %v4387_v18  ;;  %8950 = vmatmul.mubr.msk.f32.gmra.mrb[48].mxu1 %vm136_vm1, %v4387_v18  ;;  %v4377_v0 = vmul.f32 %v12061_v33, %v4365_v42 }
0x177c   :  { %v4351_v53 = vadd.f32 1e-06, %v4343_v7  ;;  %v4376_v12 = vmul.f32 %v12061_v33, %v4364_v48 }
0x177d   :  { %v4350_v62 = vadd.f32 1e-06, %v4342_v9  ;;  %v4389_v28 = vadd.f32 %v4383_v50, %v4377_v0 }
0x177e   :  { %10531 = vrsqrt.f32 %v4351_v53  ;;  %v4388_v49 = vadd.f32 %v4383_v50, %v4376_v12 }
0x177f   :  { %10533 = vrsqrt.f32 %v4350_v62  ;;  %v12095_v60 = vadd.f32 %v4650_v26, %v4389_v28 }
0x1780   :  { %8932 = vmatprep.mubr.msk.f32.mxu0 %vm136_vm1, %v4388_v49  ;;  %8952 = vmatprep.mubr.msk.f32.mxu1 %vm136_vm1, %v4388_v49  ;;  %v12099_v15 = vadd.f32 %v4650_v26, %v4388_v49 }
0x1781   :  { %8933 = vmatmul.mubr.msk.f32.gmra.mrb[78].mxu0 %vm136_vm1, %v4389_v28  ;;  %8953 = vmatmul.mubr.msk.f32.gmra.mrb[50].mxu1 %vm136_vm1, %v4389_v28 }
0x1788   :  { %v10532_v43 = vpop.eup %10531 }
0x1789   :  { %v10534_v46 = vpop.eup %10533  ;;  %v4367_v27 = vmul.f32 %v10532_v43, %v12046_v2 }
0x178a   :  { %v4366_v57 = vmul.f32 %v10534_v46, %v12048_v21 }
0x178b   :  { %v4379_v14 = vmul.f32 %v12061_v33, %v4367_v27 }
0x178c   :  { %v4378_v22 = vmul.f32 %v12061_v33, %v4366_v57 }
0x178d   :  { %v4391_v54 = vadd.f32 %v4383_v50, %v4379_v14 }
0x178e   :  { %v4390_v36 = vadd.f32 %v4383_v50, %v4378_v22 }
0x178f   :  { %v12107_v6 = vadd.f32 %v4650_v26, %v4391_v54 }
0x1790   :  { %8935 = vmatprep.mubr.msk.f32.mxu0 %vm136_vm1, %v4390_v36  ;;  %8955 = vmatprep.mubr.msk.f32.mxu1 %vm136_vm1, %v4390_v36  ;;  %v12111_v47 = vadd.f32 %v4650_v26, %v4390_v36 }
0x1791   :  { %8936 = vmatmul.mubr.msk.f32.gmra.mrb[80].mxu0 %vm136_vm1, %v4391_v54  ;;  %8956 = vmatmul.mubr.msk.f32.gmra.mrb[52].mxu1 %vm136_vm1, %v4391_v54 }
0x1846   :  { %v12115_v2 = vpop.f32.mrb[74].mxu0  ;;  %v8948_v21 = vpop.f32.mrb[46].mxu1 }
0x1847   :  { %v12117_v38 = vpop.f32.mrb[75].mxu0  ;;  %v4608_v33 = vpop.f32.mrb[47].mxu1 }
0x1848   :  { %v12119_v1 = vpack.i.bf16 %v8948_v21, %v4608_v33  ;;  %8974 = vmatprep.mubr.msk.f32.mxu0 %vm34_vm0, %v12117_v38  ;;  %v9620_v55 = vpack.c.bf16 %v8948_v21, %v4608_v33  ;;  %v12125_v16 = vpack.i.bf16 %v12115_v2, %v12117_v38 }
0x184a   :  { %9621 = vmatprep.subr.bf16.mxu1 %v9620_v55  ;;  %10136 = vrot.lane.b32.xlu1 %v12125_v16, %s10764_s0 }
0x184b   :  { %9623 = vmatpush3.bf16.msra.mxu1 %v9620_v55 }
0x184e   :  { %v12129_v44 = vpop.f32.mrb[76].mxu0  ;;  %v8951_v24 = vpop.f32.mrb[48].mxu1 }
0x184f   :  { %v12131_v50 = vpop.f32.mrb[77].mxu0  ;;  %v4618_v5 = vpop.f32.mrb[49].mxu1 }
0x1850   :  { %v12133_v11 = vpack.i.bf16 %v8951_v24, %v4618_v5  ;;  %v9624_v17 = vpack.c.bf16 %v8951_v24, %v4618_v5  ;;  %v12137_v26 = vpack.i.bf16 %v12129_v44, %v12131_v50 }
0x1852   :  { %9625 = vmatprep.subr.bf16.mxu1 %v9624_v17  ;;  %10141 = vrot.lane.b32.xlu0 %v12137_v26, %s10764_s0 }
0x1853   :  { %9627 = vmatpush3.bf16.msra.mxu1 %v9624_v17 }
0x1854   :  { %v12141_v40 = vpop.f32.mrb[78].mxu0  ;;  %v8954_v34 = vpop.f32.mrb[50].mxu1 }
0x1855   :  { %v12143_v30 = vpop.f32.mrb[79].mxu0  ;;  %v4628_v19 = vpop.f32.mrb[51].mxu1 }
0x1856   :  { %v12145_v8 = vpack.i.bf16 %v8954_v34, %v4628_v19  ;;  %v9628_v59 = vpack.c.bf16 %v8954_v34, %v4628_v19  ;;  %10161 = vrot.lane.b32.xlu0 %v12125_v16, %s10770_s4  ;;  %v12151_v23 = vpack.i.bf16 %v12141_v40, %v12143_v30 }
0x1858   :  { %9629 = vmatprep.subr.bf16.mxu1 %v9628_v59  ;;  %10146 = vrot.lane.b32.xlu1 %v12151_v23, %s10764_s0 }
0x1859   :  { %9631 = vmatpush3.bf16.msra.mxu1 %v9628_v59 }
0x185a   :  { %10171 = vrot.lane.b32.xlu0 %v12137_v26, %s10770_s4 }
0x1864   :  { %v12157_v63 = vpop.f32.mrb[80].mxu0  ;;  %v8957_v20 = vpop.f32.mrb[52].mxu1 }
0x1865   :  { %v12159_v58 = vpop.f32.mrb[81].mxu0  ;;  %v4638_v41 = vpop.f32.mrb[53].mxu1 }
0x1866   :  { %v12161_v18 = vpack.i.bf16 %v8957_v20, %v4638_v41  ;;  %v9632_v39 = vpack.c.bf16 %v8957_v20, %v4638_v41  ;;  %v12165_v56 = vpack.i.bf16 %v12157_v63, %v12159_v58 }
0x1868   :  { %9633 = vmatprep.subr.bf16.mxu1 %v9632_v39  ;;  %10186 = vrot.lane.b32.xlu0 %v12165_v56, %s10772_s6 }
0x1869   :  { %10151 = vrot.lane.b32.xlu1 %v12165_v56, %s10764_s0  ;;  %9635 = vmatpush3.bf16.msra.mxu1 %v9632_v39 }
0x186d   :  { %10156 = vrot.lane.b32.xlu1 %v12125_v16, %s10772_s6 }
0x1871   :  { %10166 = vrot.lane.b32.xlu1 %v12137_v26, %s10772_s6 }
0x1875   :  { %10176 = vrot.lane.b32.xlu1 %v12151_v23, %s10772_s6 }
0x1879   :  { %10181 = vrot.lane.b32.xlu1 %v12151_v23, %s10770_s4 }
0x187d   :  { %10191 = vrot.lane.b32.xlu1 %v12165_v56, %s10770_s4 }
0x18bc   :  { %v10137_v25 = vpop.permute.xlu1 %10136 }
0x18bd   :  { %v10139_v51 = vunpack.i.h.bf16 %v10137_v25  ;;  %v10138_v42 = vunpack.i.l.bf16 %v10137_v25 }
0x18bf   :  { %v9596_v7 = vpack.c.bf16 %v10139_v51, %v10138_v42 }
0x18c1   :  { %9598 = vmatprep.subr.msk.bf16.mxu0 %vm11202_vm10, %v9596_v7 }
0x18c2   :  { %9601 = vmatpush3.bf16.xpose.msk.msra.mxu0 %vm11202_vm10, %v9596_v7 }
0x18c4   :  { %v10142_v48 = vpop.permute.xlu0 %10141 }
0x18c5   :  { %v10144_v9 = vunpack.i.h.bf16 %v10142_v48  ;;  %v10143_v0 = vunpack.i.l.bf16 %v10142_v48 }
0x18c7   :  { %v9602_v53 = vpack.c.bf16 %v10144_v9, %v10143_v0 }
0x18c8   :  { %v10162_v43 = vpop.permute.xlu0 %10161 }
0x18c9   :  { %9604 = vmatprep.subr.msk.bf16.mxu0 %vm11202_vm10, %v9602_v53  ;;  %v10164_v27 = vunpack.i.h.bf16 %v10162_v43  ;;  %v10163_v57 = vunpack.i.l.bf16 %v10162_v43 }
0x18ca   :  { %v10147_v12 = vpop.permute.xlu1 %10146  ;;  %9607 = vmatpush3.bf16.xpose.msk.msra.mxu0 %vm11202_vm10, %v9602_v53  ;;  %v12236_v53 = vld [vmem:[#allocation2 + $0x110] sm:$0xff] }
0x18cb   :  { %v10149_v62 = vunpack.i.h.bf16 %v10147_v12  ;;  %v10148_v28 = vunpack.i.l.bf16 %v10147_v12  ;;  %v9676_v21 = vpack.c.bf16 %v10164_v27, %v10163_v57  ;;  %v12244_v57 = vld [vmem:[#allocation2 + $0x120] sm:$0xff] }
0x18cc   :  { %v10172_v24 = vpop.permute.xlu0 %10171 }
0x18cd   :  { %v9608_v49 = vpack.c.bf16 %v10149_v62, %v10148_v28  ;;  %v10174_v34 = vunpack.i.h.bf16 %v10172_v24  ;;  %v10173_v19 = vunpack.i.l.bf16 %v10172_v24  ;;  %v12239_v28 = vld [vmem:[#allocation2 + $0x108] sm:$0xff] }
0x18ce   :  { %v12254_v24 = vld [vmem:[#allocation2 + $0x128] sm:$0xff] }
0x18cf   :  { %9610 = vmatprep.subr.msk.bf16.mxu0 %vm11202_vm10, %v9608_v49  ;;  %v9682_v20 = vpack.c.bf16 %v10174_v34, %v10173_v19  ;;  %v12257_v19 = vld [vmem:[#allocation2 + $0x130] sm:$0xff] }
0x18d2   :  { %9613 = vmatpush3.bf16.xpose.msk.msra.mxu0 %vm11202_vm10, %v9608_v49 }
0x18db   :  { %v10152_v46 = vpop.permute.xlu1 %10151 }
0x18dc   :  { %v10154_v14 = vunpack.i.h.bf16 %v10152_v46  ;;  %v10153_v22 = vunpack.i.l.bf16 %v10152_v46 }
0x18de   :  { %v9614_v54 = vpack.c.bf16 %v10154_v14, %v10153_v22 }
0x18df   :  { %v10157_v36 = vpop.permute.xlu1 %10156 }
0x18e0   :  { %v10159_v33 = vunpack.i.h.bf16 %v10157_v36  ;;  %v10158_v55 = vunpack.i.l.bf16 %v10157_v36  ;;  %9616 = vmatprep.subr.msk.bf16.mxu0 %vm11202_vm10, %v9614_v54  ;;  %v12251_v36 = vld [vmem:[#allocation2 + $0x118] sm:$0xff] }
0x18e1   :  { %9619 = vmatpush3.bf16.xpose.msk.msra.mxu0 %vm11202_vm10, %v9614_v54 }
0x18e2   :  { %v12197_v5 = vpack.c.bf16 %v10159_v33, %v10158_v55  ;;  %9678 = vmatprep.subr.msk.bf16.mxu0 %vm11202_vm10, %v9676_v21 }
0x18e3   :  { %v12201_v17 = vpop.permute.xlu1 %10166 }
0x18e4   :  { %9638 = vmatprep.subr.msk.bf16.mxu1 %vm11202_vm10, %v12197_v5 }
0x18e7   :  { %v12206_v59 = vpop.permute.xlu1 %10176 }
0x18e8   :  { %8975 = vmatmul.mubr.msk.f32.vlgmr.msra.gmra.mrb[82].mxu0 %vm34_vm0, %v12115_v2 }
0x18e9   :  { %8977 = vmatprep.mubr.msk.f32.mxu0 %vm34_vm0, %v12131_v50  ;;  %9681 = vmatpush3.bf16.xpose.msk.msra.mxu0 %vm11202_vm10, %v9676_v21 }
0x18ea   :  { %9684 = vmatprep.subr.msk.bf16.mxu0 %vm11202_vm10, %v9682_v20 }
0x18eb   :  { %v10182_v41 = vpop.permute.xlu1 %10181 }
0x18ec   :  { %v10184_v39 = vunpack.i.h.bf16 %v10182_v41  ;;  %v10183_v25 = vunpack.i.l.bf16 %v10182_v41  ;;  %8978 = vmatmul.mubr.msk.f32.gmra.mrb[84].mxu0 %vm34_vm0, %v12129_v44 }
0x18ed   :  { %8980 = vmatprep.mubr.msk.f32.mxu0 %vm34_vm0, %v12143_v30 }
0x18ee   :  { %v9688_v51 = vpack.c.bf16 %v10184_v39, %v10183_v25 }
0x18ef   :  { %v10192_v42 = vpop.permute.xlu1 %10191 }
0x18f0   :  { %8981 = vmatmul.mubr.msk.f32.gmra.mrb[86].mxu0 %vm34_vm0, %v12141_v40  ;;  %v10194_v7 = vunpack.i.h.bf16 %v10192_v42  ;;  %v10193_v48 = vunpack.i.l.bf16 %v10192_v42  ;;  %v12264_v42 = vld [vmem:[#allocation2 + $0x140] sm:$0xff] }
0x18f1   :  { %8983 = vmatprep.mubr.msk.f32.mxu0 %vm34_vm0, %v12159_v58  ;;  %9687 = vmatpush3.bf16.xpose.msk.msra.mxu0 %vm11202_vm10, %v9682_v20 }
0x18f2   :  { %9690 = vmatprep.subr.msk.bf16.mxu0 %vm11202_vm10, %v9688_v51  ;;  %v9694_v9 = vpack.c.bf16 %v10194_v7, %v10193_v48 }
0x18f4   :  { %8984 = vmatmul.mubr.msk.f32.gmra.mrb[88].mxu0 %vm34_vm0, %v12157_v63 }
0x18f9   :  { %9693 = vmatpush3.bf16.xpose.msk.msra.mxu0 %vm11202_vm10, %v9688_v51 }
0x18fa   :  { %9696 = vmatprep.subr.msk.bf16.mxu0 %vm11202_vm10, %v9694_v9 }
0x1901   :  { %9699 = vmatpush3.bf16.xpose.msk.msra.mxu0 %vm11202_vm10, %v9694_v9 }
0x19bb   :  { %v8976_v0 = vpop.f32.mrb[82].mxu0 }
0x19bc   :  { %v4787_v12 = vadd.f32 %v12236_v53, %v8976_v0  ;;  %v4781_v62 = vpop.f32.mrb[83].mxu0  ;;  %v12274_v0 = vld [vmem:[#allocation2 + $0x138] sm:$0xff] }
0x19bd   :  { %v4782_v49 = vadd.f32 %v12239_v28, %v4781_v62 }
0x19be   :  { %v4823_v43 = vsel %vm2302_vm11, %v4787_v12, -inf }
0x19bf   :  { %4824 = vmax.xlane.f32.xlu1 %v4823_v43  ;;  %v8979_v46 = vpop.f32.mrb[84].mxu0  ;;  %v4820_v27 = vsel %vm2302_vm11, %v4782_v49, -inf }
0x19c0   :  { %v12247_v14 = vadd.f32 %v12244_v57, %v8979_v46  ;;  %v4791_v22 = vpop.f32.mrb[85].mxu0  ;;  %4821 = vmax.xlane.f32.xlu0 %v4820_v27  ;;  %v12280_v46 = vpop.permute.xlu0 %10186 }
0x19c1   :  { %v4792_v21 = vadd.f32 %v12251_v36, %v4791_v22 }
0x19c2   :  { %v4829_v54 = vsel %vm2302_vm11, %v12247_v14, -inf }
0x19c3   :  { %v8982_v33 = vpop.f32.mrb[86].mxu0  ;;  %v4826_v25 = vsel %vm2302_vm11, %v4792_v21, -inf }
0x19c4   :  { %v4801_v55 = vpop.f32.mrb[87].mxu0  ;;  %4830 = vmax.xlane.f32.xlu0 %v4829_v54  ;;  %v12260_v20 = vadd.f32 %v12257_v19, %v8982_v33 }
0x19c5   :  { %v4802_v34 = vadd.f32 %v12254_v24, %v4801_v55 }
0x19c6   :  { %v4835_v48 = vsel %vm2302_vm11, %v12260_v20, -inf }
0x19c7   :  { %v8985_v41 = vpop.f32.mrb[88].mxu0  ;;  %v4832_v39 = vsel %vm2302_vm11, %v4802_v34, -inf }
0x19c8   :  { %v4811_v51 = vpop.f32.mrb[89].mxu0  ;;  %4833 = vmax.xlane.f32.xlu1 %v4832_v39  ;;  %4827 = vmax.xlane.f32.xlu0 %v4826_v25  ;;  %v4817_v7 = vadd.f32 %v12264_v42, %v8985_v41 }
0x19c9   :  { %v4812_v62 = vadd.f32 %v12274_v0, %v4811_v51 }
0x19ca   :  { %v4841_v9 = vsel %vm2302_vm11, %v4817_v7, -inf }
0x19cb   :  { %v4838_v43 = vsel %vm2302_vm11, %v4812_v62, -inf }
0x19cc   :  { %4836 = vmax.xlane.f32.xlu0 %v4835_v48 }
0x19d0   :  { %4842 = vmax.xlane.f32.xlu0 %v4841_v9 }
0x19d9   :  { %5045 = vrot.lane.b32.xlu1 %v12117_v38, %s10765_s30 }
0x19e6   :  { %10196 = vrot.lane.b32.xlu0 %v12125_v16, %s10771_s5 }
0x19fd   :  { %4839 = vmax.xlane.f32.xlu1 %v4838_v43 }
0x1a0e   :  { %5471 = vrot.lane.b32.xlu1 %v12117_v38, %s10766_s3 }
0x1a4c   :  { %v4825_v27 = vpop.xlane.xlu1 %4824 }
0x1a4d   :  { %v4845_v22 = vsub.f32 %v4787_v12, %v4825_v27  ;;  %v4822_v54 = vpop.xlane.xlu0 %4821 }
0x1a4e   :  { %v4844_v33 = vsub.f32 %v4782_v49, %v4822_v54 }
0x1a4f   :  { %v4854_v55 = vmul.f32 1.442695, %v4845_v22 }
0x1a50   :  { %v4852_v41 = vmul.f32 1.442695, %v4844_v33 }
0x1a51   :  { %10535 = vpow2.f32 %v4854_v55  ;;  %v4831_v16 = vpop.xlane.xlu0 %4830 }
0x1a52   :  { %10537 = vpow2.f32 %v4852_v41 }
0x1a55   :  { %v4834_v39 = vpop.xlane.xlu1 %4833  ;;  %v4828_v25 = vpop.xlane.xlu0 %4827 }
0x1a56   :  { %v4848_v51 = vsub.f32 %v4802_v34, %v4834_v39  ;;  %v4846_v48 = vsub.f32 %v4792_v21, %v4828_v25  ;;  %v4847_v25 = vsub.f32 %v12247_v14, %v4831_v16 }
0x1a58   :  { %v4856_v9 = vmul.f32 1.442695, %v4846_v48  ;;  %v4860_v43 = vmul.f32 1.442695, %v4848_v51  ;;  %v4858_v51 = vmul.f32 1.442695, %v4847_v25 }
0x1a59   :  { %v4837_v35 = vpop.xlane.xlu0 %4836 }
0x1a5a   :  { %10539 = vpow2.f32 %v4856_v9  ;;  %v4849_v48 = vsub.f32 %v12260_v20, %v4837_v35 }
0x1a5b   :  { %v12282_v45 = vpop.eup %10535  ;;  %10541 = vpow2.f32 %v4860_v43 }
0x1a5c   :  { %v12284_v52 = vpop.eup %10537  ;;  %v4871_v12 = vsel %vm2302_vm11, %v12282_v45, 0.0  ;;  %10543 = vpow2.f32 %v4858_v51  ;;  %v4862_v9 = vmul.f32 1.442695, %v4849_v48  ;;  %v10188_v51 = vunpack.i.l.bf16 %v12280_v46 }
0x1a5d   :  { %4872 = vadd.xlane.f32.xlu0 %v4871_v12  ;;  %v4843_v49 = vpop.xlane.xlu0 %4842  ;;  %v4868_v27 = vsel %vm2302_vm11, %v12284_v52, 0.0  ;;  %v12309_v12 = vpop.permute.xlu1 %5045 }
0x1a5e   :  { %4869 = vadd.xlane.f32.xlu1 %v4868_v27  ;;  %v4851_v43 = vsub.f32 %v4817_v7, %v4843_v49  ;;  %10545 = vpow2.f32 %v4862_v9 }
0x1a60   :  { %v4866_v27 = vmul.f32 1.442695, %v4851_v43 }
0x1a61   :  { %v10197_v34 = vpop.permute.xlu0 %10196 }
0x1a62   :  { %v10199_v21 = vunpack.i.h.bf16 %v10197_v34  ;;  %v10198_v22 = vunpack.i.l.bf16 %v10197_v34  ;;  %10547 = vpow2.f32 %v4866_v27 }
0x1a64   :  { %v12290_v54 = vpack.c.bf16 %v10199_v21, %v10198_v22  ;;  %v12292_v33 = vpop.eup %10539 }
0x1a65   :  { %v4874_v55 = vsel %vm2302_vm11, %v12292_v33, 0.0  ;;  %v12299_v41 = vpop.eup %10541 }
0x1a66   :  { %9718 = vmatprep.subr.msk.bf16.mxu0 %vm11202_vm10, %v12290_v54  ;;  %4875 = vadd.xlane.f32.xlu1 %v4874_v55  ;;  %v4880_v39 = vsel %vm2302_vm11, %v12299_v41, 0.0  ;;  %v12311_v22 = vpop.eup %10543 }
0x1a67   :  { %v4877_v16 = vsel %vm2302_vm11, %v12311_v22, 0.0 }
0x1a68   :  { %v12316_v35 = vpop.eup %10545 }
0x1a69   :  { %v4883_v20 = vsel %vm2302_vm11, %v12316_v35, 0.0 }
0x1a6a   :  { %4881 = vadd.xlane.f32.xlu1 %v4880_v39 }
0x1a6c   :  { %v12320_v7 = vpop.eup %10547 }
0x1a73   :  { %5047 = vrot.lane.b32.xlu0 %v12115_v2, %s10765_s30 }
0x1a7b   :  { %5049 = vrot.lane.b32.xlu1 %v12131_v50, %s10765_s30 }
0x1a8a   :  { %v4840_v34 = vpop.xlane.xlu1 %4839 }
0x1a8b   :  { %v4850_v21 = vsub.f32 %v4812_v62, %v4840_v34  ;;  %v4889_v62 = vsel %vm2302_vm11, %v12320_v7, 0.0 }
0x1a8d   :  { %v4864_v55 = vmul.f32 1.442695, %v4850_v21 }
0x1a8e   :  { %v5472_v14 = vpop.permute.xlu1 %5471 }
0x1a8f   :  { %9086 = vmatprep.mubr.msk.f32.mxu0 %vm34_vm0, %v5472_v14  ;;  %10549 = vpow2.f32 %v4864_v55 }
0x1a92   :  { %4878 = vadd.xlane.f32.xlu0 %v4877_v16 }
0x1a96   :  { %4884 = vadd.xlane.f32.xlu0 %v4883_v20 }
0x1a99   :  { %v12324_v49 = vpop.eup %10549 }
0x1a9a   :  { %4890 = vadd.xlane.f32.xlu0 %v4889_v62  ;;  %v4886_v39 = vsel %vm2302_vm11, %v12324_v49, 0.0 }
0x1a9f   :  { %4887 = vadd.xlane.f32.xlu1 %v4886_v39 }
0x1ab0   :  { %5473 = vrot.lane.b32.xlu0 %v12115_v2, %s10766_s3  ;;  %10201 = vrot.lane.b32.xlu1 %v12137_v26, %s10771_s5 }
0x1ab4   :  { %5051 = vrot.lane.b32.xlu0 %v12129_v44, %s10765_s30  ;;  %5055 = vrot.lane.b32.xlu1 %v12141_v40, %s10765_s30 }
0x1ab8   :  { %5053 = vrot.lane.b32.xlu0 %v12143_v30, %s10765_s30  ;;  %5059 = vrot.lane.b32.xlu1 %v12157_v63, %s10765_s30 }
0x1abc   :  { %5057 = vrot.lane.b32.xlu0 %v12159_v58, %s10765_s30  ;;  %5475 = vrot.lane.b32.xlu1 %v12131_v50, %s10766_s3 }
0x1ac0   :  { %10206 = vrot.lane.b32.xlu0 %v12151_v23, %s10771_s5  ;;  %10211 = vrot.lane.b32.xlu1 %v12165_v56, %s10771_s5  ;;  %v10169_v23 = vunpack.i.h.bf16 %v12201_v17 }
0x1ac4   :  { %5477 = vrot.lane.b32.xlu0 %v12129_v44, %s10766_s3  ;;  %5481 = vrot.lane.b32.xlu1 %v12141_v40, %s10766_s3 }
0x1ac8   :  { %5479 = vrot.lane.b32.xlu0 %v12143_v30, %s10766_s3  ;;  %5485 = vrot.lane.b32.xlu1 %v12157_v63, %s10766_s3 }
0x1acc   :  { %5483 = vrot.lane.b32.xlu0 %v12159_v58, %s10766_s3  ;;  %5891 = vrot.lane.b32.xlu1 %v12115_v2, %s10773_s7 }
0x1ad0   :  { %5889 = vrot.lane.b32.xlu0 %v12117_v38, %s10773_s7  ;;  %5895 = vrot.lane.b32.xlu1 %v12129_v44, %s10773_s7 }
0x1ad4   :  { %5893 = vrot.lane.b32.xlu0 %v12131_v50, %s10773_s7  ;;  %5899 = vrot.lane.b32.xlu1 %v12141_v40, %s10773_s7  ;;  %v10168_v40 = vunpack.i.l.bf16 %v12201_v17  ;;  %v10178_v17 = vunpack.i.l.bf16 %v12206_v59 }
0x1ad8   :  { %5897 = vrot.lane.b32.xlu0 %v12143_v30, %s10773_s7  ;;  %5903 = vrot.lane.b32.xlu1 %v12157_v63, %s10773_s7  ;;  %v9642_v63 = vpack.c.bf16 %v10169_v23, %v10168_v40 }
0x1adc   :  { %5901 = vrot.lane.b32.xlu0 %v12159_v58, %s10773_s7  ;;  %v10179_v58 = vunpack.i.h.bf16 %v12206_v59 }
0x1aea   :  { %v4873_v2 = vpop.xlane.xlu0 %4872 }
0x1aeb   :  { %10551 = vrcp.f32 %v4873_v2  ;;  %v4870_v38 = vpop.xlane.xlu1 %4869 }
0x1aec   :  { %10553 = vrcp.f32 %v4870_v38 }
0x1aee   :  { %v5048_v59 = vpop.permute.xlu0 %5047 }
0x1af3   :  { %v4876_v44 = vpop.xlane.xlu1 %4875 }
0x1af4   :  { %10555 = vrcp.f32 %v4876_v44 }
0x1af5   :  { %v10552_v26 = vpop.eup %10551 }
0x1af6   :  { %v10554_v50 = vpop.eup %10553  ;;  %v4901_v56 = vmul.f32 %v10552_v26, %v12282_v45  ;;  %v9648_v45 = vpack.c.bf16 %v10179_v58, %v10178_v17 }
0x1af7   :  { %v4900_v30 = vmul.f32 %v10554_v50, %v12284_v52 }
0x1af9   :  { %9002 = vmatprep.mubr.msk.f32.mxu1 %vm2302_vm11, %v4900_v30 }
0x1afa   :  { %9003 = vmatmul.mubr.msk.f32.vlgmr.msra.gmra.mrb[54].mxu1 %vm2302_vm11, %v4901_v56 }
0x1afb   :  { %9641 = vmatpush3.bf16.xpose.msk.msra.mxu1 %vm11202_vm10, %v12197_v5  ;;  %v10189_v5 = vunpack.i.h.bf16 %v12280_v46 }
0x1afc   :  { %9644 = vmatprep.subr.msk.bf16.mxu1 %vm11202_vm10, %v9642_v63 }
0x1afd   :  { %v9654_v48 = vpack.c.bf16 %v10189_v5, %v10188_v51 }
0x1afe   :  { %v10556_v25 = vpop.eup %10555 }
0x1aff   :  { %v4902_v52 = vmul.f32 %v10556_v25, %v12292_v33  ;;  %v4882_v33 = vpop.xlane.xlu1 %4881 }
0x1b00   :  { %10557 = vrcp.f32 %v4882_v33 }
0x1b01   :  { %9005 = vmatprep.mubr.msk.f32.mxu1 %vm2302_vm11, %v4902_v52 }
0x1b03   :  { %9647 = vmatpush3.bf16.xpose.msk.msra.mxu1 %vm11202_vm10, %v9642_v63  ;;  %v5050_v46 = vpop.permute.xlu1 %5049 }
0x1b04   :  { %9650 = vmatprep.subr.msk.bf16.mxu1 %vm11202_vm10, %v9648_v45 }
0x1b0a   :  { %v10558_v34 = vpop.eup %10557 }
0x1b0b   :  { %9653 = vmatpush3.bf16.xpose.msk.msra.mxu1 %vm11202_vm10, %v9648_v45  ;;  %v4904_v16 = vmul.f32 %v10558_v34, %v12299_v41 }
0x1b0c   :  { %9656 = vmatprep.subr.msk.bf16.mxu1 %vm11202_vm10, %v9654_v48 }
0x1b13   :  { %9659 = vmatpush3.bf16.xpose.msk.msra.mxu1 %vm11202_vm10, %v9654_v48 }
0x1b1f   :  { %v4879_v9 = vpop.xlane.xlu0 %4878 }
0x1b20   :  { %10559 = vrcp.f32 %v4879_v9 }
0x1b23   :  { %v4885_v43 = vpop.xlane.xlu0 %4884 }
0x1b24   :  { %10561 = vrcp.f32 %v4885_v43 }
0x1b27   :  { %v4891_v27 = vpop.xlane.xlu0 %4890 }
0x1b28   :  { %10563 = vrcp.f32 %v4891_v27 }
0x1b2a   :  { %v10560_v21 = vpop.eup %10559 }
0x1b2b   :  { %v5474_v55 = vpop.permute.xlu0 %5473  ;;  %v4903_v14 = vmul.f32 %v10560_v21, %v12311_v22 }
0x1b2c   :  { %9087 = vmatmul.mubr.msk.f32.vlgmr.msra.gmra.mrb[90].mxu0 %vm34_vm0, %v5474_v55  ;;  %v4888_v20 = vpop.xlane.xlu1 %4887 }
0x1b2d   :  { %9721 = vmatpush3.bf16.xpose.msk.msra.mxu0 %vm11202_vm10, %v12290_v54  ;;  %9006 = vmatmul.mubr.msk.f32.gmra.mrb[56].mxu1 %vm2302_vm11, %v4903_v14  ;;  %10565 = vrcp.f32 %v4888_v20 }
0x1b2e   :  { %v10562_v62 = vpop.eup %10561  ;;  %9008 = vmatprep.mubr.msk.f32.mxu1 %vm2302_vm11, %v4904_v16 }
0x1b2f   :  { %v5052_v39 = vpop.permute.xlu0 %5051  ;;  %v4905_v2 = vmul.f32 %v10562_v62, %v12316_v35 }
0x1b30   :  { %v10202_v22 = vpop.permute.xlu1 %10201 }
0x1b31   :  { %9009 = vmatmul.mubr.msk.f32.gmra.mrb[58].mxu1 %vm2302_vm11, %v4905_v2  ;;  %v10204_v38 = vunpack.i.h.bf16 %v10202_v22  ;;  %v10203_v41 = vunpack.i.l.bf16 %v10202_v22 }
0x1b32   :  { %v10564_v54 = vpop.eup %10563 }
0x1b33   :  { %v5054_v44 = vpop.permute.xlu0 %5053  ;;  %v9722_v26 = vpack.c.bf16 %v10204_v38, %v10203_v41  ;;  %v4907_v56 = vmul.f32 %v10564_v54, %v12320_v7 }
0x1b34   :  { %v5056_v50 = vpop.permute.xlu1 %5055 }
0x1b35   :  { %9724 = vmatprep.subr.msk.bf16.mxu0 %vm11202_vm10, %v9722_v26 }
0x1b36   :  { %9727 = vmatpush3.bf16.xpose.msk.msra.mxu0 %vm11202_vm10, %v9722_v26 }
0x1b37   :  { %v5058_v23 = vpop.permute.xlu0 %5057  ;;  %v10566_v40 = vpop.eup %10565 }
0x1b38   :  { %v5060_v30 = vpop.permute.xlu1 %5059  ;;  %v4906_v35 = vmul.f32 %v10566_v40, %v12324_v49 }
0x1b3a   :  { %9011 = vmatprep.mubr.msk.f32.mxu1 %vm2302_vm11, %v4906_v35 }
0x1b3b   :  { %v10207_v63 = vpop.permute.xlu0 %10206  ;;  %9012 = vmatmul.mubr.msk.f32.gmra.mrb[60].mxu1 %vm2302_vm11, %v4907_v56 }
0x1b3c   :  { %v10209_v58 = vunpack.i.h.bf16 %v10207_v63  ;;  %v10208_v17 = vunpack.i.l.bf16 %v10207_v63  ;;  %v5476_v25 = vpop.permute.xlu1 %5475  ;;  %9030 = vmatprep.mubr.msk.f32.mxu1 %vm34_vm0, %v12309_v12 }
0x1b3d   :  { %9089 = vmatprep.mubr.msk.f32.mxu0 %vm34_vm0, %v5476_v25 }
0x1b3e   :  { %v9728_v52 = vpack.c.bf16 %v10209_v58, %v10208_v17 }
0x1b3f   :  { %v5478_v45 = vpop.permute.xlu0 %5477  ;;  %9031 = vmatmul.mubr.msk.f32.vlgmr.msra.gmra.mrb[62].mxu1 %vm34_vm0, %v5048_v59 }
0x1b40   :  { %9090 = vmatmul.mubr.msk.f32.gmra.mrb[92].mxu0 %vm34_vm0, %v5478_v45  ;;  %v10212_v7 = vpop.permute.xlu1 %10211  ;;  %9033 = vmatprep.mubr.msk.f32.mxu1 %vm34_vm0, %v5050_v46 }
0x1b41   :  { %9730 = vmatprep.subr.msk.bf16.mxu0 %vm11202_vm10, %v9728_v52  ;;  %v10214_v49 = vunpack.i.h.bf16 %v10212_v7  ;;  %v10213_v5 = vunpack.i.l.bf16 %v10212_v7 }
0x1b42   :  { %9733 = vmatpush3.bf16.xpose.msk.msra.mxu0 %vm11202_vm10, %v9728_v52 }
0x1b43   :  { %v5480_v12 = vpop.permute.xlu0 %5479  ;;  %v9734_v51 = vpack.c.bf16 %v10214_v49, %v10213_v5  ;;  %9034 = vmatmul.mubr.msk.f32.gmra.mrb[64].mxu1 %vm34_vm0, %v5052_v39 }
0x1b44   :  { %9092 = vmatprep.mubr.msk.f32.mxu0 %vm34_vm0, %v5480_v12  ;;  %v5482_v48 = vpop.permute.xlu1 %5481  ;;  %9036 = vmatprep.mubr.msk.f32.mxu1 %vm34_vm0, %v5054_v44 }
0x1b45   :  { %9093 = vmatmul.mubr.msk.f32.gmra.mrb[94].mxu0 %vm34_vm0, %v5482_v48  ;;  %9736 = vmatprep.subr.msk.bf16.mxu0 %vm11202_vm10, %v9734_v51 }
0x1b47   :  { %v5484_v59 = vpop.permute.xlu0 %5483  ;;  %9037 = vmatmul.mubr.msk.f32.gmra.mrb[66].mxu1 %vm34_vm0, %v5056_v50 }
0x1b48   :  { %9095 = vmatprep.mubr.msk.f32.mxu0 %vm34_vm0, %v5484_v59  ;;  %v5486_v33 = vpop.permute.xlu1 %5485  ;;  %9039 = vmatprep.mubr.msk.f32.mxu1 %vm34_vm0, %v5058_v23 }
0x1b49   :  { %9096 = vmatmul.mubr.msk.f32.gmra.mrb[96].mxu0 %vm34_vm0, %v5486_v33 }
0x1b4a   :  { %9739 = vmatpush3.bf16.xpose.msk.msra.mxu0 %vm11202_vm10, %v9734_v51 }
0x1b4b   :  { %v5890_v9 = vpop.permute.xlu0 %5889  ;;  %9040 = vmatmul.mubr.msk.f32.gmra.mrb[68].mxu1 %vm34_vm0, %v5060_v30 }
0x1b4c   :  { %9142 = vmatprep.mubr.msk.f32.mxu0 %vm34_vm0, %v5890_v9  ;;  %v5892_v43 = vpop.permute.xlu1 %5891 }
0x1b4f   :  { %v5894_v27 = vpop.permute.xlu0 %5893 }
0x1b50   :  { %v5896_v34 = vpop.permute.xlu1 %5895 }
0x1b51   :  { %9143 = vmatmul.mubr.msk.f32.vlgmr.msra.gmra.mrb[98].mxu0 %vm34_vm0, %v5892_v43 }
0x1b52   :  { %9145 = vmatprep.mubr.msk.f32.mxu0 %vm34_vm0, %v5894_v27 }
0x1b53   :  { %v5898_v46 = vpop.permute.xlu0 %5897 }
0x1b54   :  { %v5900_v21 = vpop.permute.xlu1 %5899 }
0x1b55   :  { %9146 = vmatmul.mubr.msk.f32.gmra.mrb[100].mxu0 %vm34_vm0, %v5896_v34 }
0x1b56   :  { %9148 = vmatprep.mubr.msk.f32.mxu0 %vm34_vm0, %v5898_v46 }
0x1b57   :  { %v5902_v32 = vpop.permute.xlu0 %5901 }
0x1b58   :  { %v5904_v55 = vpop.permute.xlu1 %5903 }
0x1b59   :  { %9149 = vmatmul.mubr.msk.f32.gmra.mrb[102].mxu0 %vm34_vm0, %v5900_v21 }
0x1b5a   :  { %9151 = vmatprep.mubr.msk.f32.mxu0 %vm34_vm0, %v5902_v32 }
0x1b5d   :  { %9152 = vmatmul.mubr.msk.f32.gmra.mrb[104].mxu0 %vm34_vm0, %v5904_v55 }
0x1bff   :  { %v9088_v14 = vpop.f32.mrb[90].mxu0 }
0x1c00   :  { %v12451_v16 = vadd.f32 %v12236_v53, %v9088_v14  ;;  %v5601_v20 = vpop.f32.mrb[91].mxu0 }
0x1c01   :  { %v12454_v62 = vadd.f32 %v12239_v28, %v5601_v20 }
0x1c02   :  { %v5643_v39 = vsel %vm2302_vm11, %v12451_v16, -inf }
0x1c03   :  { %5644 = vmax.xlane.f32.xlu0 %v5643_v39  ;;  %v5640_v2 = vsel %vm2302_vm11, %v12454_v62, -inf }
0x1c04   :  { %5641 = vmax.xlane.f32.xlu1 %v5640_v2 }
0x1c12   :  { %v12460_v22 = vpop.f32.mrb[62].mxu1 }
0x1c13   :  { %v9091_v38 = vpop.f32.mrb[92].mxu0  ;;  %v12462_v41 = vpop.f32.mrb[63].mxu1 }
0x1c14   :  { %v12465_v44 = vadd.f32 %v12244_v57, %v9091_v38  ;;  %v5611_v26 = vpop.f32.mrb[93].mxu0 }
0x1c15   :  { %v12468_v50 = vadd.f32 %v12251_v36, %v5611_v26 }
0x1c16   :  { %v5649_v54 = vsel %vm2302_vm11, %v12465_v44, -inf  ;;  %v12472_v23 = vpop.f32.mrb[64].mxu1 }
0x1c17   :  { %5650 = vmax.xlane.f32.xlu0 %v5649_v54  ;;  %v5646_v40 = vsel %vm2302_vm11, %v12468_v50, -inf  ;;  %v12476_v30 = vpop.f32.mrb[65].mxu1 }
0x1c18   :  { %5647 = vmax.xlane.f32.xlu1 %v5646_v40  ;;  %v9094_v35 = vpop.f32.mrb[94].mxu0 }
0x1c19   :  { %v12479_v56 = vadd.f32 %v12257_v19, %v9094_v35  ;;  %v5621_v63 = vpop.f32.mrb[95].mxu0 }
0x1c1a   :  { %v12482_v58 = vadd.f32 %v12254_v24, %v5621_v63  ;;  %v12484_v17 = vpop.f32.mrb[66].mxu1 }
0x1c1b   :  { %v12486_v25 = vpop.f32.mrb[67].mxu1  ;;  %v5655_v52 = vsel %vm2302_vm11, %v12479_v56, -inf }
0x1c1c   :  { %5656 = vmax.xlane.f32.xlu0 %v5655_v52  ;;  %v9097_v45 = vpop.f32.mrb[96].mxu0  ;;  %v5652_v7 = vsel %vm2302_vm11, %v12482_v58, -inf }
0x1c1d   :  { %v12493_v49 = vadd.f32 %v12264_v42, %v9097_v45  ;;  %5653 = vmax.xlane.f32.xlu1 %v5652_v7  ;;  %v5631_v5 = vpop.f32.mrb[97].mxu0 }
0x1c1e   :  { %v12496_v12 = vadd.f32 %v12274_v0, %v5631_v5  ;;  %v12498_v51 = vpop.f32.mrb[68].mxu1 }
0x1c1f   :  { %v12500_v48 = vpop.f32.mrb[69].mxu1  ;;  %v5661_v59 = vsel %vm2302_vm11, %v12493_v49, -inf }
0x1c20   :  { %5662 = vmax.xlane.f32.xlu0 %v5661_v59  ;;  %v5658_v33 = vsel %vm2302_vm11, %v12496_v12, -inf }
0x1c21   :  { %5659 = vmax.xlane.f32.xlu1 %v5658_v33 }
0x1c24   :  { %v9144_v9 = vpop.f32.mrb[98].mxu0 }
0x1c25   :  { %v12507_v43 = vadd.f32 %v12236_v53, %v9144_v9  ;;  %v6019_v27 = vpop.f32.mrb[99].mxu0 }
0x1c26   :  { %v12510_v34 = vadd.f32 %v12239_v28, %v6019_v27 }
0x1c27   :  { %v6061_v46 = vsel %vm2302_vm11, %v12507_v43, -inf }
0x1c28   :  { %6062 = vmax.xlane.f32.xlu0 %v6061_v46  ;;  %v9147_v21 = vpop.f32.mrb[100].mxu0  ;;  %v6058_v32 = vsel %vm2302_vm11, %v12510_v34, -inf }
0x1c29   :  { %v12517_v55 = vadd.f32 %v12244_v57, %v9147_v21  ;;  %v6029_v14 = vpop.f32.mrb[101].mxu0  ;;  %6059 = vmax.xlane.f32.xlu1 %v6058_v32 }
0x1c2a   :  { %v12520_v20 = vadd.f32 %v12251_v36, %v6029_v14 }
0x1c2b   :  { %v6067_v39 = vsel %vm2302_vm11, %v12517_v55, -inf }
0x1c2c   :  { %6068 = vmax.xlane.f32.xlu0 %v6067_v39  ;;  %v9150_v2 = vpop.f32.mrb[102].mxu0  ;;  %v6064_v38 = vsel %vm2302_vm11, %v12520_v20, -inf }
0x1c2d   :  { %v12527_v26 = vadd.f32 %v12257_v19, %v9150_v2  ;;  %v6039_v54 = vpop.f32.mrb[103].mxu0  ;;  %6065 = vmax.xlane.f32.xlu1 %v6064_v38 }
0x1c2e   :  { %v12530_v40 = vadd.f32 %v12254_v24, %v6039_v54 }
0x1c2f   :  { %v6073_v35 = vsel %vm2302_vm11, %v12527_v26, -inf }
0x1c30   :  { %6074 = vmax.xlane.f32.xlu0 %v6073_v35  ;;  %v9153_v63 = vpop.f32.mrb[104].mxu0  ;;  %v6070_v52 = vsel %vm2302_vm11, %v12530_v40, -inf }
0x1c31   :  { %v12537_v45 = vadd.f32 %v12264_v42, %v9153_v63  ;;  %v6049_v7 = vpop.f32.mrb[105].mxu0  ;;  %6071 = vmax.xlane.f32.xlu1 %v6070_v52 }
0x1c32   :  { %v12540_v5 = vadd.f32 %v12274_v0, %v6049_v7 }
0x1c33   :  { %v6079_v59 = vsel %vm2302_vm11, %v12537_v45, -inf }
0x1c34   :  { %6080 = vmax.xlane.f32.xlu0 %v6079_v59  ;;  %v6076_v33 = vsel %vm2302_vm11, %v12540_v5, -inf }
0x1c35   :  { %6077 = vmax.xlane.f32.xlu1 %v6076_v33 }
0x1c46   :  { %10216 = vrot.lane.b32.xlu1 %v12119_v1, %s10764_s0 }
0x1c4a   :  { %10221 = vrot.lane.b32.xlu0 %v12133_v11, %s10764_s0  ;;  %10226 = vrot.lane.b32.xlu1 %v12145_v8, %s10764_s0 }
0x1c4e   :  { %10236 = vrot.lane.b32.xlu0 %v12119_v1, %s10774_s8  ;;  %10231 = vrot.lane.b32.xlu1 %v12161_v18, %s10764_s0 }
0x1c90   :  { %v5645_v9 = vpop.xlane.xlu0 %5644 }
0x1c91   :  { %v5665_v27 = vsub.f32 %v12451_v16, %v5645_v9  ;;  %v5642_v46 = vpop.xlane.xlu1 %5641 }
0x1c92   :  { %v5664_v21 = vsub.f32 %v12454_v62, %v5642_v46 }
0x1c93   :  { %v5674_v32 = vmul.f32 1.442695, %v5665_v27 }
0x1c94   :  { %v5672_v14 = vmul.f32 1.442695, %v5664_v21 }
0x1c95   :  { %10567 = vpow2.f32 %v5674_v32 }
0x1c96   :  { %10569 = vpow2.f32 %v5672_v14 }
0x1c9f   :  { %v12558_v39 = vpop.eup %10567 }
0x1ca0   :  { %v12560_v2 = vpop.eup %10569  ;;  %v5691_v38 = vsel %vm2302_vm11, %v12558_v39, 0.0 }
0x1ca1   :  { %5692 = vadd.xlane.f32.xlu0 %v5691_v38  ;;  %v5688_v54 = vsel %vm2302_vm11, %v12560_v2, 0.0 }
0x1ca2   :  { %5689 = vadd.xlane.f32.xlu1 %v5688_v54 }
0x1ca4   :  { %v5651_v16 = vpop.xlane.xlu0 %5650 }
0x1ca5   :  { %v5667_v35 = vsub.f32 %v12465_v44, %v5651_v16  ;;  %v5648_v62 = vpop.xlane.xlu1 %5647 }
0x1ca6   :  { %v5666_v63 = vsub.f32 %v12468_v50, %v5648_v62 }
0x1ca7   :  { %v5678_v52 = vmul.f32 1.442695, %v5667_v35 }
0x1ca8   :  { %v5676_v7 = vmul.f32 1.442695, %v5666_v63 }
0x1ca9   :  { %10571 = vpow2.f32 %v5678_v52  ;;  %v5657_v59 = vpop.xlane.xlu0 %5656 }
0x1caa   :  { %10573 = vpow2.f32 %v5676_v7  ;;  %v5669_v33 = vsub.f32 %v12479_v56, %v5657_v59  ;;  %v5654_v9 = vpop.xlane.xlu1 %5653 }
0x1cab   :  { %v5668_v27 = vsub.f32 %v12482_v58, %v5654_v9 }
0x1cac   :  { %v5682_v46 = vmul.f32 1.442695, %v5669_v33 }
0x1cad   :  { %v5680_v21 = vmul.f32 1.442695, %v5668_v27  ;;  %v5663_v32 = vpop.xlane.xlu0 %5662 }
0x1cae   :  { %10575 = vpow2.f32 %v5682_v46  ;;  %v5671_v14 = vsub.f32 %v12493_v49, %v5663_v32  ;;  %v5660_v44 = vpop.xlane.xlu1 %5659  ;;  %v12600_v46 = vadd.f32 %v12236_v53, %v12460_v22  ;;  %v12616_v53 = vadd.f32 %v12254_v24, %v12486_v25 }
0x1caf   :  { %10577 = vpow2.f32 %v5680_v21  ;;  %v5670_v50 = vsub.f32 %v12496_v12, %v5660_v44  ;;  %v12610_v44 = vadd.f32 %v12239_v28, %v12462_v41  ;;  %v12633_v24 = vadd.f32 %v12274_v0, %v12500_v48 }
0x1cb0   :  { %v5686_v38 = vmul.f32 1.442695, %v5671_v14 }
0x1cb1   :  { %v5684_v54 = vmul.f32 1.442695, %v5670_v50  ;;  %v5232_v48 = vsel %vm2302_vm11, %v12633_v24, -inf }
0x1cb2   :  { %10579 = vpow2.f32 %v5686_v38  ;;  %v5217_v38 = vsel %vm2302_vm11, %v12600_v46, -inf }
0x1cb3   :  { %v12572_v16 = vpop.eup %10571  ;;  %10581 = vpow2.f32 %v5684_v54  ;;  %v12624_v54 = vadd.f32 %v12244_v57, %v12472_v23  ;;  %v12639_v57 = vadd.f32 %v12251_v36, %v12476_v30 }
0x1cb4   :  { %v5697_v56 = vsel %vm2302_vm11, %v12572_v16, 0.0  ;;  %v12576_v58 = vpop.eup %10573 }
0x1cb5   :  { %5698 = vadd.xlane.f32.xlu0 %v5697_v56  ;;  %v12578_v35 = vpop.xlane.xlu0 %6062  ;;  %v5694_v49 = vsel %vm2302_vm11, %v12576_v58, 0.0  ;;  %v5214_v56 = vsel %vm2302_vm11, %v12610_v44, -inf }
0x1cb6   :  { %v6060_v62 = vpop.xlane.xlu1 %6059 }
0x1cb7   :  { %v6082_v28 = vsub.f32 %v12510_v34, %v6060_v62  ;;  %v5223_v62 = vsel %vm2302_vm11, %v12624_v54, -inf }
0x1cb8   :  { %v12582_v63 = vpop.eup %10575 }
0x1cb9   :  { %5695 = vadd.xlane.f32.xlu0 %v5694_v49  ;;  %v12584_v12 = vpop.eup %10577  ;;  %v12586_v52 = vpop.xlane.xlu0 %6068  ;;  %v5703_v7 = vsel %vm2302_vm11, %v12582_v63, 0.0  ;;  %v5226_v49 = vsel %vm2302_vm11, %v12616_v53, -inf  ;;  %v6090_v23 = vmul.f32 1.442695, %v6082_v28 }
0x1cba   :  { %v12590_v59 = vpop.xlane.xlu1 %6065  ;;  %5704 = vadd.xlane.f32.xlu1 %v5703_v7  ;;  %v5700_v33 = vsel %vm2302_vm11, %v12584_v12, 0.0 }
0x1cbb   :  { %10583 = vpow2.f32 %v6090_v23 }
0x1cbc   :  { %v12594_v9 = vpop.eup %10579 }
0x1cbd   :  { %5701 = vadd.xlane.f32.xlu0 %v5700_v33  ;;  %v12596_v27 = vpop.eup %10581  ;;  %v12602_v21 = vpop.xlane.xlu0 %6074  ;;  %v5709_v32 = vsel %vm2302_vm11, %v12594_v9, 0.0 }
0x1cbe   :  { %v12606_v14 = vpop.xlane.xlu1 %6071  ;;  %5710 = vadd.xlane.f32.xlu1 %v5709_v32  ;;  %v5706_v50 = vsel %vm2302_vm11, %v12596_v27, 0.0 }
0x1cc1   :  { %5707 = vadd.xlane.f32.xlu0 %v5706_v50  ;;  %v12618_v22 = vpop.xlane.xlu0 %6080 }
0x1cc2   :  { %v12627_v41 = vpop.xlane.xlu1 %6077  ;;  %5218 = vmax.xlane.f32.xlu1 %v5217_v38  ;;  %v12647_v38 = vadd.f32 %v12257_v19, %v12484_v17  ;;  %v12655_v19 = vadd.f32 %v12264_v42, %v12498_v51 }
0x1cc5   :  { %5215 = vmax.xlane.f32.xlu0 %v5214_v56  ;;  %v10222_v25 = vpop.permute.xlu0 %10221 }
0x1cc6   :  { %v10217_v34 = vpop.permute.xlu1 %10216  ;;  %5227 = vmax.xlane.f32.xlu1 %v5226_v49  ;;  %v10224_v7 = vunpack.i.h.bf16 %v10222_v25  ;;  %v10223_v33 = vunpack.i.l.bf16 %v10222_v25  ;;  %v5220_v25 = vsel %vm2302_vm11, %v12639_v57, -inf }
0x1cc7   :  { %v10219_v32 = vunpack.i.h.bf16 %v10217_v34  ;;  %v10218_v50 = vunpack.i.l.bf16 %v10217_v34  ;;  %v5229_v34 = vsel %vm2302_vm11, %v12647_v38, -inf }
0x1cc8   :  { %v9664_v30 = vpack.c.bf16 %v10224_v7, %v10223_v33 }
0x1cc9   :  { %5224 = vmax.xlane.f32.xlu0 %v5223_v62  ;;  %v9660_v0 = vpack.c.bf16 %v10219_v32, %v10218_v50  ;;  %v10237_v7 = vpop.permute.xlu0 %10236 }
0x1cca   :  { %v10227_v36 = vpop.permute.xlu1 %10226  ;;  %5233 = vmax.xlane.f32.xlu1 %v5232_v48  ;;  %v10239_v33 = vunpack.i.h.bf16 %v10237_v7  ;;  %v10238_v32 = vunpack.i.l.bf16 %v10237_v7  ;;  %v12659_v48 = vpop.eup %10583 }
0x1ccb   :  { %v10229_v28 = vunpack.i.h.bf16 %v10227_v36  ;;  %v10228_v56 = vunpack.i.l.bf16 %v10227_v36  ;;  %9661 = vmatprep.subr.bf16.mxu1 %v9660_v0  ;;  %v6106_v51 = vsel %vm2302_vm11, %v12659_v48, 0.0  ;;  %v6083_v36 = vsub.f32 %v12507_v43, %v12578_v35 }
0x1ccc   :  { %9663 = vmatpush3.bf16.msra.mxu1 %v9660_v0  ;;  %v5235_v0 = vsel %vm2302_vm11, %v12655_v19, -inf  ;;  %v12661_v42 = vpack.c.bf16 %v10239_v33, %v10238_v32 }
0x1ccd   :  { %5221 = vmax.xlane.f32.xlu0 %v5220_v25  ;;  %9665 = vmatprep.subr.bf16.mxu1 %v9664_v30  ;;  %v9668_v17 = vpack.c.bf16 %v10229_v28, %v10228_v56  ;;  %v6085_v28 = vsub.f32 %v12517_v55, %v12586_v52  ;;  %v6084_v25 = vsub.f32 %v12520_v20, %v12590_v59 }
0x1cce   :  { %v10232_v49 = vpop.permute.xlu1 %10231 }
0x1ccf   :  { %v10234_v23 = vunpack.i.h.bf16 %v10232_v49  ;;  %v10233_v62 = vunpack.i.l.bf16 %v10232_v49  ;;  %v6096_v56 = vmul.f32 1.442695, %v6085_v28 }
0x1cd0   :  { %9667 = vmatpush3.bf16.msra.mxu1 %v9664_v30  ;;  %v6092_v30 = vmul.f32 1.442695, %v6083_v36 }
0x1cd1   :  { %5230 = vmax.xlane.f32.xlu0 %v5229_v34  ;;  %9669 = vmatprep.subr.bf16.mxu1 %v9668_v17  ;;  %v9672_v50 = vpack.c.bf16 %v10234_v23, %v10233_v62  ;;  %v6094_v34 = vmul.f32 1.442695, %v6084_v25 }
0x1cd2   :  { %10585 = vpow2.f32 %v6092_v30 }
0x1cd3   :  { %10587 = vpow2.f32 %v6096_v56 }
0x1cd4   :  { %9671 = vmatpush3.bf16.msra.mxu1 %v9668_v17  ;;  %v6086_v17 = vsub.f32 %v12530_v40, %v12606_v14  ;;  %10589 = vpow2.f32 %v6094_v34  ;;  %v6087_v14 = vsub.f32 %v12527_v26, %v12602_v21 }
0x1cd5   :  { %5236 = vmax.xlane.f32.xlu0 %v5235_v0  ;;  %9673 = vmatprep.subr.bf16.mxu1 %v9672_v50 }
0x1cd6   :  { %v6098_v55 = vmul.f32 1.442695, %v6086_v17  ;;  %v6100_v62 = vmul.f32 1.442695, %v6087_v14 }
0x1cd8   :  { %9675 = vmatpush3.bf16.msra.mxu1 %v9672_v50  ;;  %10591 = vpow2.f32 %v6098_v55 }
0x1cd9   :  { %6107 = vadd.xlane.f32.xlu0 %v6106_v51  ;;  %9701 = vmatprep.subr.bf16.mxu1 %v12661_v42  ;;  %10593 = vpow2.f32 %v6100_v62 }
0x1cdb   :  { %10241 = vrot.lane.b32.xlu1 %v12133_v11, %s10774_s8 }
0x1cdc   :  { %v12676_v49 = vpop.eup %10585 }
0x1cdd   :  { %v6109_v43 = vsel %vm2302_vm11, %v12676_v49, 0.0  ;;  %v12682_v35 = vpop.eup %10587 }
0x1cde   :  { %v6115_v52 = vsel %vm2302_vm11, %v12682_v35, 0.0  ;;  %v12686_v20 = vpop.eup %10589 }
0x1cdf   :  { %v6112_v59 = vsel %vm2302_vm11, %v12686_v20, 0.0 }
0x1ce2   :  { %v12690_v23 = vpop.eup %10591 }
0x1ce3   :  { %v6118_v40 = vsel %vm2302_vm11, %v12690_v23, 0.0  ;;  %v12698_v7 = vpop.eup %10593 }
0x1ce4   :  { %v6121_v33 = vsel %vm2302_vm11, %v12698_v7, 0.0 }
0x1cef   :  { %10246 = vrot.lane.b32.xlu0 %v12145_v8, %s10774_s8 }
0x1cff   :  { %6110 = vadd.xlane.f32.xlu1 %v6109_v43 }
0x1d03   :  { %6116 = vadd.xlane.f32.xlu1 %v6115_v52 }
0x1d0e   :  { %6113 = vadd.xlane.f32.xlu0 %v6112_v59 }
0x1d12   :  { %6119 = vadd.xlane.f32.xlu0 %v6118_v40 }
0x1d14   :  { %10251 = vrot.lane.b32.xlu1 %v12161_v18, %s10774_s8 }
0x1d2e   :  { %v12702_v32 = vpop.xlane.xlu0 %5692 }
0x1d2f   :  { %v12706_v0 = vpop.xlane.xlu1 %5689 }
0x1d38   :  { %6122 = vadd.xlane.f32.xlu1 %v6121_v33 }
0x1d42   :  { %v12704_v50 = vpop.xlane.xlu0 %5698 }
0x1d46   :  { %v12708_v51 = vpop.xlane.xlu0 %5695 }
0x1d47   :  { %v12710_v36 = vpop.xlane.xlu1 %5704 }
0x1d4a   :  { %v12712_v30 = vpop.xlane.xlu0 %5701 }
0x1d4b   :  { %v12714_v26 = vpop.xlane.xlu1 %5710 }
0x1d4e   :  { %v12716_v21 = vpop.xlane.xlu0 %5707 }
0x1d4f   :  { %v5219_v28 = vpop.xlane.xlu1 %5218 }
0x1d50   :  { %v5239_v56 = vsub.f32 %v12600_v46, %v5219_v28  ;;  %v6089_v46 = vsub.f32 %v12537_v45, %v12618_v22 }
0x1d52   :  { %v5216_v25 = vpop.xlane.xlu0 %5215  ;;  %v5248_v34 = vmul.f32 1.442695, %v5239_v56 }
0x1d53   :  { %v5238_v17 = vsub.f32 %v12610_v44, %v5216_v25  ;;  %v5228_v55 = vpop.xlane.xlu1 %5227 }
0x1d54   :  { %10595 = vpow2.f32 %v5248_v34  ;;  %v5242_v40 = vsub.f32 %v12616_v53, %v5228_v55 }
0x1d55   :  { %v5246_v43 = vmul.f32 1.442695, %v5238_v17 }
0x1d56   :  { %v5225_v52 = vpop.xlane.xlu0 %5224  ;;  %v5254_v28 = vmul.f32 1.442695, %v5242_v40 }
0x1d57   :  { %10597 = vpow2.f32 %v5246_v43  ;;  %v5241_v59 = vsub.f32 %v12624_v54, %v5225_v52  ;;  %v5234_v44 = vpop.xlane.xlu1 %5233  ;;  %v6104_v43 = vmul.f32 1.442695, %v6089_v46 }
0x1d59   :  { %v5252_v14 = vmul.f32 1.442695, %v5241_v59 }
0x1d5a   :  { %v5222_v62 = vpop.xlane.xlu0 %5221 }
0x1d5b   :  { %10599 = vpow2.f32 %v5252_v14  ;;  %v5240_v33 = vsub.f32 %v12639_v57, %v5222_v62  ;;  %v5244_v57 = vsub.f32 %v12633_v24, %v5234_v44 }
0x1d5d   :  { %v5250_v56 = vmul.f32 1.442695, %v5240_v33  ;;  %v5258_v59 = vmul.f32 1.442695, %v5244_v57  ;;  %v6088_v57 = vsub.f32 %v12540_v5, %v12627_v41 }
0x1d5e   :  { %v5231_v25 = vpop.xlane.xlu0 %5230  ;;  %v12725_v34 = vpop.eup %10595 }
0x1d5f   :  { %10601 = vpow2.f32 %v5250_v56  ;;  %v5243_v17 = vsub.f32 %v12647_v38, %v5231_v25  ;;  %v5265_v53 = vsel %vm2302_vm11, %v12725_v34, 0.0 }
0x1d60   :  { %10603 = vpow2.f32 %v5254_v28  ;;  %5266 = vadd.xlane.f32.xlu0 %v5265_v53 }
0x1d61   :  { %v12730_v54 = vpop.eup %10597  ;;  %v5256_v55 = vmul.f32 1.442695, %v5243_v17 }
0x1d62   :  { %v5237_v45 = vpop.xlane.xlu0 %5236  ;;  %v5262_v22 = vsel %vm2302_vm11, %v12730_v54, 0.0 }
0x1d63   :  { %10605 = vpow2.f32 %v5256_v55  ;;  %v5245_v52 = vsub.f32 %v12655_v19, %v5237_v45  ;;  %5263 = vadd.xlane.f32.xlu1 %v5262_v22  ;;  %v6102_v55 = vmul.f32 1.442695, %v6088_v57 }
0x1d64   :  { %10607 = vpow2.f32 %v6104_v43 }
0x1d65   :  { %v12736_v38 = vpop.eup %10599  ;;  %v5260_v40 = vmul.f32 1.442695, %v5245_v52 }
0x1d66   :  { %v5271_v14 = vsel %vm2302_vm11, %v12736_v38, 0.0  ;;  %v12778_v52 = vpop.xlane.xlu0 %6107 }
0x1d67   :  { %10609 = vpow2.f32 %v5260_v40  ;;  %5272 = vadd.xlane.f32.xlu0 %v5271_v14 }
0x1d68   :  { %10611 = vpow2.f32 %v5258_v59 }
0x1d69   :  { %v12740_v24 = vpop.eup %10601  ;;  %10613 = vpow2.f32 %v6102_v55 }
0x1d6a   :  { %v5268_v62 = vsel %vm2302_vm11, %v12740_v24, 0.0  ;;  %v12744_v33 = vpop.eup %10603 }
0x1d6b   :  { %5269 = vadd.xlane.f32.xlu1 %v5268_v62  ;;  %v5274_v28 = vsel %vm2302_vm11, %v12744_v33, 0.0 }
0x1d6d   :  { %v12746_v19 = vpop.eup %10605 }
0x1d6e   :  { %v5277_v46 = vsel %vm2302_vm11, %v12746_v19, 0.0  ;;  %v12752_v56 = vpop.eup %10607 }
0x1d6f   :  { %5278 = vadd.xlane.f32.xlu0 %v5277_v46  ;;  %5275 = vadd.xlane.f32.xlu1 %v5274_v28  ;;  %v6127_v17 = vsel %vm2302_vm11, %v12752_v56, 0.0 }
0x1d71   :  { %v12754_v44 = vpop.eup %10609 }
0x1d72   :  { %v5283_v25 = vsel %vm2302_vm11, %v12754_v44, 0.0  ;;  %v12760_v53 = vpop.eup %10611 }
0x1d73   :  { %5284 = vadd.xlane.f32.xlu0 %v5283_v25  ;;  %6128 = vadd.xlane.f32.xlu1 %v6127_v17  ;;  %v5280_v43 = vsel %vm2302_vm11, %v12760_v53, 0.0  ;;  %v12772_v45 = vpop.eup %10613 }
0x1d74   :  { %v6124_v22 = vsel %vm2302_vm11, %v12772_v45, 0.0 }
0x1d77   :  { %5281 = vadd.xlane.f32.xlu0 %v5280_v43 }
0x1d84   :  { %10261 = vrot.lane.b32.xlu1 %v12133_v11, %s10775_s9  ;;  %v10242_v11 = vpop.permute.xlu1 %10241 }
0x1d85   :  { %v10244_v43 = vunpack.i.h.bf16 %v10242_v11  ;;  %v10243_v57 = vunpack.i.l.bf16 %v10242_v11 }
0x1d88   :  { %10271 = vrot.lane.b32.xlu1 %v12161_v18, %s10775_s9 }
0x1d8c   :  { %v12780_v18 = vpop.xlane.xlu1 %6110 }
0x1d8d   :  { %10256 = vrot.lane.b32.xlu0 %v12119_v1, %s10775_s9  ;;  %v10247_v1 = vpop.permute.xlu0 %10246 }
0x1d8e   :  { %v10248_v13 = vunpack.i.l.bf16 %v10247_v1 }
0x1d90   :  { %v12782_v59 = vpop.xlane.xlu1 %6116 }
0x1d94   :  { %v10252_v41 = vpop.permute.xlu1 %10251 }
0x1d9b   :  { %v12784_v5 = vpop.xlane.xlu0 %6113 }
0x1d9f   :  { %v12786_v40 = vpop.xlane.xlu0 %6119 }
0x1dac   :  { %6125 = vadd.xlane.f32.xlu0 %v6124_v22 }
0x1dc2   :  { %10266 = vrot.lane.b32.xlu0 %v12145_v8, %s10775_s9 }
0x1dc5   :  { %v12788_v14 = vpop.xlane.xlu1 %6122 }
0x1ded   :  { %v5267_v62 = vpop.xlane.xlu0 %5266 }
0x1dee   :  { %10615 = vrcp.f32 %v5267_v62  ;;  %v9704_v62 = vpack.c.bf16 %v10244_v43, %v10243_v57 }
0x1df0   :  { %v5264_v46 = vpop.xlane.xlu1 %5263 }
0x1df1   :  { %10617 = vrcp.f32 %v5264_v46  ;;  %v10249_v46 = vunpack.i.h.bf16 %v10247_v1 }
0x1df4   :  { %v5273_v8 = vpop.xlane.xlu0 %5272 }
0x1df5   :  { %10619 = vrcp.f32 %v5273_v8 }
0x1df8   :  { %v5270_v28 = vpop.xlane.xlu1 %5269  ;;  %v10616_v25 = vpop.eup %10615 }
0x1df9   :  { %10621 = vrcp.f32 %v5270_v28  ;;  %v5295_v31 = vmul.f32 %v10616_v25, %v12725_v34  ;;  %v10253_v34 = vunpack.i.l.bf16 %v10252_v41 }
0x1dfb   :  { %v10618_v17 = vpop.eup %10617 }
0x1dfc   :  { %v5279_v55 = vpop.xlane.xlu0 %5278  ;;  %v5276_v22 = vpop.xlane.xlu1 %5275  ;;  %v5294_v10 = vmul.f32 %v10618_v17, %v12730_v54  ;;  %v9708_v54 = vpack.c.bf16 %v10249_v46, %v10248_v13  ;;  %v10254_v17 = vunpack.i.h.bf16 %v10252_v41 }
0x1dfd   :  { %10623 = vrcp.f32 %v5279_v55 }
0x1dfe   :  { %10625 = vrcp.f32 %v5276_v22  ;;  %9058 = vmatprep.mubr.msk.f32.mxu1 %vm2302_vm11, %v5294_v10  ;;  %v9712_v1 = vpack.c.bf16 %v10254_v17, %v10253_v34 }
0x1dff   :  { %9059 = vmatmul.mubr.msk.f32.vlgmr.msra.gmra.mrb[54].mxu1 %vm2302_vm11, %v5295_v31  ;;  %v10620_v11 = vpop.eup %10619  ;;  %10627 = vrcp.f32 %v12706_v0 }
0x1e00   :  { %9703 = vmatpush3.bf16.msra.mxu1 %v12661_v42  ;;  %v5285_v8 = vpop.xlane.xlu0 %5284  ;;  %v5297_v31 = vmul.f32 %v10620_v11, %v12736_v38  ;;  %v12803_v57 = vpop.xlane.xlu1 %6128 }
0x1e01   :  { %9705 = vmatprep.subr.bf16.mxu1 %v9704_v62  ;;  %10629 = vrcp.f32 %v5285_v8 }
0x1e03   :  { %v10622_v28 = vpop.eup %10621 }
0x1e04   :  { %9707 = vmatpush3.bf16.msra.mxu1 %v9704_v62  ;;  %v5282_v25 = vpop.xlane.xlu0 %5281  ;;  %v5296_v10 = vmul.f32 %v10622_v28, %v12740_v24 }
0x1e05   :  { %10631 = vrcp.f32 %v5282_v25  ;;  %9709 = vmatprep.subr.bf16.mxu1 %v9708_v54 }
0x1e06   :  { %9061 = vmatprep.mubr.msk.f32.mxu1 %vm2302_vm11, %v5296_v10  ;;  %10633 = vrcp.f32 %v12702_v32 }
0x1e07   :  { %v10624_v42 = vpop.eup %10623  ;;  %9062 = vmatmul.mubr.msk.f32.gmra.mrb[56].mxu1 %vm2302_vm11, %v5297_v31  ;;  %10635 = vrcp.f32 %v12708_v51 }
0x1e08   :  { %v10626_v43 = vpop.eup %10625  ;;  %9711 = vmatpush3.bf16.msra.mxu1 %v9708_v54  ;;  %v10257_v13 = vpop.permute.xlu0 %10256  ;;  %v5299_v24 = vmul.f32 %v10624_v42, %v12746_v19  ;;  %10637 = vrcp.f32 %v12704_v50 }
0x1e09   :  { %v10259_v0 = vunpack.i.h.bf16 %v10257_v13  ;;  %v10258_v41 = vunpack.i.l.bf16 %v10257_v13  ;;  %9713 = vmatprep.subr.bf16.mxu1 %v9712_v1  ;;  %v5298_v38 = vmul.f32 %v10626_v43, %v12744_v33  ;;  %v10628_v32 = vpop.eup %10627  ;;  %10639 = vrcp.f32 %v12712_v30  ;;  %v10262_v19 = vpop.permute.xlu1 %10261 }
0x1e0a   :  { %10641 = vrcp.f32 %v12710_v36  ;;  %v5720_v46 = vmul.f32 %v10628_v32, %v12560_v2  ;;  %v10264_v8 = vunpack.i.h.bf16 %v10262_v19  ;;  %v10263_v11 = vunpack.i.l.bf16 %v10262_v19 }
0x1e0b   :  { %v9740_v55 = vpack.c.bf16 %v10259_v0, %v10258_v41  ;;  %9064 = vmatprep.mubr.msk.f32.mxu1 %vm2302_vm11, %v5298_v38  ;;  %v10630_v51 = vpop.eup %10629  ;;  %10643 = vrcp.f32 %v12716_v21 }
0x1e0c   :  { %9715 = vmatpush3.bf16.msra.mxu1 %v9712_v1  ;;  %v5301_v50 = vmul.f32 %v10630_v51, %v12754_v44  ;;  %10645 = vrcp.f32 %v12714_v26  ;;  %v9744_v28 = vpack.c.bf16 %v10264_v8, %v10263_v11 }
0x1e0d   :  { %9065 = vmatmul.mubr.msk.f32.gmra.mrb[58].mxu1 %vm2302_vm11, %v5299_v24  ;;  %9741 = vmatprep.subr.bf16.mxu1 %v9740_v55  ;;  %10647 = vrcp.f32 %v12778_v52 }
0x1e0e   :  { %10649 = vrcp.f32 %v12780_v18 }
0x1e0f   :  { %v10632_v22 = vpop.eup %10631  ;;  %10651 = vrcp.f32 %v12784_v5 }
0x1e10   :  { %v5300_v62 = vmul.f32 %v10632_v22, %v12760_v53  ;;  %v10634_v33 = vpop.eup %10633  ;;  %10653 = vrcp.f32 %v12782_v59 }
0x1e11   :  { %v10636_v30 = vpop.eup %10635  ;;  %v5721_v36 = vmul.f32 %v10634_v33, %v12558_v39  ;;  %10655 = vrcp.f32 %v12786_v40 }
0x1e12   :  { %9067 = vmatprep.mubr.msk.f32.mxu1 %vm2302_vm11, %v5300_v62  ;;  %v10638_v21 = vpop.eup %10637  ;;  %v5722_v44 = vmul.f32 %v10636_v30, %v12576_v58  ;;  %10657 = vrcp.f32 %v12788_v14 }
0x1e13   :  { %9068 = vmatmul.mubr.msk.f32.gmra.mrb[60].mxu1 %vm2302_vm11, %v5301_v50  ;;  %v10640_v53 = vpop.eup %10639  ;;  %v5723_v2 = vmul.f32 %v10638_v21, %v12572_v16 }
0x1e14   :  { %9114 = vmatprep.mubr.msk.f32.mxu1 %vm2302_vm11, %v5720_v46  ;;  %v10642_v26 = vpop.eup %10641  ;;  %v5724_v54 = vmul.f32 %v10640_v53, %v12584_v12 }
0x1e15   :  { %v10644_v17 = vpop.eup %10643  ;;  %v5725_v39 = vmul.f32 %v10642_v26, %v12582_v63  ;;  %v10272_v63 = vpop.permute.xlu1 %10271 }
0x1e16   :  { %v10646_v58 = vpop.eup %10645  ;;  %v5726_v52 = vmul.f32 %v10644_v17, %v12596_v27  ;;  %v10274_v10 = vunpack.i.h.bf16 %v10272_v63  ;;  %v10273_v31 = vunpack.i.l.bf16 %v10272_v63 }
0x1e17   :  { %9115 = vmatmul.mubr.msk.f32.vlgmr.msra.gmra.mrb[54].mxu1 %vm2302_vm11, %v5721_v36  ;;  %v10648_v34 = vpop.eup %10647  ;;  %v5727_v16 = vmul.f32 %v10646_v58, %v12594_v9 }
0x1e18   :  { %9743 = vmatpush3.bf16.msra.mxu1 %v9740_v55  ;;  %9117 = vmatprep.mubr.msk.f32.mxu1 %vm2302_vm11, %v5722_v44  ;;  %v6138_v12 = vmul.f32 %v10648_v34, %v12659_v48  ;;  %v9752_v48 = vpack.c.bf16 %v10274_v10, %v10273_v31  ;;  %v10650_v18 = vpop.eup %10649 }
0x1e19   :  { %9745 = vmatprep.subr.bf16.mxu1 %v9744_v28  ;;  %v10652_v43 = vpop.eup %10651  ;;  %v6139_v5 = vmul.f32 %v10650_v18, %v12676_v49 }
0x1e1a   :  { %v10654_v13 = vpop.eup %10653  ;;  %v6140_v59 = vmul.f32 %v10652_v43, %v12686_v20 }
0x1e1b   :  { %9118 = vmatmul.mubr.msk.f32.gmra.mrb[56].mxu1 %vm2302_vm11, %v5723_v2  ;;  %v10656_v0 = vpop.eup %10655  ;;  %v6141_v40 = vmul.f32 %v10654_v13, %v12682_v35 }
0x1e1c   :  { %9747 = vmatpush3.bf16.msra.mxu1 %v9744_v28  ;;  %9120 = vmatprep.mubr.msk.f32.mxu1 %vm2302_vm11, %v5724_v54  ;;  %v10658_v14 = vpop.eup %10657  ;;  %v6142_v41 = vmul.f32 %v10656_v0, %v12690_v23 }
0x1e1d   :  { %v6143_v49 = vmul.f32 %v10658_v14, %v12698_v7 }
0x1e1f   :  { %9121 = vmatmul.mubr.msk.f32.gmra.mrb[58].mxu1 %vm2302_vm11, %v5725_v39 }
0x1e20   :  { %9123 = vmatprep.mubr.msk.f32.mxu1 %vm2302_vm11, %v5726_v52 }
0x1e23   :  { %9124 = vmatmul.mubr.msk.f32.gmra.mrb[60].mxu1 %vm2302_vm11, %v5727_v16 }
0x1e24   :  { %9170 = vmatprep.mubr.msk.f32.mxu1 %vm2302_vm11, %v6138_v12 }
0x1e39   :  { %v6126_v25 = vpop.xlane.xlu0 %6125 }
0x1e3a   :  { %10659 = vrcp.f32 %v6126_v25 }
0x1e3b   :  { %10661 = vrcp.f32 %v12803_v57 }
0x1e3d   :  { %v10267_v27 = vpop.permute.xlu0 %10266 }
0x1e3e   :  { %v10269_v42 = vunpack.i.h.bf16 %v10267_v27  ;;  %v10268_v1 = vunpack.i.l.bf16 %v10267_v27 }
0x1e40   :  { %v9748_v9 = vpack.c.bf16 %v10269_v42, %v10268_v1 }
0x1e42   :  { %9749 = vmatprep.subr.bf16.mxu1 %v9748_v9 }
0x1e43   :  { %9751 = vmatpush3.bf16.msra.mxu1 %v9748_v9 }
0x1e44   :  { %9753 = vmatprep.subr.bf16.mxu1 %v9752_v48  ;;  %v10660_v24 = vpop.eup %10659 }
0x1e45   :  { %v10662_v57 = vpop.eup %10661  ;;  %v6144_v20 = vmul.f32 %v10660_v24, %v12772_v45 }
0x1e46   :  { %v6145_v38 = vmul.f32 %v10662_v57, %v12752_v56 }
0x1e47   :  { %9755 = vmatpush3.bf16.msra.mxu1 %v9752_v48 }
0x1e4a   :  { %9171 = vmatmul.mubr.msk.f32.vlgmr.msra.gmra.mrb[54].mxu1 %vm2302_vm11, %v6139_v5 }
0x1e4b   :  { %9173 = vmatprep.mubr.msk.f32.mxu1 %vm2302_vm11, %v6140_v59 }
0x1e4e   :  { %9174 = vmatmul.mubr.msk.f32.gmra.mrb[56].mxu1 %vm2302_vm11, %v6141_v40 }
0x1e4f   :  { %9176 = vmatprep.mubr.msk.f32.mxu1 %vm2302_vm11, %v6142_v41 }
0x1e52   :  { %9177 = vmatmul.mubr.msk.f32.gmra.mrb[58].mxu1 %vm2302_vm11, %v6143_v49 }
0x1e53   :  { %9179 = vmatprep.mubr.msk.f32.mxu1 %vm2302_vm11, %v6144_v20 }
0x1e56   :  { %9180 = vmatmul.mubr.msk.f32.gmra.mrb[60].mxu1 %vm2302_vm11, %v6145_v38 }
0x1f1d   :  { %v9172_v35 = vpop.f32.mrb[54].mxu1 }
0x1f1e   :  { %v9874_v23 = vadd.f32 %v9172_v35, %v12071_v4  ;;  %v6260_v55 = vpop.f32.mrb[55].mxu1 }
0x1f1f   :  { %v9875_v32 = vadd.f32 %v6260_v55, %v12075_v3  ;;  %v4401_v55 = vld [vmem:[#allocation2 + $0x238] sm:$0xff] }
0x1f20   :  { %v6310_v51 = vsel %vm136_vm1, %v9874_v23, 0.0 }
0x1f21   :  { %6311 = vadd.xlane.f32.xlu0 %v6310_v51  ;;  %v9175_v7 = vpop.f32.mrb[56].mxu1  ;;  %v6307_v45 = vsel %vm136_vm1, %v9875_v32, 0.0  ;;  %v4402_v51 = vld [vmem:[#allocation2 + $0x240] sm:$0xff] }
0x1f22   :  { %v9876_v22 = vadd.f32 %v9175_v7, %v12084_v61  ;;  %6308 = vadd.xlane.f32.xlu1 %v6307_v45  ;;  %v6270_v19 = vpop.f32.mrb[57].mxu1  ;;  %v4403_v7 = vld [vmem:[#allocation2 + $0x248] sm:$0xff] }
0x1f23   :  { %v9877_v56 = vadd.f32 %v6270_v19, %v12089_v29  ;;  %v9760_v45 = vpack.c.bf16 %v4403_v7, %v4402_v51  ;;  %v4405_v51 = vld [vmem:[#allocation2 + $0x258] sm:$0xff] }
0x1f24   :  { %v6316_v62 = vsel %vm136_vm1, %v9876_v22, 0.0 }
0x1f25   :  { %v9178_v50 = vpop.f32.mrb[58].mxu1  ;;  %v6313_v8 = vsel %vm136_vm1, %v9877_v56, 0.0 }
0x1f26   :  { %v9878_v4 = vadd.f32 %v9178_v50, %v12095_v60  ;;  %6317 = vadd.xlane.f32.xlu1 %v6316_v62  ;;  %v6280_v33 = vpop.f32.mrb[59].mxu1 }
0x1f27   :  { %v9879_v3 = vadd.f32 %v6280_v33, %v12099_v15 }
0x1f28   :  { %v6322_v46 = vsel %vm136_vm1, %v9878_v4, 0.0 }
0x1f29   :  { %6323 = vadd.xlane.f32.xlu0 %v6322_v46  ;;  %v9181_v30 = vpop.f32.mrb[60].mxu1  ;;  %v6319_v60 = vsel %vm136_vm1, %v9879_v3, 0.0 }
0x1f2a   :  { %v9880_v61 = vadd.f32 %v9181_v30, %v12107_v6  ;;  %6314 = vadd.xlane.f32.xlu1 %v6313_v8  ;;  %v6290_v11 = vpop.f32.mrb[61].mxu1 }
0x1f2b   :  { %v9881_v29 = vadd.f32 %v6290_v11, %v12111_v47 }
0x1f2c   :  { %v6328_v36 = vsel %vm136_vm1, %v9880_v61, 0.0 }
0x1f2d   :  { %6329 = vadd.xlane.f32.xlu0 %v6328_v36  ;;  %v6325_v15 = vsel %vm136_vm1, %v9881_v29, 0.0 }
0x1f2e   :  { %6320 = vadd.xlane.f32.xlu1 %v6319_v60 }
0x1f32   :  { %6326 = vadd.xlane.f32.xlu1 %v6325_v15 }
0x1fae   :  { %v6312_v21 = vpop.xlane.xlu0 %6311 }
0x1faf   :  { %v6332_v44 = vmul.f32 0.03125, %v6312_v21  ;;  %v6309_v53 = vpop.xlane.xlu1 %6308  ;;  %v12912_v21 = vld [vmem:[#allocation2 + $0x290] sm:$0x7f] }
0x1fb0   :  { %v6331_v28 = vmul.f32 0.03125, %v6309_v53 }
0x1fb1   :  { %v12872_v2 = vsub.f32 %v9874_v23, %v6332_v44  ;;  %v4400_v23 = vld [vmem:[#allocation2 + $0x230] sm:$0xff]  ;;  %v6414_v44 = vrot.slane %v12912_v21, %v13127_v37 }
0x1fb2   :  { %v12874_v6 = vsub.f32 %v9875_v32, %v6331_v28  ;;  %v9756_v32 = vpack.c.bf16 %v4401_v55, %v4400_v23 }
0x1fb3   :  { %v6318_v26 = vpop.xlane.xlu1 %6317  ;;  %v6348_v47 = vmul.f32 %v12872_v2, %v12872_v2 }
0x1fb4   :  { %v6334_v54 = vmul.f32 0.03125, %v6318_v26  ;;  %v6347_v17 = vmul.f32 %v12874_v6, %v12874_v6  ;;  %9757 = vmatprep.subr.bf16.mxu0 %v9756_v32 }
0x1fb5   :  { %v6358_v39 = vsel %vm136_vm1, %v6348_v47, 0.0  ;;  %9759 = vmatpush3.bf16.msra.mxu0 %v9756_v32 }
0x1fb6   :  { %v12881_v58 = vsub.f32 %v9876_v22, %v6334_v54  ;;  %v6324_v52 = vpop.xlane.xlu0 %6323  ;;  %6359 = vadd.xlane.f32.xlu0 %v6358_v39  ;;  %v6355_v34 = vsel %vm136_vm1, %v6347_v17, 0.0  ;;  %9761 = vmatprep.subr.bf16.mxu0 %v9760_v45 }
0x1fb7   :  { %v6336_v16 = vmul.f32 0.03125, %v6324_v52  ;;  %v6315_v12 = vpop.xlane.xlu1 %6314  ;;  %6356 = vadd.xlane.f32.xlu1 %v6355_v34  ;;  %v13132_v52 = vld [vmem:[#allocation8_spill] sm:$0xff] }
0x1fb8   :  { %v6333_v25 = vmul.f32 0.03125, %v6315_v12  ;;  %v6350_v63 = vmul.f32 %v12881_v58, %v12881_v58  ;;  %v6426_v34 = vrot.slane %v12912_v21, %v13132_v52 }
0x1fb9   :  { %v12886_v27 = vsub.f32 %v9878_v4, %v6336_v16  ;;  %9763 = vmatpush3.bf16.msra.mxu0 %v9760_v45  ;;  %v4406_v45 = vld [vmem:[#allocation2 + $0x260] sm:$0xff] }
0x1fba   :  { %v12888_v10 = vsub.f32 %v9877_v56, %v6333_v25  ;;  %v6330_v31 = vpop.xlane.xlu0 %6329  ;;  %v6364_v42 = vsel %vm136_vm1, %v6350_v63, 0.0 }
0x1fbb   :  { %v6338_v1 = vmul.f32 0.03125, %v6330_v31  ;;  %v6321_v9 = vpop.xlane.xlu1 %6320  ;;  %6365 = vadd.xlane.f32.xlu0 %v6364_v42  ;;  %v6352_v48 = vmul.f32 %v12886_v27, %v12886_v27 }
0x1fbc   :  { %v6335_v18 = vmul.f32 0.03125, %v6321_v9  ;;  %v6349_v43 = vmul.f32 %v12888_v10, %v12888_v10 }
0x1fbd   :  { %v12895_v5 = vsub.f32 %v9880_v61, %v6338_v1  ;;  %v6370_v13 = vsel %vm136_vm1, %v6352_v48, 0.0 }
0x1fbe   :  { %v12898_v59 = vsub.f32 %v9879_v3, %v6335_v18  ;;  %v6361_v0 = vsel %vm136_vm1, %v6349_v43, 0.0 }
0x1fbf   :  { %6371 = vadd.xlane.f32.xlu0 %v6370_v13  ;;  %6362 = vadd.xlane.f32.xlu1 %v6361_v0  ;;  %v6327_v40 = vpop.xlane.xlu1 %6326  ;;  %v6354_v14 = vmul.f32 %v12895_v5, %v12895_v5 }
0x1fc0   :  { %v6337_v41 = vmul.f32 0.03125, %v6327_v40  ;;  %v6351_v24 = vmul.f32 %v12898_v59, %v12898_v59 }
0x1fc1   :  { %v6376_v49 = vsel %vm136_vm1, %v6354_v14, 0.0 }
0x1fc2   :  { %v12906_v57 = vsub.f32 %v9881_v29, %v6337_v41  ;;  %v6367_v20 = vsel %vm136_vm1, %v6351_v24, 0.0 }
0x1fc3   :  { %6377 = vadd.xlane.f32.xlu0 %v6376_v49  ;;  %6368 = vadd.xlane.f32.xlu1 %v6367_v20 }
0x1fc4   :  { %v6353_v38 = vmul.f32 %v12906_v57, %v12906_v57 }
0x1fc6   :  { %v6373_v35 = vsel %vm136_vm1, %v6353_v38, 0.0 }
0x1fc7   :  { %6374 = vadd.xlane.f32.xlu1 %v6373_v35 }
0x2043   :  { %v6360_v22 = vpop.xlane.xlu0 %6359 }
0x2044   :  { %v6380_v19 = vmul.f32 0.03125, %v6360_v22  ;;  %v6357_v56 = vpop.xlane.xlu1 %6356  ;;  %v4407_v22 = vld [vmem:[#allocation2 + $0x268] sm:$0xff] }
0x2045   :  { %v6379_v62 = vmul.f32 0.03125, %v6357_v56  ;;  %v4408_v56 = vld [vmem:[#allocation2 + $0x270] sm:$0xff] }
0x2046   :  { %v6388_v50 = vadd.f32 1e-06, %v6380_v19  ;;  %v9768_v19 = vpack.c.bf16 %v4407_v22, %v4406_v45 }
0x2047   :  { %v6387_v4 = vadd.f32 1e-06, %v6379_v62  ;;  %v4409_v62 = vld [vmem:[#allocation2 + $0x278] sm:$0xff] }
0x2048   :  { %10663 = vrsqrt.f32 %v6388_v50  ;;  %v6366_v33 = vpop.xlane.xlu0 %6365  ;;  %v9772_v50 = vpack.c.bf16 %v4409_v62, %v4408_v56 }
0x2049   :  { %10665 = vrsqrt.f32 %v6387_v4  ;;  %v6382_v3 = vmul.f32 0.03125, %v6366_v33  ;;  %v4410_v4 = vld [vmem:[#allocation2 + $0x280] sm:$0xff]  ;;  %v4411_v33 = vld [vmem:[#allocation2 + $0x288] sm:$0xff] }
0x204b   :  { %v6390_v46 = vadd.f32 1e-06, %v6382_v3  ;;  %v9776_v3 = vpack.c.bf16 %v4411_v33, %v4410_v4 }
0x204c   :  { %v6372_v30 = vpop.xlane.xlu0 %6371  ;;  %v6363_v8 = vpop.xlane.xlu1 %6362 }
0x204d   :  { %10667 = vrsqrt.f32 %v6390_v46  ;;  %v6384_v61 = vmul.f32 0.03125, %v6372_v30  ;;  %v6381_v11 = vmul.f32 0.03125, %v6363_v8  ;;  %v13133_v46 = vld [vmem:[#allocation5_spill] sm:$0xff] }
0x204e   :  { %v13134_v30 = vsub.s32 3, %v13133_v46 }
0x204f   :  { %v6392_v29 = vadd.f32 1e-06, %v6384_v61  ;;  %v6389_v36 = vadd.f32 1e-06, %v6381_v11 }
0x2050   :  { %v6378_v60 = vpop.xlane.xlu0 %6377  ;;  %v6369_v15 = vpop.xlane.xlu1 %6368  ;;  %v6438_v8 = vrot.slane %v12912_v21, %v13134_v30 }
0x2051   :  { %10669 = vrsqrt.f32 %v6392_v29  ;;  %v6386_v53 = vmul.f32 0.03125, %v6378_v60  ;;  %v6383_v28 = vmul.f32 0.03125, %v6369_v15 }
0x2052   :  { %v10664_v26 = vpop.eup %10663  ;;  %10671 = vrsqrt.f32 %v6389_v36 }
0x2053   :  { %v10666_v47 = vpop.eup %10665  ;;  %v6404_v54 = vmul.f32 %v10664_v26, %v12872_v2  ;;  %v6394_v17 = vadd.f32 1e-06, %v6386_v53  ;;  %v6391_v39 = vadd.f32 1e-06, %v6383_v28 }
0x2054   :  { %v6375_v16 = vpop.xlane.xlu1 %6374  ;;  %v6403_v12 = vmul.f32 %v10666_v47, %v12874_v6 }
0x2055   :  { %v6416_v25 = vmul.f32 %v6414_v44, %v6404_v54  ;;  %10673 = vrsqrt.f32 %v6394_v17  ;;  %v6385_v63 = vmul.f32 0.03125, %v6375_v16 }
0x2056   :  { %10675 = vrsqrt.f32 %v6391_v39  ;;  %v6415_v37 = vmul.f32 %v6414_v44, %v6403_v12 }
0x2057   :  { %v10668_v31 = vpop.eup %10667  ;;  %v6393_v42 = vadd.f32 1e-06, %v6385_v63  ;;  %v12922_v9 = vadd.f32 %v6426_v34, %v6416_v25 }
0x2058   :  { %v12920_v1 = vadd.f32 %v6426_v34, %v6415_v37  ;;  %v6406_v2 = vmul.f32 %v10668_v31, %v12881_v58 }
0x2059   :  { %10677 = vrsqrt.f32 %v6393_v42 }
0x205a   :  { %9190 = vmatprep.mubr.msk.f32.mxu0 %vm136_vm1, %v12920_v1  ;;  %v6418_v43 = vmul.f32 %v6414_v44, %v6406_v2 }
0x205b   :  { %v10670_v48 = vpop.eup %10669  ;;  %9191 = vmatmul.mubr.msk.f32.vlgmr.msra.gmra.mrb[106].mxu0 %vm136_vm1, %v12922_v9 }
0x205c   :  { %v10672_v6 = vpop.eup %10671  ;;  %v6408_v13 = vmul.f32 %v10670_v48, %v12886_v27  ;;  %v12934_v49 = vadd.f32 %v6426_v34, %v6418_v43 }
0x205d   :  { %v6405_v18 = vmul.f32 %v10672_v6, %v12888_v10 }
0x205e   :  { %v6420_v58 = vmul.f32 %v6414_v44, %v6408_v13 }
0x205f   :  { %v10674_v0 = vpop.eup %10673  ;;  %v6417_v40 = vmul.f32 %v6414_v44, %v6405_v18 }
0x2060   :  { %v10676_v14 = vpop.eup %10675  ;;  %v6410_v20 = vmul.f32 %v10674_v0, %v12895_v5  ;;  %v12944_v23 = vadd.f32 %v6426_v34, %v6420_v58 }
0x2061   :  { %v12931_v41 = vadd.f32 %v6426_v34, %v6417_v40  ;;  %v6407_v24 = vmul.f32 %v10676_v14, %v12898_v59 }
0x2062   :  { %v6422_v55 = vmul.f32 %v6414_v44, %v6410_v20 }
0x2063   :  { %v10678_v38 = vpop.eup %10677  ;;  %9193 = vmatprep.mubr.msk.f32.mxu0 %vm136_vm1, %v12931_v41  ;;  %v6419_v10 = vmul.f32 %v6414_v44, %v6407_v24 }
0x2064   :  { %9194 = vmatmul.mubr.msk.f32.gmra.mrb[108].mxu0 %vm136_vm1, %v12934_v49  ;;  %v6409_v27 = vmul.f32 %v10678_v38, %v12906_v57  ;;  %v12954_v32 = vadd.f32 %v6426_v34, %v6422_v55  ;;  %v4404_v57 = vld [vmem:[#allocation2 + $0x250] sm:$0xff] }
0x2065   :  { %v12942_v35 = vadd.f32 %v6426_v34, %v6419_v10  ;;  %v9764_v7 = vpack.c.bf16 %v4405_v51, %v4404_v57 }
0x2066   :  { %v6421_v59 = vmul.f32 %v6414_v44, %v6409_v27 }
0x2067   :  { %9196 = vmatprep.mubr.msk.f32.mxu0 %vm136_vm1, %v12942_v35  ;;  %9765 = vmatprep.subr.bf16.mxu1 %v9764_v7 }
0x2068   :  { %9197 = vmatmul.mubr.msk.f32.gmra.mrb[110].mxu0 %vm136_vm1, %v12944_v23  ;;  %v12950_v5 = vadd.f32 %v6426_v34, %v6421_v59  ;;  %9767 = vmatpush3.bf16.msra.mxu1 %v9764_v7 }
0x2069   :  { %9769 = vmatprep.subr.bf16.mxu1 %v9768_v19 }
0x206a   :  { %9199 = vmatprep.mubr.msk.f32.mxu0 %vm136_vm1, %v12950_v5 }
0x206c   :  { %9200 = vmatmul.mubr.msk.f32.gmra.mrb[112].mxu0 %vm136_vm1, %v12954_v32  ;;  %9771 = vmatpush3.bf16.msra.mxu1 %v9768_v19 }
0x206d   :  { %9773 = vmatprep.subr.bf16.mxu1 %v9772_v50 }
0x2070   :  { %9775 = vmatpush3.bf16.msra.mxu1 %v9772_v50 }
0x2071   :  { %9777 = vmatprep.subr.bf16.mxu1 %v9776_v3 }
0x2074   :  { %9779 = vmatpush3.bf16.msra.mxu1 %v9776_v3 }
0x212e   :  { %v9192_v61 = vpop.f32.mrb[106].mxu0 }
0x212f   :  { %v6535_v11 = vadd.f32 %v9192_v61, %v6438_v8  ;;  %v6529_v29 = vpop.f32.mrb[107].mxu0 }
0x2130   :  { %v6530_v36 = vadd.f32 %v6529_v29, %v6438_v8 }
0x2131   :  { %v6577_v60 = vmul.f32 0.044715, %v6535_v11 }
0x2132   :  { %v6576_v15 = vmul.f32 0.044715, %v6530_v36  ;;  %v6568_v61 = vmul.f32 0.5, %v6530_v36 }
0x2133   :  { %v6585_v44 = vmul.f32 %v6577_v60, %v6535_v11 }
0x2134   :  { %v6584_v53 = vmul.f32 %v6576_v15, %v6530_v36  ;;  %v6569_v15 = vmul.f32 0.5, %v6535_v11 }
0x2135   :  { %v6593_v28 = vmul.f32 %v6585_v44, %v6535_v11 }
0x2136   :  { %v6592_v26 = vmul.f32 %v6584_v53, %v6530_v36 }
0x2137   :  { %v6601_v47 = vadd.f32 %v6593_v28, %v6535_v11  ;;  %v9195_v54 = vpop.f32.mrb[108].mxu0 }
0x2138   :  { %v6600_v17 = vadd.f32 %v6592_v26, %v6530_v36  ;;  %v12961_v39 = vadd.f32 %v9195_v54, %v6438_v8  ;;  %v6539_v52 = vpop.f32.mrb[109].mxu0 }
0x2139   :  { %v6609_v34 = vmul.f32 0.7978846, %v6601_v47  ;;  %v6540_v16 = vadd.f32 %v6539_v52, %v6438_v8 }
0x213a   :  { %v6579_v12 = vmul.f32 0.044715, %v12961_v39  ;;  %v6608_v25 = vmul.f32 0.7978846, %v6600_v17 }
0x213b   :  { %10679 = vtanh.f32 %v6609_v34  ;;  %v6578_v63 = vmul.f32 0.044715, %v6540_v16  ;;  %v9198_v37 = vpop.f32.mrb[110].mxu0  ;;  %v6570_v34 = vmul.f32 0.5, %v6540_v16 }
0x213c   :  { %v6587_v31 = vmul.f32 %v6579_v12, %v12961_v39  ;;  %v12965_v42 = vadd.f32 %v9198_v37, %v6438_v8  ;;  %v6549_v2 = vpop.f32.mrb[111].mxu0  ;;  %10681 = vtanh.f32 %v6608_v25  ;;  %v6571_v12 = vmul.f32 0.5, %v12961_v39 }
0x213d   :  { %v6586_v48 = vmul.f32 %v6578_v63, %v6540_v16  ;;  %v6550_v6 = vadd.f32 %v6549_v2, %v6438_v8 }
0x213e   :  { %v6595_v18 = vmul.f32 %v6587_v31, %v12961_v39  ;;  %v6581_v43 = vmul.f32 0.044715, %v12965_v42 }
0x213f   :  { %v6594_v13 = vmul.f32 %v6586_v48, %v6540_v16  ;;  %v6580_v0 = vmul.f32 0.044715, %v6550_v6  ;;  %v9201_v40 = vpop.f32.mrb[112].mxu0  ;;  %v6572_v48 = vmul.f32 0.5, %v6550_v6 }
0x2140   :  { %v6603_v14 = vadd.f32 %v6595_v18, %v12961_v39  ;;  %v6589_v24 = vmul.f32 %v6581_v43, %v12965_v42  ;;  %v12971_v58 = vadd.f32 %v9201_v40, %v6438_v8  ;;  %v6559_v20 = vpop.f32.mrb[113].mxu0  ;;  %v6573_v43 = vmul.f32 0.5, %v12965_v42 }
0x2141   :  { %v6602_v38 = vadd.f32 %v6594_v13, %v6540_v16  ;;  %v6588_v10 = vmul.f32 %v6580_v0, %v6550_v6  ;;  %v6560_v27 = vadd.f32 %v6559_v20, %v6438_v8 }
0x2142   :  { %v6597_v59 = vmul.f32 %v6589_v24, %v12965_v42  ;;  %v6583_v55 = vmul.f32 0.044715, %v12971_v58  ;;  %v6611_v57 = vmul.f32 0.7978846, %v6603_v14  ;;  %v6575_v20 = vmul.f32 0.5, %v12971_v58 }
0x2143   :  { %v6596_v51 = vmul.f32 %v6588_v10, %v6550_v6  ;;  %v6582_v7 = vmul.f32 0.044715, %v6560_v27  ;;  %v6610_v45 = vmul.f32 0.7978846, %v6602_v38  ;;  %v6574_v39 = vmul.f32 0.5, %v6560_v27 }
0x2144   :  { %v6605_v22 = vadd.f32 %v6597_v59, %v12965_v42  ;;  %v6591_v19 = vmul.f32 %v6583_v55, %v12971_v58  ;;  %10683 = vtanh.f32 %v6611_v57  ;;  %v13135_v42 = vsub.s32 4, %v13133_v46 }
0x2145   :  { %v10680_v56 = vpop.eup %10679  ;;  %v6604_v62 = vadd.f32 %v6596_v51, %v6550_v6  ;;  %v6590_v50 = vmul.f32 %v6582_v7, %v6560_v27  ;;  %10685 = vtanh.f32 %v6610_v45 }
0x2146   :  { %v10682_v4 = vpop.eup %10681  ;;  %v6625_v33 = vadd.f32 1.0, %v10680_v56  ;;  %v6599_v3 = vmul.f32 %v6591_v19, %v12971_v58  ;;  %v6613_v30 = vmul.f32 0.7978846, %v6605_v22  ;;  %v6643_v10 = vrot.slane %v12912_v21, %v13135_v42 }
0x2147   :  { %v6598_v8 = vmul.f32 %v6590_v50, %v6560_v27  ;;  %v6624_v29 = vadd.f32 1.0, %v10682_v4  ;;  %v6612_v60 = vmul.f32 0.7978846, %v6604_v62 }
0x2148   :  { %v6607_v44 = vadd.f32 %v6599_v3, %v12971_v58  ;;  %10687 = vtanh.f32 %v6613_v30  ;;  %v6633_v26 = vmul.f32 %v6625_v33, %v6569_v15 }
0x2149   :  { %v6606_v53 = vadd.f32 %v6598_v8, %v6560_v27  ;;  %v6632_v28 = vmul.f32 %v6624_v29, %v6568_v61  ;;  %10689 = vtanh.f32 %v6612_v60 }
0x214a   :  { %v6615_v47 = vmul.f32 0.7978846, %v6607_v44 }
0x214b   :  { %9218 = vmatprep.mubr.msk.f32.mxu1 %vm2302_vm11, %v6632_v28  ;;  %v6614_v54 = vmul.f32 0.7978846, %v6606_v53 }
0x214c   :  { %9219 = vmatmul.mubr.msk.f32.vlgmr.msra.gmra.mrb[70].mxu1 %vm2302_vm11, %v6633_v26  ;;  %10691 = vtanh.f32 %v6615_v47 }
0x214d   :  { %10693 = vtanh.f32 %v6614_v54 }
0x214e   :  { %v10684_v17 = vpop.eup %10683 }
0x214f   :  { %v10686_v36 = vpop.eup %10685  ;;  %v6627_v52 = vadd.f32 1.0, %v10684_v17 }
0x2150   :  { %v6626_v11 = vadd.f32 1.0, %v10686_v36 }
0x2151   :  { %v6635_v31 = vmul.f32 %v6627_v52, %v6571_v12 }
0x2152   :  { %v10688_v25 = vpop.eup %10687  ;;  %v6634_v63 = vmul.f32 %v6626_v11, %v6570_v34 }
0x2153   :  { %v10690_v37 = vpop.eup %10689  ;;  %v6629_v2 = vadd.f32 1.0, %v10688_v25 }
0x2154   :  { %9221 = vmatprep.mubr.msk.f32.mxu1 %vm2302_vm11, %v6634_v63  ;;  %v6628_v18 = vadd.f32 1.0, %v10690_v37 }
0x2155   :  { %9222 = vmatmul.mubr.msk.f32.gmra.mrb[72].mxu1 %vm2302_vm11, %v6635_v31  ;;  %v6637_v16 = vmul.f32 %v6629_v2, %v6573_v43 }
0x2156   :  { %v10692_v13 = vpop.eup %10691  ;;  %v6636_v0 = vmul.f32 %v6628_v18, %v6572_v48 }
0x2157   :  { %v10694_v40 = vpop.eup %10693  ;;  %v6631_v14 = vadd.f32 1.0, %v10692_v13 }
0x2158   :  { %9224 = vmatprep.mubr.msk.f32.mxu1 %vm2302_vm11, %v6636_v0  ;;  %v6630_v24 = vadd.f32 1.0, %v10694_v40 }
0x2159   :  { %9225 = vmatmul.mubr.msk.f32.gmra.mrb[74].mxu1 %vm2302_vm11, %v6637_v16  ;;  %v6639_v6 = vmul.f32 %v6631_v14, %v6575_v20 }
0x215a   :  { %v6638_v38 = vmul.f32 %v6630_v24, %v6574_v39 }
0x215c   :  { %9227 = vmatprep.mubr.msk.f32.mxu1 %vm2302_vm11, %v6638_v38 }
0x215d   :  { %9228 = vmatmul.mubr.msk.f32.gmra.mrb[76].mxu1 %vm2302_vm11, %v6639_v6 }
0x221f   :  { %v9220_v59 = vpop.f32.mrb[70].mxu1 }
0x2220   :  { %v6740_v55 = vadd.f32 %v9220_v59, %v6643_v10  ;;  %v6734_v57 = vpop.f32.mrb[71].mxu1 }
0x2221   :  { %v6735_v51 = vadd.f32 %v6734_v57, %v6643_v10 }
0x2222   :  { %v6774_v27 = vadd.f32 %v6740_v55, %v12922_v9 }
0x2223   :  { %v6773_v7 = vadd.f32 %v6735_v51, %v12920_v1 }
0x2224   :  { %v6784_v58 = vsel %vm136_vm1, %v6774_v27, 0.0 }
0x2225   :  { %6785 = vadd.xlane.f32.xlu0 %v6784_v58  ;;  %v6781_v45 = vsel %vm136_vm1, %v6773_v7, 0.0 }
0x2226   :  { %6782 = vadd.xlane.f32.xlu1 %v6781_v45 }
0x2228   :  { %v9223_v22 = vpop.f32.mrb[72].mxu1 }
0x2229   :  { %v6750_v19 = vadd.f32 %v9223_v22, %v6643_v10  ;;  %v6744_v56 = vpop.f32.mrb[73].mxu1 }
0x222a   :  { %v6745_v62 = vadd.f32 %v6744_v56, %v6643_v10  ;;  %v6909_v56 = vld [vmem:[#allocation2 + $0x318] sm:$0xff] }
0x222b   :  { %v6776_v50 = vadd.f32 %v6750_v19, %v12934_v49 }
0x222c   :  { %v6775_v4 = vadd.f32 %v6745_v62, %v12931_v41  ;;  %v9226_v33 = vpop.f32.mrb[74].mxu1  ;;  %v6910_v62 = vld [vmem:[#allocation2 + $0x320] sm:$0xff] }
0x222d   :  { %v6760_v3 = vadd.f32 %v9226_v33, %v6643_v10  ;;  %v6754_v30 = vpop.f32.mrb[75].mxu1  ;;  %v6790_v9 = vsel %vm136_vm1, %v6776_v50, 0.0  ;;  %v6912_v33 = vld [vmem:[#allocation2 + $0x330] sm:$0xff] }
0x222e   :  { %v6755_v1 = vadd.f32 %v6754_v30, %v6643_v10  ;;  %6791 = vadd.xlane.f32.xlu0 %v6790_v9  ;;  %v6787_v8 = vsel %vm136_vm1, %v6775_v4, 0.0 }
0x222f   :  { %v6778_v61 = vadd.f32 %v6760_v3, %v12944_v23  ;;  %6788 = vadd.xlane.f32.xlu1 %v6787_v8 }
0x2230   :  { %v6777_v29 = vadd.f32 %v6755_v1, %v12942_v35  ;;  %v9229_v60 = vpop.f32.mrb[76].mxu1 }
0x2231   :  { %v6770_v15 = vadd.f32 %v9229_v60, %v6643_v10  ;;  %v6764_v44 = vpop.f32.mrb[77].mxu1  ;;  %v6796_v49 = vsel %vm136_vm1, %v6778_v61, 0.0 }
0x2232   :  { %v6765_v41 = vadd.f32 %v6764_v44, %v6643_v10  ;;  %6797 = vadd.xlane.f32.xlu0 %v6796_v49  ;;  %v6793_v53 = vsel %vm136_vm1, %v6777_v29, 0.0 }
0x2233   :  { %v6780_v28 = vadd.f32 %v6770_v15, %v12954_v32  ;;  %6794 = vadd.xlane.f32.xlu1 %v6793_v53 }
0x2234   :  { %v6779_v26 = vadd.f32 %v6765_v41, %v12950_v5 }
0x2235   :  { %v6802_v47 = vsel %vm136_vm1, %v6780_v28, 0.0 }
0x2236   :  { %6803 = vadd.xlane.f32.xlu0 %v6802_v47  ;;  %v6799_v23 = vsel %vm136_vm1, %v6779_v26, 0.0 }
0x2237   :  { %6800 = vadd.xlane.f32.xlu1 %v6799_v23 }
0x22b2   :  { %v6786_v35 = vpop.xlane.xlu0 %6785 }
0x22b3   :  { %v6806_v54 = vmul.f32 0.03125, %v6786_v35  ;;  %v6783_v17 = vpop.xlane.xlu1 %6782 }
0x22b4   :  { %v6805_v36 = vmul.f32 0.03125, %v6783_v17 }
0x22b5   :  { %v13009_v52 = vsub.f32 %v6774_v27, %v6806_v54 }
0x22b6   :  { %v13011_v34 = vsub.f32 %v6773_v7, %v6805_v36 }
0x22b7   :  { %v6822_v32 = vmul.f32 %v13009_v52, %v13009_v52 }
0x22b8   :  { %v6821_v5 = vmul.f32 %v13011_v34, %v13011_v34 }
0x22b9   :  { %v6832_v11 = vsel %vm136_vm1, %v6822_v32, 0.0 }
0x22ba   :  { %6833 = vadd.xlane.f32.xlu0 %v6832_v11  ;;  %v6829_v12 = vsel %vm136_vm1, %v6821_v5, 0.0  ;;  %v13137_v11 = vsub.s32 6, %v13133_v46 }
0x22bb   :  { %v6792_v25 = vpop.xlane.xlu0 %6791  ;;  %6830 = vadd.xlane.f32.xlu1 %v6829_v12 }
0x22bc   :  { %v6808_v63 = vmul.f32 0.03125, %v6792_v25  ;;  %v6789_v37 = vpop.xlane.xlu1 %6788  ;;  %v6900_v12 = vrot.slane %v12912_v21, %v13137_v11 }
0x22bd   :  { %v6807_v31 = vmul.f32 0.03125, %v6789_v37 }
0x22be   :  { %v13019_v2 = vsub.f32 %v6776_v50, %v6808_v63  ;;  %v9780_v50 = vpack.c.bf16 %v6910_v62, %v6909_v56 }
0x22bf   :  { %v13021_v48 = vsub.f32 %v6775_v4, %v6807_v31  ;;  %v6798_v18 = vpop.xlane.xlu0 %6797  ;;  %v6911_v4 = vld [vmem:[#allocation2 + $0x328] sm:$0xff] }
0x22c0   :  { %v6810_v43 = vmul.f32 0.03125, %v6798_v18  ;;  %v6795_v13 = vpop.xlane.xlu1 %6794  ;;  %v6824_v0 = vmul.f32 %v13019_v2, %v13019_v2  ;;  %9781 = vmatprep.subr.bf16.mxu0 %v9780_v50  ;;  %v9784_v3 = vpack.c.bf16 %v6912_v33, %v6911_v4 }
0x22c1   :  { %v6809_v40 = vmul.f32 0.03125, %v6795_v13  ;;  %v6823_v16 = vmul.f32 %v13021_v48, %v13021_v48  ;;  %9783 = vmatpush3.bf16.msra.mxu0 %v9780_v50 }
0x22c2   :  { %v13027_v14 = vsub.f32 %v6778_v61, %v6810_v43  ;;  %v6838_v39 = vsel %vm136_vm1, %v6824_v0, 0.0  ;;  %9785 = vmatprep.subr.bf16.mxu0 %v9784_v3 }
0x22c3   :  { %v13030_v24 = vsub.f32 %v6777_v29, %v6809_v40  ;;  %6839 = vadd.xlane.f32.xlu0 %v6838_v39  ;;  %v6804_v20 = vpop.xlane.xlu0 %6803  ;;  %v6835_v38 = vsel %vm136_vm1, %v6823_v16, 0.0 }
0x22c4   :  { %v6812_v6 = vmul.f32 0.03125, %v6804_v20  ;;  %6836 = vadd.xlane.f32.xlu1 %v6835_v38  ;;  %v6801_v42 = vpop.xlane.xlu1 %6800  ;;  %v6826_v10 = vmul.f32 %v13027_v14, %v13027_v14 }
0x22c5   :  { %v6811_v59 = vmul.f32 0.03125, %v6801_v42  ;;  %v6825_v55 = vmul.f32 %v13030_v24, %v13030_v24  ;;  %9787 = vmatpush3.bf16.msra.mxu0 %v9784_v3 }
0x22c6   :  { %v13037_v57 = vsub.f32 %v6780_v28, %v6812_v6  ;;  %v6844_v51 = vsel %vm136_vm1, %v6826_v10, 0.0 }
0x22c7   :  { %v13040_v27 = vsub.f32 %v6779_v26, %v6811_v59  ;;  %6845 = vadd.xlane.f32.xlu0 %v6844_v51  ;;  %v6841_v7 = vsel %vm136_vm1, %v6825_v55, 0.0  ;;  %v13136_v26 = vsub.s32 5, %v13133_v46 }
0x22c8   :  { %6842 = vadd.xlane.f32.xlu1 %v6841_v7  ;;  %v6828_v58 = vmul.f32 %v13037_v57, %v13037_v57 }
0x22c9   :  { %v6827_v45 = vmul.f32 %v13040_v27, %v13040_v27  ;;  %v6888_v47 = vrot.slane %v12912_v21, %v13136_v26 }
0x22ca   :  { %v6850_v22 = vsel %vm136_vm1, %v6828_v58, 0.0 }
0x22cb   :  { %6851 = vadd.xlane.f32.xlu0 %v6850_v22  ;;  %v6847_v19 = vsel %vm136_vm1, %v6827_v45, 0.0 }
0x22cc   :  { %6848 = vadd.xlane.f32.xlu1 %v6847_v19 }
0x2347   :  { %v6834_v30 = vpop.xlane.xlu0 %6833 }
0x2348   :  { %v6854_v9 = vmul.f32 0.03125, %v6834_v30  ;;  %v6831_v1 = vpop.xlane.xlu1 %6830 }
0x2349   :  { %v6853_v8 = vmul.f32 0.03125, %v6831_v1 }
0x234a   :  { %v6862_v61 = vadd.f32 1e-06, %v6854_v9 }
0x234b   :  { %v6861_v29 = vadd.f32 1e-06, %v6853_v8 }
0x234c   :  { %10695 = vrsqrt.f32 %v6862_v61 }
0x234d   :  { %10697 = vrsqrt.f32 %v6861_v29 }
0x2350   :  { %v6840_v60 = vpop.xlane.xlu0 %6839 }
0x2351   :  { %v6856_v15 = vmul.f32 0.03125, %v6840_v60  ;;  %v6837_v44 = vpop.xlane.xlu1 %6836 }
0x2352   :  { %v6855_v49 = vmul.f32 0.03125, %v6837_v44  ;;  %v7046_v44 = vld [vmem:[#allocation2 + $0x2b8] sm:$0xff] }
0x2353   :  { %v6864_v41 = vadd.f32 1e-06, %v6856_v15  ;;  %9266 = vmatprep.mubr.msk.f32.mxu1 %vm2302_vm11, %v7046_v44 }
0x2354   :  { %v6863_v53 = vadd.f32 1e-06, %v6855_v49  ;;  %v6846_v28 = vpop.xlane.xlu0 %6845 }
0x2355   :  { %10699 = vrsqrt.f32 %v6864_v41  ;;  %v6858_v23 = vmul.f32 0.03125, %v6846_v28  ;;  %v6843_v35 = vpop.xlane.xlu1 %6842 }
0x2356   :  { %v10696_v54 = vpop.eup %10695  ;;  %10701 = vrsqrt.f32 %v6863_v53  ;;  %v6857_v17 = vmul.f32 0.03125, %v6843_v35 }
0x2357   :  { %v10698_v36 = vpop.eup %10697  ;;  %v6878_v32 = vmul.f32 %v10696_v54, %v13009_v52  ;;  %v6866_v5 = vadd.f32 1e-06, %v6858_v23 }
0x2358   :  { %v6865_v25 = vadd.f32 1e-06, %v6857_v17  ;;  %v6852_v63 = vpop.xlane.xlu0 %6851  ;;  %v6877_v37 = vmul.f32 %v10698_v36, %v13011_v34 }
0x2359   :  { %v6890_v31 = vmul.f32 %v6888_v47, %v6878_v32  ;;  %10703 = vrsqrt.f32 %v6866_v5  ;;  %v6860_v18 = vmul.f32 0.03125, %v6852_v63  ;;  %v6849_v43 = vpop.xlane.xlu1 %6848 }
0x235a   :  { %10705 = vrsqrt.f32 %v6865_v25  ;;  %v6859_v13 = vmul.f32 0.03125, %v6849_v43  ;;  %v6889_v0 = vmul.f32 %v6888_v47, %v6877_v37  ;;  %v7047_v43 = vld [vmem:[#allocation2 + $0x2c0] sm:$0xff] }
0x235b   :  { %v6868_v40 = vadd.f32 1e-06, %v6860_v18  ;;  %v6902_v52 = vadd.f32 %v6900_v12, %v6890_v31 }
0x235c   :  { %v6867_v16 = vadd.f32 1e-06, %v6859_v13  ;;  %v6901_v39 = vadd.f32 %v6900_v12, %v6889_v0  ;;  %v7048_v13 = vld [vmem:[#allocation2 + $0x2c8] sm:$0xff]  ;;  %v7049_v0 = vld [vmem:[#allocation2 + $0x2d0] sm:$0xff] }
0x235d   :  { %10707 = vrsqrt.f32 %v6868_v40  ;;  %v7042_v40 = vld [vmem:[#allocation2 + $0x298] sm:$0xff] }
0x235e   :  { %10709 = vrsqrt.f32 %v6867_v16  ;;  %9238 = vmatprep.mubr.msk.f32.mxu0 %vm136_vm1, %v6901_v39 }
0x235f   :  { %v10700_v21 = vpop.eup %10699  ;;  %9239 = vmatmul.mubr.msk.f32.vlgmr.msra.gmra.mrb[114].mxu0 %vm136_vm1, %v6902_v52 }
0x2360   :  { %v10702_v46 = vpop.eup %10701  ;;  %v6880_v34 = vmul.f32 %v10700_v21, %v13019_v2 }
0x2361   :  { %v6879_v20 = vmul.f32 %v10702_v46, %v13021_v48 }
0x2362   :  { %v6892_v38 = vmul.f32 %v6888_v47, %v6880_v34 }
0x2363   :  { %v10704_v6 = vpop.eup %10703  ;;  %v6891_v42 = vmul.f32 %v6888_v47, %v6879_v20 }
0x2364   :  { %v10706_v10 = vpop.eup %10705  ;;  %v6882_v59 = vmul.f32 %v10704_v6, %v13027_v14  ;;  %v6904_v7 = vadd.f32 %v6900_v12, %v6892_v38  ;;  %v7043_v6 = vld [vmem:[#allocation2 + $0x2a0] sm:$0xff] }
0x2365   :  { %v6903_v55 = vadd.f32 %v6900_v12, %v6891_v42  ;;  %v6881_v51 = vmul.f32 %v10706_v10, %v13030_v24  ;;  %v7044_v42 = vld [vmem:[#allocation2 + $0x2a8] sm:$0xff] }
0x2366   :  { %v6894_v58 = vmul.f32 %v6888_v47, %v6882_v59 }
0x2367   :  { %v10708_v45 = vpop.eup %10707  ;;  %9241 = vmatprep.mubr.msk.f32.mxu0 %vm136_vm1, %v6903_v55  ;;  %v6893_v22 = vmul.f32 %v6888_v47, %v6881_v51 }
0x2368   :  { %v10710_v19 = vpop.eup %10709  ;;  %9242 = vmatmul.mubr.msk.f32.gmra.mrb[116].mxu0 %vm136_vm1, %v6904_v7  ;;  %v6884_v2 = vmul.f32 %v10708_v45, %v13037_v57  ;;  %v6906_v62 = vadd.f32 %v6900_v12, %v6894_v58  ;;  %v7045_v7 = vld [vmem:[#allocation2 + $0x2b0] sm:$0xff]  ;;  %v7050_v58 = vld [vmem:[#allocation2 + $0x2d8] sm:$0xff] }
0x2369   :  { %v6905_v48 = vadd.f32 %v6900_v12, %v6893_v22  ;;  %v6883_v56 = vmul.f32 %v10710_v19, %v13040_v27 }
0x236a   :  { %v6896_v50 = vmul.f32 %v6888_v47, %v6884_v2 }
0x236b   :  { %9244 = vmatprep.mubr.msk.f32.mxu0 %vm136_vm1, %v6905_v48  ;;  %v6895_v14 = vmul.f32 %v6888_v47, %v6883_v56 }
0x236c   :  { %9245 = vmatmul.mubr.msk.f32.gmra.mrb[118].mxu0 %vm136_vm1, %v6906_v62  ;;  %v6908_v4 = vadd.f32 %v6900_v12, %v6896_v50 }
0x236d   :  { %v6907_v24 = vadd.f32 %v6900_v12, %v6895_v14 }
0x236f   :  { %9247 = vmatprep.mubr.msk.f32.mxu0 %vm136_vm1, %v6907_v24 }
0x2370   :  { %9248 = vmatmul.mubr.msk.f32.gmra.mrb[120].mxu0 %vm136_vm1, %v6908_v4 }
0x2432   :  { %v9240_v33 = vpop.f32.mrb[114].mxu0 }
0x2433   :  { %v7003_v3 = vpop.f32.mrb[115].mxu0 }
0x2434   :  { %v10315_v30 = vpack.i.bf16 %v9240_v33, %v7003_v3  ;;  %v9804_v57 = vpack.c.bf16 %v9240_v33, %v7003_v3  ;;  %v7051_v3 = vld [vmem:[#allocation2 + $0x2e0] sm:$0xff] }
0x2436   :  { %10276 = vrot.lane.b32.xlu1 %v10315_v30, %s10776_s10 }
0x243b   :  { %v9243_v27 = vpop.f32.mrb[116].mxu0 }
0x243c   :  { %v7013_v9 = vpop.f32.mrb[117].mxu0 }
0x243d   :  { %v10320_v1 = vpack.i.bf16 %v9243_v27, %v7013_v9  ;;  %v9808_v8 = vpack.c.bf16 %v9243_v27, %v7013_v9 }
0x243f   :  { %10281 = vrot.lane.b32.xlu0 %v10320_v1, %s10776_s10  ;;  %v9246_v61 = vpop.f32.mrb[118].mxu0 }
0x2440   :  { %v7023_v29 = vpop.f32.mrb[119].mxu0 }
0x2441   :  { %v10325_v60 = vpack.i.bf16 %v9246_v61, %v7023_v29  ;;  %v9812_v15 = vpack.c.bf16 %v9246_v61, %v7023_v29  ;;  %v7054_v61 = vld [vmem:[#allocation2 + $0x2f8] sm:$0xff] }
0x2443   :  { %10296 = vrot.lane.b32.xlu0 %v10315_v30, %s10777_s11  ;;  %10286 = vrot.lane.b32.xlu1 %v10325_v60, %s10776_s10  ;;  %v9249_v49 = vpop.f32.mrb[120].mxu0 }
0x2444   :  { %v7033_v41 = vpop.f32.mrb[121].mxu0 }
0x2445   :  { %v10330_v53 = vpack.i.bf16 %v9249_v49, %v7033_v41  ;;  %v9816_v28 = vpack.c.bf16 %v9249_v49, %v7033_v41  ;;  %v7055_v49 = vld [vmem:[#allocation2 + $0x300] sm:$0xff]  ;;  %v7056_v41 = vld [vmem:[#allocation2 + $0x308] sm:$0xff] }
0x2447   :  { %10306 = vrot.lane.b32.xlu0 %v10325_v60, %s10777_s11  ;;  %10291 = vrot.lane.b32.xlu1 %v10330_v53, %s10776_s10 }
0x244b   :  { %10316 = vrot.lane.b32.xlu0 %v10315_v30, %s10778_s12  ;;  %10301 = vrot.lane.b32.xlu1 %v10320_v1, %s10777_s11  ;;  %v7052_v30 = vld [vmem:[#allocation2 + $0x2e8] sm:$0xff] }
0x244f   :  { %10326 = vrot.lane.b32.xlu0 %v10325_v60, %s10778_s12  ;;  %10311 = vrot.lane.b32.xlu1 %v10330_v53, %s10777_s11 }
0x2453   :  { %10321 = vrot.lane.b32.xlu1 %v10320_v1, %s10778_s12 }
0x2457   :  { %10331 = vrot.lane.b32.xlu1 %v10330_v53, %s10778_s12  ;;  %v7057_v53 = vld [vmem:[#allocation2 + $0x310] sm:$0xff] }
0x24a8   :  { %v10277_v26 = vpop.permute.xlu1 %10276 }
0x24a9   :  { %v10279_v47 = vunpack.i.h.bf16 %v10277_v26  ;;  %v10278_v23 = vunpack.i.l.bf16 %v10277_v26 }
0x24ab   :  { %v9788_v35 = vpack.c.bf16 %v10279_v47, %v10278_v23 }
0x24ad   :  { %9789 = vmatprep.subr.bf16.mxu1 %v9788_v35 }
0x24ae   :  { %9791 = vmatpush3.bf16.msra.mxu1 %v9788_v35 }
0x24b1   :  { %v10282_v54 = vpop.permute.xlu0 %10281 }
0x24b2   :  { %v10284_v17 = vunpack.i.h.bf16 %v10282_v54  ;;  %v10283_v36 = vunpack.i.l.bf16 %v10282_v54 }
0x24b4   :  { %v9792_v32 = vpack.c.bf16 %v10284_v17, %v10283_v36 }
0x24b5   :  { %v10287_v5 = vpop.permute.xlu1 %10286  ;;  %v10297_v16 = vpop.permute.xlu0 %10296 }
0x24b6   :  { %v10289_v11 = vunpack.i.h.bf16 %v10287_v5  ;;  %v10288_v12 = vunpack.i.l.bf16 %v10287_v5  ;;  %9793 = vmatprep.subr.bf16.mxu1 %v9792_v32  ;;  %v10299_v39 = vunpack.i.h.bf16 %v10297_v16  ;;  %v10298_v52 = vunpack.i.l.bf16 %v10297_v16 }
0x24b7   :  { %9795 = vmatpush3.bf16.msra.mxu1 %v9792_v32 }
0x24b8   :  { %v9796_v25 = vpack.c.bf16 %v10289_v11, %v10288_v12  ;;  %v9820_v46 = vpack.c.bf16 %v10299_v39, %v10298_v52 }
0x24b9   :  { %v10292_v63 = vpop.permute.xlu1 %10291  ;;  %v10307_v38 = vpop.permute.xlu0 %10306 }
0x24ba   :  { %v10294_v37 = vunpack.i.h.bf16 %v10292_v63  ;;  %v10293_v31 = vunpack.i.l.bf16 %v10292_v63  ;;  %9797 = vmatprep.subr.bf16.mxu1 %v9796_v25  ;;  %v10309_v10 = vunpack.i.h.bf16 %v10307_v38  ;;  %v10308_v59 = vunpack.i.l.bf16 %v10307_v38 }
0x24bb   :  { %9799 = vmatpush3.bf16.msra.mxu1 %v9796_v25 }
0x24bc   :  { %v9800_v18 = vpack.c.bf16 %v10294_v37, %v10293_v31  ;;  %v9828_v45 = vpack.c.bf16 %v10309_v10, %v10308_v59 }
0x24bd   :  { %v10302_v21 = vpop.permute.xlu1 %10301  ;;  %v10317_v2 = vpop.permute.xlu0 %10316 }
0x24be   :  { %9801 = vmatprep.subr.bf16.mxu1 %v9800_v18  ;;  %v10304_v34 = vunpack.i.h.bf16 %v10302_v21  ;;  %v10303_v20 = vunpack.i.l.bf16 %v10302_v21  ;;  %v10319_v48 = vunpack.i.h.bf16 %v10317_v2  ;;  %v10318_v56 = vunpack.i.l.bf16 %v10317_v2 }
0x24bf   :  { %9803 = vmatpush3.bf16.msra.mxu1 %v9800_v18 }
0x24c0   :  { %9805 = vmatprep.subr.bf16.mxu1 %v9804_v57  ;;  %v9824_v55 = vpack.c.bf16 %v10304_v34, %v10303_v20  ;;  %v9836_v14 = vpack.c.bf16 %v10319_v48, %v10318_v56 }
0x24c1   :  { %v10312_v51 = vpop.permute.xlu1 %10311  ;;  %v10327_v33 = vpop.permute.xlu0 %10326 }
0x24c2   :  { %9267 = vmatmul.mubr.msk.f32.vlgmr.msra.gmra.mrb[78].mxu1 %vm2302_vm11, %v7047_v43  ;;  %v10314_v22 = vunpack.i.h.bf16 %v10312_v51  ;;  %v10313_v19 = vunpack.i.l.bf16 %v10312_v51  ;;  %v10328_v27 = vunpack.i.l.bf16 %v10327_v33 }
0x24c3   :  { %9807 = vmatpush3.bf16.msra.mxu1 %v9804_v57  ;;  %9269 = vmatprep.mubr.msk.f32.mxu1 %vm2302_vm11, %v7048_v13  ;;  %v10329_v57 = vunpack.i.h.bf16 %v10327_v33 }
0x24c4   :  { %9809 = vmatprep.subr.bf16.mxu1 %v9808_v8  ;;  %v9832_v62 = vpack.c.bf16 %v10314_v22, %v10313_v19 }
0x24c5   :  { %v10322_v50 = vpop.permute.xlu1 %10321  ;;  %v9844_v29 = vpack.c.bf16 %v10329_v57, %v10328_v27 }
0x24c6   :  { %9270 = vmatmul.mubr.msk.f32.gmra.mrb[80].mxu1 %vm2302_vm11, %v7049_v0  ;;  %v10324_v24 = vunpack.i.h.bf16 %v10322_v50  ;;  %v10323_v4 = vunpack.i.l.bf16 %v10322_v50 }
0x24c7   :  { %9811 = vmatpush3.bf16.msra.mxu1 %v9808_v8  ;;  %9288 = vmatprep.mubr.msk.f32.mxu1 %vm2302_vm11, %v7042_v40  ;;  %v7053_v8 = vld [vmem:[#allocation2 + $0x2f0] sm:$0xff] }
0x24c8   :  { %9813 = vmatprep.subr.bf16.mxu1 %v9812_v15  ;;  %v9840_v9 = vpack.c.bf16 %v10324_v24, %v10323_v4 }
0x24c9   :  { %v10332_v1 = vpop.permute.xlu1 %10331 }
0x24ca   :  { %v10334_v60 = vunpack.i.h.bf16 %v10332_v1 }
0x24cb   :  { %9815 = vmatpush3.bf16.msra.mxu1 %v9812_v15  ;;  %v10333_v15 = vunpack.i.l.bf16 %v10332_v1 }
0x24cc   :  { %9817 = vmatprep.subr.bf16.mxu1 %v9816_v28 }
0x24cd   :  { %v9848_v44 = vpack.c.bf16 %v10334_v60, %v10333_v15 }
0x24cf   :  { %9819 = vmatpush3.bf16.msra.mxu1 %v9816_v28 }
0x24d0   :  { %9821 = vmatprep.subr.bf16.mxu1 %v9820_v46 }
0x24d2   :  { %9289 = vmatmul.mubr.msk.f32.vlgmr.msra.gmra.mrb[78].mxu1 %vm2302_vm11, %v7043_v6 }
0x24d3   :  { %9823 = vmatpush3.bf16.msra.mxu1 %v9820_v46  ;;  %9291 = vmatprep.mubr.msk.f32.mxu1 %vm2302_vm11, %v7044_v42 }
0x24d4   :  { %9825 = vmatprep.subr.bf16.mxu1 %v9824_v55 }
0x24d6   :  { %9292 = vmatmul.mubr.msk.f32.gmra.mrb[80].mxu1 %vm2302_vm11, %v7045_v7 }
0x24d7   :  { %9827 = vmatpush3.bf16.msra.mxu1 %v9824_v55  ;;  %9310 = vmatprep.mubr.msk.f32.mxu1 %vm2302_vm11, %v7050_v58 }
0x24d8   :  { %9829 = vmatprep.subr.bf16.mxu1 %v9828_v45 }
0x24db   :  { %9831 = vmatpush3.bf16.msra.mxu1 %v9828_v45 }
0x24dc   :  { %9833 = vmatprep.subr.bf16.mxu1 %v9832_v62 }
0x24df   :  { %9835 = vmatpush3.bf16.msra.mxu1 %v9832_v62 }
0x24e0   :  { %9837 = vmatprep.subr.bf16.mxu1 %v9836_v14 }
0x24e2   :  { %9311 = vmatmul.mubr.msk.f32.vlgmr.msra.gmra.mrb[78].mxu1 %vm2302_vm11, %v7051_v3 }
0x24e3   :  { %9839 = vmatpush3.bf16.msra.mxu1 %v9836_v14  ;;  %9313 = vmatprep.mubr.msk.f32.mxu1 %vm2302_vm11, %v7052_v30 }
0x24e4   :  { %9841 = vmatprep.subr.bf16.mxu1 %v9840_v9 }
0x24e6   :  { %9314 = vmatmul.mubr.msk.f32.gmra.mrb[80].mxu1 %vm2302_vm11, %v7053_v8 }
0x24e7   :  { %9843 = vmatpush3.bf16.msra.mxu1 %v9840_v9  ;;  %9332 = vmatprep.mubr.msk.f32.mxu1 %vm2302_vm11, %v7054_v61 }
0x24e8   :  { %9845 = vmatprep.subr.bf16.mxu1 %v9844_v29 }
0x24eb   :  { %9847 = vmatpush3.bf16.msra.mxu1 %v9844_v29 }
0x24ec   :  { %9849 = vmatprep.subr.bf16.mxu1 %v9848_v44 }
0x24ef   :  { %9851 = vmatpush3.bf16.msra.mxu1 %v9848_v44 }
0x24f2   :  { %9333 = vmatmul.mubr.msk.f32.vlgmr.msra.gmra.mrb[78].mxu1 %vm2302_vm11, %v7055_v49 }
0x24f3   :  { %9335 = vmatprep.mubr.msk.f32.mxu1 %vm2302_vm11, %v7056_v41 }
0x24f6   :  { %9336 = vmatmul.mubr.msk.f32.gmra.mrb[80].mxu1 %vm2302_vm11, %v7057_v53 }
0x25c5   :  { %v9334_v28 = vpop.f32.mrb[78].mxu1 }
0x25c6   :  { %v7539_v26 = vand.u32 2147483647, %v9334_v28  ;;  %v7511_v47 = vpop.f32.mrb[79].mxu1  ;;  %v7535_v34 = vmax.f32 %v9334_v28, 0.0 }
0x25c7   :  { %v7538_v23 = vand.u32 2147483647, %v7511_v47  ;;  %v7534_v38 = vmax.f32 %v7511_v47, 0.0 }
0x25c8   :  { %v7543_v35 = vsub.f32 0.0, %v7539_v26 }
0x25c9   :  { %v7542_v54 = vsub.f32 0.0, %v7538_v23  ;;  %v9337_v17 = vpop.f32.mrb[80].mxu1 }
0x25ca   :  { %v7548_v36 = vmul.f32 1.442695, %v7543_v35  ;;  %v7541_v32 = vand.u32 2147483647, %v9337_v17  ;;  %v7521_v5 = vpop.f32.mrb[81].mxu1  ;;  %v7537_v51 = vmax.f32 %v9337_v17, 0.0 }
0x25cb   :  { %v7546_v11 = vmul.f32 1.442695, %v7542_v54  ;;  %v7540_v12 = vand.u32 2147483647, %v7521_v5  ;;  %v7536_v58 = vmax.f32 %v7521_v5, 0.0 }
0x25cc   :  { %10711 = vpow2.f32 %v7548_v36  ;;  %v7545_v25 = vsub.f32 0.0, %v7541_v32 }
0x25cd   :  { %10713 = vpow2.f32 %v7546_v11  ;;  %v7544_v63 = vsub.f32 0.0, %v7540_v12 }
0x25ce   :  { %v7552_v37 = vmul.f32 1.442695, %v7545_v25 }
0x25cf   :  { %v7550_v31 = vmul.f32 1.442695, %v7544_v63 }
0x25d0   :  { %10715 = vpow2.f32 %v7552_v37 }
0x25d1   :  { %10717 = vpow2.f32 %v7550_v31 }
0x25d6   :  { %v10712_v18 = vpop.eup %10711 }
0x25d7   :  { %v10714_v43 = vpop.eup %10713  ;;  %v7555_v13 = vadd.f32 1.0, %v10712_v18 }
0x25d8   :  { %v7554_v0 = vadd.f32 1.0, %v10714_v43 }
0x25d9   :  { %10719 = vlog2.f32 %v7555_v13 }
0x25da   :  { %v10716_v40 = vpop.eup %10715  ;;  %10721 = vlog2.f32 %v7554_v0 }
0x25db   :  { %v10718_v16 = vpop.eup %10717  ;;  %v7557_v39 = vadd.f32 1.0, %v10716_v40 }
0x25dc   :  { %v7556_v52 = vadd.f32 1.0, %v10718_v16 }
0x25dd   :  { %10723 = vlog2.f32 %v7557_v39 }
0x25de   :  { %10725 = vlog2.f32 %v7556_v52 }
0x25e3   :  { %v10720_v21 = vpop.eup %10719 }
0x25e4   :  { %v10722_v46 = vpop.eup %10721  ;;  %v7561_v20 = vmul.f32 0.6931472, %v10720_v21 }
0x25e5   :  { %v7559_v6 = vmul.f32 0.6931472, %v10722_v46 }
0x25e6   :  { %v7567_v42 = vadd.f32 %v7561_v20, %v7535_v34 }
0x25e7   :  { %v10724_v10 = vpop.eup %10723  ;;  %v7566_v59 = vadd.f32 %v7559_v6, %v7534_v38 }
0x25e8   :  { %v10726_v55 = vpop.eup %10725  ;;  %7572 = vst.msk [vmem:[%s13105_s2 + $0x8] sm:$0xff] %vm7570_vm12, %v7567_v42  ;;  %v7565_v7 = vmul.f32 0.6931472, %v10724_v10 }
0x25e9   :  { %7571 = vst.msk [vmem:[%s13105_s2] sm:$0xff] %vm7570_vm12, %v7566_v59  ;;  %v7563_v45 = vmul.f32 0.6931472, %v10726_v55 }
0x25ea   :  { %v7569_v22 = vadd.f32 %v7565_v7, %v7537_v51 }
0x25eb   :  { %v7568_v19 = vadd.f32 %v7563_v45, %v7536_v58 }
0x25ec   :  { %7574 = vst.msk [vmem:[%s13105_s2 + $0x18] sm:$0xff] %vm7570_vm12, %v7569_v22 }
0x25ed   :  { %7573 = vst.msk [vmem:[%s13105_s2 + $0x10] sm:$0xff] %vm7570_vm12, %v7568_v19 }
0x25ee   :  { %7579 = vsyncpa [#allocation3], 1 }

</bundles_post_ra>
